<compile_context>
chip_gen: v5e
topology: v5e:2x2
jax: 0.10.0
libtpu: 0.0.40
codegen_flags: <defaults>
</compile_context>

<pallas_src>
import jax
import jax.numpy as jnp
from jax.experimental import pallas as pl
from jax.experimental.pallas import tpu as pltpu

B = 2            # batch
H = W = 10      # spatial size (free in the module; chosen small)
P = H + 2        # padded spatial = 12
NP = P * P       # 144 flattened padded positions per batch element
C = 64           # num_planes
CIN = C + 2      # stem input channels (hidden_state 64 + action 2)
CINP = 128       # stem input channels zero-padded to a full lane width
NBLK = 16        # residual blocks
EPS = 1e-5       # PyTorch BatchNorm eps

G = 16                                         # zero guard rows (>= P+1, 16-aligned)
assert G >= P + 1
OFFS = tuple(G + b * (NP + G) for b in range(B))   # scratch row offset of each batch
M_TOTAL = G + B * (NP + G)                     # 336 total rows (guards included)
L = M_TOTAL - 2 * G                            # 304 rows written per layer
SHIFTS = tuple(P * (di - 1) + (dj - 1) for di in range(3) for dj in range(3))
assert G + min(SHIFTS) >= 0 and G + max(SHIFTS) + L <= M_TOTAL

_FLOPS = 2 * L * CINP * C * 9 + NBLK * 2 * (2 * L * C * C * 9)
_BYTES = (M_TOTAL * CINP * 2 + 9 * CINP * C * 2 + 2 * C * 4
          + 2 * (NBLK * 9 * C * C * 2) + 4 * NBLK * C * 4
          + L * C * 4 + M_TOTAL * C * 4)


def tower_kernel(x_ref, stem_w_ref, stem_s_ref, stem_t_ref,
                 w1_ref, s1_ref, t1_ref, w2_ref, s2_ref, t2_ref,
                 mask_ref, out_ref, abf_ref):
    # Guard rows of the bf16 activation mirror must be zero; also clear the
    # f32 output buffer (its guard rows are never written afterwards).
    abf_ref[...] = jnp.zeros_like(abf_ref)
    out_ref[...] = jnp.zeros_like(out_ref)

    def conv3x3(src_ref, wsel):
        # 9 small accumulated MXU matmuls over statically shifted reads of the
        # guarded activation; center tap (t=4, shift 0) seeds the accumulator.
        acc = jnp.dot(src_ref[pl.ds(G + SHIFTS[4], L), :], wsel(4),
                      preferred_element_type=jnp.float32)
        for t in (0, 1, 2, 3, 5, 6, 7, 8):
            lhs = src_ref[pl.ds(G + SHIFTS[t], L), :]
            acc = acc + jnp.dot(lhs, wsel(t), preferred_element_type=jnp.float32)
        return acc                                            # (L, C) f32

    # Stem: conv(66->64, zero-padded to 128 lanes) + folded BN + ReLU.
    a = conv3x3(x_ref, lambda t: stem_w_ref[t])
    a = jnp.maximum(a * stem_s_ref[...] + stem_t_ref[...], 0.0) * mask_ref[...]
    out_ref[pl.ds(G, L), :] = a
    abf_ref[pl.ds(G, L), :] = a.astype(jnp.bfloat16)

    # 16 residual blocks; all weights resident in VMEM, indexed dynamically.
    @pl.loop(0, NBLK)
    def _(i):
        h = conv3x3(abf_ref, lambda t: w1_ref[i * 9 + t])
        h = jnp.maximum(h * s1_ref[i] + t1_ref[i], 0.0) * mask_ref[...]
        abf_ref[pl.ds(G, L), :] = h.astype(jnp.bfloat16)      # reuse as conv2 input
        y = conv3x3(abf_ref, lambda t: w2_ref[i * 9 + t]) * s2_ref[i] + t2_ref[i]
        o = jnp.maximum(out_ref[pl.ds(G, L), :] + y, 0.0) * mask_ref[...]
        out_ref[pl.ds(G, L), :] = o
        abf_ref[pl.ds(G, L), :] = o.astype(jnp.bfloat16)


def dynamics_net_forward(hidden_state, action, params):
    # host glue: NCHW concat -> padded-flat NHWC, batch stacked along M with
    # zero guard rows, channels zero-padded to 128 lanes, bf16.
    state = jnp.concatenate([hidden_state, action], axis=1)          # (B, 66, H, W)
    s = jnp.transpose(state, (0, 2, 3, 1))                           # (B, H, W, 66)
    s = jnp.pad(s, ((0, 0), (1, 1), (1, 1), (0, CINP - CIN)))        # (B, 12, 12, 128)
    s = s.reshape(B, NP, CINP)
    x = jnp.zeros((M_TOTAL, CINP), jnp.float32)
    for b in range(B):
        x = x.at[OFFS[b]:OFFS[b] + NP].set(s[b])
    x = x.astype(jnp.bfloat16)

    out = pl.pallas_call(
        tower_kernel,
        out_shape=jax.ShapeDtypeStruct((M_TOTAL, C), jnp.float32),
        in_specs=[pl.BlockSpec(memory_space=pltpu.MemorySpace.VMEM)] * 11,
        out_specs=pl.BlockSpec(memory_space=pltpu.MemorySpace.VMEM),
        scratch_shapes=[pltpu.VMEM((M_TOTAL, C), jnp.bfloat16)],
        cost_estimate=pl.CostEstimate(flops=_FLOPS, transcendentals=0,
                                      bytes_accessed=_BYTES),
    )(x, params["stem_w"], params["stem_s"], params["stem_t"],
      params["w1"], params["s1"], params["t1"],
      params["w2"], params["s2"], params["t2"], params["mask"])

    # host glue: guarded M-stacked layout -> NCHW interior (PyTorch output layout)
    y = jnp.stack([out[OFFS[b]:OFFS[b] + NP] for b in range(B)], 0)  # (B, NP, C)
    y = y.reshape(B, P, P, C)[:, 1:P - 1, 1:P - 1, :]                # (B, H, W, C)
    return jnp.transpose(y, (0, 3, 1, 2))                            # (B, C, H, W)


def ref_forward(hidden_state, action, params):
    """Plain-JAX (lax.conv) reference of the same folded network, f32 activations."""
    state = jnp.concatenate([hidden_state, action], axis=1)
    x = jnp.transpose(state, (0, 2, 3, 1))                            # (B, H, W, 66)
    x = jnp.pad(x, ((0, 0), (0, 0), (0, 0), (0, CINP - CIN)))         # (B, H, W, 128)

    def conv(a, w9):                                                  # w9: (9, cin, C)
        cin = w9.shape[1]
        w = w9.astype(jnp.float32).reshape(3, 3, cin, C)              # HWIO, t = 3*di+dj
        return jax.lax.conv_general_dilated(
            a, w, (1, 1), "SAME", dimension_numbers=("NHWC", "HWIO", "NHWC"))

    a = jnp.maximum(conv(x, params["stem_w"]) * params["stem_s"][0]
                    + params["stem_t"][0], 0.0)
    for i in range(NBLK):
        w1 = params["w1"][i * 9:(i + 1) * 9]
        w2 = params["w2"][i * 9:(i + 1) * 9]
        h = jnp.maximum(conv(a, w1) * params["s1"][i, 0] + params["t1"][i, 0], 0.0)
        y = conv(h, w2) * params["s2"][i, 0] + params["t2"][i, 0]
        a = jnp.maximum(a + y, 0.0)
    return jnp.transpose(a, (0, 3, 1, 2))


def init_params(key):
    kit = iter(jax.random.split(key, 256))

    def fold_bn(bias, gamma, beta, mean, var):
        scale = gamma / jnp.sqrt(var + EPS)
        shift = beta + (bias - mean) * scale
        return scale, shift

    def conv_bn(cin, cin_pad, cout, wstd):
        w = jax.random.normal(next(kit), (9, cin, cout), jnp.float32) * wstd
        if cin_pad > cin:
            w = jnp.pad(w, ((0, 0), (0, cin_pad - cin), (0, 0)))      # (9, cin_pad, cout)
        bias = jax.random.normal(next(kit), (cout,)) * 0.01
        gamma = jax.random.uniform(next(kit), (cout,), minval=0.9, maxval=1.1)
        beta = jax.random.normal(next(kit), (cout,)) * 0.01
        mean = jax.random.normal(next(kit), (cout,)) * 0.01
        var = jax.random.uniform(next(kit), (cout,), minval=0.9, maxval=1.1)
        s, t = fold_bn(bias, gamma, beta, mean, var)
        return (w.astype(jnp.bfloat16),
                s.reshape(1, cout).astype(jnp.float32),
                t.reshape(1, cout).astype(jnp.float32))

    p = {}
    p["stem_w"], p["stem_s"], p["stem_t"] = conv_bn(CIN, CINP, C, 0.03)

    w1s, s1s, t1s, w2s, s2s, t2s = [], [], [], [], [], []
    for _ in range(NBLK):
        w1, s1, t1 = conv_bn(C, C, C, 0.03)
        w2, s2, t2 = conv_bn(C, C, C, 0.03)
        w1s.append(w1); s1s.append(s1); t1s.append(t1)
        w2s.append(w2); s2s.append(s2); t2s.append(t2)
    p["w1"] = jnp.concatenate(w1s, 0)        # (NBLK*9, C, C) bf16
    p["w2"] = jnp.concatenate(w2s, 0)        # (NBLK*9, C, C) bf16
    p["s1"] = jnp.stack(s1s); p["t1"] = jnp.stack(t1s)   # (NBLK, 1, C) f32
    p["s2"] = jnp.stack(s2s); p["t2"] = jnp.stack(t2s)

    # Pad-ring / inter-batch-guard mask over the L rows written per layer.
    mvals = []
    for q in range(L):
        r = G + q
        v = 0.0
        for b in range(B):
            if OFFS[b] <= r < OFFS[b] + NP:
                pidx = r - OFFS[b]
                gi, gj = pidx // P, pidx % P
                if 1 <= gi <= P - 2 and 1 <= gj <= P - 2:
                    v = 1.0
        mvals.append(v)
    p["mask"] = jnp.tile(jnp.asarray(mvals, jnp.float32).reshape(L, 1), (1, C))
    return p


if __name__ == "__main__":
    key = jax.random.PRNGKey(0)
    kh, ka, kp = jax.random.split(key, 3)
    hidden_state = jax.random.normal(kh, (B, C, H, W), jnp.float32)
    action = jax.random.normal(ka, (B, 2, H, W), jnp.float32)
    params = init_params(kp)

    fwd = jax.jit(dynamics_net_forward)
    out = fwd(hidden_state, action, params)
    jax.block_until_ready(out)

    assert out.shape == (B, C, H, W)
    assert bool(jnp.all(jnp.isfinite(out)))

    # cross-check against the plain-JAX reference (loose tol: bf16 conv inputs/MXU)
    ref = jax.jit(ref_forward)(hidden_state, action, params)
    jax.block_until_ready(ref)
    err = float(jnp.max(jnp.abs(out - ref)))
    scale = 1.0 + float(jnp.max(jnp.abs(ref)))
    assert err <= 0.1 * scale, f"mismatch: max|diff|={err}, scale={scale}"

    print("KERNEL_OK")
</pallas_src>

<mosaic_0001>
module attributes {stable_mosaic.version = 11 : i64} {
  func.func @tower_kernel(%arg0: memref<336x128xbf16, #tpu.memory_space<vmem>>, %arg1: memref<9x128x64xbf16, #tpu.memory_space<vmem>>, %arg2: memref<1x64xf32, #tpu.memory_space<vmem>>, %arg3: memref<1x64xf32, #tpu.memory_space<vmem>>, %arg4: memref<144x64x64xbf16, #tpu.memory_space<vmem>>, %arg5: memref<16x1x64xf32, #tpu.memory_space<vmem>>, %arg6: memref<16x1x64xf32, #tpu.memory_space<vmem>>, %arg7: memref<144x64x64xbf16, #tpu.memory_space<vmem>>, %arg8: memref<16x1x64xf32, #tpu.memory_space<vmem>>, %arg9: memref<16x1x64xf32, #tpu.memory_space<vmem>>, %arg10: memref<304x64xf32, #tpu.memory_space<vmem>>, %arg11: memref<336x64xf32, #tpu.memory_space<vmem>>, %arg12: memref<336x64xbf16, #tpu.memory_space<vmem>>) attributes {dimension_semantics = [], scalar_prefetch = 0 : i64, scratch_operands = 1 : i64, tpu.core_type = #tpu.core_type<tc>} {
    %cst = arith.constant 0.000000e+00 : bf16
    %0 = vector.broadcast %cst : bf16 to vector<336x64xbf16>
    %c0 = arith.constant 0 : index
    %c0_0 = arith.constant 0 : index
    %1 = vector.load %arg12[%c0, %c0_0] : memref<336x64xbf16, #tpu.memory_space<vmem>>, vector<336x64xbf16>
    tpu.vector_store %arg12[%c0, %c0_0], %0 {strides = array<i32>} : memref<336x64xbf16, #tpu.memory_space<vmem>>, vector<336x64xbf16>,
    %cst_1 = arith.constant 0.000000e+00 : f32
    %2 = vector.broadcast %cst_1 : f32 to vector<336x64xf32>
    %c0_2 = arith.constant 0 : index
    %c0_3 = arith.constant 0 : index
    %3 = vector.load %arg11[%c0_2, %c0_3] : memref<336x64xf32, #tpu.memory_space<vmem>>, vector<336x64xf32>
    tpu.vector_store %arg11[%c0_2, %c0_3], %2 {strides = array<i32>} : memref<336x64xf32, #tpu.memory_space<vmem>>, vector<336x64xf32>,
    %c16 = arith.constant 16 : index
    %c0_4 = arith.constant 0 : index
    %4 = vector.load %arg0[%c16, %c0_4] : memref<336x128xbf16, #tpu.memory_space<vmem>>, vector<304x128xbf16>
    %c4 = arith.constant 4 : index
    %c0_5 = arith.constant 0 : index
    %c0_6 = arith.constant 0 : index
    %5 = vector.load %arg1[%c4, %c0_5, %c0_6] : memref<9x128x64xbf16, #tpu.memory_space<vmem>>, vector<1x128x64xbf16>
    %6 = vector.shape_cast %5 : vector<1x128x64xbf16> to vector<128x64xbf16>
    %cst_7 = arith.constant dense<0.000000e+00> : vector<304x64xf32>
    %7 = tpu.matmul %4, %6, %cst_7 {dimension_numbers = #tpu.dot_dimension_numbers<[1], [0], [0], [1], [0, 0, 1, 1], [], []>} : vector<304x128xbf16>, vector<128x64xbf16>, vector<304x64xf32> -> vector<304x64xf32>
    %c3 = arith.constant 3 : index
    %c0_8 = arith.constant 0 : index
    %8 = vector.load %arg0[%c3, %c0_8] : memref<336x128xbf16, #tpu.memory_space<vmem>>, vector<304x128xbf16>
    %c0_9 = arith.constant 0 : index
    %c0_10 = arith.constant 0 : index
    %c0_11 = arith.constant 0 : index
    %9 = vector.load %arg1[%c0_9, %c0_10, %c0_11] : memref<9x128x64xbf16, #tpu.memory_space<vmem>>, vector<1x128x64xbf16>
    %10 = vector.shape_cast %9 : vector<1x128x64xbf16> to vector<128x64xbf16>
    %cst_12 = arith.constant dense<0.000000e+00> : vector<304x64xf32>
    %11 = tpu.matmul %8, %10, %cst_12 {dimension_numbers = #tpu.dot_dimension_numbers<[1], [0], [0], [1], [0, 0, 1, 1], [], []>} : vector<304x128xbf16>, vector<128x64xbf16>, vector<304x64xf32> -> vector<304x64xf32>
    %12 = arith.addf %7, %11 : vector<304x64xf32>
    %c4_13 = arith.constant 4 : index
    %c0_14 = arith.constant 0 : index
    %13 = vector.load %arg0[%c4_13, %c0_14] : memref<336x128xbf16, #tpu.memory_space<vmem>>, vector<304x128xbf16>
    %c1 = arith.constant 1 : index
    %c0_15 = arith.constant 0 : index
    %c0_16 = arith.constant 0 : index
    %14 = vector.load %arg1[%c1, %c0_15, %c0_16] : memref<9x128x64xbf16, #tpu.memory_space<vmem>>, vector<1x128x64xbf16>
    %15 = vector.shape_cast %14 : vector<1x128x64xbf16> to vector<128x64xbf16>
    %cst_17 = arith.constant dense<0.000000e+00> : vector<304x64xf32>
    %16 = tpu.matmul %13, %15, %cst_17 {dimension_numbers = #tpu.dot_dimension_numbers<[1], [0], [0], [1], [0, 0, 1, 1], [], []>} : vector<304x128xbf16>, vector<128x64xbf16>, vector<304x64xf32> -> vector<304x64xf32>
    %17 = arith.addf %12, %16 : vector<304x64xf32>
    %c5 = arith.constant 5 : index
    %c0_18 = arith.constant 0 : index
    %18 = vector.load %arg0[%c5, %c0_18] : memref<336x128xbf16, #tpu.memory_space<vmem>>, vector<304x128xbf16>
    %c2 = arith.constant 2 : index
    %c0_19 = arith.constant 0 : index
    %c0_20 = arith.constant 0 : index
    %19 = vector.load %arg1[%c2, %c0_19, %c0_20] : memref<9x128x64xbf16, #tpu.memory_space<vmem>>, vector<1x128x64xbf16>
    %20 = vector.shape_cast %19 : vector<1x128x64xbf16> to vector<128x64xbf16>
    %cst_21 = arith.constant dense<0.000000e+00> : vector<304x64xf32>
    %21 = tpu.matmul %18, %20, %cst_21 {dimension_numbers = #tpu.dot_dimension_numbers<[1], [0], [0], [1], [0, 0, 1, 1], [], []>} : vector<304x128xbf16>, vector<128x64xbf16>, vector<304x64xf32> -> vector<304x64xf32>
    %22 = arith.addf %17, %21 : vector<304x64xf32>
    %c15 = arith.constant 15 : index
    %c0_22 = arith.constant 0 : index
    %23 = vector.load %arg0[%c15, %c0_22] : memref<336x128xbf16, #tpu.memory_space<vmem>>, vector<304x128xbf16>
    %c3_23 = arith.constant 3 : index
    %c0_24 = arith.constant 0 : index
    %c0_25 = arith.constant 0 : index
    %24 = vector.load %arg1[%c3_23, %c0_24, %c0_25] : memref<9x128x64xbf16, #tpu.memory_space<vmem>>, vector<1x128x64xbf16>
    %25 = vector.shape_cast %24 : vector<1x128x64xbf16> to vector<128x64xbf16>
    %cst_26 = arith.constant dense<0.000000e+00> : vector<304x64xf32>
    %26 = tpu.matmul %23, %25, %cst_26 {dimension_numbers = #tpu.dot_dimension_numbers<[1], [0], [0], [1], [0, 0, 1, 1], [], []>} : vector<304x128xbf16>, vector<128x64xbf16>, vector<304x64xf32> -> vector<304x64xf32>
    %27 = arith.addf %22, %26 : vector<304x64xf32>
    %c17 = arith.constant 17 : index
    %c0_27 = arith.constant 0 : index
    %28 = vector.load %arg0[%c17, %c0_27] : memref<336x128xbf16, #tpu.memory_space<vmem>>, vector<304x128xbf16>
    %c5_28 = arith.constant 5 : index
    %c0_29 = arith.constant 0 : index
    %c0_30 = arith.constant 0 : index
    %29 = vector.load %arg1[%c5_28, %c0_29, %c0_30] : memref<9x128x64xbf16, #tpu.memory_space<vmem>>, vector<1x128x64xbf16>
    %30 = vector.shape_cast %29 : vector<1x128x64xbf16> to vector<128x64xbf16>
    %cst_31 = arith.constant dense<0.000000e+00> : vector<304x64xf32>
    %31 = tpu.matmul %28, %30, %cst_31 {dimension_numbers = #tpu.dot_dimension_numbers<[1], [0], [0], [1], [0, 0, 1, 1], [], []>} : vector<304x128xbf16>, vector<128x64xbf16>, vector<304x64xf32> -> vector<304x64xf32>
    %32 = arith.addf %27, %31 : vector<304x64xf32>
    %c27 = arith.constant 27 : index
    %c0_32 = arith.constant 0 : index
    %33 = vector.load %arg0[%c27, %c0_32] : memref<336x128xbf16, #tpu.memory_space<vmem>>, vector<304x128xbf16>
    %c6 = arith.constant 6 : index
    %c0_33 = arith.constant 0 : index
    %c0_34 = arith.constant 0 : index
    %34 = vector.load %arg1[%c6, %c0_33, %c0_34] : memref<9x128x64xbf16, #tpu.memory_space<vmem>>, vector<1x128x64xbf16>
    %35 = vector.shape_cast %34 : vector<1x128x64xbf16> to vector<128x64xbf16>
    %cst_35 = arith.constant dense<0.000000e+00> : vector<304x64xf32>
    %36 = tpu.matmul %33, %35, %cst_35 {dimension_numbers = #tpu.dot_dimension_numbers<[1], [0], [0], [1], [0, 0, 1, 1], [], []>} : vector<304x128xbf16>, vector<128x64xbf16>, vector<304x64xf32> -> vector<304x64xf32>
    %37 = arith.addf %32, %36 : vector<304x64xf32>
    %c28 = arith.constant 28 : index
    %c0_36 = arith.constant 0 : index
    %38 = vector.load %arg0[%c28, %c0_36] : memref<336x128xbf16, #tpu.memory_space<vmem>>, vector<304x128xbf16>
    %c7 = arith.constant 7 : index
    %c0_37 = arith.constant 0 : index
    %c0_38 = arith.constant 0 : index
    %39 = vector.load %arg1[%c7, %c0_37, %c0_38] : memref<9x128x64xbf16, #tpu.memory_space<vmem>>, vector<1x128x64xbf16>
    %40 = vector.shape_cast %39 : vector<1x128x64xbf16> to vector<128x64xbf16>
    %cst_39 = arith.constant dense<0.000000e+00> : vector<304x64xf32>
    %41 = tpu.matmul %38, %40, %cst_39 {dimension_numbers = #tpu.dot_dimension_numbers<[1], [0], [0], [1], [0, 0, 1, 1], [], []>} : vector<304x128xbf16>, vector<128x64xbf16>, vector<304x64xf32> -> vector<304x64xf32>
    %42 = arith.addf %37, %41 : vector<304x64xf32>
    %c29 = arith.constant 29 : index
    %c0_40 = arith.constant 0 : index
    %43 = vector.load %arg0[%c29, %c0_40] : memref<336x128xbf16, #tpu.memory_space<vmem>>, vector<304x128xbf16>
    %c8 = arith.constant 8 : index
    %c0_41 = arith.constant 0 : index
    %c0_42 = arith.constant 0 : index
    %44 = vector.load %arg1[%c8, %c0_41, %c0_42] : memref<9x128x64xbf16, #tpu.memory_space<vmem>>, vector<1x128x64xbf16>
    %45 = vector.shape_cast %44 : vector<1x128x64xbf16> to vector<128x64xbf16>
    %cst_43 = arith.constant dense<0.000000e+00> : vector<304x64xf32>
    %46 = tpu.matmul %43, %45, %cst_43 {dimension_numbers = #tpu.dot_dimension_numbers<[1], [0], [0], [1], [0, 0, 1, 1], [], []>} : vector<304x128xbf16>, vector<128x64xbf16>, vector<304x64xf32> -> vector<304x64xf32>
    %47 = arith.addf %42, %46 : vector<304x64xf32>
    %c0_44 = arith.constant 0 : index
    %c0_45 = arith.constant 0 : index
    %48 = vector.load %arg2[%c0_44, %c0_45] : memref<1x64xf32, #tpu.memory_space<vmem>>, vector<1x64xf32>
    %49 = vector.broadcast %48 : vector<1x64xf32> to vector<304x64xf32>
    %50 = arith.mulf %47, %49 : vector<304x64xf32>
    %c0_46 = arith.constant 0 : index
    %c0_47 = arith.constant 0 : index
    %51 = vector.load %arg3[%c0_46, %c0_47] : memref<1x64xf32, #tpu.memory_space<vmem>>, vector<1x64xf32>
    %52 = vector.broadcast %51 : vector<1x64xf32> to vector<304x64xf32>
    %53 = arith.addf %50, %52 : vector<304x64xf32>
    %cst_48 = arith.constant 0.000000e+00 : f32
    %54 = vector.broadcast %cst_48 : f32 to vector<304x64xf32>
    %55 = arith.maximumf %53, %54 : vector<304x64xf32>
    %c0_49 = arith.constant 0 : index
    %c0_50 = arith.constant 0 : index
    %56 = vector.load %arg10[%c0_49, %c0_50] : memref<304x64xf32, #tpu.memory_space<vmem>>, vector<304x64xf32>
    %57 = arith.mulf %55, %56 : vector<304x64xf32>
    %c16_51 = arith.constant 16 : index
    %c0_52 = arith.constant 0 : index
    %58 = vector.load %arg11[%c16_51, %c0_52] : memref<336x64xf32, #tpu.memory_space<vmem>>, vector<304x64xf32>
    tpu.vector_store %arg11[%c16_51, %c0_52], %57 {strides = array<i32>} : memref<336x64xf32, #tpu.memory_space<vmem>>, vector<304x64xf32>,
    %59 = arith.truncf %57 : vector<304x64xf32> to vector<304x64xbf16>
    %c16_53 = arith.constant 16 : index
    %c0_54 = arith.constant 0 : index
    %60 = vector.load %arg12[%c16_53, %c0_54] : memref<336x64xbf16, #tpu.memory_space<vmem>>, vector<304x64xbf16>
    tpu.vector_store %arg12[%c16_53, %c0_54], %59 {strides = array<i32>} : memref<336x64xbf16, #tpu.memory_space<vmem>>, vector<304x64xbf16>,
    %c0_i32 = arith.constant 0 : i32
    %c16_i32 = arith.constant 16 : i32
    %61 = arith.addi %c0_i32, %c16_i32 : i32
    %c1_i32 = arith.constant 1 : i32
    scf.for %arg13 = %c0_i32 to %61 step %c1_i32  : i32 {
      %c1_i32_56 = arith.constant 1 : i32
      %62 = arith.muli %arg13, %c1_i32_56 : i32
      %c0_i32_57 = arith.constant 0 : i32
      %63 = arith.addi %c0_i32_57, %62 : i32
      %c16_58 = arith.constant 16 : index
      %c0_59 = arith.constant 0 : index
      %64 = vector.load %arg12[%c16_58, %c0_59] : memref<336x64xbf16, #tpu.memory_space<vmem>>, vector<304x64xbf16>
      %c9_i32 = arith.constant 9 : i32
      %65 = arith.muli %63, %c9_i32 : i32
      %c4_i32 = arith.constant 4 : i32
      %66 = arith.addi %65, %c4_i32 : i32
      %67 = arith.index_cast %66 : i32 to index
      %c0_60 = arith.constant 0 : index
      %c0_61 = arith.constant 0 : index
      %68 = vector.load %arg4[%67, %c0_60, %c0_61] : memref<144x64x64xbf16, #tpu.memory_space<vmem>>, vector<1x64x64xbf16>
      %69 = vector.shape_cast %68 : vector<1x64x64xbf16> to vector<64x64xbf16>
      %cst_62 = arith.constant dense<0.000000e+00> : vector<304x64xf32>
      %70 = tpu.matmul %64, %69, %cst_62 {dimension_numbers = #tpu.dot_dimension_numbers<[1], [0], [0], [1], [0, 0, 1, 1], [], []>} : vector<304x64xbf16>, vector<64x64xbf16>, vector<304x64xf32> -> vector<304x64xf32>
      %c3_63 = arith.constant 3 : index
      %c0_64 = arith.constant 0 : index
      %71 = vector.load %arg12[%c3_63, %c0_64] : memref<336x64xbf16, #tpu.memory_space<vmem>>, vector<304x64xbf16>
      %c9_i32_65 = arith.constant 9 : i32
      %72 = arith.muli %63, %c9_i32_65 : i32
      %c0_i32_66 = arith.constant 0 : i32
      %73 = arith.addi %72, %c0_i32_66 : i32
      %74 = arith.index_cast %73 : i32 to index
      %c0_67 = arith.constant 0 : index
      %c0_68 = arith.constant 0 : index
      %75 = vector.load %arg4[%74, %c0_67, %c0_68] : memref<144x64x64xbf16, #tpu.memory_space<vmem>>, vector<1x64x64xbf16>
      %76 = vector.shape_cast %75 : vector<1x64x64xbf16> to vector<64x64xbf16>
      %cst_69 = arith.constant dense<0.000000e+00> : vector<304x64xf32>
      %77 = tpu.matmul %71, %76, %cst_69 {dimension_numbers = #tpu.dot_dimension_numbers<[1], [0], [0], [1], [0, 0, 1, 1], [], []>} : vector<304x64xbf16>, vector<64x64xbf16>, vector<304x64xf32> -> vector<304x64xf32>
      %78 = arith.addf %70, %77 : vector<304x64xf32>
      %c4_70 = arith.constant 4 : index
      %c0_71 = arith.constant 0 : index
      %79 = vector.load %arg12[%c4_70, %c0_71] : memref<336x64xbf16, #tpu.memory_space<vmem>>, vector<304x64xbf16>
      %c9_i32_72 = arith.constant 9 : i32
      %80 = arith.muli %63, %c9_i32_72 : i32
      %c1_i32_73 = arith.constant 1 : i32
      %81 = arith.addi %80, %c1_i32_73 : i32
      %82 = arith.index_cast %81 : i32 to index
      %c0_74 = arith.constant 0 : index
      %c0_75 = arith.constant 0 : index
      %83 = vector.load %arg4[%82, %c0_74, %c0_75] : memref<144x64x64xbf16, #tpu.memory_space<vmem>>, vector<1x64x64xbf16>
      %84 = vector.shape_cast %83 : vector<1x64x64xbf16> to vector<64x64xbf16>
      %cst_76 = arith.constant dense<0.000000e+00> : vector<304x64xf32>
      %85 = tpu.matmul %79, %84, %cst_76 {dimension_numbers = #tpu.dot_dimension_numbers<[1], [0], [0], [1], [0, 0, 1, 1], [], []>} : vector<304x64xbf16>, vector<64x64xbf16>, vector<304x64xf32> -> vector<304x64xf32>
      %86 = arith.addf %78, %85 : vector<304x64xf32>
      %c5_77 = arith.constant 5 : index
      %c0_78 = arith.constant 0 : index
      %87 = vector.load %arg12[%c5_77, %c0_78] : memref<336x64xbf16, #tpu.memory_space<vmem>>, vector<304x64xbf16>
      %c9_i32_79 = arith.constant 9 : i32
      %88 = arith.muli %63, %c9_i32_79 : i32
      %c2_i32 = arith.constant 2 : i32
      %89 = arith.addi %88, %c2_i32 : i32
      %90 = arith.index_cast %89 : i32 to index
      %c0_80 = arith.constant 0 : index
      %c0_81 = arith.constant 0 : index
      %91 = vector.load %arg4[%90, %c0_80, %c0_81] : memref<144x64x64xbf16, #tpu.memory_space<vmem>>, vector<1x64x64xbf16>
      %92 = vector.shape_cast %91 : vector<1x64x64xbf16> to vector<64x64xbf16>
      %cst_82 = arith.constant dense<0.000000e+00> : vector<304x64xf32>
      %93 = tpu.matmul %87, %92, %cst_82 {dimension_numbers = #tpu.dot_dimension_numbers<[1], [0], [0], [1], [0, 0, 1, 1], [], []>} : vector<304x64xbf16>, vector<64x64xbf16>, vector<304x64xf32> -> vector<304x64xf32>
      %94 = arith.addf %86, %93 : vector<304x64xf32>
      %c15_83 = arith.constant 15 : index
      %c0_84 = arith.constant 0 : index
      %95 = vector.load %arg12[%c15_83, %c0_84] : memref<336x64xbf16, #tpu.memory_space<vmem>>, vector<304x64xbf16>
      %c9_i32_85 = arith.constant 9 : i32
      %96 = arith.muli %63, %c9_i32_85 : i32
      %c3_i32 = arith.constant 3 : i32
      %97 = arith.addi %96, %c3_i32 : i32
      %98 = arith.index_cast %97 : i32 to index
      %c0_86 = arith.constant 0 : index
      %c0_87 = arith.constant 0 : index
      %99 = vector.load %arg4[%98, %c0_86, %c0_87] : memref<144x64x64xbf16, #tpu.memory_space<vmem>>, vector<1x64x64xbf16>
      %100 = vector.shape_cast %99 : vector<1x64x64xbf16> to vector<64x64xbf16>
      %cst_88 = arith.constant dense<0.000000e+00> : vector<304x64xf32>
      %101 = tpu.matmul %95, %100, %cst_88 {dimension_numbers = #tpu.dot_dimension_numbers<[1], [0], [0], [1], [0, 0, 1, 1], [], []>} : vector<304x64xbf16>, vector<64x64xbf16>, vector<304x64xf32> -> vector<304x64xf32>
      %102 = arith.addf %94, %101 : vector<304x64xf32>
      %c17_89 = arith.constant 17 : index
      %c0_90 = arith.constant 0 : index
      %103 = vector.load %arg12[%c17_89, %c0_90] : memref<336x64xbf16, #tpu.memory_space<vmem>>, vector<304x64xbf16>
      %c9_i32_91 = arith.constant 9 : i32
      %104 = arith.muli %63, %c9_i32_91 : i32
      %c5_i32 = arith.constant 5 : i32
      %105 = arith.addi %104, %c5_i32 : i32
      %106 = arith.index_cast %105 : i32 to index
      %c0_92 = arith.constant 0 : index
      %c0_93 = arith.constant 0 : index
      %107 = vector.load %arg4[%106, %c0_92, %c0_93] : memref<144x64x64xbf16, #tpu.memory_space<vmem>>, vector<1x64x64xbf16>
      %108 = vector.shape_cast %107 : vector<1x64x64xbf16> to vector<64x64xbf16>
      %cst_94 = arith.constant dense<0.000000e+00> : vector<304x64xf32>
      %109 = tpu.matmul %103, %108, %cst_94 {dimension_numbers = #tpu.dot_dimension_numbers<[1], [0], [0], [1], [0, 0, 1, 1], [], []>} : vector<304x64xbf16>, vector<64x64xbf16>, vector<304x64xf32> -> vector<304x64xf32>
      %110 = arith.addf %102, %109 : vector<304x64xf32>
      %c27_95 = arith.constant 27 : index
      %c0_96 = arith.constant 0 : index
      %111 = vector.load %arg12[%c27_95, %c0_96] : memref<336x64xbf16, #tpu.memory_space<vmem>>, vector<304x64xbf16>
      %c9_i32_97 = arith.constant 9 : i32
      %112 = arith.muli %63, %c9_i32_97 : i32
      %c6_i32 = arith.constant 6 : i32
      %113 = arith.addi %112, %c6_i32 : i32
      %114 = arith.index_cast %113 : i32 to index
      %c0_98 = arith.constant 0 : index
      %c0_99 = arith.constant 0 : index
      %115 = vector.load %arg4[%114, %c0_98, %c0_99] : memref<144x64x64xbf16, #tpu.memory_space<vmem>>, vector<1x64x64xbf16>
      %116 = vector.shape_cast %115 : vector<1x64x64xbf16> to vector<64x64xbf16>
      %cst_100 = arith.constant dense<0.000000e+00> : vector<304x64xf32>
      %117 = tpu.matmul %111, %116, %cst_100 {dimension_numbers = #tpu.dot_dimension_numbers<[1], [0], [0], [1], [0, 0, 1, 1], [], []>} : vector<304x64xbf16>, vector<64x64xbf16>, vector<304x64xf32> -> vector<304x64xf32>
      %118 = arith.addf %110, %117 : vector<304x64xf32>
      %c28_101 = arith.constant 28 : index
      %c0_102 = arith.constant 0 : index
      %119 = vector.load %arg12[%c28_101, %c0_102] : memref<336x64xbf16, #tpu.memory_space<vmem>>, vector<304x64xbf16>
      %c9_i32_103 = arith.constant 9 : i32
      %120 = arith.muli %63, %c9_i32_103 : i32
      %c7_i32 = arith.constant 7 : i32
      %121 = arith.addi %120, %c7_i32 : i32
      %122 = arith.index_cast %121 : i32 to index
      %c0_104 = arith.constant 0 : index
      %c0_105 = arith.constant 0 : index
      %123 = vector.load %arg4[%122, %c0_104, %c0_105] : memref<144x64x64xbf16, #tpu.memory_space<vmem>>, vector<1x64x64xbf16>
      %124 = vector.shape_cast %123 : vector<1x64x64xbf16> to vector<64x64xbf16>
      %cst_106 = arith.constant dense<0.000000e+00> : vector<304x64xf32>
      %125 = tpu.matmul %119, %124, %cst_106 {dimension_numbers = #tpu.dot_dimension_numbers<[1], [0], [0], [1], [0, 0, 1, 1], [], []>} : vector<304x64xbf16>, vector<64x64xbf16>, vector<304x64xf32> -> vector<304x64xf32>
      %126 = arith.addf %118, %125 : vector<304x64xf32>
      %c29_107 = arith.constant 29 : index
      %c0_108 = arith.constant 0 : index
      %127 = vector.load %arg12[%c29_107, %c0_108] : memref<336x64xbf16, #tpu.memory_space<vmem>>, vector<304x64xbf16>
      %c9_i32_109 = arith.constant 9 : i32
      %128 = arith.muli %63, %c9_i32_109 : i32
      %c8_i32 = arith.constant 8 : i32
      %129 = arith.addi %128, %c8_i32 : i32
      %130 = arith.index_cast %129 : i32 to index
      %c0_110 = arith.constant 0 : index
      %c0_111 = arith.constant 0 : index
      %131 = vector.load %arg4[%130, %c0_110, %c0_111] : memref<144x64x64xbf16, #tpu.memory_space<vmem>>, vector<1x64x64xbf16>
      %132 = vector.shape_cast %131 : vector<1x64x64xbf16> to vector<64x64xbf16>
      %cst_112 = arith.constant dense<0.000000e+00> : vector<304x64xf32>
      %133 = tpu.matmul %127, %132, %cst_112 {dimension_numbers = #tpu.dot_dimension_numbers<[1], [0], [0], [1], [0, 0, 1, 1], [], []>} : vector<304x64xbf16>, vector<64x64xbf16>, vector<304x64xf32> -> vector<304x64xf32>
      %134 = arith.addf %126, %133 : vector<304x64xf32>
      %135 = arith.index_cast %63 : i32 to index
      %c0_113 = arith.constant 0 : index
      %c0_114 = arith.constant 0 : index
      %136 = vector.load %arg5[%135, %c0_113, %c0_114] : memref<16x1x64xf32, #tpu.memory_space<vmem>>, vector<1x1x64xf32>
      %137 = vector.shape_cast %136 : vector<1x1x64xf32> to vector<1x64xf32>
      %138 = vector.broadcast %137 : vector<1x64xf32> to vector<304x64xf32>
      %139 = arith.mulf %134, %138 : vector<304x64xf32>
      %140 = arith.index_cast %63 : i32 to index
      %c0_115 = arith.constant 0 : index
      %c0_116 = arith.constant 0 : index
      %141 = vector.load %arg6[%140, %c0_115, %c0_116] : memref<16x1x64xf32, #tpu.memory_space<vmem>>, vector<1x1x64xf32>
      %142 = vector.shape_cast %141 : vector<1x1x64xf32> to vector<1x64xf32>
      %143 = vector.broadcast %142 : vector<1x64xf32> to vector<304x64xf32>
      %144 = arith.addf %139, %143 : vector<304x64xf32>
      %cst_117 = arith.constant 0.000000e+00 : f32
      %145 = vector.broadcast %cst_117 : f32 to vector<304x64xf32>
      %146 = arith.maximumf %144, %145 : vector<304x64xf32>
      %c0_118 = arith.constant 0 : index
      %c0_119 = arith.constant 0 : index
      %147 = vector.load %arg10[%c0_118, %c0_119] : memref<304x64xf32, #tpu.memory_space<vmem>>, vector<304x64xf32>
      %148 = arith.mulf %146, %147 : vector<304x64xf32>
      %149 = arith.truncf %148 : vector<304x64xf32> to vector<304x64xbf16>
      %c16_120 = arith.constant 16 : index
      %c0_121 = arith.constant 0 : index
      %150 = vector.load %arg12[%c16_120, %c0_121] : memref<336x64xbf16, #tpu.memory_space<vmem>>, vector<304x64xbf16>
      tpu.vector_store %arg12[%c16_120, %c0_121], %149 {strides = array<i32>} : memref<336x64xbf16, #tpu.memory_space<vmem>>, vector<304x64xbf16>,
      %c16_122 = arith.constant 16 : index
      %c0_123 = arith.constant 0 : index
      %151 = vector.load %arg12[%c16_122, %c0_123] : memref<336x64xbf16, #tpu.memory_space<vmem>>, vector<304x64xbf16>
      %c9_i32_124 = arith.constant 9 : i32
      %152 = arith.muli %63, %c9_i32_124 : i32
      %c4_i32_125 = arith.constant 4 : i32
      %153 = arith.addi %152, %c4_i32_125 : i32
      %154 = arith.index_cast %153 : i32 to index
      %c0_126 = arith.constant 0 : index
      %c0_127 = arith.constant 0 : index
      %155 = vector.load %arg7[%154, %c0_126, %c0_127] : memref<144x64x64xbf16, #tpu.memory_space<vmem>>, vector<1x64x64xbf16>
      %156 = vector.shape_cast %155 : vector<1x64x64xbf16> to vector<64x64xbf16>
      %cst_128 = arith.constant dense<0.000000e+00> : vector<304x64xf32>
      %157 = tpu.matmul %151, %156, %cst_128 {dimension_numbers = #tpu.dot_dimension_numbers<[1], [0], [0], [1], [0, 0, 1, 1], [], []>} : vector<304x64xbf16>, vector<64x64xbf16>, vector<304x64xf32> -> vector<304x64xf32>
      %c3_129 = arith.constant 3 : index
      %c0_130 = arith.constant 0 : index
      %158 = vector.load %arg12[%c3_129, %c0_130] : memref<336x64xbf16, #tpu.memory_space<vmem>>, vector<304x64xbf16>
      %c9_i32_131 = arith.constant 9 : i32
      %159 = arith.muli %63, %c9_i32_131 : i32
      %c0_i32_132 = arith.constant 0 : i32
      %160 = arith.addi %159, %c0_i32_132 : i32
      %161 = arith.index_cast %160 : i32 to index
      %c0_133 = arith.constant 0 : index
      %c0_134 = arith.constant 0 : index
      %162 = vector.load %arg7[%161, %c0_133, %c0_134] : memref<144x64x64xbf16, #tpu.memory_space<vmem>>, vector<1x64x64xbf16>
      %163 = vector.shape_cast %162 : vector<1x64x64xbf16> to vector<64x64xbf16>
      %cst_135 = arith.constant dense<0.000000e+00> : vector<304x64xf32>
      %164 = tpu.matmul %158, %163, %cst_135 {dimension_numbers = #tpu.dot_dimension_numbers<[1], [0], [0], [1], [0, 0, 1, 1], [], []>} : vector<304x64xbf16>, vector<64x64xbf16>, vector<304x64xf32> -> vector<304x64xf32>
      %165 = arith.addf %157, %164 : vector<304x64xf32>
      %c4_136 = arith.constant 4 : index
      %c0_137 = arith.constant 0 : index
      %166 = vector.load %arg12[%c4_136, %c0_137] : memref<336x64xbf16, #tpu.memory_space<vmem>>, vector<304x64xbf16>
      %c9_i32_138 = arith.constant 9 : i32
      %167 = arith.muli %63, %c9_i32_138 : i32
      %c1_i32_139 = arith.constant 1 : i32
      %168 = arith.addi %167, %c1_i32_139 : i32
      %169 = arith.index_cast %168 : i32 to index
      %c0_140 = arith.constant 0 : index
      %c0_141 = arith.constant 0 : index
      %170 = vector.load %arg7[%169, %c0_140, %c0_141] : memref<144x64x64xbf16, #tpu.memory_space<vmem>>, vector<1x64x64xbf16>
      %171 = vector.shape_cast %170 : vector<1x64x64xbf16> to vector<64x64xbf16>
      %cst_142 = arith.constant dense<0.000000e+00> : vector<304x64xf32>
      %172 = tpu.matmul %166, %171, %cst_142 {dimension_numbers = #tpu.dot_dimension_numbers<[1], [0], [0], [1], [0, 0, 1, 1], [], []>} : vector<304x64xbf16>, vector<64x64xbf16>, vector<304x64xf32> -> vector<304x64xf32>
      %173 = arith.addf %165, %172 : vector<304x64xf32>
      %c5_143 = arith.constant 5 : index
      %c0_144 = arith.constant 0 : index
      %174 = vector.load %arg12[%c5_143, %c0_144] : memref<336x64xbf16, #tpu.memory_space<vmem>>, vector<304x64xbf16>
      %c9_i32_145 = arith.constant 9 : i32
      %175 = arith.muli %63, %c9_i32_145 : i32
      %c2_i32_146 = arith.constant 2 : i32
      %176 = arith.addi %175, %c2_i32_146 : i32
      %177 = arith.index_cast %176 : i32 to index
      %c0_147 = arith.constant 0 : index
      %c0_148 = arith.constant 0 : index
      %178 = vector.load %arg7[%177, %c0_147, %c0_148] : memref<144x64x64xbf16, #tpu.memory_space<vmem>>, vector<1x64x64xbf16>
      %179 = vector.shape_cast %178 : vector<1x64x64xbf16> to vector<64x64xbf16>
      %cst_149 = arith.constant dense<0.000000e+00> : vector<304x64xf32>
      %180 = tpu.matmul %174, %179, %cst_149 {dimension_numbers = #tpu.dot_dimension_numbers<[1], [0], [0], [1], [0, 0, 1, 1], [], []>} : vector<304x64xbf16>, vector<64x64xbf16>, vector<304x64xf32> -> vector<304x64xf32>
      %181 = arith.addf %173, %180 : vector<304x64xf32>
      %c15_150 = arith.constant 15 : index
      %c0_151 = arith.constant 0 : index
      %182 = vector.load %arg12[%c15_150, %c0_151] : memref<336x64xbf16, #tpu.memory_space<vmem>>, vector<304x64xbf16>
      %c9_i32_152 = arith.constant 9 : i32
      %183 = arith.muli %63, %c9_i32_152 : i32
      %c3_i32_153 = arith.constant 3 : i32
      %184 = arith.addi %183, %c3_i32_153 : i32
      %185 = arith.index_cast %184 : i32 to index
      %c0_154 = arith.constant 0 : index
      %c0_155 = arith.constant 0 : index
      %186 = vector.load %arg7[%185, %c0_154, %c0_155] : memref<144x64x64xbf16, #tpu.memory_space<vmem>>, vector<1x64x64xbf16>
      %187 = vector.shape_cast %186 : vector<1x64x64xbf16> to vector<64x64xbf16>
      %cst_156 = arith.constant dense<0.000000e+00> : vector<304x64xf32>
      %188 = tpu.matmul %182, %187, %cst_156 {dimension_numbers = #tpu.dot_dimension_numbers<[1], [0], [0], [1], [0, 0, 1, 1], [], []>} : vector<304x64xbf16>, vector<64x64xbf16>, vector<304x64xf32> -> vector<304x64xf32>
      %189 = arith.addf %181, %188 : vector<304x64xf32>
      %c17_157 = arith.constant 17 : index
      %c0_158 = arith.constant 0 : index
      %190 = vector.load %arg12[%c17_157, %c0_158] : memref<336x64xbf16, #tpu.memory_space<vmem>>, vector<304x64xbf16>
      %c9_i32_159 = arith.constant 9 : i32
      %191 = arith.muli %63, %c9_i32_159 : i32
      %c5_i32_160 = arith.constant 5 : i32
      %192 = arith.addi %191, %c5_i32_160 : i32
      %193 = arith.index_cast %192 : i32 to index
      %c0_161 = arith.constant 0 : index
      %c0_162 = arith.constant 0 : index
      %194 = vector.load %arg7[%193, %c0_161, %c0_162] : memref<144x64x64xbf16, #tpu.memory_space<vmem>>, vector<1x64x64xbf16>
      %195 = vector.shape_cast %194 : vector<1x64x64xbf16> to vector<64x64xbf16>
      %cst_163 = arith.constant dense<0.000000e+00> : vector<304x64xf32>
      %196 = tpu.matmul %190, %195, %cst_163 {dimension_numbers = #tpu.dot_dimension_numbers<[1], [0], [0], [1], [0, 0, 1, 1], [], []>} : vector<304x64xbf16>, vector<64x64xbf16>, vector<304x64xf32> -> vector<304x64xf32>
      %197 = arith.addf %189, %196 : vector<304x64xf32>
      %c27_164 = arith.constant 27 : index
      %c0_165 = arith.constant 0 : index
      %198 = vector.load %arg12[%c27_164, %c0_165] : memref<336x64xbf16, #tpu.memory_space<vmem>>, vector<304x64xbf16>
      %c9_i32_166 = arith.constant 9 : i32
      %199 = arith.muli %63, %c9_i32_166 : i32
      %c6_i32_167 = arith.constant 6 : i32
      %200 = arith.addi %199, %c6_i32_167 : i32
      %201 = arith.index_cast %200 : i32 to index
      %c0_168 = arith.constant 0 : index
      %c0_169 = arith.constant 0 : index
      %202 = vector.load %arg7[%201, %c0_168, %c0_169] : memref<144x64x64xbf16, #tpu.memory_space<vmem>>, vector<1x64x64xbf16>
      %203 = vector.shape_cast %202 : vector<1x64x64xbf16> to vector<64x64xbf16>
      %cst_170 = arith.constant dense<0.000000e+00> : vector<304x64xf32>
      %204 = tpu.matmul %198, %203, %cst_170 {dimension_numbers = #tpu.dot_dimension_numbers<[1], [0], [0], [1], [0, 0, 1, 1], [], []>} : vector<304x64xbf16>, vector<64x64xbf16>, vector<304x64xf32> -> vector<304x64xf32>
      %205 = arith.addf %197, %204 : vector<304x64xf32>
      %c28_171 = arith.constant 28 : index
      %c0_172 = arith.constant 0 : index
      %206 = vector.load %arg12[%c28_171, %c0_172] : memref<336x64xbf16, #tpu.memory_space<vmem>>, vector<304x64xbf16>
      %c9_i32_173 = arith.constant 9 : i32
      %207 = arith.muli %63, %c9_i32_173 : i32
      %c7_i32_174 = arith.constant 7 : i32
      %208 = arith.addi %207, %c7_i32_174 : i32
      %209 = arith.index_cast %208 : i32 to index
      %c0_175 = arith.constant 0 : index
      %c0_176 = arith.constant 0 : index
      %210 = vector.load %arg7[%209, %c0_175, %c0_176] : memref<144x64x64xbf16, #tpu.memory_space<vmem>>, vector<1x64x64xbf16>
      %211 = vector.shape_cast %210 : vector<1x64x64xbf16> to vector<64x64xbf16>
      %cst_177 = arith.constant dense<0.000000e+00> : vector<304x64xf32>
      %212 = tpu.matmul %206, %211, %cst_177 {dimension_numbers = #tpu.dot_dimension_numbers<[1], [0], [0], [1], [0, 0, 1, 1], [], []>} : vector<304x64xbf16>, vector<64x64xbf16>, vector<304x64xf32> -> vector<304x64xf32>
      %213 = arith.addf %205, %212 : vector<304x64xf32>
      %c29_178 = arith.constant 29 : index
      %c0_179 = arith.constant 0 : index
      %214 = vector.load %arg12[%c29_178, %c0_179] : memref<336x64xbf16, #tpu.memory_space<vmem>>, vector<304x64xbf16>
      %c9_i32_180 = arith.constant 9 : i32
      %215 = arith.muli %63, %c9_i32_180 : i32
      %c8_i32_181 = arith.constant 8 : i32
      %216 = arith.addi %215, %c8_i32_181 : i32
      %217 = arith.index_cast %216 : i32 to index
      %c0_182 = arith.constant 0 : index
      %c0_183 = arith.constant 0 : index
      %218 = vector.load %arg7[%217, %c0_182, %c0_183] : memref<144x64x64xbf16, #tpu.memory_space<vmem>>, vector<1x64x64xbf16>
      %219 = vector.shape_cast %218 : vector<1x64x64xbf16> to vector<64x64xbf16>
      %cst_184 = arith.constant dense<0.000000e+00> : vector<304x64xf32>
      %220 = tpu.matmul %214, %219, %cst_184 {dimension_numbers = #tpu.dot_dimension_numbers<[1], [0], [0], [1], [0, 0, 1, 1], [], []>} : vector<304x64xbf16>, vector<64x64xbf16>, vector<304x64xf32> -> vector<304x64xf32>
      %221 = arith.addf %213, %220 : vector<304x64xf32>
      %222 = arith.index_cast %63 : i32 to index
      %c0_185 = arith.constant 0 : index
      %c0_186 = arith.constant 0 : index
      %223 = vector.load %arg8[%222, %c0_185, %c0_186] : memref<16x1x64xf32, #tpu.memory_space<vmem>>, vector<1x1x64xf32>
      %224 = vector.shape_cast %223 : vector<1x1x64xf32> to vector<1x64xf32>
      %225 = vector.broadcast %224 : vector<1x64xf32> to vector<304x64xf32>
      %226 = arith.mulf %221, %225 : vector<304x64xf32>
      %227 = arith.index_cast %63 : i32 to index
      %c0_187 = arith.constant 0 : index
      %c0_188 = arith.constant 0 : index
      %228 = vector.load %arg9[%227, %c0_187, %c0_188] : memref<16x1x64xf32, #tpu.memory_space<vmem>>, vector<1x1x64xf32>
      %229 = vector.shape_cast %228 : vector<1x1x64xf32> to vector<1x64xf32>
      %230 = vector.broadcast %229 : vector<1x64xf32> to vector<304x64xf32>
      %231 = arith.addf %226, %230 : vector<304x64xf32>
      %c16_189 = arith.constant 16 : index
      %c0_190 = arith.constant 0 : index
      %232 = vector.load %arg11[%c16_189, %c0_190] : memref<336x64xf32, #tpu.memory_space<vmem>>, vector<304x64xf32>
      %233 = arith.addf %232, %231 : vector<304x64xf32>
      %cst_191 = arith.constant 0.000000e+00 : f32
      %234 = vector.broadcast %cst_191 : f32 to vector<304x64xf32>
      %235 = arith.maximumf %233, %234 : vector<304x64xf32>
      %c0_192 = arith.constant 0 : index
      %c0_193 = arith.constant 0 : index
      %236 = vector.load %arg10[%c0_192, %c0_193] : memref<304x64xf32, #tpu.memory_space<vmem>>, vector<304x64xf32>
      %237 = arith.mulf %235, %236 : vector<304x64xf32>
      %c16_194 = arith.constant 16 : index
      %c0_195 = arith.constant 0 : index
      %238 = vector.load %arg11[%c16_194, %c0_195] : memref<336x64xf32, #tpu.memory_space<vmem>>, vector<304x64xf32>
      tpu.vector_store %arg11[%c16_194, %c0_195], %237 {strides = array<i32>} : memref<336x64xf32, #tpu.memory_space<vmem>>, vector<304x64xf32>,
      %239 = arith.truncf %237 : vector<304x64xf32> to vector<304x64xbf16>
      %c16_196 = arith.constant 16 : index
      %c0_197 = arith.constant 0 : index
      %240 = vector.load %arg12[%c16_196, %c0_197] : memref<336x64xbf16, #tpu.memory_space<vmem>>, vector<304x64xbf16>
      tpu.vector_store %arg12[%c16_196, %c0_197], %239 {strides = array<i32>} : memref<336x64xbf16, #tpu.memory_space<vmem>>, vector<304x64xbf16>,
    }
    %c16_i32_55 = arith.constant 16 : i32
    return
  }
}

</mosaic_0001>

<bundles_post_ra>
// kernel: dynamics_net_forward.1
= control target key start
LH: loop header
LB: loop body
LE: loop exit
PB: predicated region body
PF: predicated region fallthrough
CT: control target
= control target key end

     0   :  { %vm297_vm0 = vsmask.f32 6400  ;;  %vm1115_vm1 = vsmask.f32 5376  ;;  %vm845_vm2 = vcmask 1045504   ;;  %vm39_vm5 = vcmask 519168   ;;  %s19807_s1 = inlined_call_operand.vmem [shape: bf16[9,128,64], index: 1, kind: input, shape index: {}]   ;;  %s19808_s4 = inlined_call_operand.vmem [shape: bf16[144,64,64], index: 4, kind: input, shape index: {}]   ;;  %s19809_s5 = inlined_call_operand.vmem [shape: f32[16,1,64], index: 5, kind: input, shape index: {}]   ;;  %s19810_s6 = inlined_call_operand.vmem [shape: f32[16,1,64], index: 6, kind: input, shape index: {}]   ;;  %s19811_s7 = inlined_call_operand.vmem [shape: bf16[144,64,64], index: 7, kind: input, shape index: {}]   ;;  %s19812_s8 = inlined_call_operand.vmem [shape: f32[16,1,64], index: 8, kind: input, shape index: {}]   ;;  %s19813_s9 = inlined_call_operand.vmem [shape: f32[16,1,64], index: 9, kind: input, shape index: {}]   ;;  %s19814_s0 = inlined_call_operand.vmem [shape: bf16[336,128], index: 0, kind: input, shape index: {}]   ;;  %s19815_s2 = inlined_call_operand.vmem [shape: f32[1,64], index: 2, kind: input, shape index: {}]   ;;  %s19816_s3 = inlined_call_operand.vmem [shape: f32[1,64], index: 3, kind: input, shape index: {}]   ;;  %s19817_s11 = inlined_call_operand.vmem [shape: f32[336,64], index: 11, kind: output, shape index: {}]   ;;  %s19818_s10 = inlined_call_operand.vmem [shape: f32[304,64], index: 10, kind: input, shape index: {}]  }
   0x1   :  { %v13046_v0 = vld [vmem:[%s19807_s1 + $0x38] sm:$0xff]  ;;  %v13045_v1 = vld [vmem:[%s19807_s1 + $0x30] sm:$0xff]  ;;  %v13044_v2 = vld [vmem:[%s19807_s1 + $0x28] sm:$0xff]  ;;  %vm1454_vm3 = vsmask.f32 4352  ;;  %vm82_vm6 = vcmask 523264  }
   0x2   :  { %13966 = vmatpush.bf16.msra.mxu1 %v13046_v0  ;;  %13967 = vmatpush.bf16.msra.mxu2 %v13046_v0  ;;  %v180_v3 = vld [vmem:[%s19814_s0] sm:$0xe]  ;;  %v14146_v4 = vld [vmem:[%s19814_s0 + $0x4] sm:$0xf]  ;;  %v13042_v8 = vld [vmem:[%s19807_s1 + $0x18] sm:$0xff]  ;;  %s16299_s13 = smov 0  }
   0x3   :  { %544 = vmatpush.bf16.msra.mxu0 %v13046_v0  ;;  %13968 = vmatpush.bf16.msra.mxu3 %v13046_v0  ;;  %v13043_v5 = vld [vmem:[%s19807_s1 + $0x20] sm:$0xff]  ;;  %v238_v6 = vunpack.c.l.b16 %v180_v3  ;;  %v239_v7 = vunpack.c.l.b16 %v14146_v4  ;;  %v14158_v9 = vld [vmem:[%s19814_s0 + $0x28] sm:$0xff]   ;;  %v14163_v10 = vld [vmem:[%s19814_s0 + $0x30] sm:$0xff]   ;;  %vm1997_vm4 = vsmask.f32 7424 }
   0x4   :  { %v14168_v11 = vld [vmem:[%s19814_s0 + $0x50] sm:$0xff]   ;;  %v14173_v12 = vld [vmem:[%s19814_s0 + $0x58] sm:$0xff]   ;;  %v14180_v14 = vld [vmem:[%s19814_s0 + $0x8] sm:$0xff]   ;;  %v343_v15 = vshrl.u32 %v14158_v9, 16  ;;  %v346_v16 = vshll.u32 %v14158_v9, 16  ;;  %v352_v17 = vshrl.u32 %v14163_v10, 16 }
   0x5   :  { %v277_v13 = vpack.c.b16 %v239_v7, %v238_v6  ;;  %v355_v18 = vshll.u32 %v14163_v10, 16  ;;  %v14189_v19 = vld [vmem:[%s19814_s0 + $0x78] sm:$0xff]   ;;  %v14194_v20 = vld [vmem:[%s19814_s0 + $0x80] sm:$0xff]   ;;  %v13041_v21 = vld [vmem:[%s19807_s1 + $0x10] sm:$0xff]  ;;  %v19834_v22 = vshrl.u32 %v14168_v11, 16  ;;  %v19833_v23 = vshll.u32 %v14168_v11, 16 }
   0x6   :  { %13969 = vmatpush.bf16.msra.mxu1 %v13045_v1  ;;  %13970 = vmatpush.bf16.msra.mxu2 %v13045_v1  ;;  %v19832_v24 = vshrl.u32 %v14173_v12, 16  ;;  %v19831_v25 = vshll.u32 %v14173_v12, 16  ;;  %v307_v28 = vshrl.u32 %v14180_v14, 16  ;;  %v310_v29 = vshll.u32 %v14180_v14, 16  ;;  %v13040_v38 = vld [vmem:[%s19807_s1 + $0x8] sm:$0xff]  ;;  %v13039_v52 = vld [vmem:[%s19807_s1] sm:$0xff] }
   0x7   :  { %545 = vmatpush.bf16.msra.mxu0 %v13045_v1  ;;  %13971 = vmatpush.bf16.msra.mxu3 %v13045_v1  ;;  %v299_v26 = vshrl.u32 %v277_v13, 16  ;;  %v302_v27 = vshll.u32 %v277_v13, 16  ;;  %v19824_v30 = vshrl.u32 %v14189_v19, 16  ;;  %v19823_v31 = vshll.u32 %v14189_v19, 16  ;;  %v13054_v56 = vld [vmem:[%s19807_s1 + $0x78] sm:$0xff]  ;;  %v13037_v13 = vld [vmem:[%s19807_s1 + $0x130] sm:$0xff] }
   0x8   :  { %v19822_v32 = vshrl.u32 %v14194_v20, 16  ;;  %v19821_v33 = vshll.u32 %v14194_v20, 16  ;;  %v345_v34 = vrot.slane %v343_v15, 1  ;;  %v348_v35 = vrot.slane %v346_v16, 2  ;;  %v13038_v59 = vld [vmem:[%s19807_s1 + $0x138] sm:$0xff] }
   0x9   :  { %v354_v36 = vrot.slane %v352_v17, 1  ;;  %v357_v37 = vrot.slane %v355_v18, 2  ;;  %v390_v39 = vrot.slane %v19834_v22, 1  ;;  %v393_v40 = vrot.slane %v19833_v23, 2  ;;  %v13062_v0 = vld [vmem:[%s19807_s1 + $0xb8] sm:$0xff] }
   0xa   :  { %13972 = vmatpush.bf16.msra.mxu1 %v13044_v2  ;;  %13973 = vmatpush.bf16.msra.mxu2 %v13044_v2  ;;  %v399_v41 = vrot.slane %v19832_v24, 1  ;;  %v402_v42 = vrot.slane %v19831_v25, 2  ;;  %v301_v43 = vrot.slane %v299_v26, 1  ;;  %v304_v44 = vrot.slane %v302_v27, 2  ;;  %v14280_v3 = vld [vmem:[%s19814_s0 + $0x38] sm:$0xff]   ;;  %v14304_v26 = vld [vmem:[%s19814_s0 + $0x88] sm:$0xff]  }
   0xb   :  { %546 = vmatpush.bf16.msra.mxu0 %v13044_v2  ;;  %13974 = vmatpush.bf16.msra.mxu3 %v13044_v2  ;;  %v309_v45 = vrot.slane %v307_v28, 1  ;;  %v312_v46 = vrot.slane %v310_v29, 2  ;;  %v435_v47 = vrot.slane %v19824_v30, 1  ;;  %v438_v48 = vrot.slane %v19823_v31, 2  ;;  %v13053_v2 = vld [vmem:[%s19807_s1 + $0x70] sm:$0xff] }
   0xc   :  { %v444_v49 = vrot.slane %v19822_v32, 1  ;;  %v447_v50 = vrot.slane %v19821_v33, 2  ;;  %v14240_v51 = vor.u32 %v348_v35, %v345_v34  ;;  %v14245_v53 = vor.u32 %v357_v37, %v354_v36  ;;  %v13061_v37 = vld [vmem:[%s19807_s1 + $0xb0] sm:$0xff] }
   0xd   :  { %v14247_v54 = vor.u32 %v393_v40, %v390_v39  ;;  %v14249_v55 = vor.u32 %v402_v42, %v399_v41  ;;  %v305_v57 = vor.u32 %v304_v44, %v301_v43  ;;  %v14254_v58 = vor.u32 %v312_v46, %v309_v45  ;;  %v13052_v40 = vld [vmem:[%s19807_s1 + $0x68] sm:$0xff]  ;;  %v13069_v41 = vld [vmem:[%s19807_s1 + $0xf0] sm:$0xff] }
   0xe   :  { %13975 = vmatpush.bf16.msra.mxu1 %v13043_v5  ;;  %13976 = vmatpush.bf16.msra.mxu2 %v13043_v5  ;;  %v14259_v60 = vor.u32 %v438_v48, %v435_v47  ;;  %v14261_v61 = vor.u32 %v447_v50, %v444_v49  ;;  %v359_v62 = vsel %vm297_vm0, %v14240_v51, %v14245_v53  ;;  %v361_v27 = vshrl.u32 %v14280_v3, 16  ;;  %v13036_v42 = vld [vmem:[%s19807_s1 + $0x128] sm:$0xff] }
   0xf   :  { %547 = vmatpush.bf16.msra.mxu0 %v13043_v5  ;;  %13977 = vmatpush.bf16.msra.mxu3 %v13043_v5  ;;  %v404_v63 = vsel %vm297_vm0, %v14247_v54, %v14249_v55  ;;  %v314_v1 = vsel %vm297_vm0, %v305_v57, %v14254_v58  ;;  %v14285_v5 = vld [vmem:[%s19814_s0 + $0x60] sm:$0xff]   ;;  %v364_v34 = vshll.u32 %v14280_v3, 16  ;;  %v19820_v43 = vshrl.u32 %v14304_v26, 16  ;;  %v13060_v49 = vld [vmem:[%s19807_s1 + $0xa8] sm:$0xff] }
  0x10   :  { %v449_v6 = vsel %vm297_vm0, %v14259_v60, %v14261_v61  ;;  %v19830_v35 = vshrl.u32 %v14285_v5, 16  ;;  %v19829_v36 = vshll.u32 %v14285_v5, 16  ;;  %v19819_v44 = vshll.u32 %v14304_v26, 16 }
  0x11   :  { %v363_v45 = vrot.slane %v361_v27, 1  ;;  %v366_v46 = vrot.slane %v364_v34, 2  ;;  %v453_v57 = vrot.slane %v19820_v43, 1  ;;  %v182_v43 = vld [vmem:[%s19814_s0 + $0x98] sm:$0x3] }
  0x12   :  { %13978 = vmatpush.bf16.msra.mxu1 %v13042_v8  ;;  %13979 = vmatpush.bf16.msra.mxu2 %v13042_v8  ;;  %v408_v47 = vrot.slane %v19830_v35, 1  ;;  %v411_v48 = vrot.slane %v19829_v36, 2 }
  0x13   :  { %548 = vmatpush.bf16.msra.mxu0 %v13042_v8  ;;  %13980 = vmatpush.bf16.msra.mxu3 %v13042_v8  ;;  %v13070_v8 = vld [vmem:[%s19807_s1 + $0xf8] sm:$0xff] }
  0x16   :  { %13981 = vmatpush.bf16.msra.mxu1 %v13041_v21  ;;  %13982 = vmatpush.bf16.msra.mxu2 %v13041_v21 }
  0x17   :  { %549 = vmatpush.bf16.msra.mxu0 %v13041_v21  ;;  %13983 = vmatpush.bf16.msra.mxu3 %v13041_v21  ;;  %v14299_v21 = vld [vmem:[%s19814_s0 + $0x10] sm:$0xff]  }
  0x18   :  { %v319_v39 = vshll.u32 %v14299_v21, 16 }
  0x1a   :  { %13984 = vmatpush.bf16.msra.mxu1 %v13040_v38  ;;  %13985 = vmatpush.bf16.msra.mxu2 %v13040_v38 }
  0x1b   :  { %550 = vmatpush.bf16.msra.mxu0 %v13040_v38  ;;  %13986 = vmatpush.bf16.msra.mxu3 %v13040_v38  ;;  %v316_v38 = vshrl.u32 %v14299_v21, 16 }
  0x1d   :  { %v318_v50 = vrot.slane %v316_v38, 1 }
  0x1e   :  { %13987 = vmatpush.bf16.msra.mxu1 %v13039_v52  ;;  %13988 = vmatpush.bf16.msra.mxu2 %v13039_v52 }
  0x1f   :  { %551 = vmatpush.bf16.msra.mxu0 %v13039_v52  ;;  %13989 = vmatpush.bf16.msra.mxu3 %v13039_v52  ;;  %v321_v52 = vrot.slane %v319_v39, 2 }
  0x21   :  { %577 = vmatmul.bf16.vlgmr.msra.gmra.mxu1 %v359_v62  ;;  %602 = vmatmul.bf16.vlgmr.msra.gmra.mxu2 %v404_v63  ;;  %v13068_v62 = vld [vmem:[%s19807_s1 + $0xe8] sm:$0xff]  ;;  %v13035_v63 = vld [vmem:[%s19807_s1 + $0x120] sm:$0xff] }
  0x22   :  { %952 = vmatpush.bf16.msrb.mxu2 %v13054_v56  ;;  %720 = vmatpush.bf16.msrb.mxu1 %v13038_v59  ;;  %v13051_v56 = vld [vmem:[%s19807_s1 + $0x60] sm:$0xff]  ;;  %v456_v59 = vrot.slane %v19819_v44, 2 }
  0x23   :  { %552 = vmatmul.bf16.vlgmr.msra.gmra.mxu0 %v314_v1  ;;  %1272 = vmatpush.bf16.msrb.mxu3 %v13062_v0  ;;  %v14354_v0 = vor.u32 %v366_v46, %v363_v45  ;;  %v14356_v1 = vor.u32 %v411_v48, %v408_v47  ;;  %v14383_v45 = vld [vmem:[%s19814_s0 + $0x40] sm:$0xff]   ;;  %v14391_v47 = vld [vmem:[%s19814_s0 + $0x68] sm:$0xff]   ;;  %v14405_v48 = vld [vmem:[%s19814_s0 + $0x90] sm:$0xff]  }
  0x24   :  { %627 = vmatmul.bf16.vlgmr.msra.gmra.mxu3 %v449_v6  ;;  %1701 = vmatpush.bf16.msrb.mxu0 %v13070_v8  ;;  %v14361_v6 = vor.u32 %v321_v52, %v318_v50  ;;  %v13050_v8 = vld [vmem:[%s19807_s1 + $0x58] sm:$0xff]  ;;  %v19825_v50 = vshll.u32 %v14391_v47, 16  ;;  %v13049_v52 = vld [vmem:[%s19807_s1 + $0x50] sm:$0xff] }
  0x26   :  { %953 = vmatpush.bf16.msrb.mxu2 %v13053_v2  ;;  %721 = vmatpush.bf16.msrb.mxu1 %v13037_v13  ;;  %v13059_v2 = vld [vmem:[%s19807_s1 + $0xa0] sm:$0xff]  ;;  %v14366_v13 = vor.u32 %v456_v59, %v453_v57  ;;  %v323_v46 = vsel %vm297_vm0, %v14254_v58, %v14361_v6  ;;  %v370_v58 = vshrl.u32 %v14383_v45, 16  ;;  %v13066_v57 = vld [vmem:[%s19807_s1 + $0xd8] sm:$0xff] }
  0x27   :  { %1273 = vmatpush.bf16.msrb.mxu3 %v13061_v37  ;;  %v13067_v37 = vld [vmem:[%s19807_s1 + $0xe0] sm:$0xff] }
  0x28   :  { %1702 = vmatpush.bf16.msrb.mxu0 %v13069_v41  ;;  %v368_v41 = vsel %vm297_vm0, %v14245_v53, %v14354_v0  ;;  %v458_v53 = vsel %vm297_vm0, %v14261_v61, %v14366_v13  ;;  %v19828_v61 = vshrl.u32 %v14391_v47, 16 }
  0x2a   :  { %954 = vmatpush.bf16.msrb.mxu2 %v13052_v40  ;;  %722 = vmatpush.bf16.msrb.mxu1 %v13036_v42  ;;  %v13034_v40 = vld [vmem:[%s19807_s1 + $0x118] sm:$0xff]  ;;  %v413_v42 = vsel %vm297_vm0, %v14249_v55, %v14356_v1 }
  0x2b   :  { %1274 = vmatpush.bf16.msrb.mxu3 %v13060_v49  ;;  %v14399_v55 = vld [vmem:[%s19814_s0 + $0x18] sm:$0xff]   ;;  %v19839_v49 = vshll.u32 %v14383_v45, 16 }
  0x2c   :  { %1703 = vmatpush.bf16.msrb.mxu0 %v13068_v62  ;;  %v325_v59 = vshrl.u32 %v14399_v55, 16  ;;  %v328_v62 = vshll.u32 %v14399_v55, 16 }
  0x2e   :  { %955 = vmatpush.bf16.msrb.mxu2 %v13051_v56  ;;  %723 = vmatpush.bf16.msrb.mxu1 %v13035_v63  ;;  %v13058_v56 = vld [vmem:[%s19807_s1 + $0x98] sm:$0xff]  ;;  %v13033_v63 = vld [vmem:[%s19807_s1 + $0x110] sm:$0xff] }
  0x2f   :  { %1275 = vmatpush.bf16.msrb.mxu3 %v13059_v2  ;;  %v19827_v2 = vshrl.u32 %v14405_v48, 16 }
  0x30   :  { %1704 = vmatpush.bf16.msrb.mxu0 %v13067_v37  ;;  %v13057_v37 = vld [vmem:[%s19807_s1 + $0x90] sm:$0xff] }
  0x31   :  { %582 = vmatmul.bf16.gmra.mxu1 %v368_v41  ;;  %607 = vmatmul.bf16.gmra.mxu2 %v413_v42  ;;  %v13065_v41 = vld [vmem:[%s19807_s1 + $0xd0] sm:$0xff]  ;;  %v372_v42 = vrot.slane %v370_v58, 1 }
  0x32   :  { %956 = vmatpush.bf16.msrb.mxu2 %v13050_v8  ;;  %724 = vmatpush.bf16.msrb.mxu1 %v13034_v40  ;;  %v19826_v8 = vshll.u32 %v14405_v48, 16  ;;  %v13048_v40 = vld [vmem:[%s19807_s1 + $0x48] sm:$0xff] }
  0x33   :  { %557 = vmatmul.bf16.gmra.mxu0 %v323_v46  ;;  %1276 = vmatpush.bf16.msrb.mxu3 %v13058_v56  ;;  %v375_v46 = vrot.slane %v19839_v49, 2  ;;  %v327_v56 = vrot.slane %v325_v59, 1 }
  0x34   :  { %632 = vmatmul.bf16.gmra.mxu3 %v458_v53  ;;  %1705 = vmatpush.bf16.msrb.mxu0 %v13066_v57  ;;  %v417_v53 = vrot.slane %v19828_v61, 1  ;;  %v330_v57 = vrot.slane %v328_v62, 2  ;;  %v465_v44 = vrot.slane %v19826_v8, 2  ;;  %v1125_v61 = vrot.slane %v310_v29, 3 }
  0x35   :  { %v14454_v33 = vor.u32 %v375_v46, %v372_v42 }
  0x36   :  { %957 = vmatpush.bf16.msrb.mxu2 %v13049_v52  ;;  %725 = vmatpush.bf16.msrb.mxu1 %v13033_v63  ;;  %v420_v52 = vrot.slane %v19825_v50, 2  ;;  %v462_v63 = vrot.slane %v19827_v2, 1  ;;  %v14458_v31 = vor.u32 %v330_v57, %v327_v56  ;;  %v276_v50 = vunpack.c.l.b16 %v182_v43  ;;  %v14479_v43 = vld [vmem:[%s19814_s0 + $0x70] sm:$0xff]   ;;  %v13064_v57 = vld [vmem:[%s19807_s1 + $0xc8] sm:$0xff]  ;;  %v13031_v2 = vld [vmem:[%s19807_s1 + $0x100] sm:$0xff] }
  0x37   :  { %1277 = vmatpush.bf16.msrb.mxu3 %v13057_v37  ;;  %v377_v8 = vsel %vm297_vm0, %v14354_v0, %v14454_v33  ;;  %v19838_v56 = vshll.u32 %v14479_v43, 16 }
  0x38   :  { %1706 = vmatpush.bf16.msrb.mxu0 %v13065_v41  ;;  %v14456_v32 = vor.u32 %v420_v52, %v417_v53  ;;  %v14460_v30 = vor.u32 %v465_v44, %v462_v63  ;;  %v332_v41 = vsel %vm297_vm0, %v14361_v6, %v14458_v31  ;;  %v824_v44 = vld [vmem:[%s19814_s0] sm:$0xc]  ;;  %v14492_v42 = vpack.c.b16 %v276_v50, %v276_v50  ;;  %v13032_v52 = vld [vmem:[%s19807_s1 + $0x108] sm:$0xff] }
  0x39   :  { %v843_v6 = vunpack.c.l.b16 %v824_v44  ;;  %v13056_v50 = vld [vmem:[%s19807_s1 + $0x88] sm:$0xff]  ;;  %v429_v35 = vrot.slane %v19838_v56, 2 }
  0x3a   :  { %958 = vmatpush.bf16.msrb.mxu2 %v13048_v40  ;;  %v422_v37 = vsel %vm297_vm0, %v14356_v1, %v14456_v32  ;;  %v14471_v40 = vld [vmem:[%s19814_s0 + $0x48] sm:$0xff]   ;;  %v467_v0 = vsel %vm297_vm0, %v14366_v13, %v14460_v30  ;;  %v14490_v1 = vld [vmem:[%s19814_s0 + $0x20] sm:$0xff]   ;;  %v19836_v13 = vshrl.u32 %v14479_v43, 16  ;;  %726 = vmatpush.bf16.msrb.mxu1 %v13032_v52  ;;  %v469_v4 = vshrl.u32 %v14492_v42, 16 }
  0x3b   :  { %v19837_v46 = vshrl.u32 %v14471_v40, 16  ;;  %v19835_v53 = vshll.u32 %v14471_v40, 16  ;;  %v14512_v63 = vpack.c.b16 %v239_v7, %v843_v6  ;;  %v337_v44 = vshll.u32 %v14490_v1, 16  ;;  %1278 = vmatpush.bf16.msrb.mxu3 %v13056_v50  ;;  %v13063_v50 = vld [vmem:[%s19807_s1 + $0xc0] sm:$0xff] }
  0x3c   :  { %v472_v7 = vshll.u32 %v14492_v42, 16  ;;  %1707 = vmatpush.bf16.msrb.mxu0 %v13064_v57 }
  0x3d   :  { %v1120_v6 = vshll.u32 %v14512_v63, 16  ;;  %v381_v52 = vrot.slane %v19837_v46, 1  ;;  %v384_v29 = vrot.slane %v19835_v53, 2  ;;  %v339_v22 = vrot.slane %v337_v44, 2 }
  0x3e   :  { %727 = vmatpush.bf16.msrb.mxu1 %v13031_v2  ;;  %v474_v57 = vrot.slane %v472_v7, 2 }
  0x3f   :  { %v1122_v24 = vrot.slane %v1120_v6, 3  ;;  %v385_v53 = vor.u32 %v384_v29, %v381_v52 }
  0x40   :  { %1708 = vmatpush.bf16.msrb.mxu0 %v13063_v50 }
  0x41   :  { %587 = vmatmul.bf16.gmra.mxu1 %v377_v8  ;;  %612 = vmatmul.bf16.gmra.mxu2 %v422_v37  ;;  %v13047_v8 = vld [vmem:[%s19807_s1 + $0x40] sm:$0xff]  ;;  %v1124_v37 = vrot.slane %v307_v28, 2  ;;  %v386_v6 = vsel %vm297_vm0, %v14454_v33, %v385_v53 }
  0x42   :  { %959 = vmatpush.bf16.msrb.mxu2 %v13047_v8  ;;  %v13055_v28 = vld [vmem:[%s19807_s1 + $0x80] sm:$0xff]  ;;  %v426_v8 = vrot.slane %v19836_v13, 1 }
  0x43   :  { %562 = vmatmul.bf16.gmra.mxu0 %v332_v41  ;;  %v334_v41 = vshrl.u32 %v14490_v1, 16  ;;  %v1126_v36 = vor.u32 %v1125_v61, %v1124_v37  ;;  %v471_v61 = vrot.slane %v469_v4, 1  ;;  %1279 = vmatpush.bf16.msrb.mxu3 %v13055_v28 }
  0x44   :  { %637 = vmatmul.bf16.gmra.mxu3 %v467_v0  ;;  %v1117_v0 = vshrl.u32 %v14512_v63, 16  ;;  %v430_v13 = vor.u32 %v429_v35, %v426_v8  ;;  %v13856_v35 = vld [vmem:[%s19814_s0 + $0x4] sm:$0xf0]  }
  0x45   :  { %v336_v23 = vrot.slane %v334_v41, 1 }
  0x46   :  { %v1119_v25 = vrot.slane %v1117_v0, 2  ;;  %v475_v0 = vor.u32 %v474_v57, %v471_v61  ;;  %v431_v49 = vsel %vm297_vm0, %v14456_v32, %v430_v13 }
  0x47   :  { %v340_v56 = vor.u32 %v339_v22, %v336_v23  ;;  %v13131_v22 = vld [vmem:[%s19807_s1 + $0x1f8] sm:$0xff] }
  0x48   :  { %v1123_v37 = vor.u32 %v1122_v24, %v1119_v25  ;;  %v476_v4 = vsel %vm297_vm0, %v14460_v30, %v475_v0  ;;  %v13123_v24 = vld [vmem:[%s19807_s1 + $0x1b8] sm:$0xff]  ;;  %v1128_v25 = vrot.slane %v316_v38, 2  ;;  %v1129_v30 = vrot.slane %v319_v39, 3  ;;  %3032 = vmatpush.bf16.msra.mxu3 %v13131_v22  ;;  %v13537_v38 = vld [vmem:[%s19814_s0 + $0x4] sm:$0x8] }
  0x49   :  { %v341_v2 = vsel %vm297_vm0, %v14458_v31, %v340_v56  ;;  %v13097_v23 = vld [vmem:[%s19807_s1 + $0x178] sm:$0xff]  ;;  %2763 = vmatpush.bf16.msra.mxu2 %v13123_v24  ;;  %v395_v39 = vsel %vm297_vm0, %v385_v53, %v14247_v54  ;;  %v350_v7 = vsel %vm297_vm0, %v340_v56, %v14240_v51  ;;  %v13538_v28 = vor.u32 %v13856_v35, %v13537_v38  ;;  %v13096_v24 = vld [vmem:[%s19807_s1 + $0x170] sm:$0xff] }
  0x4a   :  { %v1127_v46 = vsel %vm1115_vm1, %v1123_v37, %v1126_v36  ;;  %v13139_v31 = vld [vmem:[%s19807_s1 + $0x238] sm:$0xff]  ;;  %2221 = vmatpush.bf16.msra.mxu1 %v13097_v23  ;;  %v1130_v32 = vor.u32 %v1129_v30, %v1128_v25  ;;  %v847_v51 = vrot.slane %v14180_v14, 2  ;;  %v1132_v23 = vrot.slane %v325_v59, 2  ;;  %v13138_v59 = vld [vmem:[%s19807_s1 + $0x230] sm:$0xff] }
  0x4b   :  { %3351 = vmatpush.bf16.msra.mxu0 %v13139_v31  ;;  %v1456_v52 = vshrl.u32 %v13538_v28, 16  ;;  %v1459_v29 = vshll.u32 %v13538_v28, 16  ;;  %v13860_v0 = vld [vmem:[%s19814_s0 + $0x14] sm:$0xff]   ;;  %v1133_v25 = vrot.slane %v328_v62, 3  ;;  %v849_v30 = vrot.slane %v14299_v21, 2 }
  0x4c   :  { %v1131_v33 = vsel %vm1115_vm1, %v1126_v36, %v1130_v32  ;;  %v13858_v36 = vld [vmem:[%s19814_s0 + $0xc] sm:$0xff]  }
  0x4d   :  { %v1464_v50 = vshrl.u32 %v13858_v36, 16  ;;  %v1467_v8 = vshll.u32 %v13858_v36, 16  ;;  %v1458_v54 = vrot.slane %v1456_v52, 3  ;;  %v1461_v53 = vrot.slane %v1459_v29, 4 }
  0x4e   :  { %2222 = vmatpush.bf16.msra.mxu1 %v13096_v24  ;;  %v850_v35 = vsel %vm845_vm2, %v847_v51, %v849_v30  ;;  %v1136_v52 = vrot.slane %v334_v41, 2  ;;  %v13095_v24 = vld [vmem:[%s19807_s1 + $0x168] sm:$0xff] }
  0x4f   :  { %v1466_v61 = vrot.slane %v1464_v50, 3  ;;  %v1462_v56 = vor.u32 %v1461_v53, %v1458_v54  ;;  %3352 = vmatpush.bf16.msra.mxu0 %v13138_v59  ;;  %v13864_v53 = vld [vmem:[%s19814_s0 + $0x24] sm:$0xff]  }
  0x50   :  { %v1491_v41 = vshrl.u32 %v13864_v53, 16 }
  0x51   :  { %592 = vmatmul.bf16.gmra.mxu1 %v386_v6  ;;  %617 = vmatmul.bf16.gmra.mxu2 %v431_v49  ;;  %v440_v49 = vsel %vm297_vm0, %v430_v13, %v14259_v60  ;;  %v1469_v60 = vrot.slane %v1467_v8, 4  ;;  %v846_v13 = vrot.slane %v14512_v63, 2  ;;  %v13122_v63 = vld [vmem:[%s19807_s1 + $0x1b0] sm:$0xff] }
  0x52   :  { %v13130_v6 = vld [vmem:[%s19807_s1 + $0x1f0] sm:$0xff]  ;;  %2764 = vmatpush.bf16.msra.mxu2 %v13122_v63  ;;  %2223 = vmatpush.bf16.msra.mxu1 %v13095_v24 }
  0x53   :  { %567 = vmatmul.bf16.gmra.mxu0 %v341_v2  ;;  %v1470_v57 = vor.u32 %v1469_v60, %v1466_v61  ;;  %v848_v37 = vsel %vm845_vm2, %v846_v13, %v847_v51  ;;  %v1473_v2 = vshrl.u32 %v13860_v0, 16  ;;  %3033 = vmatpush.bf16.msra.mxu3 %v13130_v6  ;;  %v1493_v60 = vrot.slane %v1491_v41, 3 }
  0x54   :  { %642 = vmatmul.bf16.gmra.mxu3 %v476_v4  ;;  %v1476_v4 = vshll.u32 %v13860_v0, 16  ;;  %v1140_v51 = vrot.slane %v343_v15, 2  ;;  %v13129_v15 = vld [vmem:[%s19807_s1 + $0x1e8] sm:$0xff] }
  0x56   :  { %v1478_v22 = vrot.slane %v1476_v4, 4 }
  0x57   :  { %3034 = vmatpush.bf16.msra.mxu3 %v13129_v15 }
  0x61   :  { %597 = vmatmul.bf16.gmra.mxu1 %v395_v39  ;;  %622 = vmatmul.bf16.gmra.mxu2 %v440_v49  ;;  %v13862_v39 = vld [vmem:[%s19814_s0 + $0x1c] sm:$0xff]  }
  0x62   :  { %v1482_v62 = vshrl.u32 %v13862_v39, 16 }
  0x63   :  { %572 = vmatmul.bf16.gmra.mxu0 %v350_v7  ;;  %v1485_v7 = vshll.u32 %v13862_v39, 16  ;;  %v1145_v39 = vrot.slane %v355_v18, 3  ;;  %v13868_v18 = vld [vmem:[%s19814_s0 + $0x34] sm:$0xff]  }
  0x64   :  { %1280 = vmatmul.bf16.vlgmr.msrb.gmra.mxu3 %v1127_v46  ;;  %v1471_v46 = vsel %vm1454_vm3, %v1462_v56, %v1470_v57  ;;  %v1484_v36 = vrot.slane %v1482_v62, 3  ;;  %v1141_v56 = vrot.slane %v346_v16, 3 }
  0x65   :  { %v1487_v28 = vrot.slane %v1485_v7, 4 }
  0x67   :  { %v1488_v29 = vor.u32 %v1487_v28, %v1484_v36 }
  0x71   :  { %728 = vmatmul.bf16.vlgmr.msrb.gmra.mxu1 %v14180_v14  ;;  %960 = vmatmul.bf16.vlgmr.msrb.gmra.mxu2 %v848_v37  ;;  %v1475_v14 = vrot.slane %v1473_v2, 3  ;;  %v13866_v2 = vld [vmem:[%s19814_s0 + $0x2c] sm:$0xff]  }
  0x73   :  { %1709 = vmatmul.bf16.vlgmr.msrb.gmra.mxu0 %v1471_v46  ;;  %v1479_v31 = vor.u32 %v1478_v22, %v1475_v14  ;;  %v1142_v46 = vor.u32 %v1141_v56, %v1140_v51  ;;  %v1500_v14 = vshrl.u32 %v13866_v2, 16  ;;  %v1503_v22 = vshll.u32 %v13866_v2, 16 }
  0x74   :  { %1285 = vmatmul.bf16.gmra.mxu3 %v1131_v33  ;;  %v1134_v33 = vor.u32 %v1133_v25, %v1132_v23 }
  0x75   :  { %v1480_v38 = vsel %vm1454_vm3, %v1470_v57, %v1479_v31  ;;  %v1489_v54 = vsel %vm1454_vm3, %v1479_v31, %v1488_v29  ;;  %v853_v57 = vrot.slane %v14490_v1, 2 }
  0x76   :  { %v1135_v49 = vsel %vm1115_vm1, %v1130_v32, %v1134_v33  ;;  %v1137_v32 = vrot.slane %v337_v44, 3  ;;  %v1494_v44 = vshll.u32 %v13864_v53, 16 }
  0x78   :  { %v1138_v50 = vor.u32 %v1137_v32, %v1136_v52  ;;  %v1496_v13 = vrot.slane %v1494_v44, 4 }
  0x7a   :  { %v1139_v61 = vsel %vm1115_vm1, %v1134_v33, %v1138_v50  ;;  %v1497_v37 = vor.u32 %v1496_v13, %v1493_v60  ;;  %v1143_v4 = vsel %vm1115_vm1, %v1138_v50, %v1142_v46  ;;  %v1502_v33 = vrot.slane %v1500_v14, 3  ;;  %v13128_v14 = vld [vmem:[%s19807_s1 + $0x1e0] sm:$0xff] }
  0x7b   :  { %v1512_v50 = vshll.u32 %v13868_v18, 16  ;;  %v1148_v60 = vrot.slane %v361_v27, 2  ;;  %v857_v13 = vrot.slane %v14163_v10, 2  ;;  %v13870_v27 = vld [vmem:[%s19814_s0 + $0x3c] sm:$0xff]   ;;  %3035 = vmatpush.bf16.msra.mxu3 %v13128_v14 }
  0x7c   :  { %v1498_v16 = vsel %vm1454_vm3, %v1488_v29, %v1497_v37  ;;  %v1509_v29 = vshrl.u32 %v13868_v18, 16  ;;  %v1518_v2 = vshrl.u32 %v13870_v27, 16 }
  0x7d   :  { %v1514_v44 = vrot.slane %v1512_v50, 4 }
  0x7e   :  { %v1511_v41 = vrot.slane %v1509_v29, 3 }
  0x80   :  { %v1515_v51 = vor.u32 %v1514_v44, %v1511_v41 }
  0x81   :  { %733 = vmatmul.bf16.gmra.mxu1 %v14299_v21  ;;  %965 = vmatmul.bf16.gmra.mxu2 %v850_v35  ;;  %v851_v21 = vrot.slane %v14399_v55, 2  ;;  %v1505_v35 = vrot.slane %v1503_v22, 4 }
  0x83   :  { %1714 = vmatmul.bf16.gmra.mxu0 %v1480_v38  ;;  %v852_v8 = vsel %vm845_vm2, %v849_v30, %v851_v21  ;;  %v854_v63 = vsel %vm845_vm2, %v851_v21, %v853_v57  ;;  %v1144_v38 = vrot.slane %v352_v17, 2  ;;  %v1506_v59 = vor.u32 %v1505_v35, %v1502_v33 }
  0x84   :  { %1290 = vmatmul.bf16.gmra.mxu3 %v1135_v49  ;;  %v855_v49 = vrot.slane %v14158_v9, 2  ;;  %v1520_v35 = vrot.slane %v1518_v2, 3 }
  0x85   :  { %v1146_v7 = vor.u32 %v1145_v39, %v1144_v38  ;;  %v1507_v17 = vsel %vm1454_vm3, %v1497_v37, %v1506_v59  ;;  %v1516_v15 = vsel %vm1454_vm3, %v1506_v59, %v1515_v51  ;;  %v1152_v39 = vrot.slane %v370_v58, 2 }
  0x86   :  { %v856_v28 = vsel %vm845_vm2, %v853_v57, %v855_v49 }
  0x87   :  { %v1147_v21 = vsel %vm1115_vm1, %v1142_v46, %v1146_v7  ;;  %v858_v46 = vsel %vm845_vm2, %v855_v49, %v857_v13  ;;  %v19969_v49 = vshll.u32 %v14383_v45, 16 }
  0x89   :  { %v1153_v59 = vrot.slane %v19969_v49, 3 }
  0x8b   :  { %v1154_v18 = vor.u32 %v1153_v59, %v1152_v39 }
  0x91   :  { %738 = vmatmul.bf16.gmra.mxu1 %v14399_v55  ;;  %970 = vmatmul.bf16.gmra.mxu2 %v852_v8  ;;  %v13121_v55 = vld [vmem:[%s19807_s1 + $0x1a8] sm:$0xff] }
  0x92   :  { %2765 = vmatpush.bf16.msra.mxu2 %v13121_v55 }
  0x93   :  { %1719 = vmatmul.bf16.gmra.mxu0 %v1489_v54 }
  0x94   :  { %1295 = vmatmul.bf16.gmra.mxu3 %v1139_v61 }
  0x9e   :  { %v14638_v0 = vpop.f32.mrf.mxu1 }
  0xa0   :  { %v14644_v6 = vpop.f32.mrf.mxu0 }
  0xa1   :  { %743 = vmatmul.bf16.gmra.mxu1 %v14490_v1  ;;  %975 = vmatmul.bf16.gmra.mxu2 %v854_v63  ;;  %v13137_v1 = vld [vmem:[%s19807_s1 + $0x228] sm:$0xff] }
  0xa2   :  { %3353 = vmatpush.bf16.msra.mxu0 %v13137_v1 }
  0xa3   :  { %1724 = vmatmul.bf16.gmra.mxu0 %v1498_v16  ;;  %v13120_v16 = vld [vmem:[%s19807_s1 + $0x1a0] sm:$0xff] }
  0xa4   :  { %1300 = vmatmul.bf16.gmra.mxu3 %v1143_v4  ;;  %v14655_v23 = vpop.f32.mrf.mxu2  ;;  %v1521_v4 = vshll.u32 %v13870_v27, 16  ;;  %2766 = vmatpush.bf16.msra.mxu2 %v13120_v16 }
  0xa6   :  { %v14657_v25 = vpop.f32.mrf.mxu1  ;;  %v1523_v38 = vrot.slane %v1521_v4, 4  ;;  %v19972_v4 = vshrl.u32 %v14471_v40, 16 }
  0xa7   :  { %v14659_v30 = vpop.f32.mrf.mxu3 }
  0xa8   :  { %19964 = vst [vmem:[#allocation3_spill] sm:$0xff] %v14659_v30  ;;  %v14664_v31 = vpop.f32.mrf.mxu0 }
  0xac   :  { %v14671_v62 = vpop.f32.mrf.mxu2 }
  0xae   :  { %v14673_v36 = vpop.f32.mrf.mxu1 }
  0xaf   :  { %v14676_v52 = vpop.f32.mrf.mxu3 }
  0xb0   :  { %19965 = vst [vmem:[#allocation4_spill] sm:$0xff] %v14676_v52  ;;  %v14678_v32 = vpop.f32.mrf.mxu0  ;;  %v19979_v52 = vshll.u32 %v14173_v12, 16 }
  0xb1   :  { %748 = vmatmul.bf16.gmra.mxu1 %v14158_v9  ;;  %980 = vmatmul.bf16.gmra.mxu2 %v856_v28  ;;  %v1149_v9 = vrot.slane %v364_v34, 3  ;;  %v1524_v28 = vor.u32 %v1523_v38, %v1520_v35 }
  0xb2   :  { %v1165_v30 = vrot.slane %v19979_v52, 3 }
  0xb3   :  { %1729 = vmatmul.bf16.gmra.mxu0 %v1507_v17  ;;  %v1150_v57 = vor.u32 %v1149_v9, %v1148_v60  ;;  %v1525_v44 = vsel %vm1454_vm3, %v1515_v51, %v1524_v28  ;;  %v13872_v60 = vld [vmem:[%s19814_s0 + $0x44] sm:$0xff]  }
  0xb4   :  { %1305 = vmatmul.bf16.gmra.mxu3 %v1147_v21  ;;  %v14686_v8 = vpop.f32.mrf.mxu2  ;;  %v13136_v21 = vld [vmem:[%s19807_s1 + $0x220] sm:$0xff] }
  0xb5   :  { %v1151_v34 = vsel %vm1115_vm1, %v1146_v7, %v1150_v57  ;;  %v859_v7 = vrot.slane %v14280_v3, 2  ;;  %3354 = vmatpush.bf16.msra.mxu0 %v13136_v21  ;;  %v1155_v9 = vsel %vm1115_vm1, %v1150_v57, %v1154_v18  ;;  %v1156_v57 = vrot.slane %v19972_v4, 2 }
  0xb6   :  { %v14688_v54 = vpop.f32.mrf.mxu1 }
  0xb7   :  { %v14690_v53 = vpop.f32.mrf.mxu3  ;;  %v860_v50 = vsel %vm845_vm2, %v857_v13, %v859_v7  ;;  %v1530_v13 = vshll.u32 %v13872_v60, 16 }
  0xb8   :  { %19966 = vst [vmem:[#allocation5_spill] sm:$0xff] %v14690_v53  ;;  %v14692_v61 = vpop.f32.mrf.mxu0 }
  0xb9   :  { %v1532_v2 = vrot.slane %v1530_v13, 4 }
  0xbc   :  { %v14699_v56 = vpop.f32.mrf.mxu2 }
  0xbe   :  { %v14701_v37 = vpop.f32.mrf.mxu1 }
  0xbf   :  { %v14704_v55 = vpop.f32.mrf.mxu3 }
  0xc0   :  { %19967 = vst [vmem:[#allocation6_spill] sm:$0xff] %v14704_v55  ;;  %v14706_v63 = vpop.f32.mrf.mxu0 }
  0xc1   :  { %753 = vmatmul.bf16.gmra.mxu1 %v14163_v10  ;;  %985 = vmatmul.bf16.gmra.mxu2 %v858_v46  ;;  %v13094_v10 = vld [vmem:[%s19807_s1 + $0x160] sm:$0xff]  ;;  %v1527_v46 = vshrl.u32 %v13872_v60, 16  ;;  %v13874_v60 = vld [vmem:[%s19814_s0 + $0x4c] sm:$0xff]  }
  0xc2   :  { %2224 = vmatpush.bf16.msra.mxu1 %v13094_v10  ;;  %v861_v10 = vrot.slane %v14383_v45, 2  ;;  %v1539_v13 = vshll.u32 %v13874_v60, 16 }
  0xc3   :  { %1734 = vmatmul.bf16.gmra.mxu0 %v1516_v15  ;;  %v1529_v16 = vrot.slane %v1527_v46, 3  ;;  %v1536_v46 = vshrl.u32 %v13874_v60, 16  ;;  %v863_v60 = vrot.slane %v14471_v40, 2 }
  0xc4   :  { %1310 = vmatmul.bf16.gmra.mxu3 %v1151_v34  ;;  %v14717_v24 = vpop.f32.mrf.mxu2  ;;  %v862_v59 = vsel %vm845_vm2, %v859_v7, %v861_v10 }
  0xc5   :  { %v1533_v35 = vor.u32 %v1532_v2, %v1529_v16 }
  0xc6   :  { %v14722_v22 = vpop.f32.mrf.mxu1 }
  0xc7   :  { %v14724_v1 = vpop.f32.mrf.mxu3 }
  0xc8   :  { %19968 = vst [vmem:[#allocation7_spill] sm:$0xff] %v14724_v1  ;;  %v14729_v33 = vpop.f32.mrf.mxu0 }
  0xcc   :  { %v14736_v17 = vpop.f32.mrf.mxu2 }
  0xce   :  { %v14741_v29 = vpop.f32.mrf.mxu1 }
  0xcf   :  { %v14744_v41 = vpop.f32.mrf.mxu3 }
  0xd0   :  { %19970 = vst [vmem:[#allocation8_spill] sm:$0xff] %v14744_v41  ;;  %v14746_v58 = vpop.f32.mrf.mxu0 }
  0xd1   :  { %758 = vmatmul.bf16.gmra.mxu1 %v14280_v3  ;;  %990 = vmatmul.bf16.gmra.mxu2 %v860_v50  ;;  %v19973_v3 = vshll.u32 %v14471_v40, 16 }
  0xd3   :  { %1739 = vmatmul.bf16.gmra.mxu0 %v1525_v44  ;;  %v1157_v14 = vrot.slane %v19973_v3, 3  ;;  %v1534_v44 = vsel %vm1454_vm3, %v1524_v28, %v1533_v35  ;;  %v1538_v28 = vrot.slane %v1536_v46, 3  ;;  %v19975_v3 = vshrl.u32 %v14168_v11, 16 }
  0xd4   :  { %1315 = vmatmul.bf16.gmra.mxu3 %v1155_v9  ;;  %v14754_v15 = vpop.f32.mrf.mxu2 }
  0xd5   :  { %v1158_v39 = vor.u32 %v1157_v14, %v1156_v57  ;;  %v1541_v57 = vrot.slane %v1539_v13, 4  ;;  %v1160_v14 = vrot.slane %v19975_v3, 2 }
  0xd6   :  { %v14756_v27 = vpop.f32.mrf.mxu1 }
  0xd7   :  { %v14758_v34 = vpop.f32.mrf.mxu3  ;;  %v1159_v9 = vsel %vm1115_vm1, %v1154_v18, %v1158_v39  ;;  %v13119_v18 = vld [vmem:[%s19807_s1 + $0x198] sm:$0xff] }
  0xd8   :  { %19971 = vst [vmem:[#allocation9_spill] sm:$0xff] %v14758_v34  ;;  %v14760_v51 = vpop.f32.mrf.mxu0  ;;  %2767 = vmatpush.bf16.msra.mxu2 %v13119_v18  ;;  %v864_v34 = vsel %vm845_vm2, %v861_v10, %v863_v60  ;;  %v13093_v18 = vld [vmem:[%s19807_s1 + $0x158] sm:$0xff] }
  0xd9   :  { %2225 = vmatpush.bf16.msra.mxu1 %v13093_v18  ;;  %v13135_v10 = vld [vmem:[%s19807_s1 + $0x218] sm:$0xff] }
  0xda   :  { %3355 = vmatpush.bf16.msra.mxu0 %v13135_v10 }
  0xdc   :  { %v14767_v38 = vpop.f32.mrf.mxu2 }
  0xde   :  { %v14769_v49 = vpop.f32.mrf.mxu1 }
  0xdf   :  { %v14772_v21 = vpop.f32.mrf.mxu3 }
  0xe0   :  { %19974 = vst [vmem:[#allocation10_spill] sm:$0xff] %v14772_v21  ;;  %v14774_v50 = vpop.f32.mrf.mxu0 }
  0xe1   :  { %763 = vmatmul.bf16.gmra.mxu1 %v14383_v45  ;;  %995 = vmatmul.bf16.gmra.mxu2 %v862_v59  ;;  %v13127_v45 = vld [vmem:[%s19807_s1 + $0x1d8] sm:$0xff]  ;;  %v19976_v59 = vshll.u32 %v14168_v11, 16 }
  0xe2   :  { %3036 = vmatpush.bf16.msra.mxu3 %v13127_v45  ;;  %v13876_v11 = vld [vmem:[%s19814_s0 + $0x54] sm:$0xff]  }
  0xe3   :  { %1744 = vmatmul.bf16.gmra.mxu0 %v1534_v44  ;;  %v1161_v44 = vrot.slane %v19976_v59, 3  ;;  %v1548_v45 = vshll.u32 %v13876_v11, 16 }
  0xe4   :  { %1320 = vmatmul.bf16.gmra.mxu3 %v1159_v9  ;;  %v14782_v7 = vpop.f32.mrf.mxu2  ;;  %v1542_v9 = vor.u32 %v1541_v57, %v1538_v28  ;;  %v1545_v57 = vshrl.u32 %v13876_v11, 16 }
  0xe5   :  { %v1162_v13 = vor.u32 %v1161_v44, %v1160_v14 }
  0xe6   :  { %v14784_v16 = vpop.f32.mrf.mxu1  ;;  %v1543_v55 = vsel %vm1454_vm3, %v1533_v35, %v1542_v9 }
  0xe7   :  { %v1281_v2 = vpop.f32.mrf.mxu3  ;;  %v1163_v28 = vsel %vm1115_vm1, %v1158_v39, %v1162_v13 }
  0xe8   :  { %v14786_v4 = vpop.f32.mrf.mxu0 }
  0xec   :  { %v14799_v46 = vpop.f32.mrf.mxu2 }
  0xed   :  { %19977 = vst [vmem:[#allocation11_spill] sm:$0xff] %v14799_v46 }
  0xee   :  { %v729_v21 = vpop.f32.mrf.mxu1 }
  0xef   :  { %v1283_v41 = vpop.f32.mrf.mxu3  ;;  %v730_v35 = vadd.f32 %v729_v21, %v14644_v6  ;;  %v14010_v6 = vld [vmem:[%s19814_s0 + $0x50] sm:$0xff]  }
  0xf0   :  { %v1710_v1 = vpop.f32.mrf.mxu0  ;;  %v865_v21 = vrot.slane %v14010_v6, 2 }
  0xf1   :  { %768 = vmatmul.bf16.gmra.mxu1 %v14471_v40  ;;  %1000 = vmatmul.bf16.gmra.mxu2 %v864_v34  ;;  %v1547_v40 = vrot.slane %v1545_v57, 3  ;;  %v1550_v34 = vrot.slane %v1548_v45, 4 }
  0xf2   :  { %v866_v45 = vsel %vm845_vm2, %v863_v60, %v865_v21 }
  0xf3   :  { %1749 = vmatmul.bf16.gmra.mxu0 %v1543_v55  ;;  %v19978_v55 = vshrl.u32 %v14173_v12, 16 }
  0xf4   :  { %1325 = vmatmul.bf16.gmra.mxu3 %v1163_v28  ;;  %v961_v3 = vpop.f32.mrf.mxu2  ;;  %v1551_v28 = vor.u32 %v1550_v34, %v1547_v40 }
  0xf5   :  { %v1056_v14 = vadd.f32 %v961_v3, %v730_v35  ;;  %v1164_v18 = vrot.slane %v19978_v55, 2 }
  0xf6   :  { %v731_v59 = vpop.f32.mrf.mxu1  ;;  %v1552_v52 = vsel %vm1454_vm3, %v1542_v9, %v1551_v28 }
  0xf7   :  { %v1286_v44 = vpop.f32.mrf.mxu3  ;;  %v1376_v39 = vadd.f32 %v1281_v2, %v1056_v14  ;;  %v732_v11 = vadd.f32 %v731_v59, %v14664_v31  ;;  %v1166_v10 = vor.u32 %v1165_v30, %v1164_v18 }
  0xf8   :  { %v1712_v53 = vpop.f32.mrf.mxu0 }
  0xf9   :  { %v14819_v46 = vadd.f32 %v1710_v1, %v1376_v39  ;;  %v13878_v1 = vld [vmem:[%s19814_s0 + $0x5c] sm:$0xff]   ;;  %v1167_v39 = vsel %vm1115_vm1, %v1162_v13, %v1166_v10  ;;  %v19980_v13 = vshrl.u32 %v14285_v5, 16 }
  0xfa   :  { %v1554_v60 = vshrl.u32 %v13878_v1, 16  ;;  %v1557_v59 = vshll.u32 %v13878_v1, 16 }
  0xfc   :  { %v963_v2 = vpop.f32.mrf.mxu2 }
  0xfd   :  { %v1057_v35 = vadd.f32 %v963_v2, %v732_v11  ;;  %v1556_v11 = vrot.slane %v1554_v60, 3  ;;  %v1559_v2 = vrot.slane %v1557_v59, 4 }
  0xfe   :  { %v734_v57 = vpop.f32.mrf.mxu1 }
  0xff   :  { %v1288_v3 = vpop.f32.mrf.mxu3  ;;  %v1377_v14 = vadd.f32 %v1283_v41, %v1057_v35  ;;  %v735_v30 = vadd.f32 %v734_v57, %v14678_v32  ;;  %v14011_v32 = vld [vmem:[%s19814_s0 + $0x58] sm:$0xff]  }
 0x100   :  { %v1715_v12 = vpop.f32.mrf.mxu0  ;;  %v867_v57 = vrot.slane %v14011_v32, 2 }
 0x101   :  { %773 = vmatmul.bf16.gmra.mxu1 %v14010_v6  ;;  %1005 = vmatmul.bf16.gmra.mxu2 %v866_v45  ;;  %v14831_v31 = vadd.f32 %v1712_v53, %v1377_v14  ;;  %v1168_v6 = vrot.slane %v19980_v13, 2  ;;  %v19981_v53 = vshll.u32 %v14285_v5, 16 }
 0x102   :  { %v868_v60 = vsel %vm845_vm2, %v865_v21, %v867_v57  ;;  %v13126_v21 = vld [vmem:[%s19807_s1 + $0x1d0] sm:$0xff] }
 0x103   :  { %1754 = vmatmul.bf16.gmra.mxu0 %v1552_v52  ;;  %v1169_v35 = vrot.slane %v19981_v53, 3  ;;  %v1560_v52 = vor.u32 %v1559_v2, %v1556_v11  ;;  %3037 = vmatpush.bf16.msra.mxu3 %v13126_v21 }
 0x104   :  { %1330 = vmatmul.bf16.gmra.mxu3 %v1167_v39  ;;  %v966_v41 = vpop.f32.mrf.mxu2 }
 0x105   :  { %v1058_v40 = vadd.f32 %v966_v41, %v735_v30  ;;  %v1170_v1 = vor.u32 %v1169_v35, %v1168_v6 }
 0x106   :  { %v736_v34 = vpop.f32.mrf.mxu1 }
 0x107   :  { %v1291_v9 = vpop.f32.mrf.mxu3  ;;  %v1378_v55 = vadd.f32 %v1286_v44, %v1058_v40  ;;  %v737_v14 = vadd.f32 %v736_v34, %v14692_v61  ;;  %v13880_v40 = vld [vmem:[%s19814_s0 + $0x64] sm:$0xff]   ;;  %v13118_v61 = vld [vmem:[%s19807_s1 + $0x190] sm:$0xff]  ;;  %v1171_v34 = vsel %vm1115_vm1, %v1166_v10, %v1170_v1 }
 0x108   :  { %v1717_v18 = vpop.f32.mrf.mxu0  ;;  %2768 = vmatpush.bf16.msra.mxu2 %v13118_v61  ;;  %v1563_v11 = vshrl.u32 %v13880_v40, 16  ;;  %v1566_v2 = vshll.u32 %v13880_v40, 16 }
 0x109   :  { %v14838_v45 = vadd.f32 %v1715_v12, %v1378_v55  ;;  %v1561_v12 = vsel %vm1454_vm3, %v1551_v28, %v1560_v52  ;;  %v13092_v28 = vld [vmem:[%s19807_s1 + $0x150] sm:$0xff] }
 0x10a   :  { %2226 = vmatpush.bf16.msra.mxu1 %v13092_v28 }
 0x10c   :  { %v968_v44 = vpop.f32.mrf.mxu2 }
 0x10d   :  { %v1059_v39 = vadd.f32 %v968_v44, %v737_v14  ;;  %v1568_v14 = vrot.slane %v1566_v2, 4  ;;  %v13134_v44 = vld [vmem:[%s19807_s1 + $0x210] sm:$0xff] }
 0x10e   :  { %v739_v30 = vpop.f32.mrf.mxu1  ;;  %3356 = vmatpush.bf16.msra.mxu0 %v13134_v44 }
 0x10f   :  { %v1293_v59 = vpop.f32.mrf.mxu3  ;;  %v1379_v41 = vadd.f32 %v1288_v3, %v1059_v39  ;;  %v740_v55 = vadd.f32 %v739_v30, %v14706_v63  ;;  %v19982_v39 = vshrl.u32 %v14391_v47, 16  ;;  %v19983_v30 = vshll.u32 %v14391_v47, 16 }
 0x110   :  { %v1720_v5 = vpop.f32.mrf.mxu0 }
 0x111   :  { %778 = vmatmul.bf16.gmra.mxu1 %v14011_v32  ;;  %1010 = vmatmul.bf16.gmra.mxu2 %v868_v60  ;;  %v14856_v3 = vadd.f32 %v1717_v18, %v1379_v41  ;;  %v1565_v32 = vrot.slane %v1563_v11, 3  ;;  %v1172_v63 = vrot.slane %v19982_v39, 2  ;;  %v1173_v60 = vrot.slane %v19983_v30, 3 }
 0x113   :  { %1759 = vmatmul.bf16.gmra.mxu0 %v1561_v12  ;;  %v1569_v61 = vor.u32 %v1568_v14, %v1565_v32  ;;  %v1174_v21 = vor.u32 %v1173_v60, %v1172_v63 }
 0x114   :  { %1335 = vmatmul.bf16.gmra.mxu3 %v1171_v34  ;;  %v971_v10 = vpop.f32.mrf.mxu2 }
 0x115   :  { %v1060_v13 = vadd.f32 %v971_v10, %v740_v55  ;;  %v1175_v44 = vsel %vm1115_vm1, %v1170_v1, %v1174_v21  ;;  %v19984_v1 = vshrl.u32 %v14479_v43, 16 }
 0x116   :  { %v741_v6 = vpop.f32.mrf.mxu1 }
 0x117   :  { %v1296_v53 = vpop.f32.mrf.mxu3  ;;  %v1380_v35 = vadd.f32 %v1291_v9, %v1060_v13  ;;  %v14012_v9 = vld [vmem:[%s19814_s0 + $0x60] sm:$0xff]   ;;  %v742_v40 = vadd.f32 %v741_v6, %v14729_v33 }
 0x118   :  { %v1722_v18 = vpop.f32.mrf.mxu0  ;;  %v869_v12 = vrot.slane %v14012_v9, 2 }
 0x119   :  { %v14869_v41 = vadd.f32 %v1720_v5, %v1380_v35  ;;  %v1570_v5 = vsel %vm1454_vm3, %v1560_v52, %v1569_v61  ;;  %v13882_v35 = vld [vmem:[%s19814_s0 + $0x6c] sm:$0xff]  }
 0x11a   :  { %v870_v11 = vsel %vm845_vm2, %v867_v57, %v869_v12  ;;  %v1572_v57 = vshrl.u32 %v13882_v35, 16  ;;  %v1575_v32 = vshll.u32 %v13882_v35, 16 }
 0x11c   :  { %v973_v34 = vpop.f32.mrf.mxu2  ;;  %v1574_v60 = vrot.slane %v1572_v57, 3 }
 0x11d   :  { %v1061_v28 = vadd.f32 %v973_v34, %v742_v40  ;;  %v1577_v40 = vrot.slane %v1575_v32, 4 }
 0x11e   :  { %v744_v55 = vpop.f32.mrf.mxu1 }
 0x11f   :  { %v1298_v2 = vpop.f32.mrf.mxu3  ;;  %v1381_v10 = vadd.f32 %v1293_v59, %v1061_v28  ;;  %v745_v6 = vadd.f32 %v744_v55, %v14746_v58  ;;  %v871_v58 = vrot.slane %v14391_v47, 2 }
 0x120   :  { %v1725_v13 = vpop.f32.mrf.mxu0 }
 0x121   :  { %783 = vmatmul.bf16.gmra.mxu1 %v14012_v9  ;;  %1015 = vmatmul.bf16.gmra.mxu2 %v870_v11  ;;  %v14881_v33 = vadd.f32 %v1722_v18, %v1381_v10  ;;  %v1176_v9 = vrot.slane %v19984_v1, 2  ;;  %v19985_v18 = vshll.u32 %v14479_v43, 16  ;;  %v1578_v11 = vor.u32 %v1577_v40, %v1574_v60 }
 0x123   :  { %1764 = vmatmul.bf16.gmra.mxu0 %v1570_v5  ;;  %v1177_v34 = vrot.slane %v19985_v18, 3 }
 0x124   :  { %1340 = vmatmul.bf16.gmra.mxu3 %v1175_v44  ;;  %v976_v59 = vpop.f32.mrf.mxu2  ;;  %v872_v44 = vsel %vm845_vm2, %v869_v12, %v871_v58 }
 0x125   :  { %v1062_v14 = vadd.f32 %v976_v59, %v745_v6  ;;  %v1178_v5 = vor.u32 %v1177_v34, %v1176_v9  ;;  %v1579_v59 = vsel %vm1454_vm3, %v1569_v61, %v1578_v11 }
 0x126   :  { %v746_v39 = vpop.f32.mrf.mxu1 }
 0x127   :  { %v1301_v52 = vpop.f32.mrf.mxu3  ;;  %v1382_v63 = vadd.f32 %v1296_v53, %v1062_v14  ;;  %v747_v55 = vadd.f32 %v746_v39, %v14760_v51  ;;  %v1179_v14 = vsel %vm1115_vm1, %v1174_v21, %v1178_v5  ;;  %v13125_v21 = vld [vmem:[%s19807_s1 + $0x1c8] sm:$0xff] }
 0x128   :  { %v1727_v30 = vpop.f32.mrf.mxu0  ;;  %3038 = vmatpush.bf16.msra.mxu3 %v13125_v21 }
 0x129   :  { %v14888_v28 = vadd.f32 %v1725_v13, %v1382_v63  ;;  %v13884_v13 = vld [vmem:[%s19814_s0 + $0x74] sm:$0xff]  }
 0x12a   :  { %v1581_v12 = vshrl.u32 %v13884_v13, 16 }
 0x12c   :  { %v978_v10 = vpop.f32.mrf.mxu2  ;;  %v1583_v18 = vrot.slane %v1581_v12, 3 }
 0x12d   :  { %v1063_v35 = vadd.f32 %v978_v10, %v747_v55 }
 0x12e   :  { %v749_v53 = vpop.f32.mrf.mxu1 }
 0x12f   :  { %v1303_v6 = vpop.f32.mrf.mxu3  ;;  %v1383_v57 = vadd.f32 %v1298_v2, %v1063_v35  ;;  %v750_v39 = vadd.f32 %v749_v53, %v14774_v50  ;;  %v1584_v2 = vshll.u32 %v13884_v13, 16  ;;  %v13091_v50 = vld [vmem:[%s19807_s1 + $0x148] sm:$0xff]  ;;  %v873_v53 = vrot.slane %v14479_v43, 2 }
 0x130   :  { %v1730_v32 = vpop.f32.mrf.mxu0  ;;  %2227 = vmatpush.bf16.msra.mxu1 %v13091_v50 }
 0x131   :  { %788 = vmatmul.bf16.gmra.mxu1 %v14391_v47  ;;  %1020 = vmatmul.bf16.gmra.mxu2 %v872_v44  ;;  %v14899_v51 = vadd.f32 %v1727_v30, %v1383_v57  ;;  %v1586_v34 = vrot.slane %v1584_v2, 4  ;;  %v13117_v47 = vld [vmem:[%s19807_s1 + $0x188] sm:$0xff]  ;;  %v19986_v30 = vshrl.u32 %v14189_v19, 16  ;;  %v874_v12 = vsel %vm845_vm2, %v871_v58, %v873_v53 }
 0x132   :  { %2769 = vmatpush.bf16.msra.mxu2 %v13117_v47 }
 0x133   :  { %1769 = vmatmul.bf16.gmra.mxu0 %v1579_v59  ;;  %v1180_v55 = vrot.slane %v19986_v30, 2  ;;  %v1587_v57 = vor.u32 %v1586_v34, %v1583_v18 }
 0x134   :  { %1345 = vmatmul.bf16.gmra.mxu3 %v1179_v14  ;;  %v981_v63 = vpop.f32.mrf.mxu2 }
 0x135   :  { %v1064_v60 = vadd.f32 %v981_v63, %v750_v39 }
 0x136   :  { %v751_v61 = vpop.f32.mrf.mxu1 }
 0x137   :  { %v1306_v40 = vpop.f32.mrf.mxu3  ;;  %v1384_v1 = vadd.f32 %v1301_v52, %v1064_v60  ;;  %v19987_v52 = vshll.u32 %v14189_v19, 16  ;;  %v752_v44 = vadd.f32 %v751_v61, %v14786_v4  ;;  %v1588_v60 = vsel %vm1454_vm3, %v1578_v11, %v1587_v57  ;;  %v13133_v4 = vld [vmem:[%s19807_s1 + $0x208] sm:$0xff] }
 0x138   :  { %v1732_v9 = vpop.f32.mrf.mxu0  ;;  %3357 = vmatpush.bf16.msra.mxu0 %v13133_v4 }
 0x139   :  { %v1181_v10 = vrot.slane %v19987_v52, 3  ;;  %v14915_v35 = vadd.f32 %v1730_v32, %v1384_v1  ;;  %v13886_v32 = vld [vmem:[%s19814_s0 + $0x7c] sm:$0xff]  }
 0x13a   :  { %v1590_v11 = vshrl.u32 %v13886_v32, 16 }
 0x13b   :  { %v1182_v13 = vor.u32 %v1181_v10, %v1180_v55 }
 0x13c   :  { %v983_v59 = vpop.f32.mrf.mxu2  ;;  %v1592_v55 = vrot.slane %v1590_v11, 3 }
 0x13d   :  { %v1065_v14 = vadd.f32 %v983_v59, %v752_v44  ;;  %v1183_v61 = vsel %vm1115_vm1, %v1178_v5, %v1182_v13 }
 0x13e   :  { %v754_v39 = vpop.f32.mrf.mxu1 }
 0x13f   :  { %v1308_v2 = vpop.f32.mrf.mxu3  ;;  %v1385_v63 = vadd.f32 %v1303_v6, %v1065_v14  ;;  %v755_v58 = vadd.f32 %v754_v39, %v14638_v0  ;;  %v1593_v6 = vshll.u32 %v13886_v32, 16  ;;  %v14013_v0 = vld [vmem:[%s19814_s0 + $0x78] sm:$0xff]  }
 0x140   :  { %v1735_v19 = vpop.f32.mrf.mxu0  ;;  %v875_v59 = vrot.slane %v14013_v0, 2 }
 0x141   :  { %793 = vmatmul.bf16.gmra.mxu1 %v14479_v43  ;;  %1025 = vmatmul.bf16.gmra.mxu2 %v874_v12  ;;  %v14929_v1 = vadd.f32 %v1732_v9, %v1385_v63  ;;  %v1595_v5 = vrot.slane %v1593_v6, 4  ;;  %v19988_v43 = vshrl.u32 %v14194_v20, 16  ;;  %v19989_v9 = vshll.u32 %v14194_v20, 16 }
 0x142   :  { %v876_v32 = vsel %vm845_vm2, %v873_v53, %v875_v59 }
 0x143   :  { %1774 = vmatmul.bf16.gmra.mxu0 %v1588_v60  ;;  %v1184_v52 = vrot.slane %v19988_v43, 2  ;;  %v1185_v10 = vrot.slane %v19989_v9, 3  ;;  %v1596_v39 = vor.u32 %v1595_v5, %v1592_v55 }
 0x144   :  { %1350 = vmatmul.bf16.gmra.mxu3 %v1183_v61  ;;  %v986_v18 = vpop.f32.mrf.mxu2 }
 0x145   :  { %v1066_v34 = vadd.f32 %v986_v18, %v755_v58  ;;  %v1186_v12 = vor.u32 %v1185_v10, %v1184_v52  ;;  %v13888_v58 = vld [vmem:[%s19814_s0 + $0x84] sm:$0xff]  }
 0x146   :  { %v756_v47 = vpop.f32.mrf.mxu1  ;;  %v1599_v53 = vshrl.u32 %v13888_v58, 16  ;;  %v1602_v18 = vshll.u32 %v13888_v58, 16 }
 0x147   :  { %v1311_v21 = vpop.f32.mrf.mxu3  ;;  %v1386_v50 = vadd.f32 %v1306_v40, %v1066_v34  ;;  %v757_v14 = vadd.f32 %v756_v47, %v14657_v25  ;;  %v1187_v11 = vsel %vm1115_vm1, %v1182_v13, %v1186_v12  ;;  %v13116_v13 = vld [vmem:[%s19807_s1 + $0x180] sm:$0xff] }
 0x148   :  { %v1737_v30 = vpop.f32.mrf.mxu0  ;;  %v1601_v5 = vrot.slane %v1599_v53, 3  ;;  %v1604_v43 = vrot.slane %v1602_v18, 4  ;;  %2770 = vmatpush.bf16.msra.mxu2 %v13116_v13  ;;  %v13090_v53 = vld [vmem:[%s19807_s1 + $0x140] sm:$0xff] }
 0x149   :  { %v14936_v44 = vadd.f32 %v1735_v19, %v1386_v50  ;;  %v1597_v19 = vsel %vm1454_vm3, %v1587_v57, %v1596_v39  ;;  %2228 = vmatpush.bf16.msra.mxu1 %v13090_v53 }
 0x14c   :  { %v988_v40 = vpop.f32.mrf.mxu2 }
 0x14d   :  { %v1067_v63 = vadd.f32 %v988_v40, %v757_v14  ;;  %v1605_v40 = vor.u32 %v1604_v43, %v1601_v5 }
 0x14e   :  { %v759_v60 = vpop.f32.mrf.mxu1 }
 0x14f   :  { %v1313_v4 = vpop.f32.mrf.mxu3  ;;  %v1387_v61 = vadd.f32 %v1308_v2, %v1067_v63  ;;  %v760_v6 = vadd.f32 %v759_v60, %v14673_v36  ;;  %v19991_v36 = vshll.u32 %v14304_v26, 16 }
 0x150   :  { %v1740_v20 = vpop.f32.mrf.mxu0 }
 0x151   :  { %798 = vmatmul.bf16.gmra.mxu1 %v14013_v0  ;;  %1030 = vmatmul.bf16.gmra.mxu2 %v876_v32  ;;  %v14948_v25 = vadd.f32 %v1737_v30, %v1387_v61  ;;  %v19990_v30 = vshrl.u32 %v14304_v26, 16  ;;  %v1189_v9 = vrot.slane %v19991_v36, 3 }
 0x153   :  { %1779 = vmatmul.bf16.gmra.mxu0 %v1597_v19  ;;  %v1188_v52 = vrot.slane %v19990_v30, 2 }
 0x154   :  { %1355 = vmatmul.bf16.gmra.mxu3 %v1187_v11  ;;  %v991_v2 = vpop.f32.mrf.mxu2 }
 0x155   :  { %v1068_v34 = vadd.f32 %v991_v2, %v760_v6  ;;  %v1190_v60 = vor.u32 %v1189_v9, %v1188_v52  ;;  %v13890_v6 = vld [vmem:[%s19814_s0 + $0x8c] sm:$0xff]   ;;  %v19992_v52 = vshrl.u32 %v14405_v48, 16 }
 0x156   :  { %v761_v47 = vpop.f32.mrf.mxu1  ;;  %v1611_v2 = vshll.u32 %v13890_v6, 16 }
 0x157   :  { %v1316_v57 = vpop.f32.mrf.mxu3  ;;  %v1388_v50 = vadd.f32 %v1311_v21, %v1068_v34  ;;  %v14014_v21 = vld [vmem:[%s19814_s0 + $0x80] sm:$0xff]   ;;  %v762_v14 = vadd.f32 %v761_v47, %v14688_v54  ;;  %v1191_v18 = vsel %vm1115_vm1, %v1186_v12, %v1190_v60  ;;  %v1192_v36 = vrot.slane %v19992_v52, 2 }
 0x158   :  { %v1742_v55 = vpop.f32.mrf.mxu0  ;;  %v877_v0 = vrot.slane %v14014_v21, 2  ;;  %v13124_v54 = vld [vmem:[%s19807_s1 + $0x1c0] sm:$0xff]  ;;  %v1613_v12 = vrot.slane %v1611_v2, 4 }
 0x159   :  { %v14958_v10 = vadd.f32 %v1740_v20, %v1388_v50  ;;  %v1606_v20 = vsel %vm1454_vm3, %v1596_v39, %v1605_v40  ;;  %3039 = vmatpush.bf16.msra.mxu3 %v13124_v54 }
 0x15a   :  { %v878_v19 = vsel %vm845_vm2, %v875_v59, %v877_v0 }
 0x15c   :  { %v993_v63 = vpop.f32.mrf.mxu2 }
 0x15d   :  { %v1069_v32 = vadd.f32 %v993_v63, %v762_v14 }
 0x15e   :  { %v764_v61 = vpop.f32.mrf.mxu1 }
 0x15f   :  { %v1318_v58 = vpop.f32.mrf.mxu3  ;;  %v1389_v26 = vadd.f32 %v1313_v4, %v1069_v32  ;;  %v765_v39 = vadd.f32 %v764_v61, %v14701_v37  ;;  %v1608_v4 = vshrl.u32 %v13890_v6, 16  ;;  %v19993_v37 = vshll.u32 %v14405_v48, 16 }
 0x160   :  { %v1745_v11 = vpop.f32.mrf.mxu0 }
 0x161   :  { %803 = vmatmul.bf16.gmra.mxu1 %v14014_v21  ;;  %1035 = vmatmul.bf16.gmra.mxu2 %v878_v19  ;;  %v14976_v59 = vadd.f32 %v1742_v55, %v1389_v26  ;;  %v1610_v30 = vrot.slane %v1608_v4, 3  ;;  %v13132_v55 = vld [vmem:[%s19807_s1 + $0x200] sm:$0xff]  ;;  %v1193_v9 = vrot.slane %v19993_v37, 3  ;;  %v1094_v21 = vld [vmem:[%s19814_s0 + $0x98] sm:$0x7] }
 0x162   :  { %3358 = vmatpush.bf16.msra.mxu0 %v13132_v55  ;;  %v13891_v4 = vld [vmem:[%s19814_s0 + $0x94] sm:$0xff]  }
 0x163   :  { %1784 = vmatmul.bf16.gmra.mxu0 %v1606_v20  ;;  %v1614_v61 = vor.u32 %v1613_v12, %v1610_v30  ;;  %v1194_v26 = vor.u32 %v1193_v9, %v1192_v36  ;;  %v1113_v20 = vunpack.c.l.b16 %v1094_v21 }
 0x164   :  { %1360 = vmatmul.bf16.gmra.mxu3 %v1191_v18  ;;  %v996_v34 = vpop.f32.mrf.mxu2 }
 0x165   :  { %v1070_v47 = vadd.f32 %v996_v34, %v765_v39  ;;  %v1195_v2 = vsel %vm1115_vm1, %v1190_v60, %v1194_v26 }
 0x166   :  { %v766_v50 = vpop.f32.mrf.mxu1 }
 0x167   :  { %v1321_v5 = vpop.f32.mrf.mxu3  ;;  %v1390_v43 = vadd.f32 %v1316_v57, %v1070_v47  ;;  %v14015_v57 = vld [vmem:[%s19814_s0 + $0x88] sm:$0xff]   ;;  %v767_v32 = vadd.f32 %v766_v50, %v14722_v22  ;;  %v1114_v22 = vpack.c.b16 %v1113_v20, %v1113_v20 }
 0x168   :  { %v1747_v13 = vpop.f32.mrf.mxu0  ;;  %v879_v63 = vrot.slane %v14015_v57, 2 }
 0x169   :  { %v14989_v14 = vadd.f32 %v1745_v11, %v1390_v43  ;;  %v1615_v11 = vsel %vm1454_vm3, %v1605_v40, %v1614_v61  ;;  %v1197_v43 = vshrl.u32 %v1114_v22, 16  ;;  %v1200_v40 = vshll.u32 %v1114_v22, 16 }
 0x16a   :  { %v880_v54 = vsel %vm845_vm2, %v877_v0, %v879_v63  ;;  %v1617_v0 = vshrl.u32 %v13891_v4, 16 }
 0x16b   :  { %v1199_v9 = vrot.slane %v1197_v43, 2  ;;  %v1202_v21 = vrot.slane %v1200_v40, 3 }
 0x16c   :  { %v998_v19 = vpop.f32.mrf.mxu2  ;;  %v1619_v60 = vrot.slane %v1617_v0, 3 }
 0x16d   :  { %v1071_v48 = vadd.f32 %v998_v19, %v767_v32 }
 0x16e   :  { %v769_v6 = vpop.f32.mrf.mxu1 }
 0x16f   :  { %v1323_v53 = vpop.f32.mrf.mxu3  ;;  %v1391_v18 = vadd.f32 %v1318_v58, %v1071_v48  ;;  %v770_v47 = vadd.f32 %v769_v6, %v14741_v29  ;;  %v1620_v58 = vshll.u32 %v13891_v4, 16  ;;  %v1203_v6 = vor.u32 %v1202_v21, %v1199_v9 }
 0x170   :  { %v1750_v39 = vpop.f32.mrf.mxu0 }
 0x171   :  { %808 = vmatmul.bf16.gmra.mxu1 %v14015_v57  ;;  %1040 = vmatmul.bf16.gmra.mxu2 %v880_v54  ;;  %v15001_v34 = vadd.f32 %v1747_v13, %v1391_v18  ;;  %v1622_v37 = vrot.slane %v1620_v58, 4  ;;  %v13534_v13 = vld [vmem:[%s19814_s0 + $0x98] sm:$0xff]   ;;  %v14016_v57 = vld [vmem:[%s19814_s0 + $0x90] sm:$0xff]   ;;  %v1204_v0 = vsel %vm1115_vm1, %v1194_v26, %v1203_v6  ;;  %v2905_v58 = vld [vmem:[%s19814_s0 + $0xc] sm:$0xc] }
 0x172   :  { %v881_v32 = vrot.slane %v14016_v57, 2  ;;  %v2924_v40 = vunpack.c.l.b16 %v2905_v58 }
 0x173   :  { %1789 = vmatmul.bf16.gmra.mxu0 %v1615_v11  ;;  %v1623_v20 = vor.u32 %v1622_v37, %v1619_v60  ;;  %v2363_v60 = vld [vmem:[%s19814_s0 + $0xc] sm:$0xe] }
 0x174   :  { %1365 = vmatmul.bf16.gmra.mxu3 %v1195_v2  ;;  %v1001_v50 = vpop.f32.mrf.mxu2  ;;  %v882_v11 = vsel %vm845_vm2, %v879_v63, %v881_v32 }
 0x175   :  { %v1072_v30 = vadd.f32 %v1001_v50, %v770_v47 }
 0x176   :  { %v771_v12 = vpop.f32.mrf.mxu1 }
 0x177   :  { %v1326_v55 = vpop.f32.mrf.mxu3  ;;  %v1392_v52 = vadd.f32 %v1321_v5, %v1072_v30  ;;  %v772_v19 = vadd.f32 %v771_v12, %v14756_v27  ;;  %v13363_v5 = vunpack.c.h.b16 %v13534_v13  ;;  %v2364_v27 = vld [vmem:[%s19814_s0 + $0x10] sm:$0xf] }
 0x178   :  { %v1752_v36 = vpop.f32.mrf.mxu0  ;;  %v2459_v26 = vunpack.c.l.b16 %v2364_v27 }
 0x179   :  { %v15007_v29 = vadd.f32 %v1750_v39, %v1392_v52  ;;  %v1624_v39 = vsel %vm1454_vm3, %v1614_v61, %v1623_v20  ;;  %v1453_v47 = vpack.c.b16 %v13363_v5, %v13363_v5 }
 0x17b   :  { %v1626_v61 = vshrl.u32 %v1453_v47, 16 }
 0x17c   :  { %v1003_v48 = vpop.f32.mrf.mxu2 }
 0x17d   :  { %v1073_v54 = vadd.f32 %v1003_v48, %v772_v19  ;;  %v2458_v19 = vunpack.c.l.b16 %v2363_v60  ;;  %v883_v48 = vrot.slane %v14492_v42, 2 }
 0x17e   :  { %v774_v18 = vpop.f32.mrf.mxu1 }
 0x17f   :  { %v1328_v4 = vpop.f32.mrf.mxu3  ;;  %v1393_v2 = vadd.f32 %v1323_v53, %v1073_v54  ;;  %v775_v63 = vadd.f32 %v774_v18, %v14769_v49  ;;  %v1629_v53 = vshll.u32 %v1453_v47, 16  ;;  %v15031_v49 = vld [vmem:[%s19814_s0 + $0x14] sm:$0xff]  ;;  %v2497_v47 = vpack.c.b16 %v2459_v26, %v2458_v19 }
 0x180   :  { %v1755_v22 = vpop.f32.mrf.mxu0  ;;  %v884_v27 = vsel %vm845_vm2, %v881_v32, %v883_v48 }
 0x181   :  { %813 = vmatmul.bf16.gmra.mxu1 %v14016_v57  ;;  %1045 = vmatmul.bf16.gmra.mxu2 %v882_v11  ;;  %v15022_v50 = vadd.f32 %v1752_v36, %v1393_v2  ;;  %v1628_v36 = vrot.slane %v1626_v61, 3  ;;  %v1631_v21 = vrot.slane %v1629_v53, 4  ;;  %v2925_v57 = vpack.c.b16 %v2459_v26, %v2924_v40  ;;  %v15049_v61 = vld [vmem:[%s19814_s0 + $0x10] sm:$0xff] }
 0x182   :  { %v2521_v32 = vshll.u32 %v2497_v47, 16 }
 0x183   :  { %1794 = vmatmul.bf16.gmra.mxu0 %v1624_v39  ;;  %v1632_v54 = vor.u32 %v1631_v21, %v1628_v36  ;;  %v2926_v11 = vrot.slane %v2925_v57, 2  ;;  %v13071_v39 = vld [vmem:[%s19814_s0 + $0x8] sm:$0xff]  ;;  %v3196_v40 = vshrl.u32 %v2925_v57, 16  ;;  %v2006_v21 = vshll.u32 %v15049_v61, 16 }
 0x184   :  { %1370 = vmatmul.bf16.gmra.mxu3 %v1204_v0  ;;  %v1006_v43 = vpop.f32.mrf.mxu2  ;;  %v2001_v53 = vshll.u32 %v13071_v39, 16  ;;  %v1999_v60 = vshrl.u32 %v13071_v39, 16 }
 0x185   :  { %v1074_v30 = vadd.f32 %v1006_v43, %v775_v63  ;;  %v1633_v42 = vsel %vm1454_vm3, %v1623_v20, %v1632_v54  ;;  %v2518_v43 = vshrl.u32 %v2497_v47, 16  ;;  %v2529_v20 = vshll.u32 %v15031_v49, 16 }
 0x186   :  { %v776_v12 = vpop.f32.mrf.mxu1  ;;  %v2003_v36 = vrot.slane %v2001_v53, 1 }
 0x187   :  { %v1331_v52 = vpop.f32.mrf.mxu3  ;;  %v1394_v37 = vadd.f32 %v1326_v55, %v1074_v30  ;;  %v777_v6 = vadd.f32 %v776_v12, %v14784_v16  ;;  %v2927_v55 = vrot.slane %v15031_v49, 2  ;;  %v2520_v19 = vrot.slane %v2518_v43, 1 }
 0x188   :  { %v1757_v9 = vpop.f32.mrf.mxu0 }
 0x189   :  { %v15033_v5 = vadd.f32 %v1755_v22, %v1394_v37  ;;  %v2928_v16 = vsel %vm845_vm2, %v2926_v11, %v2927_v55  ;;  %v3198_v11 = vrot.slane %v3196_v40, 2 }
 0x18c   :  { %v1008_v18 = vpop.f32.mrf.mxu2 }
 0x18d   :  { %v1075_v2 = vadd.f32 %v1008_v18, %v777_v6  ;;  %v2523_v6 = vrot.slane %v2521_v32, 2  ;;  %v2531_v18 = vrot.slane %v2529_v20, 2 }
 0x18e   :  { %v779_v0 = vpop.f32.mrf.mxu1 }
 0x18f   :  { %v1333_v22 = vpop.f32.mrf.mxu3  ;;  %v1395_v58 = vadd.f32 %v1328_v4, %v1075_v2  ;;  %v2526_v4 = vshrl.u32 %v15031_v49, 16  ;;  %v780_v30 = vadd.f32 %v779_v0, %v14655_v23  ;;  %v3204_v23 = vrot.slane %v2529_v20, 3 }
 0x190   :  { %v1760_v63 = vpop.f32.mrf.mxu0  ;;  %v2004_v0 = vor.u32 %v2003_v36, %v1999_v60 }
 0x191   :  { %818 = vmatmul.bf16.gmra.mxu1 %v13534_v13  ;;  %1050 = vmatmul.bf16.gmra.mxu2 %v884_v27  ;;  %v15051_v26 = vadd.f32 %v1757_v9, %v1395_v58  ;;  %v3199_v13 = vshll.u32 %v2925_v57, 16  ;;  %v2528_v54 = vrot.slane %v2526_v4, 1  ;;  %v3203_v58 = vrot.slane %v2526_v4, 2  ;;  %v15060_v57 = vld [vmem:[%s19814_s0 + $0x1c] sm:$0xff] }
 0x192   :  { %v2929_v4 = vrot.slane %v15060_v57, 2 }
 0x193   :  { %1799 = vmatmul.bf16.gmra.mxu0 %v1633_v42  ;;  %v3201_v27 = vrot.slane %v3199_v13, 3  ;;  %v2008_v42 = vrot.slane %v2006_v21, 1  ;;  %v2532_v53 = vor.u32 %v2531_v18, %v2528_v54 }
 0x194   :  { %3040 = vmatmul.bf16.vlgmr.msra.gmra.mxu3 %v2928_v16  ;;  %v1011_v12 = vpop.f32.mrf.mxu2  ;;  %v2524_v16 = vor.u32 %v2523_v6, %v2520_v19  ;;  %v13073_v19 = vld [vmem:[%s19814_s0 + $0x18] sm:$0xff] }
 0x195   :  { %v1076_v37 = vadd.f32 %v1011_v12, %v780_v30  ;;  %v3202_v32 = vor.u32 %v3201_v27, %v3198_v11  ;;  %v2009_v13 = vsel %vm1997_vm4, %v2004_v0, %v2008_v42  ;;  %v2010_v11 = vshrl.u32 %v15049_v61, 16 }
 0x196   :  { %v781_v9 = vpop.f32.mrf.mxu1  ;;  %v2533_v12 = vsel %vm297_vm0, %v2524_v16, %v2532_v53 }
 0x197   :  { %v1336_v48 = vpop.f32.mrf.mxu3  ;;  %v1396_v2 = vadd.f32 %v1331_v52, %v1076_v37  ;;  %v782_v43 = vadd.f32 %v781_v9, %v14671_v62  ;;  %v3205_v52 = vor.u32 %v3204_v23, %v3203_v58  ;;  %v2930_v62 = vsel %vm845_vm2, %v2927_v55, %v2929_v4 }
 0x198   :  { %v1762_v47 = vpop.f32.mrf.mxu0  ;;  %v2535_v9 = vshrl.u32 %v15060_v57, 16 }
 0x199   :  { %v15062_v39 = vadd.f32 %v1760_v63, %v1396_v2  ;;  %v3206_v36 = vsel %vm1115_vm1, %v3202_v32, %v3205_v52  ;;  %v2014_v2 = vshll.u32 %v13073_v19, 16 }
 0x19a   :  { %v3207_v0 = vrot.slane %v2535_v9, 2 }
 0x19b   :  { %v2016_v32 = vrot.slane %v2014_v2, 1  ;;  %v2018_v2 = vshrl.u32 %v13073_v19, 16 }
 0x19c   :  { %v1013_v40 = vpop.f32.mrf.mxu2 }
 0x19d   :  { %v1077_v20 = vadd.f32 %v1013_v40, %v782_v43 }
 0x19e   :  { %v784_v30 = vpop.f32.mrf.mxu1 }
 0x19f   :  { %v1338_v63 = vpop.f32.mrf.mxu3  ;;  %v1397_v37 = vadd.f32 %v1333_v22, %v1077_v20  ;;  %v2538_v22 = vshll.u32 %v15060_v57, 16  ;;  %v785_v6 = vadd.f32 %v784_v30, %v14686_v8  ;;  %v13100_v57 = vld [vmem:[%s19814_s0 + $0x24] sm:$0xff]  ;;  %v2012_v8 = vor.u32 %v2010_v11, %v2008_v42 }
 0x1a0   :  { %v1765_v60 = vpop.f32.mrf.mxu0 }
 0x1a1   :  { %2229 = vmatmul.bf16.vlgmr.msra.gmra.mxu1 %v2009_v13  ;;  %2771 = vmatmul.bf16.vlgmr.msra.gmra.mxu2 %v2533_v12  ;;  %v15072_v21 = vadd.f32 %v1762_v47, %v1397_v37  ;;  %v2537_v47 = vrot.slane %v2535_v9, 1  ;;  %v2540_v27 = vrot.slane %v2538_v22, 2  ;;  %v3208_v16 = vrot.slane %v2538_v22, 3 }
 0x1a2   :  { %v2931_v13 = vrot.slane %v13100_v57, 2 }
 0x1a3   :  { %3359 = vmatmul.bf16.vlgmr.msra.gmra.mxu0 %v3206_v36  ;;  %v2541_v40 = vor.u32 %v2540_v27, %v2537_v47  ;;  %v3209_v30 = vor.u32 %v3208_v16, %v3207_v0 }
 0x1a4   :  { %3045 = vmatmul.bf16.gmra.mxu3 %v2930_v62  ;;  %v1016_v54 = vpop.f32.mrf.mxu2  ;;  %v2932_v42 = vsel %vm845_vm2, %v2929_v4, %v2931_v13 }
 0x1a5   :  { %v1078_v49 = vadd.f32 %v1016_v54, %v785_v6  ;;  %v2542_v36 = vsel %vm297_vm0, %v2532_v53, %v2541_v40  ;;  %v2544_v54 = vshrl.u32 %v13100_v57, 16 }
 0x1a6   :  { %v786_v18 = vpop.f32.mrf.mxu1 }
 0x1a7   :  { %v1341_v55 = vpop.f32.mrf.mxu3  ;;  %v1398_v58 = vadd.f32 %v1336_v48, %v1078_v49  ;;  %v787_v20 = vadd.f32 %v786_v18, %v14699_v56  ;;  %v2017_v48 = vsel %vm1997_vm4, %v2012_v8, %v2016_v32  ;;  %v13074_v56 = vld [vmem:[%s19814_s0 + $0x20] sm:$0xff]  ;;  %v2547_v49 = vshll.u32 %v13100_v57, 16  ;;  %v13101_v8 = vld [vmem:[%s19814_s0 + $0x2c] sm:$0xff] }
 0x1a8   :  { %v1767_v23 = vpop.f32.mrf.mxu0  ;;  %v2022_v4 = vshll.u32 %v13074_v56, 16  ;;  %v2546_v47 = vrot.slane %v2544_v54, 1  ;;  %v3211_v0 = vrot.slane %v2544_v54, 2 }
 0x1a9   :  { %v15084_v43 = vadd.f32 %v1765_v60, %v1398_v58  ;;  %v3210_v60 = vsel %vm1115_vm1, %v3205_v52, %v3209_v30  ;;  %v2549_v27 = vrot.slane %v2547_v49, 2  ;;  %v3212_v16 = vrot.slane %v2547_v49, 3 }
 0x1ac   :  { %v1018_v61 = vpop.f32.mrf.mxu2 }
 0x1ad   :  { %v1079_v12 = vadd.f32 %v1018_v61, %v787_v20  ;;  %v2024_v20 = vrot.slane %v2022_v4, 1  ;;  %v2550_v61 = vor.u32 %v2549_v27, %v2546_v47  ;;  %v2026_v4 = vshrl.u32 %v13074_v56, 16 }
 0x1ae   :  { %v789_v37 = vpop.f32.mrf.mxu1 }
 0x1af   :  { %v1343_v62 = vpop.f32.mrf.mxu3  ;;  %v1399_v9 = vadd.f32 %v1338_v63, %v1079_v12  ;;  %v790_v53 = vadd.f32 %v789_v37, %v14717_v24  ;;  %v2020_v24 = vor.u32 %v2018_v2, %v2016_v32  ;;  %v3213_v37 = vor.u32 %v3212_v16, %v3211_v0 }
 0x1b0   :  { %v1770_v22 = vpop.f32.mrf.mxu0 }
 0x1b1   :  { %2234 = vmatmul.bf16.gmra.mxu1 %v2017_v48  ;;  %2776 = vmatmul.bf16.gmra.mxu2 %v2542_v36  ;;  %v15091_v6 = vadd.f32 %v1767_v23, %v1399_v9  ;;  %v2933_v48 = vrot.slane %v13101_v8, 2 }
 0x1b3   :  { %3364 = vmatmul.bf16.gmra.mxu0 %v3210_v60  ;;  %v2551_v60 = vsel %vm297_vm0, %v2541_v40, %v2550_v61  ;;  %v2934_v32 = vsel %vm845_vm2, %v2931_v13, %v2933_v48 }
 0x1b4   :  { %3050 = vmatmul.bf16.gmra.mxu3 %v2932_v42  ;;  %v1021_v63 = vpop.f32.mrf.mxu2 }
 0x1b5   :  { %v1080_v18 = vadd.f32 %v1021_v63, %v790_v53  ;;  %v2553_v63 = vshrl.u32 %v13101_v8, 16 }
 0x1b6   :  { %v791_v11 = vpop.f32.mrf.mxu1 }
 0x1b7   :  { %v1346_v52 = vpop.f32.mrf.mxu3  ;;  %v1400_v58 = vadd.f32 %v1341_v55, %v1080_v18  ;;  %v792_v12 = vadd.f32 %v791_v11, %v14736_v17  ;;  %v2025_v55 = vsel %vm1997_vm4, %v2020_v24, %v2024_v20  ;;  %v13075_v17 = vld [vmem:[%s19814_s0 + $0x28] sm:$0xff]  ;;  %v2556_v18 = vshll.u32 %v13101_v8, 16  ;;  %v13102_v24 = vld [vmem:[%s19814_s0 + $0x34] sm:$0xff] }
 0x1b8   :  { %v1772_v23 = vpop.f32.mrf.mxu0  ;;  %v2030_v13 = vshll.u32 %v13075_v17, 16  ;;  %v2555_v47 = vrot.slane %v2553_v63, 1  ;;  %v3215_v0 = vrot.slane %v2553_v63, 2 }
 0x1b9   :  { %v15100_v57 = vadd.f32 %v1770_v22, %v1400_v58  ;;  %v3214_v22 = vsel %vm1115_vm1, %v3209_v30, %v3213_v37  ;;  %v2558_v27 = vrot.slane %v2556_v18, 2  ;;  %v3216_v16 = vrot.slane %v2556_v18, 3 }
 0x1bc   :  { %v1023_v19 = vpop.f32.mrf.mxu2 }
 0x1bd   :  { %v1081_v36 = vadd.f32 %v1023_v19, %v792_v12  ;;  %v2032_v12 = vrot.slane %v2030_v13, 1  ;;  %v2559_v19 = vor.u32 %v2558_v27, %v2555_v47  ;;  %v2034_v13 = vshrl.u32 %v13075_v17, 16 }
 0x1be   :  { %v794_v9 = vpop.f32.mrf.mxu1 }
 0x1bf   :  { %v1348_v42 = vpop.f32.mrf.mxu3  ;;  %v1401_v54 = vadd.f32 %v1343_v62, %v1081_v36  ;;  %v795_v40 = vadd.f32 %v794_v9, %v14754_v15  ;;  %v2028_v15 = vor.u32 %v2026_v4, %v2024_v20  ;;  %v3217_v9 = vor.u32 %v3216_v16, %v3215_v0 }
 0x1c0   :  { %v1775_v49 = vpop.f32.mrf.mxu0 }
 0x1c1   :  { %2239 = vmatmul.bf16.gmra.mxu1 %v2025_v55  ;;  %2781 = vmatmul.bf16.gmra.mxu2 %v2551_v60  ;;  %v15107_v53 = vadd.f32 %v1772_v23, %v1401_v54  ;;  %v2935_v55 = vrot.slane %v13102_v24, 2 }
 0x1c3   :  { %3369 = vmatmul.bf16.gmra.mxu0 %v3214_v22  ;;  %v2560_v22 = vsel %vm297_vm0, %v2550_v61, %v2559_v19  ;;  %v2936_v20 = vsel %vm845_vm2, %v2933_v48, %v2935_v55 }
 0x1c4   :  { %3055 = vmatmul.bf16.gmra.mxu3 %v2934_v32  ;;  %v1026_v62 = vpop.f32.mrf.mxu2 }
 0x1c5   :  { %v1082_v11 = vadd.f32 %v1026_v62, %v795_v40  ;;  %v2562_v62 = vshrl.u32 %v13102_v24, 16 }
 0x1c6   :  { %v796_v2 = vpop.f32.mrf.mxu1 }
 0x1c7   :  { %v1351_v30 = vpop.f32.mrf.mxu3  ;;  %v1402_v58 = vadd.f32 %v1346_v52, %v1082_v11  ;;  %v797_v36 = vadd.f32 %v796_v2, %v14767_v38  ;;  %v2033_v52 = vsel %vm1997_vm4, %v2028_v15, %v2032_v12  ;;  %v13076_v38 = vld [vmem:[%s19814_s0 + $0x30] sm:$0xff]  ;;  %v2565_v11 = vshll.u32 %v13102_v24, 16  ;;  %v13103_v15 = vld [vmem:[%s19814_s0 + $0x3c] sm:$0xff] }
 0x1c8   :  { %v1777_v23 = vpop.f32.mrf.mxu0  ;;  %v2038_v48 = vshll.u32 %v13076_v38, 16  ;;  %v2564_v47 = vrot.slane %v2562_v62, 1  ;;  %v3219_v0 = vrot.slane %v2562_v62, 2 }
 0x1c9   :  { %v15116_v8 = vadd.f32 %v1775_v49, %v1402_v58  ;;  %v3218_v49 = vsel %vm1115_vm1, %v3213_v37, %v3217_v9  ;;  %v2567_v27 = vrot.slane %v2565_v11, 2  ;;  %v3220_v16 = vrot.slane %v2565_v11, 3 }
 0x1cc   :  { %v1028_v56 = vpop.f32.mrf.mxu2 }
 0x1cd   :  { %v1083_v60 = vadd.f32 %v1028_v56, %v797_v36  ;;  %v2040_v36 = vrot.slane %v2038_v48, 1  ;;  %v2568_v56 = vor.u32 %v2567_v27, %v2564_v47  ;;  %v19995_v48 = vld [vmem:[#allocation3_spill] sm:$0xff] }
 0x1ce   :  { %v799_v54 = vpop.f32.mrf.mxu1 }
 0x1cf   :  { %v1353_v32 = vpop.f32.mrf.mxu3  ;;  %v1403_v63 = vadd.f32 %v1348_v42, %v1083_v60  ;;  %v800_v61 = vadd.f32 %v799_v54, %v14782_v7  ;;  %v2036_v7 = vor.u32 %v2034_v13, %v2032_v12  ;;  %v19994_v60 = vld [vmem:[#allocation11_spill] sm:$0xff]  ;;  %v2574_v13 = vshll.u32 %v13103_v15, 16 }
 0x1d0   :  { %v1780_v18 = vpop.f32.mrf.mxu0 }
 0x1d1   :  { %2244 = vmatmul.bf16.gmra.mxu1 %v2033_v52  ;;  %2786 = vmatmul.bf16.gmra.mxu2 %v2560_v22  ;;  %v15123_v40 = vadd.f32 %v1777_v23, %v1403_v63  ;;  %v3221_v52 = vor.u32 %v3220_v16, %v3219_v0  ;;  %v2937_v22 = vrot.slane %v13103_v15, 2  ;;  %v2576_v16 = vrot.slane %v2574_v13, 2 }
 0x1d3   :  { %3374 = vmatmul.bf16.gmra.mxu0 %v3218_v49  ;;  %v2938_v12 = vsel %vm845_vm2, %v2935_v55, %v2937_v22 }
 0x1d4   :  { %3060 = vmatmul.bf16.gmra.mxu3 %v2936_v20  ;;  %v1031_v42 = vpop.f32.mrf.mxu2  ;;  %v2569_v20 = vsel %vm297_vm0, %v2559_v19, %v2568_v56 }
 0x1d5   :  { %v1084_v2 = vadd.f32 %v1031_v42, %v800_v61 }
 0x1d6   :  { %v801_v4 = vpop.f32.mrf.mxu1 }
 0x1d7   :  { %v1356_v37 = vpop.f32.mrf.mxu3  ;;  %v1404_v58 = vadd.f32 %v1351_v30, %v1084_v2  ;;  %v802_v54 = vadd.f32 %v801_v4, %v19994_v60  ;;  %v2041_v30 = vsel %vm1997_vm4, %v2036_v7, %v2040_v36  ;;  %v13077_v2 = vld [vmem:[%s19814_s0 + $0x38] sm:$0xff]  ;;  %v2571_v4 = vshrl.u32 %v13103_v15, 16 }
 0x1d8   :  { %v1782_v23 = vpop.f32.mrf.mxu0  ;;  %v2046_v55 = vshll.u32 %v13077_v2, 16 }
 0x1d9   :  { %v15132_v24 = vadd.f32 %v1780_v18, %v1404_v58  ;;  %v3222_v18 = vsel %vm1115_vm1, %v3217_v9, %v3221_v52  ;;  %v2042_v58 = vshrl.u32 %v13076_v38, 16  ;;  %v2573_v0 = vrot.slane %v2571_v4, 1 }
 0x1da   :  { %v3223_v60 = vrot.slane %v2571_v4, 2 }
 0x1dc   :  { %v1033_v17 = vpop.f32.mrf.mxu2 }
 0x1dd   :  { %v1085_v63 = vadd.f32 %v1033_v17, %v802_v54  ;;  %v3224_v54 = vrot.slane %v2574_v13, 3  ;;  %v13104_v17 = vld [vmem:[%s19814_s0 + $0x44] sm:$0xff] }
 0x1de   :  { %v804_v49 = vpop.f32.mrf.mxu1 }
 0x1df   :  { %v1358_v62 = vpop.f32.mrf.mxu3  ;;  %v1405_v11 = vadd.f32 %v1353_v32, %v1085_v63  ;;  %v805_v19 = vadd.f32 %v804_v49, %v19995_v48  ;;  %v2044_v63 = vor.u32 %v2042_v58, %v2040_v36  ;;  %v2048_v49 = vrot.slane %v2046_v55, 1 }
 0x1e0   :  { %v1785_v61 = vpop.f32.mrf.mxu0  ;;  %v2580_v55 = vshrl.u32 %v13104_v17, 16 }
 0x1e1   :  { %2249 = vmatmul.bf16.gmra.mxu1 %v2041_v30  ;;  %2791 = vmatmul.bf16.gmra.mxu2 %v2569_v20  ;;  %v15139_v42 = vadd.f32 %v1782_v23, %v1405_v11  ;;  %v2577_v30 = vor.u32 %v2576_v16, %v2573_v0  ;;  %v19996_v20 = vld [vmem:[#allocation4_spill] sm:$0xff]  ;;  %v2583_v0 = vshll.u32 %v13104_v17, 16 }
 0x1e3   :  { %3379 = vmatmul.bf16.gmra.mxu0 %v3222_v18  ;;  %v3225_v18 = vor.u32 %v3224_v54, %v3223_v60  ;;  %v2578_v4 = vsel %vm297_vm0, %v2568_v56, %v2577_v30  ;;  %v19997_v56 = vld [vmem:[#allocation5_spill] sm:$0xff] }
 0x1e4   :  { %3065 = vmatmul.bf16.gmra.mxu3 %v2938_v12  ;;  %v1036_v32 = vpop.f32.mrf.mxu2  ;;  %v2939_v12 = vrot.slane %v13104_v17, 2  ;;  %v15167_v17 = vld [vmem:[%s19814_s0 + $0x4c] sm:$0xff] }
 0x1e5   :  { %v1086_v47 = vadd.f32 %v1036_v32, %v805_v19 }
 0x1e6   :  { %v806_v27 = vpop.f32.mrf.mxu1  ;;  %v2940_v36 = vsel %vm845_vm2, %v2937_v22, %v2939_v12  ;;  %v2050_v22 = vshrl.u32 %v13077_v2, 16  ;;  %v19998_v2 = vld [vmem:[#allocation6_spill] sm:$0xff] }
 0x1e7   :  { %v1361_v9 = vpop.f32.mrf.mxu3  ;;  %v1406_v23 = vadd.f32 %v1356_v37, %v1086_v47  ;;  %v807_v11 = vadd.f32 %v806_v27, %v19996_v20  ;;  %v2049_v37 = vsel %vm1997_vm4, %v2044_v63, %v2048_v49  ;;  %v15160_v27 = vld [vmem:[%s19814_s0 + $0x40] sm:$0xff]  ;;  %v2585_v63 = vrot.slane %v2583_v0, 2 }
 0x1e8   :  { %v1787_v7 = vpop.f32.mrf.mxu0  ;;  %v2054_v54 = vshll.u32 %v15160_v27, 16 }
 0x1e9   :  { %v15148_v15 = vadd.f32 %v1785_v61, %v1406_v23  ;;  %v3226_v61 = vsel %vm1115_vm1, %v3221_v52, %v3225_v18 }
 0x1ec   :  { %v1038_v38 = vpop.f32.mrf.mxu2 }
 0x1ed   :  { %v1087_v48 = vadd.f32 %v1038_v38, %v807_v11  ;;  %v3227_v38 = vrot.slane %v2580_v55, 2 }
 0x1ee   :  { %v809_v19 = vpop.f32.mrf.mxu1 }
 0x1ef   :  { %v1363_v13 = vpop.f32.mrf.mxu3  ;;  %v1407_v32 = vadd.f32 %v1358_v62, %v1087_v48  ;;  %v810_v16 = vadd.f32 %v809_v19, %v19997_v56  ;;  %v3228_v48 = vrot.slane %v2583_v0, 3 }
 0x1f0   :  { %v1790_v47 = vpop.f32.mrf.mxu0 }
 0x1f1   :  { %2254 = vmatmul.bf16.gmra.mxu1 %v2049_v37  ;;  %2796 = vmatmul.bf16.gmra.mxu2 %v2578_v4  ;;  %v15155_v58 = vadd.f32 %v1787_v7, %v1407_v32  ;;  %v2582_v7 = vrot.slane %v2580_v55, 1  ;;  %v2052_v37 = vor.u32 %v2050_v22, %v2048_v49  ;;  %v2056_v4 = vrot.slane %v2054_v54, 1 }
 0x1f2   :  { %v2589_v54 = vshrl.u32 %v15167_v17, 16 }
 0x1f3   :  { %3384 = vmatmul.bf16.gmra.mxu0 %v3226_v61  ;;  %v15171_v32 = vor.u32 %v2585_v63, %v2582_v7  ;;  %v2592_v7 = vshll.u32 %v15167_v17, 16 }
 0x1f4   :  { %3070 = vmatmul.bf16.gmra.mxu3 %v2940_v36  ;;  %v1041_v62 = vpop.f32.mrf.mxu2  ;;  %v15174_v36 = vor.u32 %v3228_v48, %v3227_v38  ;;  %v19840_v38 = vmov 0.0  }
 0x1f5   :  { %v1088_v23 = vadd.f32 %v1041_v62, %v810_v16  ;;  %v2057_v16 = vsel %vm1997_vm4, %v2052_v37, %v2056_v4  ;;  %v2587_v62 = vsel %vm297_vm0, %v2577_v30, %v15171_v32  ;;  %v15192_v30 = vld [vmem:[%s19814_s0 + $0x48] sm:$0xff]  ;;  %85 = vst.msk [vmem:[%s19817_s11 + $0x10] sm:$0xff] %vm82_vm6, %v19840_v38 }
 0x1f6   :  { %v811_v52 = vpop.f32.mrf.mxu1  ;;  %v3230_v22 = vsel %vm1115_vm1, %v3225_v18, %v15174_v36  ;;  %v19999_v18 = vld [vmem:[#allocation7_spill] sm:$0xff] }
 0x1f7   :  { %v1366_v60 = vpop.f32.mrf.mxu3  ;;  %v1408_v20 = vadd.f32 %v1361_v9, %v1088_v23  ;;  %v812_v61 = vadd.f32 %v811_v52, %v19998_v2  ;;  %v2941_v9 = vrot.slane %v15167_v17, 2  ;;  %v2058_v2 = vshrl.u32 %v15160_v27, 16 }
 0x1f8   :  { %v1792_v11 = vpop.f32.mrf.mxu0 }
 0x1f9   :  { %v15169_v19 = vadd.f32 %v1790_v47, %v1408_v20  ;;  %v2942_v52 = vsel %vm845_vm2, %v2939_v12, %v2941_v9  ;;  %v14069_v12 = vmov 0  }
 0x1fa   :  { %42 = vst.msk [vmem:[#allocation2 + $0x8] sm:$0xf] %vm39_vm5, %v14069_v12 }
 0x1fb   :  { %40 = vst.msk [vmem:[#allocation2] sm:$0xf] %vm39_vm5, %v14069_v12 }
 0x1fc   :  { %v1043_v56 = vpop.f32.mrf.mxu2  ;;  %41 = vst.msk [vmem:[#allocation2 + $0x4] sm:$0xf] %vm39_vm5, %v14069_v12 }
 0x1fd   :  { %v1089_v55 = vadd.f32 %v1043_v56, %v812_v61  ;;  %v2062_v61 = vshll.u32 %v15192_v30, 16  ;;  %v2591_v56 = vrot.slane %v2589_v54, 1  ;;  %43 = vst.msk [vmem:[#allocation2 + $0xc] sm:$0xf] %vm39_vm5, %v14069_v12 }
 0x1fe   :  { %v814_v0 = vpop.f32.mrf.mxu1  ;;  %44 = vst.msk [vmem:[#allocation2 + $0x10] sm:$0xf] %vm39_vm5, %v14069_v12 }
 0x1ff   :  { %v1368_v47 = vpop.f32.mrf.mxu3  ;;  %v1409_v23 = vadd.f32 %v1363_v13, %v1089_v55  ;;  %v815_v13 = vadd.f32 %v814_v0, %v19999_v18  ;;  %v2594_v55 = vrot.slane %v2592_v7, 2  ;;  %45 = vst.msk [vmem:[#allocation2 + $0x14] sm:$0xf] %vm39_vm5, %v14069_v12 }
 0x200   :  { %v1795_v49 = vpop.f32.mrf.mxu0  ;;  %46 = vst.msk [vmem:[#allocation2 + $0x18] sm:$0xf] %vm39_vm5, %v14069_v12 }
 0x201   :  { %2259 = vmatmul.bf16.gmra.mxu1 %v2057_v16  ;;  %2801 = vmatmul.bf16.gmra.mxu2 %v2587_v62  ;;  %v15187_v63 = vadd.f32 %v1792_v11, %v1409_v23  ;;  %v3231_v62 = vrot.slane %v2589_v54, 2  ;;  %v3232_v23 = vrot.slane %v2592_v7, 3  ;;  %v15221_v54 = vor.u32 %v2594_v55, %v2591_v56  ;;  %v20001_v7 = vld [vmem:[#allocation8_spill] sm:$0xff]  ;;  %47 = vst.msk [vmem:[#allocation2 + $0x1c] sm:$0xf] %vm39_vm5, %v14069_v12 }
 0x202   :  { %48 = vst.msk [vmem:[#allocation2 + $0x20] sm:$0xf] %vm39_vm5, %v14069_v12 }
 0x203   :  { %3389 = vmatmul.bf16.gmra.mxu0 %v3230_v22  ;;  %v15213_v22 = vld [vmem:[%s19814_s0 + $0x54] sm:$0xff]  ;;  %49 = vst.msk [vmem:[#allocation2 + $0x24] sm:$0xf] %vm39_vm5, %v14069_v12 }
 0x204   :  { %3075 = vmatmul.bf16.gmra.mxu3 %v2942_v52  ;;  %v1046_v20 = vpop.f32.mrf.mxu2  ;;  %v2064_v52 = vrot.slane %v2062_v61, 1  ;;  %50 = vst.msk [vmem:[#allocation2 + $0x28] sm:$0xf] %vm39_vm5, %v14069_v12  ;;  %v2598_v17 = vshrl.u32 %v15213_v22, 16 }
 0x205   :  { %v1090_v11 = vadd.f32 %v1046_v20, %v815_v13  ;;  %v15226_v13 = vor.u32 %v3232_v23, %v3231_v62  ;;  %51 = vst.msk [vmem:[#allocation2 + $0x2c] sm:$0xf] %vm39_vm5, %v14069_v12 }
 0x206   :  { %v816_v48 = vpop.f32.mrf.mxu1  ;;  %52 = vst.msk [vmem:[#allocation2 + $0x30] sm:$0xf] %vm39_vm5, %v14069_v12 }
 0x207   :  { %v1371_v37 = vpop.f32.mrf.mxu3  ;;  %v1410_v0 = vadd.f32 %v1366_v60, %v1090_v11  ;;  %v2060_v60 = vor.u32 %v2058_v2, %v2056_v4  ;;  %v817_v18 = vadd.f32 %v816_v48, %v20001_v7  ;;  %v2943_v11 = vrot.slane %v15213_v22, 2  ;;  %53 = vst.msk [vmem:[#allocation2 + $0x34] sm:$0xf] %vm39_vm5, %v14069_v12 }
 0x208   :  { %v1797_v16 = vpop.f32.mrf.mxu0  ;;  %v2596_v48 = vsel %vm297_vm0, %v15171_v32, %v15221_v54  ;;  %54 = vst.msk [vmem:[#allocation2 + $0x38] sm:$0xf] %vm39_vm5, %v14069_v12 }
 0x209   :  { %v15219_v27 = vadd.f32 %v1795_v49, %v1410_v0  ;;  %v2065_v2 = vsel %vm1997_vm4, %v2060_v60, %v2064_v52  ;;  %v3234_v0 = vsel %vm1115_vm1, %v15174_v36, %v15226_v13  ;;  %v2944_v62 = vsel %vm845_vm2, %v2941_v9, %v2943_v11  ;;  %v15260_v36 = vld [vmem:[%s19814_s0 + $0x50] sm:$0xff]  ;;  %55 = vst.msk [vmem:[#allocation2 + $0x3c] sm:$0xf] %vm39_vm5, %v14069_v12 }
 0x20a   :  { %v2601_v9 = vshll.u32 %v15213_v22, 16  ;;  %56 = vst.msk [vmem:[#allocation2 + $0x40] sm:$0xf] %vm39_vm5, %v14069_v12 }
 0x20b   :  { %20000 = vst [vmem:[#allocation11_spill] sm:$0xff] %v15219_v27 }
 0x20c   :  { %v1048_v20 = vpop.f32.mrf.mxu2  ;;  %57 = vst.msk [vmem:[#allocation2 + $0x44] sm:$0xf] %vm39_vm5, %v14069_v12 }
 0x20d   :  { %v1091_v4 = vadd.f32 %v1048_v20, %v817_v18  ;;  %v2066_v18 = vshrl.u32 %v15192_v30, 16  ;;  %v2070_v20 = vshll.u32 %v15260_v36, 16  ;;  %58 = vst.msk [vmem:[#allocation2 + $0x48] sm:$0xf] %vm39_vm5, %v14069_v12  ;;  %v15284_v30 = vld [vmem:[%s19814_s0 + $0x5c] sm:$0xff] }
 0x20e   :  { %v819_v49 = vpop.f32.mrf.mxu1  ;;  %59 = vst.msk [vmem:[#allocation2 + $0x4c] sm:$0xf] %vm39_vm5, %v14069_v12 }
 0x20f   :  { %v1373_v61 = vpop.f32.mrf.mxu3  ;;  %v1411_v56 = vadd.f32 %v1368_v47, %v1091_v4  ;;  %v20003_v47 = vld [vmem:[#allocation9_spill] sm:$0xff]  ;;  %v2600_v4 = vrot.slane %v2598_v17, 1  ;;  %60 = vst.msk [vmem:[#allocation2 + $0x50] sm:$0xf] %vm39_vm5, %v14069_v12 }
 0x210   :  { %v1800_v55 = vpop.f32.mrf.mxu0  ;;  %v820_v23 = vadd.f32 %v819_v49, %v20003_v47  ;;  %61 = vst.msk [vmem:[#allocation2 + $0x54] sm:$0xf] %vm39_vm5, %v14069_v12 }
 0x211   :  { %2264 = vmatmul.bf16.gmra.mxu1 %v2065_v2  ;;  %2806 = vmatmul.bf16.gmra.mxu2 %v2596_v48  ;;  %v15255_v32 = vadd.f32 %v1797_v16, %v1411_v56  ;;  %v2603_v2 = vrot.slane %v2601_v9, 2  ;;  %v3235_v56 = vrot.slane %v2598_v17, 2  ;;  %v2072_v17 = vrot.slane %v2070_v20, 1  ;;  %62 = vst.msk [vmem:[#allocation2 + $0x58] sm:$0xf] %vm39_vm5, %v14069_v12 }
 0x212   :  { %63 = vst.msk [vmem:[#allocation2 + $0x5c] sm:$0xf] %vm39_vm5, %v14069_v12 }
 0x213   :  { %20002 = vst [vmem:[#allocation3_spill] sm:$0xff] %v15255_v32  ;;  %3394 = vmatmul.bf16.gmra.mxu0 %v3234_v0  ;;  %v3236_v0 = vrot.slane %v2601_v9, 3  ;;  %v15290_v9 = vor.u32 %v2603_v2, %v2600_v4 }
 0x214   :  { %3080 = vmatmul.bf16.gmra.mxu3 %v2944_v62  ;;  %v1051_v16 = vpop.f32.mrf.mxu2  ;;  %64 = vst.msk [vmem:[#allocation2 + $0x60] sm:$0xf] %vm39_vm5, %v14069_v12 }
 0x215   :  { %v1092_v60 = vadd.f32 %v1051_v16, %v820_v23  ;;  %v20005_v23 = vld [vmem:[#allocation10_spill] sm:$0xff]  ;;  %65 = vst.msk [vmem:[#allocation2 + $0x64] sm:$0xf] %vm39_vm5, %v14069_v12 }
 0x216   :  { %v821_v7 = vpop.f32.mrf.mxu1  ;;  %66 = vst.msk [vmem:[#allocation2 + $0x68] sm:$0xf] %vm39_vm5, %v14069_v12 }
 0x217   :  { %v1412_v49 = vadd.f32 %v1371_v37, %v1092_v60  ;;  %v3041_v62 = vpop.f32.mrf.mxu3  ;;  %v2068_v37 = vor.u32 %v2066_v18, %v2064_v52  ;;  %v822_v16 = vadd.f32 %v821_v7, %v20005_v23  ;;  %v15295_v60 = vor.u32 %v3236_v0, %v3235_v56  ;;  %67 = vst.msk [vmem:[#allocation2 + $0x6c] sm:$0xf] %vm39_vm5, %v14069_v12 }
 0x218   :  { %v1802_v48 = vpop.f32.mrf.mxu0  ;;  %v2605_v7 = vsel %vm297_vm0, %v15221_v54, %v15290_v9  ;;  %68 = vst.msk [vmem:[#allocation2 + $0x70] sm:$0xf] %vm39_vm5, %v14069_v12  ;;  %v2610_v23 = vshll.u32 %v15284_v30, 16 }
 0x219   :  { %v15288_v47 = vadd.f32 %v1800_v55, %v1412_v49  ;;  %v19842_v55 = vrot.slane %v15284_v30, 2  ;;  %v2073_v20 = vsel %vm1997_vm4, %v2068_v37, %v2072_v17  ;;  %v3238_v49 = vsel %vm1115_vm1, %v15226_v13, %v15295_v60  ;;  %69 = vst.msk [vmem:[#allocation2 + $0x74] sm:$0xf] %vm39_vm5, %v14069_v12  ;;  %v15353_v37 = vld [vmem:[%s19814_s0 + $0x58] sm:$0xff] }
 0x21a   :  { %70 = vst.msk [vmem:[#allocation2 + $0x78] sm:$0xf] %vm39_vm5, %v14069_v12 }
 0x21b   :  { %20004 = vst [vmem:[#allocation4_spill] sm:$0xff] %v15288_v47 }
 0x21c   :  { %v1053_v38 = vpop.f32.mrf.mxu2  ;;  %71 = vst.msk [vmem:[#allocation2 + $0x7c] sm:$0xf] %vm39_vm5, %v14069_v12 }
 0x21d   :  { %v1093_v52 = vadd.f32 %v1053_v38, %v822_v16  ;;  %v2946_v38 = vsel %vm845_vm2, %v2943_v11, %v19842_v55  ;;  %72 = vst.msk [vmem:[#allocation2 + $0x80] sm:$0xf] %vm39_vm5, %v14069_v12  ;;  %v3615_v55 = vld [vmem:[%s19818_s10] sm:$0xff] }
 0x21e   :  { %v2230_v18 = vpop.f32.mrf.mxu1  ;;  %73 = vst.msk [vmem:[#allocation2 + $0x84] sm:$0xf] %vm39_vm5, %v14069_v12 }
 0x21f   :  { %v1413_v4 = vadd.f32 %v1373_v61, %v1093_v52  ;;  %v15328_v13 = vpop.f32.mrf.mxu3  ;;  %v2325_v61 = vadd.f32 %v2230_v18, %v14819_v46  ;;  %74 = vst.msk [vmem:[#allocation2 + $0x88] sm:$0xf] %vm39_vm5, %v14069_v12  ;;  %v15342_v46 = vld [vmem:[%s19815_s2] ss:$0 sm:$0xff]  ;;  %v2074_v18 = vshrl.u32 %v15260_v36, 16 }
 0x220   :  { %v3360_v2 = vpop.f32.mrf.mxu0  ;;  %75 = vst.msk [vmem:[#allocation2 + $0x8c] sm:$0xf] %vm39_vm5, %v14069_v12  ;;  %v15360_v52 = vld [vmem:[%s19816_s3] ss:$0 sm:$0xff] }
 0x221   :  { %2269 = vmatmul.bf16.gmra.mxu1 %v2073_v20  ;;  %2811 = vmatmul.bf16.gmra.mxu2 %v2605_v7  ;;  %v15324_v54 = vadd.f32 %v1802_v48, %v1413_v4  ;;  %76 = vst.msk [vmem:[#allocation2 + $0x90] sm:$0xf] %vm39_vm5, %v14069_v12  ;;  %v2078_v20 = vshll.u32 %v15353_v37, 16  ;;  %v2612_v4 = vrot.slane %v2610_v23, 2 }
 0x222   :  { %77 = vst.msk [vmem:[#allocation2 + $0x94] sm:$0xf] %vm39_vm5, %v14069_v12 }
 0x223   :  { %20006 = vst [vmem:[#allocation5_spill] sm:$0xff] %v15324_v54  ;;  %3399 = vmatmul.bf16.gmra.mxu0 %v3238_v49  ;;  %v20007_v54 = vmov 0.0  }
 0x224   :  { %3085 = vmatmul.bf16.gmra.mxu3 %v2946_v38  ;;  %v2772_v22 = vpop.f32.mrf.mxu2  ;;  %78 = vst.msk [vmem:[#allocation2 + $0x98] sm:$0xf] %vm39_vm5, %v14069_v12 }
 0x225   :  { %v2867_v11 = vadd.f32 %v2772_v22, %v2325_v61  ;;  %79 = vst.msk [vmem:[#allocation2 + $0x9c] sm:$0xf] %vm39_vm5, %v14069_v12  ;;  %v2076_v61 = vor.u32 %v2074_v18, %v2072_v17  ;;  %v2080_v22 = vrot.slane %v2078_v20, 1 }
 0x226   :  { %v2232_v48 = vpop.f32.mrf.mxu1  ;;  %80 = vst.msk [vmem:[#allocation2 + $0xa0] sm:$0xf] %vm39_vm5, %v14069_v12 }
 0x227   :  { %v3136_v56 = vadd.f32 %v3041_v62, %v2867_v11  ;;  %v2607_v62 = vshrl.u32 %v15284_v30, 16  ;;  %v15373_v38 = vpop.f32.mrf.mxu3  ;;  %81 = vst.msk [vmem:[#allocation2 + $0xa4] sm:$0xf] %vm39_vm5, %v14069_v12  ;;  %v2081_v18 = vsel %vm1997_vm4, %v2076_v61, %v2080_v22  ;;  %v2326_v61 = vadd.f32 %v2232_v48, %v14831_v31 }
 0x228   :  { %v15346_v0 = vpop.f32.mrf.mxu0  ;;  %83 = vst.msk [vmem:[%s19817_s11] sm:$0xff] %vm82_vm6, %v20007_v54  ;;  %v20008_v31 = vrot.slane %v15284_v30, 2  ;;  %v2082_v30 = vshrl.u32 %v15353_v37, 16 }
 0x229   :  { %v3455_v16 = vadd.f32 %v3360_v2, %v3136_v56  ;;  %v2609_v7 = vrot.slane %v2607_v62, 1  ;;  %v3239_v36 = vrot.slane %v2607_v62, 2  ;;  %84 = vst.msk [vmem:[%s19817_s11 + $0x8] sm:$0xff] %vm82_vm6, %v20007_v54 }
 0x22a   :  { %86 = vst.msk [vmem:[%s19817_s11 + $0x18] sm:$0xff] %vm82_vm6, %v20007_v54 }
 0x22b   :  { %v3497_v49 = vmul.f32 %v15342_v46, %v3455_v16  ;;  %v15375_v11 = vor.u32 %v2612_v4, %v2609_v7  ;;  %v3240_v16 = vrot.slane %v2610_v23, 3  ;;  %87 = vst.msk [vmem:[%s19817_s11 + $0x20] sm:$0xff] %vm82_vm6, %v20007_v54 }
 0x22c   :  { %v2774_v2 = vpop.f32.mrf.mxu2  ;;  %88 = vst.msk [vmem:[%s19817_s11 + $0x28] sm:$0xff] %vm82_vm6, %v20007_v54 }
 0x22d   :  { %v3539_v56 = vadd.f32 %v15360_v52, %v3497_v49  ;;  %v2614_v62 = vsel %vm297_vm0, %v15290_v9, %v15375_v11  ;;  %v15399_v23 = vor.u32 %v3240_v16, %v3239_v36  ;;  %89 = vst.msk [vmem:[%s19817_s11 + $0x30] sm:$0xff] %vm82_vm6, %v20007_v54  ;;  %v15431_v49 = vld [vmem:[%s19814_s0 + $0x64] sm:$0xff]  ;;  %v2868_v16 = vadd.f32 %v2774_v2, %v2326_v61 }
 0x22e   :  { %v2235_v17 = vpop.f32.mrf.mxu1  ;;  %90 = vst.msk [vmem:[%s19817_s11 + $0x38] sm:$0xff] %vm82_vm6, %v20007_v54  ;;  %v2616_v2 = vshrl.u32 %v15431_v49, 16 }
 0x22f   :  { %v3577_v20 = vmax.f32 %v3539_v56, 0.0  ;;  %v3242_v9 = vsel %vm1115_vm1, %v15295_v60, %v15399_v23  ;;  %v3048_v4 = vpop.f32.mrf.mxu3  ;;  %v19843_v56 = vrot.slane %v15431_v49, 2  ;;  %91 = vst.msk [vmem:[%s19817_s11 + $0x40] sm:$0xff] %vm82_vm6, %v20007_v54 }
 0x230   :  { %v15397_v12 = vpop.f32.mrf.mxu0  ;;  %92 = vst.msk [vmem:[%s19817_s11 + $0x48] sm:$0xff] %vm82_vm6, %v20007_v54  ;;  %v3243_v27 = vrot.slane %v2616_v2, 2 }
 0x231   :  { %v3653_v7 = vmul.f32 %v3615_v55, %v3577_v20  ;;  %2274 = vmatmul.bf16.gmra.mxu1 %v2081_v18  ;;  %2816 = vmatmul.bf16.gmra.mxu2 %v2614_v62  ;;  %v2948_v48 = vsel %vm845_vm2, %v20008_v31, %v19843_v56  ;;  %v15459_v62 = vld [vmem:[%s19814_s0 + $0x60] sm:$0xff]  ;;  %v2619_v20 = vshll.u32 %v15431_v49, 16  ;;  %93 = vst.msk [vmem:[%s19817_s11 + $0x50] sm:$0xff] %vm82_vm6, %v20007_v54 }
 0x232   :  { %94 = vst.msk [vmem:[%s19817_s11 + $0x58] sm:$0xff] %vm82_vm6, %v20007_v54  ;;  %v2084_v56 = vor.u32 %v2082_v30, %v2080_v22 }
 0x233   :  { %3404 = vmatmul.bf16.gmra.mxu0 %v3242_v9  ;;  %3691 = vst.msk [vmem:[%s19817_s11 + $0x10] sm:$0xff] %vm82_vm6, %v3653_v7  ;;  %v3729_v55 = vpack.c.bf16 %v3653_v7, %v3653_v7  ;;  %v2327_v7 = vadd.f32 %v2235_v17, %v14838_v45  ;;  %v2086_v9 = vshll.u32 %v15459_v62, 16  ;;  %v2621_v61 = vrot.slane %v2619_v20, 2 }
 0x234   :  { %v2777_v60 = vpop.f32.mrf.mxu2  ;;  %3090 = vmatmul.bf16.gmra.mxu3 %v2948_v48  ;;  %95 = vst.msk [vmem:[%s19817_s11 + $0x60] sm:$0xff] %vm82_vm6, %v20007_v54  ;;  %v3137_v45 = vadd.f32 %v15328_v13, %v2868_v16  ;;  %v3244_v13 = vrot.slane %v2619_v20, 3 }
 0x235   :  { %3767 = vst.msk [vmem:[#allocation2 + $0x8] sm:$0xf] %vm39_vm5, %v3729_v55  ;;  %v2618_v55 = vrot.slane %v2616_v2, 1  ;;  %v2869_v17 = vadd.f32 %v2777_v60, %v2327_v7  ;;  %v2088_v47 = vrot.slane %v2086_v9, 1  ;;  %v15540_v7 = vld [vmem:[%s19814_s0 + $0x68] sm:$0xff] }
 0x236   :  { %v2237_v36 = vpop.f32.mrf.mxu1  ;;  %96 = vst.msk [vmem:[%s19817_s11 + $0x68] sm:$0xff] %vm82_vm6, %v20007_v54  ;;  %v15509_v2 = vor.u32 %v3244_v13, %v3243_v27  ;;  %v2094_v13 = vshll.u32 %v15540_v7, 16 }
 0x237   :  { %v2328_v31 = vadd.f32 %v2237_v36, %v14856_v3  ;;  %v3051_v48 = vpop.f32.mrf.mxu3  ;;  %v15488_v32 = vor.u32 %v2621_v61, %v2618_v55  ;;  %97 = vst.msk [vmem:[%s19817_s11 + $0x70] sm:$0xff] %vm82_vm6, %v20007_v54  ;;  %v2089_v22 = vsel %vm1997_vm4, %v2084_v56, %v2088_v47  ;;  %v3456_v56 = vadd.f32 %v15346_v0, %v3137_v45 }
 0x238   :  { %v3367_v18 = vpop.f32.mrf.mxu0  ;;  %98 = vst.msk [vmem:[%s19817_s11 + $0x78] sm:$0xff] %vm82_vm6, %v20007_v54  ;;  %v3138_v20 = vadd.f32 %v15373_v38, %v2869_v17  ;;  %v3246_v0 = vsel %vm1115_vm1, %v15399_v23, %v15509_v2 }
 0x239   :  { %v2623_v36 = vsel %vm297_vm0, %v15375_v11, %v15488_v32  ;;  %99 = vst.msk [vmem:[%s19817_s11 + $0x80] sm:$0xff] %vm82_vm6, %v20007_v54  ;;  %v15521_v11 = vld [vmem:[%s19814_s0 + $0x6c] sm:$0xff]  ;;  %v3498_v9 = vmul.f32 %v15342_v46, %v3456_v56 }
 0x23a   :  { %100 = vst.msk [vmem:[%s19817_s11 + $0x88] sm:$0xff] %vm82_vm6, %v20007_v54  ;;  %v2949_v38 = vrot.slane %v15521_v11, 2  ;;  %v2628_v30 = vshll.u32 %v15521_v11, 16  ;;  %v3457_v55 = vadd.f32 %v15397_v12, %v3138_v20  ;;  %v20009_v12 = vrot.slane %v15431_v49, 2 }
 0x23b   :  { %101 = vst.msk [vmem:[%s19817_s11 + $0x90] sm:$0xff] %vm82_vm6, %v20007_v54  ;;  %v3540_v49 = vadd.f32 %v15360_v52, %v3498_v9 }
 0x23c   :  { %v2779_v37 = vpop.f32.mrf.mxu2  ;;  %102 = vst.msk [vmem:[%s19817_s11 + $0x98] sm:$0xff] %vm82_vm6, %v20007_v54  ;;  %v3248_v56 = vrot.slane %v2628_v30, 3  ;;  %v3499_v20 = vmul.f32 %v15342_v46, %v3457_v55 }
 0x23d   :  { %v2870_v3 = vadd.f32 %v2779_v37, %v2328_v31  ;;  %103 = vst.msk [vmem:[%s19817_s11 + $0xa0] sm:$0xff] %vm82_vm6, %v20007_v54  ;;  %v2090_v31 = vshrl.u32 %v15459_v62, 16 }
 0x23e   :  { %v2240_v60 = vpop.f32.mrf.mxu1  ;;  %104 = vst.msk [vmem:[%s19817_s11 + $0xa8] sm:$0xff] %vm82_vm6, %v20007_v54  ;;  %v3541_v9 = vadd.f32 %v15360_v52, %v3499_v20 }
 0x23f   :  { %v3139_v27 = vadd.f32 %v3048_v4, %v2870_v3  ;;  %v2625_v4 = vshrl.u32 %v15521_v11, 16  ;;  %v2329_v23 = vadd.f32 %v2240_v60, %v14869_v41  ;;  %v3053_v45 = vpop.f32.mrf.mxu3  ;;  %105 = vst.msk [vmem:[%s19817_s11 + $0xb0] sm:$0xff] %vm82_vm6, %v20007_v54  ;;  %v2950_v3 = vsel %vm845_vm2, %v20009_v12, %v2949_v38 }
 0x240   :  { %v3370_v16 = vpop.f32.mrf.mxu0  ;;  %106 = vst.msk [vmem:[%s19817_s11 + $0xb8] sm:$0xff] %vm82_vm6, %v20007_v54 }
 0x241   :  { %2279 = vmatmul.bf16.gmra.mxu1 %v2089_v22  ;;  %2821 = vmatmul.bf16.gmra.mxu2 %v2623_v36  ;;  %v3458_v17 = vadd.f32 %v3367_v18, %v3139_v27  ;;  %v2627_v60 = vrot.slane %v2625_v4, 1  ;;  %v2630_v18 = vrot.slane %v2628_v30, 2  ;;  %107 = vst.msk [vmem:[%s19817_s11 + $0xc0] sm:$0xff] %vm82_vm6, %v20007_v54  ;;  %v3247_v36 = vrot.slane %v2625_v4, 2 }
 0x242   :  { %108 = vst.msk [vmem:[%s19817_s11 + $0xc8] sm:$0xff] %vm82_vm6, %v20007_v54  ;;  %v15597_v4 = vrot.slane %v2094_v13, 1 }
 0x243   :  { %3409 = vmatmul.bf16.gmra.mxu0 %v3246_v0  ;;  %109 = vst.msk [vmem:[%s19817_s11 + $0xd0] sm:$0xff] %vm82_vm6, %v20007_v54  ;;  %v2092_v0 = vor.u32 %v2090_v31, %v2088_v47  ;;  %v15599_v30 = vor.u32 %v2630_v18, %v2627_v60  ;;  %v3578_v47 = vmax.f32 %v3540_v49, 0.0 }
 0x244   :  { %v2782_v61 = vpop.f32.mrf.mxu2  ;;  %3095 = vmatmul.bf16.gmra.mxu3 %v2950_v3  ;;  %110 = vst.msk [vmem:[%s19817_s11 + $0xd8] sm:$0xff] %vm82_vm6, %v20007_v54 }
 0x245   :  { %v2871_v41 = vadd.f32 %v2782_v61, %v2329_v23  ;;  %111 = vst.msk [vmem:[%s19817_s11 + $0xe0] sm:$0xff] %vm82_vm6, %v20007_v54  ;;  %v15607_v23 = vor.u32 %v3248_v56, %v3247_v36  ;;  %v2097_v3 = vsel %vm1997_vm4, %v2092_v0, %v15597_v4  ;;  %v2632_v13 = vsel %vm297_vm0, %v15488_v32, %v15599_v30 }
 0x246   :  { %v2242_v37 = vpop.f32.mrf.mxu1  ;;  %112 = vst.msk [vmem:[%s19817_s11 + $0xe8] sm:$0xff] %vm82_vm6, %v20007_v54  ;;  %v3579_v32 = vmax.f32 %v3541_v9, 0.0 }
 0x247   :  { %v3140_v62 = vadd.f32 %v3051_v48, %v2871_v41  ;;  %v3500_v48 = vmul.f32 %v15342_v46, %v3458_v17  ;;  %v3056_v17 = vpop.f32.mrf.mxu3  ;;  %113 = vst.msk [vmem:[%s19817_s11 + $0xf0] sm:$0xff] %vm82_vm6, %v20007_v54 }
 0x248   :  { %v3372_v22 = vpop.f32.mrf.mxu0  ;;  %114 = vst.msk [vmem:[%s19817_s11 + $0xf8] sm:$0xff] %vm82_vm6, %v20007_v54 }
 0x249   :  { %v3459_v27 = vadd.f32 %v3370_v16, %v3140_v62  ;;  %v2330_v16 = vadd.f32 %v2242_v37, %v14881_v33  ;;  %v3616_v33 = vld [vmem:[%s19818_s10 + $0x8] sm:$0xff]  ;;  %v3542_v41 = vadd.f32 %v15360_v52, %v3500_v48  ;;  %v15628_v37 = vld [vmem:[%s19814_s0 + $0x74] sm:$0xff]  ;;  %115 = vst.msk [vmem:[%s19817_s11 + $0x100] sm:$0xff] %vm82_vm6, %v20007_v54  ;;  %v3250_v62 = vsel %vm1115_vm1, %v15509_v2, %v15607_v23 }
 0x24a   :  { %116 = vst.msk [vmem:[%s19817_s11 + $0x108] sm:$0xff] %vm82_vm6, %v20007_v54  ;;  %v3654_v36 = vmul.f32 %v3616_v33, %v3578_v47  ;;  %v3617_v2 = vld [vmem:[%s19818_s10 + $0x10] sm:$0xff]  ;;  %v2951_v20 = vrot.slane %v15628_v37, 2  ;;  %v3618_v48 = vld [vmem:[%s19818_s10 + $0x18] sm:$0xff]  ;;  %v2637_v0 = vshll.u32 %v15628_v37, 16 }
 0x24b   :  { %v3501_v55 = vmul.f32 %v15342_v46, %v3459_v27  ;;  %117 = vst.msk [vmem:[%s19817_s11 + $0x110] sm:$0xff] %vm82_vm6, %v20007_v54  ;;  %v15674_v27 = vld [vmem:[%s19814_s0 + $0x70] sm:$0xff] }
 0x24c   :  { %v2784_v61 = vpop.f32.mrf.mxu2  ;;  %118 = vst.msk [vmem:[%s19817_s11 + $0x118] sm:$0xff] %vm82_vm6, %v20007_v54  ;;  %v3730_v9 = vpack.c.bf16 %v3654_v36, %v3654_v36 }
 0x24d   :  { %v2872_v31 = vadd.f32 %v2784_v61, %v2330_v16  ;;  %v3543_v56 = vadd.f32 %v15360_v52, %v3501_v55  ;;  %119 = vst.msk [vmem:[%s19817_s11 + $0x120] sm:$0xff] %vm82_vm6, %v20007_v54  ;;  %v3655_v55 = vmul.f32 %v3617_v2, %v3579_v32  ;;  %v2102_v32 = vshll.u32 %v15674_v27, 16 }
 0x24e   :  { %v2245_v12 = vpop.f32.mrf.mxu1  ;;  %120 = vst.msk [vmem:[%s19817_s11 + $0x128] sm:$0xff] %vm82_vm6, %v20007_v54  ;;  %v2639_v2 = vrot.slane %v2637_v0, 2 }
 0x24f   :  { %v3141_v60 = vadd.f32 %v3053_v45, %v2872_v31  ;;  %v3580_v45 = vmax.f32 %v3542_v41, 0.0  ;;  %v2331_v47 = vadd.f32 %v2245_v12, %v14888_v28  ;;  %v3581_v61 = vmax.f32 %v3543_v56, 0.0  ;;  %v3058_v41 = vpop.f32.mrf.mxu3  ;;  %121 = vst.msk [vmem:[%s19817_s11 + $0x130] sm:$0xff] %vm82_vm6, %v20007_v54  ;;  %v3619_v28 = vld [vmem:[%s19818_s10 + $0x20] sm:$0xff] }
 0x250   :  { %v3375_v18 = vpop.f32.mrf.mxu0  ;;  %122 = vst.msk [vmem:[%s19817_s11 + $0x138] sm:$0xff] %vm82_vm6, %v20007_v54 }
 0x251   :  { %v3460_v49 = vadd.f32 %v3372_v22, %v3141_v60  ;;  %2284 = vmatmul.bf16.gmra.mxu1 %v2097_v3  ;;  %2826 = vmatmul.bf16.gmra.mxu2 %v2632_v13  ;;  %v2634_v22 = vshrl.u32 %v15628_v37, 16  ;;  %v3656_v31 = vmul.f32 %v3618_v48, %v3580_v45  ;;  %v2952_v13 = vsel %vm845_vm2, %v2949_v38, %v2951_v20  ;;  %v3620_v38 = vld [vmem:[%s19818_s10 + $0x28] sm:$0xff] }
 0x252   :  { %123 = vst.msk [vmem:[%s19817_s11 + $0x140] sm:$0xff] %vm82_vm6, %v20007_v54 }
 0x253   :  { %3414 = vmatmul.bf16.gmra.mxu0 %v3250_v62  ;;  %v3502_v16 = vmul.f32 %v15342_v46, %v3460_v49  ;;  %v2098_v62 = vshrl.u32 %v15540_v7, 16  ;;  %v2636_v56 = vrot.slane %v2634_v22, 1  ;;  %v3251_v48 = vrot.slane %v2634_v22, 2  ;;  %124 = vst.msk [vmem:[%s19817_s11 + $0x148] sm:$0xff] %vm82_vm6, %v20007_v54 }
 0x254   :  { %v2787_v33 = vpop.f32.mrf.mxu2  ;;  %v3731_v7 = vpack.c.bf16 %v3655_v55, %v3655_v55  ;;  %3692 = vst.msk [vmem:[%s19817_s11 + $0x18] sm:$0xff] %vm82_vm6, %v3654_v36  ;;  %3100 = vmatmul.bf16.gmra.mxu3 %v2952_v13 }
 0x255   :  { %v3544_v12 = vadd.f32 %v15360_v52, %v3502_v16  ;;  %v2873_v3 = vadd.f32 %v2787_v33, %v2331_v47  ;;  %v3252_v16 = vrot.slane %v2637_v0, 3  ;;  %v3657_v47 = vmul.f32 %v3619_v28, %v3581_v61  ;;  %3768 = vst.msk [vmem:[#allocation2 + $0xc] sm:$0xf] %vm39_vm5, %v3730_v9 }
 0x256   :  { %v2247_v60 = vpop.f32.mrf.mxu1  ;;  %v3732_v33 = vpack.c.bf16 %v3656_v31, %v3656_v31  ;;  %v2100_v22 = vor.u32 %v2098_v62, %v15597_v4  ;;  %v2104_v0 = vrot.slane %v2102_v32, 1  ;;  %3693 = vst.msk [vmem:[%s19817_s11 + $0x20] sm:$0xff] %vm82_vm6, %v3655_v55  ;;  %v15749_v55 = vld [vmem:[%s19814_s0 + $0x7c] sm:$0xff] }
 0x257   :  { %v3582_v11 = vmax.f32 %v3544_v12, 0.0  ;;  %v3142_v45 = vadd.f32 %v3056_v17, %v2873_v3  ;;  %v15730_v3 = vor.u32 %v2639_v2, %v2636_v56  ;;  %v2332_v36 = vadd.f32 %v2247_v60, %v14899_v51  ;;  %3769 = vst.msk [vmem:[#allocation2 + $0x10] sm:$0xf] %vm39_vm5, %v3731_v7  ;;  %v3061_v28 = vpop.f32.mrf.mxu3  ;;  %v3621_v60 = vld [vmem:[%s19818_s10 + $0x30] sm:$0xff] }
 0x258   :  { %v3377_v49 = vpop.f32.mrf.mxu0  ;;  %v15738_v61 = vor.u32 %v3252_v16, %v3251_v48  ;;  %3694 = vst.msk [vmem:[%s19817_s11 + $0x28] sm:$0xff] %vm82_vm6, %v3656_v31  ;;  %v2105_v32 = vsel %vm1997_vm4, %v2100_v22, %v2104_v0  ;;  %v2953_v48 = vrot.slane %v15749_v55, 2  ;;  %v2646_v16 = vshll.u32 %v15749_v55, 16 }
 0x259   :  { %v3461_v12 = vadd.f32 %v3375_v18, %v3142_v45  ;;  %v3658_v17 = vmul.f32 %v3620_v38, %v3582_v11  ;;  %v3733_v18 = vpack.c.bf16 %v3657_v47, %v3657_v47  ;;  %3770 = vst.msk [vmem:[#allocation2 + $0x14] sm:$0xf] %vm39_vm5, %v3732_v33  ;;  %v2641_v31 = vsel %vm297_vm0, %v15599_v30, %v15730_v3 }
 0x25a   :  { %3695 = vst.msk [vmem:[%s19817_s11 + $0x30] sm:$0xff] %vm82_vm6, %v3657_v47  ;;  %v3254_v38 = vsel %vm1115_vm1, %v15607_v23, %v15738_v61  ;;  %v15776_v23 = vld [vmem:[%s19814_s0 + $0x78] sm:$0xff] }
 0x25b   :  { %v3503_v54 = vmul.f32 %v15342_v46, %v3461_v12  ;;  %v3734_v51 = vpack.c.bf16 %v3658_v17, %v3658_v17  ;;  %3771 = vst.msk [vmem:[#allocation2 + $0x18] sm:$0xf] %vm39_vm5, %v3733_v18 }
 0x25c   :  { %v2789_v9 = vpop.f32.mrf.mxu2  ;;  %3696 = vst.msk [vmem:[%s19817_s11 + $0x38] sm:$0xff] %vm82_vm6, %v3658_v17 }
 0x25d   :  { %v3545_v4 = vadd.f32 %v15360_v52, %v3503_v54  ;;  %v2874_v13 = vadd.f32 %v2789_v9, %v2332_v36  ;;  %3772 = vst.msk [vmem:[#allocation2 + $0x1c] sm:$0xf] %vm39_vm5, %v3734_v51  ;;  %v2954_v54 = vsel %vm845_vm2, %v2951_v20, %v2953_v48  ;;  %v3622_v36 = vld [vmem:[%s19818_s10 + $0x38] sm:$0xff]  ;;  %v2110_v9 = vshll.u32 %v15776_v23, 16 }
 0x25e   :  { %v2250_v62 = vpop.f32.mrf.mxu1 }
 0x25f   :  { %v3583_v56 = vmax.f32 %v3545_v4, 0.0  ;;  %v3143_v2 = vadd.f32 %v3058_v41, %v2874_v13  ;;  %v2643_v41 = vshrl.u32 %v15749_v55, 16  ;;  %v2333_v47 = vadd.f32 %v2250_v62, %v14915_v35  ;;  %v3063_v12 = vpop.f32.mrf.mxu3 }
 0x260   :  { %v3380_v11 = vpop.f32.mrf.mxu0  ;;  %v2106_v35 = vshrl.u32 %v15674_v27, 16  ;;  %v2648_v13 = vrot.slane %v2646_v16, 2 }
 0x261   :  { %v3659_v30 = vmul.f32 %v3621_v60, %v3583_v56  ;;  %v3462_v45 = vadd.f32 %v3377_v49, %v3143_v2  ;;  %2289 = vmatmul.bf16.gmra.mxu1 %v2105_v32  ;;  %2831 = vmatmul.bf16.gmra.mxu2 %v2641_v31  ;;  %v2645_v4 = vrot.slane %v2643_v41, 1  ;;  %v3255_v32 = vrot.slane %v2643_v41, 2 }
 0x262   :  { %v3256_v31 = vrot.slane %v2646_v16, 3  ;;  %v2108_v20 = vor.u32 %v2106_v35, %v2104_v0  ;;  %v2112_v2 = vrot.slane %v2110_v9, 1 }
 0x263   :  { %3419 = vmatmul.bf16.gmra.mxu0 %v3254_v38  ;;  %3697 = vst.msk [vmem:[%s19817_s11 + $0x40] sm:$0xff] %vm82_vm6, %v3659_v30  ;;  %v3735_v49 = vpack.c.bf16 %v3659_v30, %v3659_v30  ;;  %v3504_v7 = vmul.f32 %v15342_v46, %v3462_v45  ;;  %v15798_v38 = vor.u32 %v2648_v13, %v2645_v4  ;;  %v15829_v4 = vld [vmem:[%s19814_s0 + $0x80] sm:$0xff] }
 0x264   :  { %v2792_v33 = vpop.f32.mrf.mxu2  ;;  %3105 = vmatmul.bf16.gmra.mxu3 %v2954_v54  ;;  %v15806_v45 = vor.u32 %v3256_v31, %v3255_v32 }
 0x265   :  { %3773 = vst.msk [vmem:[#allocation2 + $0x20] sm:$0xf] %vm39_vm5, %v3735_v49  ;;  %v3546_v17 = vadd.f32 %v15360_v52, %v3504_v7  ;;  %v2875_v22 = vadd.f32 %v2792_v33, %v2333_v47  ;;  %v15813_v49 = vld [vmem:[%s19814_s0 + $0x84] sm:$0xff]  ;;  %v2650_v33 = vsel %vm297_vm0, %v15730_v3, %v15798_v38 }
 0x266   :  { %v2252_v18 = vpop.f32.mrf.mxu1  ;;  %v3623_v7 = vld [vmem:[%s19818_s10 + $0x40] sm:$0xff]  ;;  %v2955_v9 = vrot.slane %v15813_v49, 2  ;;  %v2652_v3 = vshrl.u32 %v15813_v49, 16 }
 0x267   :  { %v3584_v51 = vmax.f32 %v3546_v17, 0.0  ;;  %v3144_v60 = vadd.f32 %v3061_v28, %v2875_v22  ;;  %v2334_v28 = vadd.f32 %v2252_v18, %v14929_v1  ;;  %v3066_v16 = vpop.f32.mrf.mxu3  ;;  %v2113_v1 = vsel %vm1997_vm4, %v2108_v20, %v2112_v2 }
 0x268   :  { %v3382_v62 = vpop.f32.mrf.mxu0 }
 0x269   :  { %v3660_v56 = vmul.f32 %v3622_v36, %v3584_v51  ;;  %v3463_v37 = vadd.f32 %v3380_v11, %v3144_v60  ;;  %v3258_v36 = vsel %vm1115_vm1, %v15738_v61, %v15806_v45 }
 0x26b   :  { %3698 = vst.msk [vmem:[%s19817_s11 + $0x48] sm:$0xff] %vm82_vm6, %v3660_v56  ;;  %v3736_v27 = vpack.c.bf16 %v3660_v56, %v3660_v56  ;;  %v3505_v30 = vmul.f32 %v15342_v46, %v3463_v37  ;;  %v2956_v56 = vsel %vm845_vm2, %v2953_v48, %v2955_v9  ;;  %v3624_v37 = vld [vmem:[%s19818_s10 + $0x48] sm:$0xff] }
 0x26c   :  { %v2794_v41 = vpop.f32.mrf.mxu2 }
 0x26d   :  { %3774 = vst.msk [vmem:[#allocation2 + $0x24] sm:$0xf] %vm39_vm5, %v3736_v27  ;;  %v3547_v0 = vadd.f32 %v15360_v52, %v3505_v30  ;;  %v2876_v11 = vadd.f32 %v2794_v41, %v2334_v28  ;;  %v2118_v27 = vshll.u32 %v15829_v4, 16  ;;  %v2654_v30 = vrot.slane %v2652_v3, 1 }
 0x26e   :  { %v2255_v47 = vpop.f32.mrf.mxu1 }
 0x26f   :  { %v3585_v17 = vmax.f32 %v3547_v0, 0.0  ;;  %v3145_v22 = vadd.f32 %v3063_v12, %v2876_v11  ;;  %v2655_v12 = vshll.u32 %v15813_v49, 16  ;;  %v2335_v51 = vadd.f32 %v2255_v47, %v14936_v44 }
 0x270   :  { %v3385_v54 = vpop.f32.mrf.mxu0  ;;  %v2114_v44 = vshrl.u32 %v15776_v23, 16 }
 0x271   :  { %v3661_v18 = vmul.f32 %v3623_v7, %v3585_v17  ;;  %v3464_v35 = vadd.f32 %v3382_v62, %v3145_v22  ;;  %2294 = vmatmul.bf16.gmra.mxu1 %v2113_v1  ;;  %2836 = vmatmul.bf16.gmra.mxu2 %v2650_v33  ;;  %v3068_v62 = vpop.f32.mrf.mxu3  ;;  %v2657_v28 = vrot.slane %v2655_v12, 2  ;;  %v3259_v7 = vrot.slane %v2652_v3, 2  ;;  %v15866_v3 = vld [vmem:[%s19814_s0 + $0x8c] sm:$0xff] }
 0x272   :  { %v3260_v47 = vrot.slane %v2655_v12, 3  ;;  %v2116_v48 = vor.u32 %v2114_v44, %v2112_v2  ;;  %v2120_v33 = vrot.slane %v2118_v27, 1  ;;  %v3625_v12 = vld [vmem:[%s19818_s10 + $0x50] sm:$0xff]  ;;  %v15882_v44 = vld [vmem:[%s19814_s0 + $0x88] sm:$0xff] }
 0x273   :  { %3424 = vmatmul.bf16.gmra.mxu0 %v3258_v36  ;;  %3699 = vst.msk [vmem:[%s19817_s11 + $0x50] sm:$0xff] %vm82_vm6, %v3661_v18  ;;  %v3737_v61 = vpack.c.bf16 %v3661_v18, %v3661_v18  ;;  %v3506_v13 = vmul.f32 %v15342_v46, %v3464_v35  ;;  %v15851_v17 = vor.u32 %v2657_v28, %v2654_v30 }
 0x274   :  { %v2797_v60 = vpop.f32.mrf.mxu2  ;;  %3110 = vmatmul.bf16.gmra.mxu3 %v2956_v56  ;;  %v15859_v36 = vor.u32 %v3260_v47, %v3259_v7  ;;  %v3626_v47 = vld [vmem:[%s19818_s10 + $0x58] sm:$0xff] }
 0x275   :  { %3775 = vst.msk [vmem:[#allocation2 + $0x28] sm:$0xf] %vm39_vm5, %v3737_v61  ;;  %v3548_v32 = vadd.f32 %v15360_v52, %v3506_v13  ;;  %v2877_v31 = vadd.f32 %v2797_v60, %v2335_v51  ;;  %v2659_v13 = vsel %vm297_vm0, %v15798_v38, %v15851_v17  ;;  %v2661_v38 = vshrl.u32 %v15866_v3, 16 }
 0x276   :  { %v2257_v20 = vpop.f32.mrf.mxu1 }
 0x277   :  { %v3586_v41 = vmax.f32 %v3548_v32, 0.0  ;;  %v3146_v0 = vadd.f32 %v3066_v16, %v2877_v31  ;;  %v2336_v16 = vadd.f32 %v2257_v20, %v14948_v25  ;;  %v2121_v25 = vsel %vm1997_vm4, %v2116_v48, %v2120_v33 }
 0x278   :  { %v3387_v11 = vpop.f32.mrf.mxu0  ;;  %v3262_v31 = vsel %vm1115_vm1, %v15806_v45, %v15859_v36  ;;  %v2957_v20 = vrot.slane %v15866_v3, 2  ;;  %v2663_v48 = vrot.slane %v2661_v38, 1 }
 0x279   :  { %v3662_v1 = vmul.f32 %v3624_v37, %v3586_v41  ;;  %v3465_v55 = vadd.f32 %v3385_v54, %v3146_v0  ;;  %v3071_v35 = vpop.f32.mrf.mxu3 }
 0x27a   :  { %v2958_v7 = vsel %vm845_vm2, %v2955_v9, %v2957_v20 }
 0x27b   :  { %3700 = vst.msk [vmem:[%s19817_s11 + $0x58] sm:$0xff] %vm82_vm6, %v3662_v1  ;;  %v3738_v23 = vpack.c.bf16 %v3662_v1, %v3662_v1  ;;  %v3507_v22 = vmul.f32 %v15342_v46, %v3465_v55  ;;  %v2126_v55 = vshll.u32 %v15882_v44, 16 }
 0x27c   :  { %v2799_v18 = vpop.f32.mrf.mxu2 }
 0x27d   :  { %3776 = vst.msk [vmem:[#allocation2 + $0x2c] sm:$0xf] %vm39_vm5, %v3738_v23  ;;  %v3549_v2 = vadd.f32 %v15360_v52, %v3507_v22  ;;  %v2878_v54 = vadd.f32 %v2799_v18, %v2336_v16 }
 0x27e   :  { %v2260_v61 = vpop.f32.mrf.mxu1 }
 0x27f   :  { %v3587_v51 = vmax.f32 %v3549_v2, 0.0  ;;  %v3147_v60 = vadd.f32 %v3068_v62, %v2878_v54  ;;  %v2664_v62 = vshll.u32 %v15866_v3, 16  ;;  %v2337_v30 = vadd.f32 %v2260_v61, %v14958_v10 }
 0x280   :  { %v3390_v32 = vpop.f32.mrf.mxu0  ;;  %v2122_v10 = vshrl.u32 %v15829_v4, 16  ;;  %v3263_v2 = vrot.slane %v2661_v38, 2  ;;  %v2128_v61 = vrot.slane %v2126_v55, 1 }
 0x281   :  { %v3663_v56 = vmul.f32 %v3625_v12, %v3587_v51  ;;  %v3466_v37 = vadd.f32 %v3387_v11, %v3147_v60  ;;  %2299 = vmatmul.bf16.gmra.mxu1 %v2121_v25  ;;  %2841 = vmatmul.bf16.gmra.mxu2 %v2659_v13  ;;  %v3073_v41 = vpop.f32.mrf.mxu3  ;;  %v2666_v23 = vrot.slane %v2664_v62, 2  ;;  %v3264_v54 = vrot.slane %v2664_v62, 3 }
 0x282   :  { %v2124_v9 = vor.u32 %v2122_v10, %v2120_v33 }
 0x283   :  { %3429 = vmatmul.bf16.gmra.mxu0 %v3262_v31  ;;  %3701 = vst.msk [vmem:[%s19817_s11 + $0x60] sm:$0xff] %vm82_vm6, %v3663_v56  ;;  %v3739_v45 = vpack.c.bf16 %v3663_v56, %v3663_v56  ;;  %v3508_v27 = vmul.f32 %v15342_v46, %v3466_v37  ;;  %v15904_v25 = vor.u32 %v2666_v23, %v2663_v48  ;;  %v15919_v56 = vld [vmem:[%s19814_s0 + $0x94] sm:$0xff]  ;;  %v3627_v37 = vld [vmem:[%s19818_s10 + $0x60] sm:$0xff] }
 0x284   :  { %v2802_v28 = vpop.f32.mrf.mxu2  ;;  %3115 = vmatmul.bf16.gmra.mxu3 %v2958_v7  ;;  %v15912_v51 = vor.u32 %v3264_v54, %v3263_v2  ;;  %v2959_v7 = vrot.slane %v15919_v56, 2 }
 0x285   :  { %3777 = vst.msk [vmem:[#allocation2 + $0x30] sm:$0xf] %vm39_vm5, %v3739_v45  ;;  %v3550_v0 = vadd.f32 %v15360_v52, %v3508_v27  ;;  %v2879_v11 = vadd.f32 %v2802_v28, %v2337_v30  ;;  %v2668_v62 = vsel %vm297_vm0, %v15851_v17, %v15904_v25  ;;  %v2670_v17 = vshrl.u32 %v15919_v56, 16 }
 0x286   :  { %v2262_v1 = vpop.f32.mrf.mxu1  ;;  %v3266_v28 = vsel %vm1115_vm1, %v15859_v36, %v15912_v51 }
 0x287   :  { %v3588_v22 = vmax.f32 %v3550_v0, 0.0  ;;  %v3148_v16 = vadd.f32 %v3071_v35, %v2879_v11  ;;  %v2338_v35 = vadd.f32 %v2262_v1, %v14976_v59  ;;  %v2129_v59 = vsel %vm1997_vm4, %v2124_v9, %v2128_v61 }
 0x288   :  { %v3392_v18 = vpop.f32.mrf.mxu0 }
 0x289   :  { %v3664_v12 = vmul.f32 %v3626_v47, %v3588_v22  ;;  %v3467_v49 = vadd.f32 %v3390_v32, %v3148_v16  ;;  %v3076_v31 = vpop.f32.mrf.mxu3  ;;  %v15935_v47 = vld [vmem:[%s19814_s0 + $0x90] sm:$0xff]  ;;  %v2960_v16 = vsel %vm845_vm2, %v2957_v20, %v2959_v7 }
 0x28a   :  { %v2134_v54 = vshll.u32 %v15935_v47, 16 }
 0x28b   :  { %3702 = vst.msk [vmem:[%s19817_s11 + $0x68] sm:$0xff] %vm82_vm6, %v3664_v12  ;;  %v3740_v4 = vpack.c.bf16 %v3664_v12, %v3664_v12  ;;  %v3509_v13 = vmul.f32 %v15342_v46, %v3467_v49  ;;  %v2672_v12 = vrot.slane %v2670_v17, 1 }
 0x28c   :  { %v2804_v60 = vpop.f32.mrf.mxu2 }
 0x28d   :  { %3778 = vst.msk [vmem:[#allocation2 + $0x34] sm:$0xf] %vm39_vm5, %v3740_v4  ;;  %v3551_v33 = vadd.f32 %v15360_v52, %v3509_v13  ;;  %v2880_v32 = vadd.f32 %v2804_v60, %v2338_v35  ;;  %v3267_v35 = vrot.slane %v2670_v17, 2 }
 0x28e   :  { %v2265_v38 = vpop.f32.mrf.mxu1 }
 0x28f   :  { %v3589_v45 = vmax.f32 %v3551_v33, 0.0  ;;  %v3149_v27 = vadd.f32 %v3073_v41, %v2880_v32  ;;  %v2673_v41 = vshll.u32 %v15919_v56, 16  ;;  %v2339_v10 = vadd.f32 %v2265_v38, %v14989_v14 }
 0x290   :  { %v3395_v30 = vpop.f32.mrf.mxu0  ;;  %v2130_v14 = vshrl.u32 %v15882_v44, 16  ;;  %v2136_v32 = vrot.slane %v2134_v54, 1 }
 0x291   :  { %v3665_v0 = vmul.f32 %v3627_v37, %v3589_v45  ;;  %v3468_v11 = vadd.f32 %v3392_v18, %v3149_v27  ;;  %2304 = vmatmul.bf16.gmra.mxu1 %v2129_v59  ;;  %2846 = vmatmul.bf16.gmra.mxu2 %v2668_v62  ;;  %v3078_v48 = vpop.f32.mrf.mxu3  ;;  %v3628_v18 = vld [vmem:[%s19818_s10 + $0x68] sm:$0xff]  ;;  %v2675_v49 = vrot.slane %v2673_v41, 2  ;;  %v3268_v60 = vrot.slane %v2673_v41, 3 }
 0x292   :  { %v2132_v20 = vor.u32 %v2130_v14, %v2128_v61 }
 0x293   :  { %3434 = vmatmul.bf16.gmra.mxu0 %v3266_v28  ;;  %3703 = vst.msk [vmem:[%s19817_s11 + $0x70] sm:$0xff] %vm82_vm6, %v3665_v0  ;;  %v3741_v36 = vpack.c.bf16 %v3665_v0, %v3665_v0  ;;  %v3510_v1 = vmul.f32 %v15342_v46, %v3468_v11  ;;  %v15957_v37 = vor.u32 %v2675_v49, %v2672_v12  ;;  %v3629_v28 = vld [vmem:[%s19818_s10 + $0x70] sm:$0xff]  ;;  %v3630_v12 = vld [vmem:[%s19818_s10 + $0x78] sm:$0xff] }
 0x294   :  { %v2807_v55 = vpop.f32.mrf.mxu2  ;;  %3120 = vmatmul.bf16.gmra.mxu3 %v2960_v16  ;;  %v15965_v59 = vor.u32 %v3268_v60, %v3267_v35 }
 0x295   :  { %3779 = vst.msk [vmem:[#allocation2 + $0x38] sm:$0xf] %vm39_vm5, %v3741_v36  ;;  %v3552_v23 = vadd.f32 %v15360_v52, %v3510_v1  ;;  %v2881_v22 = vadd.f32 %v2807_v55, %v2339_v10  ;;  %v2677_v11 = vsel %vm297_vm0, %v15904_v25, %v15957_v37 }
 0x296   :  { %v2267_v2 = vpop.f32.mrf.mxu1  ;;  %v3270_v1 = vsel %vm1115_vm1, %v15912_v51, %v15965_v59 }
 0x297   :  { %v3590_v9 = vmax.f32 %v3552_v23, 0.0  ;;  %v3150_v4 = vadd.f32 %v3076_v31, %v2881_v22  ;;  %v2340_v31 = vadd.f32 %v2267_v2, %v15001_v34  ;;  %v2137_v34 = vsel %vm1997_vm4, %v2132_v20, %v2136_v32  ;;  %v15988_v22 = vld [vmem:[%s19814_s0 + $0x98] sm:$0xff] }
 0x298   :  { %v3397_v13 = vpop.f32.mrf.mxu0 }
 0x299   :  { %v3666_v33 = vmul.f32 %v3628_v18, %v3590_v9  ;;  %v3469_v3 = vadd.f32 %v3395_v30, %v3150_v4  ;;  %v3081_v45 = vpop.f32.mrf.mxu3  ;;  %v15972_v30 = vld [vmem:[%s19814_s0 + $0x9c] sm:$0xff] }
 0x29a   :  { %v2961_v23 = vrot.slane %v15972_v30, 2  ;;  %v2679_v25 = vshrl.u32 %v15972_v30, 16 }
 0x29b   :  { %3704 = vst.msk [vmem:[%s19817_s11 + $0x78] sm:$0xff] %vm82_vm6, %v3666_v33  ;;  %v3742_v44 = vpack.c.bf16 %v3666_v33, %v3666_v33  ;;  %v3511_v38 = vmul.f32 %v15342_v46, %v3469_v3  ;;  %v2401_v33 = vld [vmem:[%s19814_s0 + $0xa4] sm:$0x3] }
 0x29c   :  { %v2809_v62 = vpop.f32.mrf.mxu2  ;;  %v2962_v9 = vsel %vm845_vm2, %v2959_v7, %v2961_v23  ;;  %v2681_v35 = vrot.slane %v2679_v25, 1  ;;  %v2496_v7 = vunpack.c.l.b16 %v2401_v33 }
 0x29d   :  { %3780 = vst.msk [vmem:[#allocation2 + $0x3c] sm:$0xf] %vm39_vm5, %v3742_v44  ;;  %v3553_v61 = vadd.f32 %v15360_v52, %v3511_v38  ;;  %v2882_v27 = vadd.f32 %v2809_v62, %v2340_v31  ;;  %v3271_v38 = vrot.slane %v2679_v25, 2 }
 0x29e   :  { %v2270_v0 = vpop.f32.mrf.mxu1 }
 0x29f   :  { %v3591_v17 = vmax.f32 %v3553_v61, 0.0  ;;  %v3151_v41 = vadd.f32 %v3078_v48, %v2882_v27  ;;  %v2682_v48 = vshll.u32 %v15972_v30, 16  ;;  %v2341_v18 = vadd.f32 %v2270_v0, %v15007_v29 }
 0x2a0   :  { %v3400_v36 = vpop.f32.mrf.mxu0  ;;  %v2138_v29 = vshrl.u32 %v15935_v47, 16 }
 0x2a1   :  { %v3667_v10 = vmul.f32 %v3629_v28, %v3591_v17  ;;  %v3470_v55 = vadd.f32 %v3397_v13, %v3151_v41  ;;  %2309 = vmatmul.bf16.gmra.mxu1 %v2137_v34  ;;  %2851 = vmatmul.bf16.gmra.mxu2 %v2677_v11  ;;  %v3083_v14 = vpop.f32.mrf.mxu3  ;;  %v2142_v13 = vshll.u32 %v15988_v22, 16  ;;  %v2684_v60 = vrot.slane %v2682_v48, 2 }
 0x2a2   :  { %v3272_v31 = vrot.slane %v2682_v48, 3  ;;  %v2140_v61 = vor.u32 %v2138_v29, %v2136_v32 }
 0x2a3   :  { %3439 = vmatmul.bf16.gmra.mxu0 %v3270_v1  ;;  %3705 = vst.msk [vmem:[%s19817_s11 + $0x80] sm:$0xff] %vm82_vm6, %v3667_v10  ;;  %v3743_v51 = vpack.c.bf16 %v3667_v10, %v3667_v10  ;;  %v3512_v16 = vmul.f32 %v15342_v46, %v3470_v55  ;;  %v16013_v27 = vrot.slane %v2142_v13, 1  ;;  %v16015_v47 = vor.u32 %v2684_v60, %v2681_v35  ;;  %v1881_v1 = vld [vmem:[%s19814_s0 + $0xa0] sm:$0x1] }
 0x2a4   :  { %v2812_v2 = vpop.f32.mrf.mxu2  ;;  %3125 = vmatmul.bf16.gmra.mxu3 %v2962_v9  ;;  %v16023_v34 = vor.u32 %v3272_v31, %v3271_v38  ;;  %v1976_v25 = vunpack.c.l.b16 %v1881_v1 }
 0x2a5   :  { %3781 = vst.msk [vmem:[#allocation2 + $0x40] sm:$0xf] %vm39_vm5, %v3743_v51  ;;  %v3554_v54 = vadd.f32 %v15360_v52, %v3512_v16  ;;  %v2883_v49 = vadd.f32 %v2812_v2, %v2341_v18  ;;  %v2686_v55 = vsel %vm297_vm0, %v15957_v37, %v16015_v47 }
 0x2a6   :  { %v2272_v4 = vpop.f32.mrf.mxu1  ;;  %v3274_v18 = vsel %vm1115_vm1, %v15965_v59, %v16023_v34  ;;  %v1996_v37 = vpack.c.b16 %v1976_v25, %v1976_v25  ;;  %v16051_v59 = vld [vmem:[%s19815_s2] ss:$0 sm:$0xff] }
 0x2a7   :  { %v3592_v3 = vmax.f32 %v3554_v54, 0.0  ;;  %v3152_v20 = vadd.f32 %v3081_v45, %v2883_v49  ;;  %v2342_v0 = vadd.f32 %v2272_v4, %v15022_v50  ;;  %v2145_v50 = vsel %vm1997_vm4, %v2140_v61, %v16013_v27 }
 0x2a8   :  { %v3402_v44 = vpop.f32.mrf.mxu0  ;;  %v2150_v61 = vshll.u32 %v1996_v37, 16 }
 0x2a9   :  { %v3668_v62 = vmul.f32 %v3630_v12, %v3592_v3  ;;  %v3471_v56 = vadd.f32 %v3400_v36, %v3152_v20  ;;  %v3086_v17 = vpop.f32.mrf.mxu3  ;;  %v2516_v36 = vpack.c.b16 %v2496_v7, %v2496_v7  ;;  %v2146_v7 = vshrl.u32 %v15988_v22, 16 }
 0x2ab   :  { %3706 = vst.msk [vmem:[%s19817_s11 + $0x88] sm:$0xff] %vm82_vm6, %v3668_v62  ;;  %v3744_v28 = vpack.c.bf16 %v3668_v62, %v3668_v62  ;;  %v3513_v45 = vmul.f32 %v15342_v46, %v3471_v56  ;;  %v3631_v46 = vld [vmem:[%s19818_s10 + $0x80] sm:$0xff]  ;;  %v2963_v49 = vrot.slane %v2516_v36, 2  ;;  %v2688_v9 = vshrl.u32 %v2516_v36, 16 }
 0x2ac   :  { %v2814_v11 = vpop.f32.mrf.mxu2  ;;  %v2691_v4 = vshll.u32 %v2516_v36, 16  ;;  %v2148_v30 = vor.u32 %v2146_v7, %v16013_v27 }
 0x2ad   :  { %3782 = vst.msk [vmem:[#allocation2 + $0x44] sm:$0xf] %vm39_vm5, %v3744_v28  ;;  %v3555_v32 = vadd.f32 %v15360_v52, %v3513_v45  ;;  %v2884_v41 = vadd.f32 %v2814_v11, %v2342_v0  ;;  %v3174_v52 = vld [vmem:[%s19814_s0 + $0xa4] sm:$0x7]  ;;  %v2964_v62 = vsel %vm845_vm2, %v2961_v23, %v2963_v49  ;;  %v2690_v28 = vrot.slane %v2688_v9, 1 }
 0x2ae   :  { %v2275_v10 = vpop.f32.mrf.mxu1  ;;  %v3193_v2 = vunpack.c.l.b16 %v3174_v52  ;;  %v2693_v45 = vrot.slane %v2691_v4, 2  ;;  %v2152_v23 = vrot.slane %v2150_v61, 1 }
 0x2af   :  { %v3593_v48 = vmax.f32 %v3555_v32, 0.0  ;;  %v3153_v51 = vadd.f32 %v3083_v14, %v2884_v41  ;;  %v2343_v35 = vadd.f32 %v2275_v10, %v15033_v5  ;;  %v3632_v5 = vld [vmem:[%s19818_s10 + $0x88] sm:$0xff] }
 0x2b0   :  { %v3405_v16 = vpop.f32.mrf.mxu0  ;;  %v3194_v29 = vpack.c.b16 %v3193_v2, %v3193_v2  ;;  %v2694_v10 = vor.u32 %v2693_v45, %v2690_v28 }
 0x2b1   :  { %v3669_v54 = vmul.f32 %v3631_v46, %v3593_v48  ;;  %v3472_v12 = vadd.f32 %v3402_v44, %v3153_v51  ;;  %2314 = vmatmul.bf16.gmra.mxu1 %v2145_v50  ;;  %2856 = vmatmul.bf16.gmra.mxu2 %v2686_v55  ;;  %v3088_v33 = vpop.f32.mrf.mxu3  ;;  %v16059_v44 = vld [vmem:[%s19816_s3] ss:$0 sm:$0xff]  ;;  %v3633_v51 = vld [vmem:[%s19818_s10 + $0x90] sm:$0xff] }
 0x2b2   :  { %v3276_v3 = vshrl.u32 %v3194_v29, 16  ;;  %v3279_v20 = vshll.u32 %v3194_v29, 16  ;;  %v2695_v2 = vsel %vm297_vm0, %v16015_v47, %v2694_v10 }
 0x2b3   :  { %3444 = vmatmul.bf16.gmra.mxu0 %v3274_v18  ;;  %3707 = vst.msk [vmem:[%s19817_s11 + $0x90] sm:$0xff] %vm82_vm6, %v3669_v54  ;;  %v3745_v14 = vpack.c.bf16 %v3669_v54, %v3669_v54  ;;  %v3514_v13 = vmul.f32 %v16051_v59, %v3472_v12  ;;  %v2153_v18 = vsel %vm1997_vm4, %v2148_v30, %v2152_v23 }
 0x2b4   :  { %v2817_v60 = vpop.f32.mrf.mxu2  ;;  %v3278_v41 = vrot.slane %v3276_v3, 2  ;;  %v3281_v36 = vrot.slane %v3279_v20, 3  ;;  %3130 = vmatmul.bf16.gmra.mxu3 %v2964_v62 }
 0x2b5   :  { %3783 = vst.msk [vmem:[#allocation2 + $0x48] sm:$0xf] %vm39_vm5, %v3745_v14  ;;  %v3556_v38 = vadd.f32 %v16059_v44, %v3514_v13  ;;  %v2885_v31 = vadd.f32 %v2817_v60, %v2343_v35  ;;  %v3634_v60 = vld [vmem:[%s19818_s10 + $0x98] sm:$0xff] }
 0x2b6   :  { %v2277_v56 = vpop.f32.mrf.mxu1  ;;  %v3282_v55 = vor.u32 %v3281_v36, %v3278_v41 }
 0x2b7   :  { %v3594_v0 = vmax.f32 %v3556_v38, 0.0  ;;  %v3154_v11 = vadd.f32 %v3086_v17, %v2885_v31  ;;  %v2344_v17 = vadd.f32 %v2277_v56, %v15051_v26 }
 0x2b8   :  { %v3407_v32 = vpop.f32.mrf.mxu0  ;;  %v3283_v49 = vsel %vm1115_vm1, %v16023_v34, %v3282_v55  ;;  %v3636_v55 = vld [vmem:[%s19818_s10 + $0xa8] sm:$0xff] }
 0x2b9   :  { %v3670_v1 = vmul.f32 %v3632_v5, %v3594_v0  ;;  %v3473_v46 = vadd.f32 %v3405_v16, %v3154_v11  ;;  %v3091_v52 = vpop.f32.mrf.mxu3  ;;  %v3635_v0 = vld [vmem:[%s19818_s10 + $0xa0] sm:$0xff] }
 0x2bb   :  { %3708 = vst.msk [vmem:[%s19817_s11 + $0x98] sm:$0xff] %vm82_vm6, %v3670_v1  ;;  %v3746_v22 = vpack.c.bf16 %v3670_v1, %v3670_v1  ;;  %v3515_v50 = vmul.f32 %v16051_v59, %v3473_v46 }
 0x2bc   :  { %v2819_v25 = vpop.f32.mrf.mxu2 }
 0x2bd   :  { %3784 = vst.msk [vmem:[#allocation2 + $0x4c] sm:$0xf] %vm39_vm5, %v3746_v22  ;;  %v3557_v48 = vadd.f32 %v16059_v44, %v3515_v50  ;;  %v2886_v27 = vadd.f32 %v2819_v25, %v2344_v17 }
 0x2be   :  { %v2280_v16 = vpop.f32.mrf.mxu1 }
 0x2bf   :  { %v3595_v54 = vmax.f32 %v3557_v48, 0.0  ;;  %v3155_v26 = vadd.f32 %v3088_v33, %v2886_v27  ;;  %v2345_v47 = vadd.f32 %v2280_v16, %v15062_v39 }
 0x2c0   :  { %v3410_v12 = vpop.f32.mrf.mxu0 }
 0x2c1   :  { %v3671_v37 = vmul.f32 %v3633_v51, %v3595_v54  ;;  %v3474_v9 = vadd.f32 %v3407_v32, %v3155_v26  ;;  %2319 = vmatmul.bf16.gmra.mxu1 %v2153_v18  ;;  %2861 = vmatmul.bf16.gmra.mxu2 %v2695_v2  ;;  %v3093_v13 = vpop.f32.mrf.mxu3 }
 0x2c3   :  { %3449 = vmatmul.bf16.gmra.mxu0 %v3283_v49  ;;  %3709 = vst.msk [vmem:[%s19817_s11 + $0xa0] sm:$0xff] %vm82_vm6, %v3671_v37  ;;  %v3747_v4 = vpack.c.bf16 %v3671_v37, %v3671_v37  ;;  %v3516_v29 = vmul.f32 %v16051_v59, %v3474_v9  ;;  %v3637_v37 = vld [vmem:[%s19818_s10 + $0xb0] sm:$0xff] }
 0x2c4   :  { %v2822_v14 = vpop.f32.mrf.mxu2 }
 0x2c5   :  { %3785 = vst.msk [vmem:[#allocation2 + $0x50] sm:$0xf] %vm39_vm5, %v3747_v4  ;;  %v3558_v34 = vadd.f32 %v16059_v44, %v3516_v29  ;;  %v2887_v35 = vadd.f32 %v2822_v14, %v2345_v47 }
 0x2c6   :  { %v2282_v33 = vpop.f32.mrf.mxu1 }
 0x2c7   :  { %v3596_v3 = vmax.f32 %v3558_v34, 0.0  ;;  %v3156_v20 = vadd.f32 %v3091_v52, %v2887_v35  ;;  %v2346_v56 = vadd.f32 %v2282_v33, %v15072_v21 }
 0x2c8   :  { %v3412_v38 = vpop.f32.mrf.mxu0 }
 0x2c9   :  { %v3672_v31 = vmul.f32 %v3634_v60, %v3596_v3  ;;  %v3475_v62 = vadd.f32 %v3410_v12, %v3156_v20  ;;  %v3096_v61 = vpop.f32.mrf.mxu3 }
 0x2cb   :  { %3710 = vst.msk [vmem:[%s19817_s11 + $0xa8] sm:$0xff] %vm82_vm6, %v3672_v31  ;;  %v3748_v39 = vpack.c.bf16 %v3672_v31, %v3672_v31  ;;  %v3517_v5 = vmul.f32 %v16051_v59, %v3475_v62 }
 0x2cc   :  { %v2824_v7 = vpop.f32.mrf.mxu2 }
 0x2cd   :  { %3786 = vst.msk [vmem:[#allocation2 + $0x54] sm:$0xf] %vm39_vm5, %v3748_v39  ;;  %v3559_v28 = vadd.f32 %v16059_v44, %v3517_v5  ;;  %v2888_v45 = vadd.f32 %v2824_v7, %v2346_v56 }
 0x2ce   :  { %v2285_v11 = vpop.f32.mrf.mxu1 }
 0x2cf   :  { %v3597_v32 = vmax.f32 %v3559_v28, 0.0  ;;  %v3157_v41 = vadd.f32 %v3093_v13, %v2888_v45  ;;  %v2347_v23 = vadd.f32 %v2285_v11, %v15084_v43 }
 0x2d0   :  { %v3415_v36 = vpop.f32.mrf.mxu0 }
 0x2d1   :  { %v3673_v1 = vmul.f32 %v3635_v0, %v3597_v32  ;;  %v3476_v46 = vadd.f32 %v3412_v38, %v3157_v41  ;;  %v3098_v22 = vpop.f32.mrf.mxu3  ;;  %v3638_v38 = vld [vmem:[%s19818_s10 + $0xb8] sm:$0xff]  ;;  %v3639_v41 = vld [vmem:[%s19818_s10 + $0xc0] sm:$0xff] }
 0x2d3   :  { %3711 = vst.msk [vmem:[%s19817_s11 + $0xb0] sm:$0xff] %vm82_vm6, %v3673_v1  ;;  %v3749_v21 = vpack.c.bf16 %v3673_v1, %v3673_v1  ;;  %v3518_v30 = vmul.f32 %v16051_v59, %v3476_v46 }
 0x2d4   :  { %v2827_v10 = vpop.f32.mrf.mxu2 }
 0x2d5   :  { %3787 = vst.msk [vmem:[#allocation2 + $0x58] sm:$0xf] %vm39_vm5, %v3749_v21  ;;  %v3560_v50 = vadd.f32 %v16059_v44, %v3518_v30  ;;  %v2889_v17 = vadd.f32 %v2827_v10, %v2347_v23 }
 0x2d6   :  { %v2287_v25 = vpop.f32.mrf.mxu1 }
 0x2d7   :  { %v3598_v52 = vmax.f32 %v3560_v50, 0.0  ;;  %v3158_v48 = vadd.f32 %v3096_v61, %v2889_v17  ;;  %v2348_v2 = vadd.f32 %v2287_v25, %v15091_v6 }
 0x2d8   :  { %v3417_v27 = vpop.f32.mrf.mxu0 }
 0x2d9   :  { %v3674_v51 = vmul.f32 %v3636_v55, %v3598_v52  ;;  %v3477_v16 = vadd.f32 %v3415_v36, %v3158_v48  ;;  %v3101_v26 = vpop.f32.mrf.mxu3  ;;  %v3640_v52 = vld [vmem:[%s19818_s10 + $0xc8] sm:$0xff] }
 0x2db   :  { %3712 = vst.msk [vmem:[%s19817_s11 + $0xb8] sm:$0xff] %vm82_vm6, %v3674_v51  ;;  %v3750_v43 = vpack.c.bf16 %v3674_v51, %v3674_v51  ;;  %v3519_v18 = vmul.f32 %v16051_v59, %v3477_v16 }
 0x2dc   :  { %v2829_v54 = vpop.f32.mrf.mxu2 }
 0x2dd   :  { %3788 = vst.msk [vmem:[#allocation2 + $0x5c] sm:$0xf] %vm39_vm5, %v3750_v43  ;;  %v3561_v12 = vadd.f32 %v16059_v44, %v3519_v18  ;;  %v2890_v49 = vadd.f32 %v2829_v54, %v2348_v2 }
 0x2de   :  { %v2290_v9 = vpop.f32.mrf.mxu1 }
 0x2df   :  { %v3599_v4 = vmax.f32 %v3561_v12, 0.0  ;;  %v3159_v29 = vadd.f32 %v3098_v22, %v2890_v49  ;;  %v2349_v35 = vadd.f32 %v2290_v9, %v15100_v57  ;;  %v3641_v9 = vld [vmem:[%s19818_s10 + $0xd0] sm:$0xff] }
 0x2e0   :  { %v3420_v47 = vpop.f32.mrf.mxu0 }
 0x2e1   :  { %v3675_v14 = vmul.f32 %v3637_v37, %v3599_v4  ;;  %v3478_v13 = vadd.f32 %v3417_v27, %v3159_v29  ;;  %v3103_v33 = vpop.f32.mrf.mxu3 }
 0x2e3   :  { %3713 = vst.msk [vmem:[%s19817_s11 + $0xc0] sm:$0xff] %vm82_vm6, %v3675_v14  ;;  %v3751_v6 = vpack.c.bf16 %v3675_v14, %v3675_v14  ;;  %v3520_v34 = vmul.f32 %v16051_v59, %v3478_v13 }
 0x2e4   :  { %v2832_v60 = vpop.f32.mrf.mxu2 }
 0x2e5   :  { %3789 = vst.msk [vmem:[#allocation2 + $0x60] sm:$0xf] %vm39_vm5, %v3751_v6  ;;  %v3562_v3 = vadd.f32 %v16059_v44, %v3520_v34  ;;  %v2891_v20 = vadd.f32 %v2832_v60, %v2349_v35 }
 0x2e6   :  { %v2292_v31 = vpop.f32.mrf.mxu1 }
 0x2e7   :  { %v3600_v62 = vmax.f32 %v3562_v3, 0.0  ;;  %v3160_v39 = vadd.f32 %v3101_v26, %v2891_v20  ;;  %v2350_v28 = vadd.f32 %v2292_v31, %v15107_v53 }
 0x2e8   :  { %v3422_v5 = vpop.f32.mrf.mxu0 }
 0x2e9   :  { %v3676_v56 = vmul.f32 %v3638_v38, %v3600_v62  ;;  %v3479_v7 = vadd.f32 %v3420_v47, %v3160_v39  ;;  %v3106_v0 = vpop.f32.mrf.mxu3  ;;  %v3642_v38 = vld [vmem:[%s19818_s10 + $0xd8] sm:$0xff] }
 0x2eb   :  { %3714 = vst.msk [vmem:[%s19817_s11 + $0xc8] sm:$0xff] %vm82_vm6, %v3676_v56  ;;  %v3752_v57 = vpack.c.bf16 %v3676_v56, %v3676_v56  ;;  %v3521_v61 = vmul.f32 %v16051_v59, %v3479_v7 }
 0x2ec   :  { %v2834_v45 = vpop.f32.mrf.mxu2 }
 0x2ed   :  { %3790 = vst.msk [vmem:[#allocation2 + $0x64] sm:$0xf] %vm39_vm5, %v3752_v57  ;;  %v3563_v11 = vadd.f32 %v16059_v44, %v3521_v61  ;;  %v2892_v32 = vadd.f32 %v2834_v45, %v2350_v28 }
 0x2ee   :  { %v2295_v36 = vpop.f32.mrf.mxu1 }
 0x2ef   :  { %v3601_v1 = vmax.f32 %v3563_v11, 0.0  ;;  %v3161_v46 = vadd.f32 %v3103_v33, %v2892_v32  ;;  %v2351_v22 = vadd.f32 %v2295_v36, %v15116_v8  ;;  %v3643_v32 = vld [vmem:[%s19818_s10 + $0xe0] sm:$0xff] }
 0x2f0   :  { %v3425_v21 = vpop.f32.mrf.mxu0 }
 0x2f1   :  { %v3677_v30 = vmul.f32 %v3639_v41, %v3601_v1  ;;  %v3480_v23 = vadd.f32 %v3422_v5, %v3161_v46  ;;  %v3108_v17 = vpop.f32.mrf.mxu3 }
 0x2f3   :  { %3715 = vst.msk [vmem:[%s19817_s11 + $0xd0] sm:$0xff] %vm82_vm6, %v3677_v30  ;;  %v3753_v53 = vpack.c.bf16 %v3677_v30, %v3677_v30  ;;  %v3522_v10 = vmul.f32 %v16051_v59, %v3480_v23 }
 0x2f4   :  { %v2837_v50 = vpop.f32.mrf.mxu2 }
 0x2f5   :  { %3791 = vst.msk [vmem:[#allocation2 + $0x68] sm:$0xf] %vm39_vm5, %v3753_v53  ;;  %v3564_v55 = vadd.f32 %v16059_v44, %v3522_v10  ;;  %v2893_v25 = vadd.f32 %v2837_v50, %v2351_v22 }
 0x2f6   :  { %v2297_v48 = vpop.f32.mrf.mxu1 }
 0x2f7   :  { %v3602_v27 = vmax.f32 %v3564_v55, 0.0  ;;  %v3162_v51 = vadd.f32 %v3106_v0, %v2893_v25  ;;  %v2352_v54 = vadd.f32 %v2297_v48, %v15123_v40  ;;  %v3644_v55 = vld [vmem:[%s19818_s10 + $0xe8] sm:$0xff] }
 0x2f8   :  { %v3427_v16 = vpop.f32.mrf.mxu0 }
 0x2f9   :  { %v3678_v43 = vmul.f32 %v3640_v52, %v3602_v27  ;;  %v3481_v18 = vadd.f32 %v3425_v21, %v3162_v51  ;;  %v3111_v12 = vpop.f32.mrf.mxu3 }
 0x2fb   :  { %3716 = vst.msk [vmem:[%s19817_s11 + $0xd8] sm:$0xff] %vm82_vm6, %v3678_v43  ;;  %v3754_v8 = vpack.c.bf16 %v3678_v43, %v3678_v43  ;;  %v3523_v2 = vmul.f32 %v16051_v59, %v3481_v18 }
 0x2fc   :  { %v2839_v26 = vpop.f32.mrf.mxu2 }
 0x2fd   :  { %3792 = vst.msk [vmem:[#allocation2 + $0x6c] sm:$0xf] %vm39_vm5, %v3754_v8  ;;  %v3565_v49 = vadd.f32 %v16059_v44, %v3523_v2  ;;  %v2894_v37 = vadd.f32 %v2839_v26, %v2352_v54 }
 0x2fe   :  { %v2300_v4 = vpop.f32.mrf.mxu1 }
 0x2ff   :  { %v3603_v29 = vmax.f32 %v3565_v49, 0.0  ;;  %v3163_v47 = vadd.f32 %v3108_v17, %v2894_v37  ;;  %v2353_v35 = vadd.f32 %v2300_v4, %v15132_v24 }
 0x300   :  { %v3430_v14 = vpop.f32.mrf.mxu0 }
 0x301   :  { %v3679_v13 = vmul.f32 %v3641_v9, %v3603_v29  ;;  %v3482_v6 = vadd.f32 %v3427_v16, %v3163_v47  ;;  %v3113_v33 = vpop.f32.mrf.mxu3 }
 0x303   :  { %3717 = vst.msk [vmem:[%s19817_s11 + $0xe0] sm:$0xff] %vm82_vm6, %v3679_v13  ;;  %v3755_v40 = vpack.c.bf16 %v3679_v13, %v3679_v13  ;;  %v3524_v34 = vmul.f32 %v16051_v59, %v3482_v6 }
 0x304   :  { %v2842_v60 = vpop.f32.mrf.mxu2 }
 0x305   :  { %3793 = vst.msk [vmem:[#allocation2 + $0x70] sm:$0xf] %vm39_vm5, %v3755_v40  ;;  %v3566_v3 = vadd.f32 %v16059_v44, %v3524_v34  ;;  %v2895_v20 = vadd.f32 %v2842_v60, %v2353_v35  ;;  %v3646_v35 = vld [vmem:[%s19818_s10 + $0xf8] sm:$0xff] }
 0x306   :  { %v2302_v31 = vpop.f32.mrf.mxu1 }
 0x307   :  { %v3604_v62 = vmax.f32 %v3566_v3, 0.0  ;;  %v3164_v39 = vadd.f32 %v3111_v12, %v2895_v20  ;;  %v2354_v61 = vadd.f32 %v2302_v31, %v15139_v42  ;;  %v3645_v12 = vld [vmem:[%s19818_s10 + $0xf0] sm:$0xff] }
 0x308   :  { %v3432_v5 = vpop.f32.mrf.mxu0 }
 0x309   :  { %v3680_v56 = vmul.f32 %v3642_v38, %v3604_v62  ;;  %v3483_v7 = vadd.f32 %v3430_v14, %v3164_v39  ;;  %v3116_v45 = vpop.f32.mrf.mxu3 }
 0x30b   :  { %3718 = vst.msk [vmem:[%s19817_s11 + $0xe8] sm:$0xff] %vm82_vm6, %v3680_v56  ;;  %v3756_v24 = vpack.c.bf16 %v3680_v56, %v3680_v56  ;;  %v3525_v57 = vmul.f32 %v16051_v59, %v3483_v7 }
 0x30c   :  { %v2844_v28 = vpop.f32.mrf.mxu2 }
 0x30d   :  { %3794 = vst.msk [vmem:[#allocation2 + $0x74] sm:$0xf] %vm39_vm5, %v3756_v24  ;;  %v3567_v0 = vadd.f32 %v16059_v44, %v3525_v57  ;;  %v2896_v11 = vadd.f32 %v2844_v28, %v2354_v61  ;;  %v3647_v57 = vld [vmem:[%s19818_s10 + $0x100] sm:$0xff] }
 0x30e   :  { %v2305_v41 = vpop.f32.mrf.mxu1 }
 0x30f   :  { %v3605_v36 = vmax.f32 %v3567_v0, 0.0  ;;  %v3165_v1 = vadd.f32 %v3113_v33, %v2896_v11  ;;  %v2355_v53 = vadd.f32 %v2305_v41, %v15148_v15 }
 0x310   :  { %v3435_v46 = vpop.f32.mrf.mxu0 }
 0x311   :  { %v3681_v21 = vmul.f32 %v3643_v32, %v3605_v36  ;;  %v3484_v30 = vadd.f32 %v3432_v5, %v3165_v1  ;;  %v3118_v22 = vpop.f32.mrf.mxu3  ;;  %v20010_v1 = vld [vmem:[#allocation11_spill] sm:$0xff] }
 0x313   :  { %3719 = vst.msk [vmem:[%s19817_s11 + $0xf0] sm:$0xff] %vm82_vm6, %v3681_v21  ;;  %v3757_v42 = vpack.c.bf16 %v3681_v21, %v3681_v21  ;;  %v3526_v23 = vmul.f32 %v16051_v59, %v3484_v30 }
 0x314   :  { %v2847_v10 = vpop.f32.mrf.mxu2 }
 0x315   :  { %3795 = vst.msk [vmem:[#allocation2 + $0x78] sm:$0xf] %vm39_vm5, %v3757_v42  ;;  %v3568_v50 = vadd.f32 %v16059_v44, %v3526_v23  ;;  %v2897_v17 = vadd.f32 %v2847_v10, %v2355_v53  ;;  %v3648_v23 = vld [vmem:[%s19818_s10 + $0x108] sm:$0xff] }
 0x316   :  { %v2307_v25 = vpop.f32.mrf.mxu1 }
 0x317   :  { %v3606_v52 = vmax.f32 %v3568_v50, 0.0  ;;  %v3166_v48 = vadd.f32 %v3116_v45, %v2897_v17  ;;  %v2356_v18 = vadd.f32 %v2307_v25, %v15155_v58 }
 0x318   :  { %v3437_v27 = vpop.f32.mrf.mxu0 }
 0x319   :  { %v3682_v51 = vmul.f32 %v3644_v55, %v3606_v52  ;;  %v3485_v16 = vadd.f32 %v3435_v46, %v3166_v48  ;;  %v3121_v2 = vpop.f32.mrf.mxu3  ;;  %v20011_v48 = vld [vmem:[#allocation3_spill] sm:$0xff] }
 0x31b   :  { %3720 = vst.msk [vmem:[%s19817_s11 + $0xf8] sm:$0xff] %vm82_vm6, %v3682_v51  ;;  %v3758_v15 = vpack.c.bf16 %v3682_v51, %v3682_v51  ;;  %v3527_v43 = vmul.f32 %v16051_v59, %v3485_v16 }
 0x31c   :  { %v2849_v8 = vpop.f32.mrf.mxu2 }
 0x31d   :  { %3796 = vst.msk [vmem:[#allocation2 + $0x7c] sm:$0xf] %vm39_vm5, %v3758_v15  ;;  %v3569_v54 = vadd.f32 %v16059_v44, %v3527_v43  ;;  %v2898_v26 = vadd.f32 %v2849_v8, %v2356_v18  ;;  %v3649_v18 = vld [vmem:[%s19818_s10 + $0x110] sm:$0xff] }
 0x31e   :  { %v2310_v49 = vpop.f32.mrf.mxu1 }
 0x31f   :  { %v3607_v37 = vmax.f32 %v3569_v54, 0.0  ;;  %v3167_v9 = vadd.f32 %v3118_v22, %v2898_v26  ;;  %v2357_v13 = vadd.f32 %v2310_v49, %v15169_v19 }
 0x320   :  { %v3440_v4 = vpop.f32.mrf.mxu0 }
 0x321   :  { %v3683_v29 = vmul.f32 %v3645_v12, %v3607_v37  ;;  %v3486_v47 = vadd.f32 %v3437_v27, %v3167_v9  ;;  %v3123_v33 = vpop.f32.mrf.mxu3  ;;  %v20012_v9 = vld [vmem:[#allocation4_spill] sm:$0xff] }
 0x323   :  { %3721 = vst.msk [vmem:[%s19817_s11 + $0x100] sm:$0xff] %vm82_vm6, %v3683_v29  ;;  %v3759_v58 = vpack.c.bf16 %v3683_v29, %v3683_v29  ;;  %v3528_v14 = vmul.f32 %v16051_v59, %v3486_v47 }
 0x324   :  { %v2852_v6 = vpop.f32.mrf.mxu2 }
 0x325   :  { %3797 = vst.msk [vmem:[#allocation2 + $0x80] sm:$0xf] %vm39_vm5, %v3759_v58  ;;  %v3570_v40 = vadd.f32 %v16059_v44, %v3528_v14  ;;  %v2899_v34 = vadd.f32 %v2852_v6, %v2357_v13  ;;  %v3650_v13 = vld [vmem:[%s19818_s10 + $0x118] sm:$0xff] }
 0x326   :  { %v2312_v60 = vpop.f32.mrf.mxu1 }
 0x327   :  { %v3608_v3 = vmax.f32 %v3570_v40, 0.0  ;;  %v3168_v20 = vadd.f32 %v3121_v2, %v2899_v34  ;;  %v2358_v5 = vadd.f32 %v2312_v60, %v15187_v63 }
 0x328   :  { %v3442_v38 = vpop.f32.mrf.mxu0 }
 0x329   :  { %v3684_v31 = vmul.f32 %v3646_v35, %v3608_v3  ;;  %v3487_v62 = vadd.f32 %v3440_v4, %v3168_v20  ;;  %v3126_v0 = vpop.f32.mrf.mxu3 }
 0x32b   :  { %3722 = vst.msk [vmem:[%s19817_s11 + $0x108] sm:$0xff] %vm82_vm6, %v3684_v31  ;;  %v3760_v19 = vpack.c.bf16 %v3684_v31, %v3684_v31  ;;  %v3529_v39 = vmul.f32 %v16051_v59, %v3487_v62 }
 0x32c   :  { %v2854_v56 = vpop.f32.mrf.mxu2 }
 0x32d   :  { %3798 = vst.msk [vmem:[#allocation2 + $0x84] sm:$0xf] %vm39_vm5, %v3760_v19  ;;  %v3571_v7 = vadd.f32 %v16059_v44, %v3529_v39  ;;  %v2900_v24 = vadd.f32 %v2854_v56, %v2358_v5  ;;  %v3651_v5 = vld [vmem:[%s19818_s10 + $0x120] sm:$0xff] }
 0x32e   :  { %v2315_v61 = vpop.f32.mrf.mxu1 }
 0x32f   :  { %v3609_v28 = vmax.f32 %v3571_v7, 0.0  ;;  %v3169_v45 = vadd.f32 %v3123_v33, %v2900_v24  ;;  %v2359_v46 = vadd.f32 %v2315_v61, %v20010_v1 }
 0x330   :  { %v3445_v41 = vpop.f32.mrf.mxu0 }
 0x331   :  { %v3685_v11 = vmul.f32 %v3647_v57, %v3609_v28  ;;  %v3488_v32 = vadd.f32 %v3442_v38, %v3169_v45  ;;  %v3128_v55 = vpop.f32.mrf.mxu3  ;;  %v20013_v38 = vld [vmem:[#allocation5_spill] sm:$0xff] }
 0x333   :  { %3723 = vst.msk [vmem:[%s19817_s11 + $0x110] sm:$0xff] %vm82_vm6, %v3685_v11  ;;  %v3761_v63 = vpack.c.bf16 %v3685_v11, %v3685_v11  ;;  %v3530_v36 = vmul.f32 %v16051_v59, %v3488_v32  ;;  %v3652_v32 = vld [vmem:[%s19818_s10 + $0x128] sm:$0xff] }
 0x334   :  { %v2857_v21 = vpop.f32.mrf.mxu2 }
 0x335   :  { %3799 = vst.msk [vmem:[#allocation2 + $0x88] sm:$0xf] %vm39_vm5, %v3761_v63  ;;  %v3572_v30 = vadd.f32 %v16059_v44, %v3530_v36  ;;  %v2901_v42 = vadd.f32 %v2857_v21, %v2359_v46 }
 0x336   :  { %v2317_v53 = vpop.f32.mrf.mxu1 }
 0x337   :  { %v3610_v10 = vmax.f32 %v3572_v30, 0.0  ;;  %v3170_v22 = vadd.f32 %v3126_v0, %v2901_v42  ;;  %v2360_v27 = vadd.f32 %v2317_v53, %v20011_v48 }
 0x338   :  { %v3447_v51 = vpop.f32.mrf.mxu0 }
 0x339   :  { %v3686_v50 = vmul.f32 %v3648_v23, %v3610_v10  ;;  %v3489_v17 = vadd.f32 %v3445_v41, %v3170_v22  ;;  %v3131_v29 = vpop.f32.mrf.mxu3 }
 0x33b   :  { %3724 = vst.msk [vmem:[%s19817_s11 + $0x118] sm:$0xff] %vm82_vm6, %v3686_v50  ;;  %v3762_v25 = vpack.c.bf16 %v3686_v50, %v3686_v50  ;;  %v3531_v52 = vmul.f32 %v16051_v59, %v3489_v17 }
 0x33c   :  { %v2859_v16 = vpop.f32.mrf.mxu2 }
 0x33d   :  { %3800 = vst.msk [vmem:[#allocation2 + $0x8c] sm:$0xf] %vm39_vm5, %v3762_v25  ;;  %v3573_v15 = vadd.f32 %v16059_v44, %v3531_v52  ;;  %v2902_v43 = vadd.f32 %v2859_v16, %v2360_v27 }
 0x33e   :  { %v2320_v8 = vpop.f32.mrf.mxu1 }
 0x33f   :  { %v3611_v2 = vmax.f32 %v3573_v15, 0.0  ;;  %v3171_v54 = vadd.f32 %v3128_v55, %v2902_v43  ;;  %v2361_v4 = vadd.f32 %v2320_v8, %v20012_v9 }
 0x340   :  { %v3450_v6 = vpop.f32.mrf.mxu0 }
 0x341   :  { %v3687_v26 = vmul.f32 %v3649_v18, %v3611_v2  ;;  %v3490_v12 = vadd.f32 %v3447_v51, %v3171_v54  ;;  %v3133_v56 = vpop.f32.mrf.mxu3 }
 0x343   :  { %3725 = vst.msk [vmem:[%s19817_s11 + $0x120] sm:$0xff] %vm82_vm6, %v3687_v26  ;;  %v3763_v49 = vpack.c.bf16 %v3687_v26, %v3687_v26  ;;  %v3532_v37 = vmul.f32 %v16051_v59, %v3490_v12 }
 0x344   :  { %v2862_v47 = vpop.f32.mrf.mxu2 }
 0x345   :  { %3801 = vst.msk [vmem:[#allocation2 + $0x90] sm:$0xf] %vm39_vm5, %v3763_v49  ;;  %v3574_v58 = vadd.f32 %v16059_v44, %v3532_v37  ;;  %v2903_v14 = vadd.f32 %v2862_v47, %v2361_v4 }
 0x346   :  { %v2322_v35 = vpop.f32.mrf.mxu1 }
 0x347   :  { %v3612_v40 = vmax.f32 %v3574_v58, 0.0  ;;  %v3172_v34 = vadd.f32 %v3131_v29, %v2903_v14  ;;  %v2362_v31 = vadd.f32 %v2322_v35, %v20013_v38 }
 0x348   :  { %v3452_v57 = vpop.f32.mrf.mxu0 }
 0x349   :  { %v3688_v60 = vmul.f32 %v3650_v13, %v3612_v40  ;;  %v3491_v33 = vadd.f32 %v3450_v6, %v3172_v34 }
 0x34b   :  { %3726 = vst.msk [vmem:[%s19817_s11 + $0x128] sm:$0xff] %vm82_vm6, %v3688_v60  ;;  %v3764_v3 = vpack.c.bf16 %v3688_v60, %v3688_v60  ;;  %v3533_v20 = vmul.f32 %v16051_v59, %v3491_v33 }
 0x34c   :  { %v2864_v62 = vpop.f32.mrf.mxu2 }
 0x34d   :  { %3802 = vst.msk [vmem:[#allocation2 + $0x94] sm:$0xf] %vm39_vm5, %v3764_v3  ;;  %v3575_v19 = vadd.f32 %v16059_v44, %v3533_v20  ;;  %v2904_v39 = vadd.f32 %v2864_v62, %v2362_v31 }
 0x34f   :  { %v3613_v7 = vmax.f32 %v3575_v19, 0.0  ;;  %v3173_v24 = vadd.f32 %v3133_v56, %v2904_v39 }
 0x351   :  { %v3689_v61 = vmul.f32 %v3651_v5, %v3613_v7  ;;  %v3492_v28 = vadd.f32 %v3452_v57, %v3173_v24 }
 0x353   :  { %3727 = vst.msk [vmem:[%s19817_s11 + $0x130] sm:$0xff] %vm82_vm6, %v3689_v61  ;;  %v3765_v45 = vpack.c.bf16 %v3689_v61, %v3689_v61  ;;  %v3534_v0 = vmul.f32 %v16051_v59, %v3492_v28 }
 0x355   :  { %3803 = vst.msk [vmem:[#allocation2 + $0x98] sm:$0xf] %vm39_vm5, %v3765_v45  ;;  %v3576_v11 = vadd.f32 %v16059_v44, %v3534_v0 }
 0x357   :  { %v3614_v41 = vmax.f32 %v3576_v11, 0.0 }
 0x359   :  { %v3690_v63 = vmul.f32 %v3652_v32, %v3614_v41 }
 0x35b   :  { %3728 = vst.msk [vmem:[%s19817_s11 + $0x138] sm:$0xff] %vm82_vm6, %v3690_v63  ;;  %v3766_v36 = vpack.c.bf16 %v3690_v63, %v3690_v63 }
 0x35d   :  { %3804 = vst.msk [vmem:[#allocation2 + $0x9c] sm:$0xf] %vm39_vm5, %v3766_v36 }
 0x35e LB: > { %v3862_v59 = vld [vmem:[#allocation2] sm:$0xe]  ;;  %v16304_v44 = vld [vmem:[#allocation2 + $0x4] sm:$0xf]  ;;  %s11958_s14 = smul.u32 288, %s14067_s13  ;;  %v16308_v21 = vld [vmem:[#allocation2 + $0x8] sm:$0xff]   ;;  %s17028_s3 = scalar_lea.vmem %s19809_s5, %s14067_s13  ;;  %s14067_s13 = sphi %s16299_s13, %s3810_s13  }
 0x35f   : > { %v3915_v1 = vunpack.c.l.b16 %v3862_v59  ;;  %v3916_v46 = vunpack.c.l.b16 %v16304_v44  ;;  %v16312_v42 = vld [vmem:[#allocation2 + $0x50] sm:$0xff]   ;;  %v16321_v23 = vld [vmem:[#allocation2 + $0x58] sm:$0xff]   ;;  %v3983_v22 = vshrl.u32 %v16308_v21, 16  ;;  %v3986_v50 = vshll.u32 %v16308_v21, 16  ;;  %v16359_v33 = vld [vmem:[#allocation2 + $0x60] sm:$0xff]   ;;  %s17038_s23 = scalar_lea.vmem %s19810_s6, %s14067_s13  ;;  %s18977_s22 = scalar_lea.vmem %s19812_s8, %s14067_s13 }
 0x360   : > { %s16319_s16 = scalar_lea.vmem %s19808_s4, %s11958_s14  ;;  %v19861_v17 = vshrl.u32 %v16312_v42, 16  ;;  %v19860_v55 = vshll.u32 %v16312_v42, 16  ;;  %v19859_v27 = vshrl.u32 %v16321_v23, 16  ;;  %v19858_v51 = vshll.u32 %v16321_v23, 16  ;;  %v16357_v60 = vld [vmem:[#allocation2 + $0x10] sm:$0xff]   ;;  %v16384_v0 = vld [vmem:[#allocation2 + $0x18] sm:$0xff]   ;;  %s16784_s19 = scalar_lea.vmem %s19811_s7, %s11958_s14 }
 0x361   : > { %v3954_v30 = vpack.c.b16 %v3916_v46, %v3915_v1  ;;  %v13148_v53 = vld [vmem:[%s16319_s16 + $0x18] sm:$0xff]  ;;  %v13147_v25 = vld [vmem:[%s16319_s16 + $0x10] sm:$0xff]  ;;  %v3985_v15 = vrot.slane %v3983_v22, 1  ;;  %v3988_v43 = vrot.slane %v3986_v50, 2  ;;  %v13146_v2 = vld [vmem:[%s16319_s16 + $0x8] sm:$0xff]  ;;  %v3992_v3 = vshrl.u32 %v16357_v60, 16  ;;  %s18989_s26 = scalar_lea.vmem %s19813_s9, %s14067_s13 }
 0x362   : > { %v13143_v10 = vld [vmem:[%s16319_s16 + $0x98] sm:$0xff]  ;;  %4238 = vmatpush.bf16.msra.mxu0 %v13148_v53  ;;  %13990 = vmatpush.bf16.msra.mxu2 %v13148_v53  ;;  %v13142_v16 = vld [vmem:[%s16319_s16 + $0x90] sm:$0xff]  ;;  %v4066_v18 = vrot.slane %v19861_v17, 1  ;;  %v4069_v8 = vrot.slane %v19860_v55, 2  ;;  %v4075_v12 = vrot.slane %v19859_v27, 1  ;;  %v4078_v49 = vrot.slane %v19858_v51, 2 }
 0x363   : > { %v3975_v52 = vshrl.u32 %v3954_v30, 16  ;;  %v3978_v48 = vshll.u32 %v3954_v30, 16  ;;  %4410 = vmatpush.bf16.msra.mxu1 %v13143_v10  ;;  %13994 = vmatpush.bf16.msra.mxu3 %v13143_v10  ;;  %v13141_v37 = vld [vmem:[%s16319_s16 + $0x88] sm:$0xff]  ;;  %v3989_v9 = vor.u32 %v3988_v43, %v3985_v15  ;;  %v13145_v4 = vld [vmem:[%s16319_s16] sm:$0xff]  ;;  %v13160_v13 = vld [vmem:[%s16319_s16 + $0x78] sm:$0xff]  ;;  %v3995_v20 = vshll.u32 %v16357_v60, 16 }
 0x364   : > { %v16348_v47 = vor.u32 %v4069_v8, %v4066_v18  ;;  %v4079_v58 = vor.u32 %v4078_v49, %v4075_v12  ;;  %v13140_v14 = vld [vmem:[%s16319_s16 + $0x80] sm:$0xff]  ;;  %v13152_v6 = vld [vmem:[%s16319_s16 + $0x38] sm:$0xff]  ;;  %v19857_v38 = vshrl.u32 %v16359_v33, 16  ;;  %v19856_v31 = vshll.u32 %v16359_v33, 16  ;;  %v13159_v62 = vld [vmem:[%s16319_s16 + $0x70] sm:$0xff]  ;;  %s3810_s13 = sadd.s32 1, %s14067_s13  }
 0x365   : > { %v3977_v54 = vrot.slane %v3975_v52, 1  ;;  %v3980_v26 = vrot.slane %v3978_v48, 2  ;;  %v13156_v35 = vld [vmem:[%s16319_s16 + $0x58] sm:$0xff]  ;;  %v13151_v19 = vld [vmem:[%s16319_s16 + $0x30] sm:$0xff]  ;;  %v3994_v5 = vrot.slane %v3992_v3, 1  ;;  %v3997_v56 = vrot.slane %v3995_v20, 2 }
 0x366   : > { %4239 = vmatpush.bf16.msra.mxu0 %v13147_v25  ;;  %13991 = vmatpush.bf16.msra.mxu2 %v13147_v25  ;;  %v4080_v34 = vsel %vm297_vm0, %v16348_v47, %v4079_v58  ;;  %v13155_v39 = vld [vmem:[%s16319_s16 + $0x50] sm:$0xff]  ;;  %v4084_v7 = vrot.slane %v19857_v38, 1  ;;  %v4087_v24 = vrot.slane %v19856_v31, 2  ;;  %v16386_v11 = vld [vmem:[#allocation2 + $0x68] sm:$0xff]   ;;  %v4001_v32 = vshrl.u32 %v16384_v0, 16  ;;  %v13647_v31 = vld [vmem:[#allocation2 + $0x98] sm:$0xff]  }
 0x367   : > { %4411 = vmatpush.bf16.msra.mxu1 %v13142_v16  ;;  %13995 = vmatpush.bf16.msra.mxu3 %v13142_v16  ;;  %v3981_v29 = vor.u32 %v3980_v26, %v3977_v54  ;;  %v3998_v57 = vor.u32 %v3997_v56, %v3994_v5  ;;  %v4004_v41 = vshll.u32 %v16384_v0, 16  ;;  %v19855_v63 = vshrl.u32 %v16386_v11, 16  ;;  %v16408_v16 = vld [vmem:[#allocation2 + $0x20] sm:$0xff]   ;;  %v16410_v15 = vld [vmem:[#allocation2 + $0x70] sm:$0xff]   ;;  %v13150_v54 = vld [vmem:[%s16319_s16 + $0x28] sm:$0xff]  ;;  %p3807_p0 = scmp.ge.s32.totalorder %s3810_s13, 16  }
 0x368   : > { %v4088_v61 = vor.u32 %v4087_v24, %v4084_v7  ;;  %v19854_v36 = vshll.u32 %v16386_v11, 16  ;;  %v4003_v59 = vrot.slane %v4001_v32, 1  ;;  %v4010_v43 = vshrl.u32 %v16408_v16, 16  ;;  %v13180_v51 = vld [vmem:[%s16319_s16 + $0xa0] sm:$0xff] }
 0x369   : > { %v3990_v40 = vsel %vm297_vm0, %v3981_v29, %v3989_v9  ;;  %v3999_v28 = vsel %vm297_vm0, %v3989_v9, %v3998_v57  ;;  %v4006_v1 = vrot.slane %v4004_v41, 2  ;;  %v4093_v30 = vrot.slane %v19855_v63, 1 }
 0x36a   : > { %4240 = vmatpush.bf16.msra.mxu0 %v13146_v2  ;;  %13992 = vmatpush.bf16.msra.mxu2 %v13146_v2  ;;  %v4089_v45 = vsel %vm297_vm0, %v4079_v58, %v4088_v61  ;;  %v4096_v53 = vrot.slane %v19854_v36, 2  ;;  %v4013_v18 = vshll.u32 %v16408_v16, 16  ;;  %v19853_v8 = vshrl.u32 %v16410_v15, 16 }
 0x36b   : > { %4412 = vmatpush.bf16.msra.mxu1 %v13141_v37  ;;  %13996 = vmatpush.bf16.msra.mxu3 %v13141_v37  ;;  %v4007_v10 = vor.u32 %v4006_v1, %v4003_v59  ;;  %v19852_v2 = vshll.u32 %v16410_v15, 16  ;;  %v4012_v26 = vrot.slane %v4010_v43, 1  ;;  %v16461_v59 = vld [vmem:[#allocation2 + $0x80] sm:$0xff]   ;;  %v4529_v17 = vrot.slane %v16357_v60, 2 }
 0x36c   : > { %v4097_v25 = vor.u32 %v4096_v53, %v4093_v30  ;;  %v4015_v12 = vrot.slane %v4013_v18, 2  ;;  %v4102_v49 = vrot.slane %v19853_v8, 1  ;;  %v19847_v53 = vshrl.u32 %v16461_v59, 16  ;;  %v13181_v8 = vld [vmem:[%s16319_s16 + $0xa8] sm:$0xff] }
 0x36d   : > { %v4008_v52 = vsel %vm297_vm0, %v3998_v57, %v4007_v10  ;;  %v4105_v37 = vrot.slane %v19852_v2, 2 }
 0x36e   : > { %4241 = vmatpush.bf16.msra.mxu0 %v13145_v4  ;;  %13993 = vmatpush.bf16.msra.mxu2 %v13145_v4  ;;  %v4098_v48 = vsel %vm297_vm0, %v4088_v61, %v4097_v25  ;;  %v4016_v9 = vor.u32 %v4015_v12, %v4012_v26 }
 0x36f   : > { %4413 = vmatpush.bf16.msra.mxu1 %v13140_v14  ;;  %13997 = vmatpush.bf16.msra.mxu3 %v13140_v14  ;;  %v4106_v4 = vor.u32 %v4105_v37, %v4102_v49  ;;  %v16433_v14 = vld [vmem:[#allocation2 + $0x28] sm:$0xff]  }
 0x370   : > { %v4017_v29 = vsel %vm297_vm0, %v4007_v10, %v4016_v9  ;;  %v19846_v10 = vshll.u32 %v16461_v59, 16 }
 0x371   : > { %11985 = vmatmul.msk.bf16.vlgmr.msra.gmra.mxu0 %vm82_vm6, %v3990_v40  ;;  %11995 = vmatmul.msk.bf16.vlgmr.msra.gmra.mxu2 %vm82_vm6, %v4080_v34  ;;  %v4107_v58 = vsel %vm297_vm0, %v4097_v25, %v4106_v4  ;;  %v4022_v40 = vshll.u32 %v16433_v14, 16 }
 0x372   : > { %5415 = vmatpush.bf16.msrb.mxu0 %v13160_v13  ;;  %4650 = vmatpush.bf16.msrb.mxu2 %v13152_v6  ;;  %v16435_v13 = vld [vmem:[#allocation2 + $0x78] sm:$0xff]   ;;  %v4019_v6 = vshrl.u32 %v16433_v14, 16 }
 0x373   : > { %12020 = vmatmul.msk.bf16.vlgmr.msra.gmra.mxu1 %vm82_vm6, %v16308_v21  ;;  %12030 = vmatmul.msk.bf16.vlgmr.msra.gmra.mxu3 %vm82_vm6, %v16321_v23  ;;  %v19851_v34 = vshrl.u32 %v16435_v13, 16  ;;  %v4024_v5 = vrot.slane %v4022_v40, 2 }
 0x374   : > { %4978 = vmatpush.bf16.msrb.mxu3 %v13156_v35  ;;  %v19850_v35 = vshll.u32 %v16435_v13, 16 }
 0x375   : > { %v4111_v56 = vrot.slane %v19851_v34, 1 }
 0x376   : > { %5416 = vmatpush.bf16.msrb.mxu0 %v13159_v62  ;;  %4651 = vmatpush.bf16.msrb.mxu2 %v13151_v19  ;;  %v13154_v62 = vld [vmem:[%s16319_s16 + $0x48] sm:$0xff]  ;;  %v4114_v7 = vrot.slane %v19850_v35, 2  ;;  %v13209_v35 = vld [vmem:[%s16319_s16 + $0xf8] sm:$0xff] }
 0x377   : > { %v13158_v19 = vld [vmem:[%s16319_s16 + $0x68] sm:$0xff] }
 0x378   : > { %4979 = vmatpush.bf16.msrb.mxu3 %v13155_v39  ;;  %v4021_v39 = vrot.slane %v4019_v6, 1  ;;  %v4115_v57 = vor.u32 %v4114_v7, %v4111_v56  ;;  %v13157_v56 = vld [vmem:[%s16319_s16 + $0x60] sm:$0xff] }
 0x37a   : > { %4652 = vmatpush.bf16.msrb.mxu2 %v13150_v54  ;;  %5417 = vmatpush.bf16.msrb.mxu0 %v13158_v19  ;;  %v4025_v24 = vor.u32 %v4024_v5, %v4021_v39  ;;  %v4123_v54 = vrot.slane %v19846_v10, 2  ;;  %v13149_v39 = vld [vmem:[%s16319_s16 + $0x20] sm:$0xff] }
 0x37b   : > { %v13153_v5 = vld [vmem:[%s16319_s16 + $0x40] sm:$0xff] }
 0x37c   : > { %4980 = vmatpush.bf16.msrb.mxu3 %v13154_v62  ;;  %v4026_v61 = vsel %vm297_vm0, %v4016_v9, %v4025_v24  ;;  %v16483_v9 = vld [vmem:[#allocation2 + $0x38] sm:$0xff]  }
 0x37e   : > { %4653 = vmatpush.bf16.msrb.mxu2 %v13149_v39  ;;  %5418 = vmatpush.bf16.msrb.mxu0 %v13157_v56 }
 0x380   : > { %4981 = vmatpush.bf16.msrb.mxu3 %v13153_v5 }
 0x381   : > { %11986 = vmatmul.msk.bf16.gmra.mxu0 %vm82_vm6, %v3999_v28  ;;  %11996 = vmatmul.msk.bf16.gmra.mxu2 %vm82_vm6, %v4089_v45  ;;  %v4116_v28 = vsel %vm297_vm0, %v4106_v4, %v4115_v57  ;;  %v16459_v45 = vld [vmem:[#allocation2 + $0x30] sm:$0xff]   ;;  %v16485_v4 = vld [vmem:[#allocation2 + $0x88] sm:$0xff]  }
 0x382   : > { %v4028_v1 = vshrl.u32 %v16459_v45, 16  ;;  %v4031_v30 = vshll.u32 %v16459_v45, 16  ;;  %v19845_v62 = vshrl.u32 %v16485_v4, 16  ;;  %v19844_v19 = vshll.u32 %v16485_v4, 16 }
 0x383   : > { %12021 = vmatmul.msk.bf16.gmra.mxu1 %vm82_vm6, %v16357_v60  ;;  %12031 = vmatmul.msk.bf16.gmra.mxu3 %vm82_vm6, %v16359_v33 }
 0x384   : > { %v4030_v25 = vrot.slane %v4028_v1, 1  ;;  %6772 = vmatpush.bf16.msra.mxu3 %v13209_v35 }
 0x391   : > { %11987 = vmatmul.msk.bf16.gmra.mxu0 %vm82_vm6, %v4008_v52  ;;  %11997 = vmatmul.msk.bf16.gmra.mxu2 %vm82_vm6, %v4098_v48  ;;  %v4033_v52 = vrot.slane %v4031_v30, 2  ;;  %v4120_v48 = vrot.slane %v19847_v53, 1  ;;  %v16536_v53 = vld [vmem:[#allocation2 + $0x48] sm:$0xff]  }
 0x393   : > { %12022 = vmatmul.msk.bf16.gmra.mxu1 %vm82_vm6, %v16384_v0  ;;  %12032 = vmatmul.msk.bf16.gmra.mxu3 %vm82_vm6, %v16386_v11  ;;  %v4034_v26 = vor.u32 %v4033_v52, %v4030_v25  ;;  %v4124_v12 = vor.u32 %v4123_v54, %v4120_v48  ;;  %v16510_v54 = vld [vmem:[#allocation2 + $0x40] sm:$0xff]  }
 0x395   : > { %v4035_v49 = vsel %vm297_vm0, %v4025_v24, %v4034_v26  ;;  %v4125_v37 = vsel %vm297_vm0, %v4115_v57, %v4124_v12  ;;  %v4129_v57 = vrot.slane %v19845_v62, 1 }
 0x3a1   : > { %11988 = vmatmul.msk.bf16.gmra.mxu0 %vm82_vm6, %v4017_v29  ;;  %11998 = vmatmul.msk.bf16.gmra.mxu2 %vm82_vm6, %v4107_v58  ;;  %v4037_v29 = vshrl.u32 %v16483_v9, 16  ;;  %v19866_v58 = vshll.u32 %v16483_v9, 16 }
 0x3a3   : > { %12023 = vmatmul.msk.bf16.gmra.mxu1 %vm82_vm6, %v16408_v16  ;;  %12033 = vmatmul.msk.bf16.gmra.mxu3 %vm82_vm6, %v16410_v15  ;;  %v4039_v7 = vrot.slane %v4037_v29, 1  ;;  %v4042_v24 = vrot.slane %v19866_v58, 2  ;;  %v13212_v58 = vld [vmem:[%s16319_s16 + $0x110] sm:$0xff] }
 0x3b1   : > { %11989 = vmatmul.msk.bf16.gmra.mxu0 %vm82_vm6, %v4026_v61  ;;  %11999 = vmatmul.msk.bf16.gmra.mxu2 %vm82_vm6, %v4116_v28  ;;  %v4132_v61 = vrot.slane %v19844_v19, 2  ;;  %v4043_v28 = vor.u32 %v4042_v24, %v4039_v7 }
 0x3b3   : > { %12024 = vmatmul.msk.bf16.gmra.mxu1 %vm82_vm6, %v16433_v14  ;;  %12034 = vmatmul.msk.bf16.gmra.mxu3 %vm82_vm6, %v16435_v13  ;;  %v4133_v25 = vor.u32 %v4132_v61, %v4129_v57  ;;  %v4044_v52 = vsel %vm297_vm0, %v4034_v26, %v4043_v28  ;;  %v19864_v26 = vshll.u32 %v16510_v54, 16  ;;  %v3864_v57 = vld [vmem:[#allocation2 + $0x98] sm:$0x3] }
 0x3b5   : > { %v4134_v48 = vsel %vm297_vm0, %v4124_v12, %v4133_v25  ;;  %v4051_v56 = vrot.slane %v19864_v26, 2 }
 0x3c1   : > { %11990 = vmatmul.msk.bf16.gmra.mxu0 %vm82_vm6, %v4035_v49  ;;  %12000 = vmatmul.msk.bf16.gmra.mxu2 %vm82_vm6, %v4125_v37  ;;  %v16512_v49 = vld [vmem:[#allocation2 + $0x90] sm:$0xff]   ;;  %v19865_v37 = vshrl.u32 %v16510_v54, 16 }
 0x3c2   : > { %v19849_v12 = vshrl.u32 %v16512_v49, 16  ;;  %v19848_v39 = vshll.u32 %v16512_v49, 16 }
 0x3c3   : > { %12025 = vmatmul.msk.bf16.gmra.mxu1 %vm82_vm6, %v16459_v45  ;;  %12035 = vmatmul.msk.bf16.gmra.mxu3 %vm82_vm6, %v16461_v59  ;;  %v4048_v5 = vrot.slane %v19865_v37, 1 }
 0x3c4   : > { %v4138_v7 = vrot.slane %v19849_v12, 1  ;;  %v4141_v24 = vrot.slane %v19848_v39, 2  ;;  %v4510_v39 = vld [vmem:[#allocation2] sm:$0xc]  ;;  %v13205_v12 = vld [vmem:[%s16319_s16 + $0xd8] sm:$0xff] }
 0x3c5   : > { %v4052_v61 = vor.u32 %v4051_v56, %v4048_v5  ;;  %6494 = vmatpush.bf16.msra.mxu2 %v13205_v12 }
 0x3c7   : > { %v4053_v19 = vsel %vm297_vm0, %v4043_v28, %v4052_v61  ;;  %v19863_v28 = vshrl.u32 %v16536_v53, 16 }
 0x3d1   : > { %11991 = vmatmul.msk.bf16.gmra.mxu0 %vm82_vm6, %v4044_v52  ;;  %12001 = vmatmul.msk.bf16.gmra.mxu2 %vm82_vm6, %v4134_v48  ;;  %v4142_v52 = vor.u32 %v4141_v24, %v4138_v7  ;;  %v3953_v48 = vunpack.c.l.b16 %v3864_v57  ;;  %v13183_v7 = vld [vmem:[%s16319_s16 + $0xb8] sm:$0xff] }
 0x3d2   : > { %5943 = vmatpush.bf16.msrb.mxu1 %v13183_v7  ;;  %v4524_v7 = vunpack.c.l.b16 %v4510_v39 }
 0x3d3   : > { %12026 = vmatmul.msk.bf16.gmra.mxu1 %vm82_vm6, %v16483_v9  ;;  %12036 = vmatmul.msk.bf16.gmra.mxu3 %vm82_vm6, %v16485_v4  ;;  %v4143_v62 = vsel %vm297_vm0, %v4133_v25, %v4142_v52  ;;  %v16534_v10 = vpack.c.b16 %v3953_v48, %v3953_v48  ;;  %v19862_v25 = vshll.u32 %v16536_v53, 16  ;;  %v13182_v48 = vld [vmem:[%s16319_s16 + $0xb0] sm:$0xff] }
 0x3d4   : > { %v4525_v38 = vpack.c.b16 %v3916_v46, %v4524_v7  ;;  %v13893_v7 = vld [vmem:[#allocation2 + $0x4] sm:$0xf0]  }
 0x3d5   : > { %v4145_v5 = vshrl.u32 %v16534_v10, 16  ;;  %v4148_v56 = vshll.u32 %v16534_v10, 16 }
 0x3d6   : > { %5944 = vmatpush.bf16.msrb.mxu1 %v13182_v48  ;;  %v4805_v35 = vshrl.u32 %v4525_v38, 16 }
 0x3d7   : > { %v4147_v24 = vrot.slane %v4145_v5, 1  ;;  %v4150_v57 = vrot.slane %v4148_v56, 2 }
 0x3d9   : > { %v4151_v2 = vor.u32 %v4150_v57, %v4147_v24 }
 0x3da   : > { %5945 = vmatpush.bf16.msrb.mxu1 %v13181_v8  ;;  %v13213_v8 = vld [vmem:[%s16319_s16 + $0x118] sm:$0xff] }
 0x3db   : > { %v4152_v5 = vsel %vm297_vm0, %v4142_v52, %v4151_v2  ;;  %v4808_v2 = vshll.u32 %v4525_v38, 16  ;;  %7100 = vmatpush.bf16.msra.mxu0 %v13213_v8  ;;  %v4812_v52 = vrot.slane %v3983_v22, 2 }
 0x3de   : > { %5946 = vmatpush.bf16.msrb.mxu1 %v13180_v51  ;;  %v4527_v51 = vrot.slane %v16308_v21, 2  ;;  %v13161_v21 = vld [vmem:[#allocation2 + $0x8] sm:$0xff] }
 0x3df   : > { %7101 = vmatpush.bf16.msra.mxu0 %v13212_v58  ;;  %v4832_v58 = vrot.slane %v4028_v1, 2 }
 0x3e0   : > { %v4530_v26 = vsel %vm845_vm2, %v4527_v51, %v4529_v17 }
 0x3e1   : > { %11992 = vmatmul.msk.bf16.gmra.mxu0 %vm82_vm6, %v4053_v19  ;;  %12002 = vmatmul.msk.bf16.gmra.mxu2 %vm82_vm6, %v4143_v62  ;;  %v4057_v62 = vrot.slane %v19863_v28, 1  ;;  %v4060_v19 = vrot.slane %v19862_v25, 2 }
 0x3e3   : > { %12027 = vmatmul.msk.bf16.gmra.mxu1 %vm82_vm6, %v16510_v54  ;;  %12037 = vmatmul.msk.bf16.gmra.mxu3 %vm82_vm6, %v16512_v49  ;;  %v4061_v34 = vor.u32 %v4060_v19, %v4057_v62  ;;  %v4813_v62 = vrot.slane %v3986_v50, 3  ;;  %v4526_v19 = vrot.slane %v4525_v38, 2 }
 0x3e5   : > { %v4062_v63 = vsel %vm297_vm0, %v4052_v61, %v4061_v34  ;;  %v4807_v61 = vrot.slane %v4805_v35, 2  ;;  %v4814_v57 = vor.u32 %v4813_v62, %v4812_v52  ;;  %v4071_v22 = vsel %vm297_vm0, %v4061_v34, %v16348_v47  ;;  %v13162_v52 = vld [vmem:[#allocation2 + $0x10] sm:$0xff] }
 0x3e6   : > { %v4528_v50 = vsel %vm845_vm2, %v4526_v19, %v4527_v51  ;;  %v5705_v62 = vshll.u32 %v13161_v21, 16  ;;  %v5710_v27 = vshll.u32 %v13162_v52, 16  ;;  %v13163_v51 = vld [vmem:[#allocation2 + $0x18] sm:$0xff] }
 0x3ee   : > { %v4243_v36 = vpop.f32.mrf.mxu0 }
 0x3f0   : > { %v4415_v56 = vpop.f32.mrf.mxu1 }
 0x3f1   : > { %v16562_v48 = vadd.f32 %v4415_v56, %v4243_v36  ;;  %11993 = vmatmul.msk.bf16.gmra.mxu0 %vm82_vm6, %v4062_v63  ;;  %12003 = vmatmul.msk.bf16.gmra.mxu2 %vm82_vm6, %v4152_v5  ;;  %v4810_v63 = vrot.slane %v4808_v2, 3  ;;  %v13650_v5 = vld [vmem:[#allocation2 + $0x4] sm:$0x8] }
 0x3f3   : > { %12028 = vmatmul.msk.bf16.gmra.mxu1 %vm82_vm6, %v16536_v53  ;;  %12038 = vmatmul.msk.bf16.gmra.mxu3 %vm82_vm6, %v13647_v31  ;;  %v4811_v24 = vor.u32 %v4810_v63, %v4807_v61 }
 0x3f4   : > { %v4293_v12 = vpop.f32.mrf.mxu2 }
 0x3f5   : > { %v4815_v38 = vsel %vm1115_vm1, %v4811_v24, %v4814_v57 }
 0x3f6   : > { %v4465_v44 = vpop.f32.mrf.mxu3  ;;  %v4245_v36 = vpop.f32.mrf.mxu0 }
 0x3f7   : > { %v16570_v46 = vadd.f32 %v4465_v44, %v4293_v12  ;;  %v13895_v12 = vld [vmem:[#allocation2 + $0xc] sm:$0xff]   ;;  %v13651_v44 = vor.u32 %v13893_v7, %v13650_v5  ;;  %v4816_v7 = vrot.slane %v3992_v3, 2 }
 0x3f8   : > { %v4417_v39 = vpop.f32.mrf.mxu1  ;;  %v5160_v61 = vshrl.u32 %v13895_v12, 16  ;;  %v5163_v63 = vshll.u32 %v13895_v12, 16  ;;  %v5707_v12 = vrot.slane %v5705_v62, 1 }
 0x3f9   : > { %v16576_v31 = vadd.f32 %v4417_v39, %v4245_v36  ;;  %v5152_v47 = vshrl.u32 %v13651_v44, 16  ;;  %v5155_v34 = vshll.u32 %v13651_v44, 16  ;;  %v5703_v44 = vshrl.u32 %v13161_v21, 16  ;;  %v13897_v21 = vld [vmem:[#allocation2 + $0x14] sm:$0xff]  }
 0x3fa   : > { %v5162_v5 = vrot.slane %v5160_v61, 3 }
 0x3fc   : > { %v4295_v56 = vpop.f32.mrf.mxu2 }
 0x3fe   : > { %v4467_v8 = vpop.f32.mrf.mxu3  ;;  %v4248_v2 = vpop.f32.mrf.mxu0 }
 0x3ff   : > { %v16579_v35 = vadd.f32 %v4467_v8, %v4295_v56 }
 0x400   : > { %v4420_v36 = vpop.f32.mrf.mxu1 }
 0x401   : > { %v16585_v39 = vadd.f32 %v4420_v36, %v4248_v2  ;;  %11994 = vmatmul.msk.bf16.gmra.mxu0 %vm82_vm6, %v4071_v22  ;;  %12064 = vmatmul.msk.bf16.vlgmr.msrb.gmra.mxu2 %vm82_vm6, %v4528_v50  ;;  %v5154_v2 = vrot.slane %v5152_v47, 3  ;;  %v5157_v22 = vrot.slane %v5155_v34, 4  ;;  %v5165_v50 = vrot.slane %v5163_v63, 4 }
 0x403   : > { %12029 = vmatmul.msk.bf16.gmra.mxu1 %vm82_vm6, %v16312_v42  ;;  %12108 = vmatmul.msk.bf16.vlgmr.msrb.gmra.mxu3 %vm82_vm6, %v4815_v38  ;;  %v4817_v38 = vrot.slane %v3995_v20, 3  ;;  %v5158_v25 = vor.u32 %v5157_v22, %v5154_v2  ;;  %v5166_v3 = vor.u32 %v5165_v50, %v5162_v5 }
 0x404   : > { %v4298_v19 = vpop.f32.mrf.mxu2 }
 0x405   : > { %v4818_v61 = vor.u32 %v4817_v38, %v4816_v7  ;;  %v5167_v20 = vsel %vm1454_vm3, %v5158_v25, %v5166_v3  ;;  %v4821_v38 = vrot.slane %v4004_v41, 3  ;;  %v13899_v41 = vld [vmem:[#allocation2 + $0x1c] sm:$0xff]  }
 0x406   : > { %v4470_v24 = vpop.f32.mrf.mxu3  ;;  %v4250_v8 = vpop.f32.mrf.mxu0 }
 0x407   : > { %v16594_v56 = vadd.f32 %v4470_v24, %v4298_v19  ;;  %v5708_v19 = vor.u32 %v5707_v12, %v5703_v44  ;;  %v5712_v24 = vrot.slane %v5710_v27, 1  ;;  %v5169_v27 = vshrl.u32 %v13897_v21, 16 }
 0x408   : > { %v4422_v36 = vpop.f32.mrf.mxu1  ;;  %v5714_v44 = vshrl.u32 %v13162_v52, 16  ;;  %v5718_v12 = vshll.u32 %v13163_v51, 16 }
 0x409   : > { %v16598_v55 = vadd.f32 %v4422_v36, %v4250_v8  ;;  %v4819_v8 = vsel %vm1115_vm1, %v4814_v57, %v4818_v61  ;;  %v5713_v60 = vsel %vm1997_vm4, %v5708_v19, %v5712_v24  ;;  %v5171_v22 = vrot.slane %v5169_v27, 3 }
 0x40c   : > { %v4300_v28 = vpop.f32.mrf.mxu2 }
 0x40e   : > { %v4472_v47 = vpop.f32.mrf.mxu3  ;;  %v4253_v63 = vpop.f32.mrf.mxu0 }
 0x40f   : > { %v16601_v34 = vadd.f32 %v4472_v47, %v4300_v28  ;;  %v5172_v28 = vshll.u32 %v13897_v21, 16  ;;  %v4531_v47 = vrot.slane %v16384_v0, 2  ;;  %v5716_v21 = vor.u32 %v5714_v44, %v5712_v24 }
 0x410   : > { %v4425_v62 = vpop.f32.mrf.mxu1  ;;  %v5178_v24 = vshrl.u32 %v13899_v41, 16 }
 0x411   : > { %v16607_v2 = vadd.f32 %v4425_v62, %v4253_v63  ;;  %12065 = vmatmul.msk.bf16.gmra.mxu2 %vm82_vm6, %v4530_v26  ;;  %12152 = vmatmul.msk.bf16.vlgmr.msrb.gmra.mxu0 %vm82_vm6, %v5167_v20  ;;  %v5174_v50 = vrot.slane %v5172_v28, 4  ;;  %v4820_v26 = vrot.slane %v4001_v32, 2  ;;  %v5720_v62 = vrot.slane %v5718_v12, 1 }
 0x412   : > { %v4532_v32 = vsel %vm845_vm2, %v4529_v17, %v4531_v47  ;;  %v5181_v17 = vshll.u32 %v13899_v41, 16  ;;  %v4824_v12 = vrot.slane %v4010_v43, 2 }
 0x413   : > { %12109 = vmatmul.msk.bf16.gmra.mxu3 %vm82_vm6, %v4819_v8  ;;  %12272 = vmatmul.msk.bf16.vlgmr.msrb.gmra.mxu1 %vm82_vm6, %v5713_v60  ;;  %v5175_v63 = vor.u32 %v5174_v50, %v5171_v22  ;;  %v4822_v20 = vor.u32 %v4821_v38, %v4820_v26  ;;  %v13164_v22 = vld [vmem:[#allocation2 + $0x20] sm:$0xff]  ;;  %v5180_v26 = vrot.slane %v5178_v24, 3 }
 0x414   : > { %v4303_v25 = vpop.f32.mrf.mxu2  ;;  %v5183_v38 = vrot.slane %v5181_v17, 4 }
 0x416   : > { %v4475_v7 = vpop.f32.mrf.mxu3  ;;  %v4255_v57 = vpop.f32.mrf.mxu0 }
 0x417   : > { %v16613_v5 = vadd.f32 %v4475_v7, %v4303_v25  ;;  %v5176_v25 = vsel %vm1454_vm3, %v5166_v3, %v5175_v63  ;;  %v4823_v7 = vsel %vm1115_vm1, %v4818_v61, %v4822_v20 }
 0x418   : > { %v4427_v36 = vpop.f32.mrf.mxu1 }
 0x419   : > { %v16619_v19 = vadd.f32 %v4427_v36, %v4255_v57  ;;  %v5721_v57 = vsel %vm1997_vm4, %v5716_v21, %v5720_v62  ;;  %v4825_v21 = vrot.slane %v4013_v18, 3 }
 0x41b   : > { %v4826_v41 = vor.u32 %v4825_v21, %v4824_v12 }
 0x41c   : > { %v4305_v8 = vpop.f32.mrf.mxu2 }
 0x41e   : > { %v4477_v60 = vpop.f32.mrf.mxu3  ;;  %v4258_v28 = vpop.f32.mrf.mxu0 }
 0x41f   : > { %v16622_v27 = vadd.f32 %v4477_v60, %v4305_v8  ;;  %v5722_v8 = vshrl.u32 %v13163_v51, 16  ;;  %v5726_v60 = vshll.u32 %v13164_v22, 16  ;;  %v13901_v51 = vld [vmem:[#allocation2 + $0x24] sm:$0xff]  }
 0x420   : > { %v4430_v52 = vpop.f32.mrf.mxu1 }
 0x421   : > { %v16628_v0 = vadd.f32 %v4430_v52, %v4258_v28  ;;  %12066 = vmatmul.msk.bf16.gmra.mxu2 %vm82_vm6, %v4532_v32  ;;  %12153 = vmatmul.msk.bf16.gmra.mxu0 %vm82_vm6, %v5176_v25  ;;  %v4533_v32 = vrot.slane %v16408_v16, 2  ;;  %v5184_v25 = vor.u32 %v5183_v38, %v5180_v26  ;;  %v5724_v52 = vor.u32 %v5722_v8, %v5720_v62  ;;  %v13165_v38 = vld [vmem:[#allocation2 + $0x28] sm:$0xff] }
 0x422   : > { %v5190_v62 = vshll.u32 %v13901_v51, 16 }
 0x423   : > { %12110 = vmatmul.msk.bf16.gmra.mxu3 %vm82_vm6, %v4823_v7  ;;  %12273 = vmatmul.msk.bf16.gmra.mxu1 %vm82_vm6, %v5721_v57  ;;  %v5728_v7 = vrot.slane %v5726_v60, 1  ;;  %v4534_v43 = vsel %vm845_vm2, %v4531_v47, %v4533_v32  ;;  %v5185_v18 = vsel %vm1454_vm3, %v5175_v63, %v5184_v25  ;;  %v5187_v47 = vshrl.u32 %v13901_v51, 16  ;;  %v13204_v63 = vld [vmem:[%s16319_s16 + $0xd0] sm:$0xff] }
 0x424   : > { %v4308_v3 = vpop.f32.mrf.mxu2  ;;  %6495 = vmatpush.bf16.msra.mxu2 %v13204_v63  ;;  %v5192_v60 = vrot.slane %v5190_v62, 4 }
 0x425   : > { %v5729_v16 = vsel %vm1997_vm4, %v5724_v52, %v5728_v7  ;;  %v5189_v8 = vrot.slane %v5187_v47, 3  ;;  %v13208_v52 = vld [vmem:[%s16319_s16 + $0xf0] sm:$0xff] }
 0x426   : > { %v4480_v50 = vpop.f32.mrf.mxu3  ;;  %v4260_v61 = vpop.f32.mrf.mxu0  ;;  %6773 = vmatpush.bf16.msra.mxu3 %v13208_v52 }
 0x427   : > { %v16634_v36 = vadd.f32 %v4480_v50, %v4308_v3 }
 0x428   : > { %v4432_v44 = vpop.f32.mrf.mxu1 }
 0x429   : > { %v16640_v28 = vadd.f32 %v4432_v44, %v4260_v61  ;;  %v4827_v61 = vsel %vm1115_vm1, %v4822_v20, %v4826_v41 }
 0x42c   : > { %v4310_v57 = vpop.f32.mrf.mxu2 }
 0x42e   : > { %v4482_v24 = vpop.f32.mrf.mxu3  ;;  %v4263_v3 = vpop.f32.mrf.mxu0 }
 0x42f   : > { %v16643_v17 = vadd.f32 %v4482_v24, %v4310_v57  ;;  %v4828_v24 = vrot.slane %v4019_v6, 2 }
 0x430   : > { %v4435_v50 = vpop.f32.mrf.mxu1 }
 0x431   : > { %v16649_v26 = vadd.f32 %v4435_v50, %v4263_v3  ;;  %12067 = vmatmul.msk.bf16.gmra.mxu2 %vm82_vm6, %v4534_v43  ;;  %12154 = vmatmul.msk.bf16.gmra.mxu0 %vm82_vm6, %v5185_v18  ;;  %v4829_v3 = vrot.slane %v4022_v40, 3  ;;  %v5730_v43 = vshrl.u32 %v13164_v22, 16  ;;  %v5734_v18 = vshll.u32 %v13165_v38, 16  ;;  %v13903_v22 = vld [vmem:[#allocation2 + $0x2c] sm:$0xff]  }
 0x432   : > { %v4535_v50 = vrot.slane %v16433_v14, 2 }
 0x433   : > { %12111 = vmatmul.msk.bf16.gmra.mxu3 %vm82_vm6, %v4827_v61  ;;  %12274 = vmatmul.msk.bf16.gmra.mxu1 %vm82_vm6, %v5729_v16  ;;  %v5193_v61 = vor.u32 %v5192_v60, %v5189_v8  ;;  %v4830_v16 = vor.u32 %v4829_v3, %v4828_v24  ;;  %v5732_v47 = vor.u32 %v5730_v43, %v5728_v7  ;;  %v5736_v62 = vrot.slane %v5734_v18, 1  ;;  %v13166_v7 = vld [vmem:[#allocation2 + $0x30] sm:$0xff] }
 0x434   : > { %v4313_v44 = vpop.f32.mrf.mxu2  ;;  %v4536_v37 = vsel %vm845_vm2, %v4533_v32, %v4535_v50  ;;  %v5196_v32 = vshrl.u32 %v13903_v22, 16 }
 0x435   : > { %v5194_v40 = vsel %vm1454_vm3, %v5184_v25, %v5193_v61  ;;  %v4831_v52 = vsel %vm1115_vm1, %v4826_v41, %v4830_v16  ;;  %v5737_v14 = vsel %vm1997_vm4, %v5732_v47, %v5736_v62  ;;  %v5199_v25 = vshll.u32 %v13903_v22, 16 }
 0x436   : > { %v4485_v20 = vpop.f32.mrf.mxu3  ;;  %v4265_v21 = vpop.f32.mrf.mxu0  ;;  %v5198_v3 = vrot.slane %v5196_v32, 3  ;;  %v5738_v47 = vshrl.u32 %v13165_v38, 16 }
 0x437   : > { %v16656_v12 = vadd.f32 %v4485_v20, %v4313_v44  ;;  %v5201_v43 = vrot.slane %v5199_v25, 4 }
 0x438   : > { %v4437_v57 = vpop.f32.mrf.mxu1 }
 0x439   : > { %20014 = vst [vmem:[#allocation12_spill] sm:$0xff] %v16656_v12  ;;  %v16663_v51 = vadd.f32 %v4437_v57, %v4265_v21 }
 0x43c   : > { %v4315_v63 = vpop.f32.mrf.mxu2 }
 0x43e   : > { %v4487_v44 = vpop.f32.mrf.mxu3  ;;  %v4268_v6 = vpop.f32.mrf.mxu0 }
 0x43f   : > { %v16666_v20 = vadd.f32 %v4487_v44, %v4315_v63  ;;  %v5742_v63 = vshll.u32 %v13166_v7, 16 }
 0x440   : > { %v4440_v21 = vpop.f32.mrf.mxu1 }
 0x441   : > { %20015 = vst [vmem:[#allocation13_spill] sm:$0xff] %v16666_v20  ;;  %v16673_v8 = vadd.f32 %v4440_v21, %v4268_v6  ;;  %12068 = vmatmul.msk.bf16.gmra.mxu2 %vm82_vm6, %v4536_v37  ;;  %12155 = vmatmul.msk.bf16.gmra.mxu0 %vm82_vm6, %v5194_v40  ;;  %v4833_v37 = vrot.slane %v4031_v30, 3  ;;  %v4537_v6 = vrot.slane %v16459_v45, 2  ;;  %v5202_v40 = vor.u32 %v5201_v43, %v5198_v3  ;;  %v13905_v30 = vld [vmem:[#allocation2 + $0x34] sm:$0xff]  }
 0x442   : > { %v5740_v21 = vor.u32 %v5738_v47, %v5736_v62  ;;  %v5205_v62 = vshrl.u32 %v13905_v30, 16  ;;  %v13167_v3 = vld [vmem:[#allocation2 + $0x38] sm:$0xff] }
 0x443   : > { %12112 = vmatmul.msk.bf16.gmra.mxu3 %vm82_vm6, %v4831_v52  ;;  %12275 = vmatmul.msk.bf16.gmra.mxu1 %vm82_vm6, %v5737_v14  ;;  %v4834_v22 = vor.u32 %v4833_v37, %v4832_v58  ;;  %v5744_v52 = vrot.slane %v5742_v63, 1  ;;  %v4538_v1 = vsel %vm845_vm2, %v4535_v50, %v4537_v6  ;;  %v5208_v50 = vshll.u32 %v13905_v30, 16 }
 0x444   : > { %v4318_v60 = vpop.f32.mrf.mxu2  ;;  %v5207_v37 = vrot.slane %v5205_v62, 3  ;;  %v4539_v30 = vrot.slane %v16483_v9, 2 }
 0x445   : > { %v5210_v47 = vrot.slane %v5208_v50, 4 }
 0x446   : > { %v4490_v57 = vpop.f32.mrf.mxu3  ;;  %v4270_v41 = vpop.f32.mrf.mxu0 }
 0x447   : > { %v16679_v24 = vadd.f32 %v4490_v57, %v4318_v60  ;;  %v5203_v57 = vsel %vm1454_vm3, %v5193_v61, %v5202_v40 }
 0x448   : > { %v4442_v18 = vpop.f32.mrf.mxu1 }
 0x449   : > { %20016 = vst [vmem:[#allocation14_spill] sm:$0xff] %v16679_v24  ;;  %v16685_v44 = vadd.f32 %v4442_v18, %v4270_v41  ;;  %v4835_v41 = vsel %vm1115_vm1, %v4830_v16, %v4834_v22  ;;  %v5745_v18 = vsel %vm1997_vm4, %v5740_v21, %v5744_v52  ;;  %v4836_v21 = vrot.slane %v4037_v29, 2 }
 0x44a   : > { %v4540_v29 = vsel %vm845_vm2, %v4537_v6, %v4539_v30 }
 0x44c   : > { %v4320_v14 = vpop.f32.mrf.mxu2 }
 0x44e   : > { %v4492_v32 = vpop.f32.mrf.mxu3  ;;  %v4273_v60 = vpop.f32.mrf.mxu0 }
 0x44f   : > { %v16688_v25 = vadd.f32 %v4492_v32, %v4320_v14  ;;  %v20019_v14 = vshll.u32 %v16483_v9, 16 }
 0x450   : > { %v4445_v38 = vpop.f32.mrf.mxu1 }
 0x451   : > { %20017 = vst [vmem:[#allocation15_spill] sm:$0xff] %v16688_v25  ;;  %v16694_v45 = vadd.f32 %v4445_v38, %v4273_v60  ;;  %12069 = vmatmul.msk.bf16.gmra.mxu2 %vm82_vm6, %v4538_v1  ;;  %12156 = vmatmul.msk.bf16.gmra.mxu0 %vm82_vm6, %v5203_v57  ;;  %v4837_v32 = vrot.slane %v20019_v14, 3  ;;  %v5746_v60 = vshrl.u32 %v13166_v7, 16  ;;  %v5750_v1 = vshll.u32 %v13167_v3, 16  ;;  %v13907_v14 = vld [vmem:[#allocation2 + $0x3c] sm:$0xff]  }
 0x452   : > { %v5211_v38 = vor.u32 %v5210_v47, %v5207_v37  ;;  %v5217_v6 = vshll.u32 %v13907_v14, 16  ;;  %v13168_v37 = vld [vmem:[#allocation2 + $0x40] sm:$0xff] }
 0x453   : > { %12113 = vmatmul.msk.bf16.gmra.mxu3 %vm82_vm6, %v4835_v41  ;;  %12276 = vmatmul.msk.bf16.gmra.mxu1 %vm82_vm6, %v5745_v18  ;;  %v4838_v41 = vor.u32 %v4837_v32, %v4836_v21  ;;  %v5748_v18 = vor.u32 %v5746_v60, %v5744_v52  ;;  %v5214_v52 = vshrl.u32 %v13907_v14, 16  ;;  %v4541_v14 = vrot.slane %v16510_v54, 2 }
 0x454   : > { %v4323_v61 = vpop.f32.mrf.mxu2  ;;  %v5212_v25 = vsel %vm1454_vm3, %v5202_v40, %v5211_v38  ;;  %v5219_v60 = vrot.slane %v5217_v6, 4 }
 0x455   : > { %v5216_v32 = vrot.slane %v5214_v52, 3 }
 0x456   : > { %v4495_v43 = vpop.f32.mrf.mxu3  ;;  %v4275_v16 = vpop.f32.mrf.mxu0 }
 0x457   : > { %v16700_v58 = vadd.f32 %v4495_v43, %v4323_v61  ;;  %v5752_v61 = vrot.slane %v5750_v1, 1  ;;  %v20022_v1 = vshrl.u32 %v16510_v54, 16 }
 0x458   : > { %v4447_v63 = vpop.f32.mrf.mxu1 }
 0x459   : > { %20018 = vst [vmem:[#allocation16_spill] sm:$0xff] %v16700_v58  ;;  %v16706_v57 = vadd.f32 %v4447_v63, %v4275_v16  ;;  %v4839_v16 = vsel %vm1115_vm1, %v4834_v22, %v4838_v41  ;;  %v5753_v63 = vsel %vm1997_vm4, %v5748_v18, %v5752_v61  ;;  %v4840_v18 = vrot.slane %v20022_v1, 2 }
 0x45a   : > { %v4542_v1 = vsel %vm845_vm2, %v4539_v30, %v4541_v14 }
 0x45c   : > { %v4325_v43 = vpop.f32.mrf.mxu2 }
 0x45e   : > { %v4497_v62 = vpop.f32.mrf.mxu3  ;;  %v4278_v58 = vpop.f32.mrf.mxu0 }
 0x45f   : > { %v16709_v50 = vadd.f32 %v4497_v62, %v4325_v43  ;;  %v5754_v62 = vshrl.u32 %v13167_v3, 16 }
 0x460   : > { %v4450_v7 = vpop.f32.mrf.mxu1 }
 0x461   : > { %20020 = vst [vmem:[#allocation17_spill] sm:$0xff] %v16709_v50  ;;  %v16715_v9 = vadd.f32 %v4450_v7, %v4278_v58  ;;  %12070 = vmatmul.msk.bf16.gmra.mxu2 %vm82_vm6, %v4540_v29  ;;  %12157 = vmatmul.msk.bf16.gmra.mxu0 %vm82_vm6, %v5212_v25  ;;  %v20023_v25 = vshll.u32 %v16510_v54, 16  ;;  %v5758_v29 = vshll.u32 %v13168_v37, 16 }
 0x463   : > { %12114 = vmatmul.msk.bf16.gmra.mxu3 %vm82_vm6, %v4839_v16  ;;  %12277 = vmatmul.msk.bf16.gmra.mxu1 %vm82_vm6, %v5753_v63  ;;  %v4841_v43 = vrot.slane %v20023_v25, 3  ;;  %v5220_v16 = vor.u32 %v5219_v60, %v5216_v32  ;;  %v13909_v25 = vld [vmem:[#allocation2 + $0x44] sm:$0xff]  }
 0x464   : > { %v4328_v40 = vpop.f32.mrf.mxu2  ;;  %v5226_v30 = vshll.u32 %v13909_v25, 16 }
 0x465   : > { %v4842_v63 = vor.u32 %v4841_v43, %v4840_v18  ;;  %v5221_v24 = vsel %vm1454_vm3, %v5211_v38, %v5220_v16 }
 0x466   : > { %v4500_v47 = vpop.f32.mrf.mxu3  ;;  %v4280_v22 = vpop.f32.mrf.mxu0  ;;  %v5228_v43 = vrot.slane %v5226_v30, 4 }
 0x467   : > { %v16721_v21 = vadd.f32 %v4500_v47, %v4328_v40  ;;  %v5756_v40 = vor.u32 %v5754_v62, %v5752_v61  ;;  %v5760_v47 = vrot.slane %v5758_v29, 1  ;;  %v5223_v61 = vshrl.u32 %v13909_v25, 16 }
 0x468   : > { %v4452_v58 = vpop.f32.mrf.mxu1  ;;  %v20026_v62 = vshrl.u32 %v16536_v53, 16  ;;  %v4543_v25 = vrot.slane %v16536_v53, 2 }
 0x469   : > { %20021 = vst [vmem:[#allocation18_spill] sm:$0xff] %v16721_v21  ;;  %v16727_v7 = vadd.f32 %v4452_v58, %v4280_v22  ;;  %v4843_v22 = vsel %vm1115_vm1, %v4838_v41, %v4842_v63  ;;  %v5761_v58 = vsel %vm1997_vm4, %v5756_v40, %v5760_v47  ;;  %v5225_v18 = vrot.slane %v5223_v61, 3 }
 0x46a   : > { %v4844_v29 = vrot.slane %v20026_v62, 2 }
 0x46c   : > { %v4330_v21 = vpop.f32.mrf.mxu2 }
 0x46e   : > { %v4502_v52 = vpop.f32.mrf.mxu3  ;;  %v4283_v50 = vpop.f32.mrf.mxu0 }
 0x46f   : > { %v16730_v6 = vadd.f32 %v4502_v52, %v4330_v21  ;;  %v13169_v21 = vld [vmem:[#allocation2 + $0x48] sm:$0xff]  ;;  %v5762_v52 = vshrl.u32 %v13168_v37, 16 }
 0x470   : > { %v4455_v3 = vpop.f32.mrf.mxu1 }
 0x471   : > { %20024 = vst [vmem:[#allocation19_spill] sm:$0xff] %v16730_v6  ;;  %v16736_v54 = vadd.f32 %v4455_v3, %v4283_v50  ;;  %12071 = vmatmul.msk.bf16.gmra.mxu2 %vm82_vm6, %v4542_v1  ;;  %12158 = vmatmul.msk.bf16.gmra.mxu0 %vm82_vm6, %v5221_v24  ;;  %v20027_v24 = vshll.u32 %v16536_v53, 16  ;;  %v5766_v1 = vshll.u32 %v13169_v21, 16  ;;  %v4544_v6 = vsel %vm845_vm2, %v4541_v14, %v4543_v25 }
 0x473   : > { %12115 = vmatmul.msk.bf16.gmra.mxu3 %vm82_vm6, %v4843_v22  ;;  %12278 = vmatmul.msk.bf16.gmra.mxu1 %vm82_vm6, %v5761_v58  ;;  %v4845_v40 = vrot.slane %v20027_v24, 3  ;;  %v5229_v22 = vor.u32 %v5228_v43, %v5225_v18  ;;  %v13911_v24 = vld [vmem:[#allocation2 + $0x4c] sm:$0xff]  }
 0x474   : > { %v4333_v38 = vpop.f32.mrf.mxu2  ;;  %v13203_v18 = vld [vmem:[%s16319_s16 + $0xc8] sm:$0xff]  ;;  %v5232_v14 = vshrl.u32 %v13911_v24, 16 }
 0x475   : > { %v4846_v58 = vor.u32 %v4845_v40, %v4844_v29  ;;  %v5230_v37 = vsel %vm1454_vm3, %v5220_v16, %v5229_v22  ;;  %v13207_v16 = vld [vmem:[%s16319_s16 + $0xe8] sm:$0xff]  ;;  %v16765_v29 = vld [vmem:[#allocation2 + $0x50] sm:$0xff]  ;;  %6496 = vmatpush.bf16.msra.mxu2 %v13203_v18 }
 0x476   : > { %v4505_v32 = vpop.f32.mrf.mxu3  ;;  %v4285_v41 = vpop.f32.mrf.mxu0  ;;  %6774 = vmatpush.bf16.msra.mxu3 %v13207_v16  ;;  %v13211_v16 = vld [vmem:[%s16319_s16 + $0x108] sm:$0xff] }
 0x477   : > { %v16742_v60 = vadd.f32 %v4505_v32, %v4333_v38  ;;  %v5764_v38 = vor.u32 %v5762_v52, %v5760_v47  ;;  %v5768_v32 = vrot.slane %v5766_v1, 1  ;;  %v5235_v47 = vshll.u32 %v13911_v24, 16  ;;  %7102 = vmatpush.bf16.msra.mxu0 %v13211_v16 }
 0x478   : > { %v4457_v50 = vpop.f32.mrf.mxu1  ;;  %v20030_v24 = vshll.u32 %v16312_v42, 16 }
 0x479   : > { %20025 = vst [vmem:[#allocation20_spill] sm:$0xff] %v16742_v60  ;;  %v16748_v3 = vadd.f32 %v4457_v50, %v4285_v41  ;;  %v4847_v50 = vsel %vm1115_vm1, %v4842_v63, %v4846_v58  ;;  %v5769_v53 = vsel %vm1997_vm4, %v5764_v38, %v5768_v32 }
 0x47c   : > { %v4335_v61 = vpop.f32.mrf.mxu2 }
 0x47e   : > { %v4507_v30 = vpop.f32.mrf.mxu3  ;;  %v4288_v62 = vpop.f32.mrf.mxu0 }
 0x47f   : > { %v16751_v60 = vadd.f32 %v4507_v30, %v4335_v61  ;;  %v5234_v61 = vrot.slane %v5232_v14, 3  ;;  %v5237_v30 = vrot.slane %v5235_v47, 4 }
 0x480   : > { %v4460_v41 = vpop.f32.mrf.mxu1 }
 0x481   : > { %20028 = vst [vmem:[#allocation21_spill] sm:$0xff] %v16751_v60  ;;  %v16758_v43 = vadd.f32 %v4460_v41, %v4288_v62  ;;  %12072 = vmatmul.msk.bf16.gmra.mxu2 %vm82_vm6, %v4544_v6  ;;  %12159 = vmatmul.msk.bf16.gmra.mxu0 %vm82_vm6, %v5230_v37  ;;  %v20029_v6 = vshrl.u32 %v16312_v42, 16  ;;  %v4849_v41 = vrot.slane %v20030_v24, 3  ;;  %v5238_v60 = vor.u32 %v5237_v30, %v5234_v61  ;;  %v13222_v24 = vld [vmem:[%s16784_s19 + $0x18] sm:$0xff] }
 0x482   : > { %7937 = vmatpush.bf16.msra.mxu1 %v13222_v24 }
 0x483   : > { %12116 = vmatmul.msk.bf16.gmra.mxu3 %vm82_vm6, %v4847_v50  ;;  %12279 = vmatmul.msk.bf16.gmra.mxu1 %vm82_vm6, %v5769_v53  ;;  %v4848_v38 = vrot.slane %v20029_v6, 2  ;;  %v5770_v50 = vshrl.u32 %v13169_v21, 16  ;;  %v5774_v53 = vshll.u32 %v16765_v29, 16 }
 0x484   : > { %v4655_v63 = vpop.f32.mrf.mxu2 }
 0x485   : > { %v4750_v40 = vadd.f32 %v4655_v63, %v16562_v48  ;;  %v14023_v48 = vld [vmem:[#allocation2 + $0x50] sm:$0xff]   ;;  %v4850_v20 = vor.u32 %v4849_v41, %v4848_v38  ;;  %v5772_v12 = vor.u32 %v5770_v50, %v5768_v32  ;;  %v5776_v6 = vrot.slane %v5774_v53, 1  ;;  %v13171_v41 = vld [vmem:[#allocation2 + $0x58] sm:$0xff] }
 0x486   : > { %v4983_v52 = vpop.f32.mrf.mxu3  ;;  %v4290_v1 = vpop.f32.mrf.mxu0  ;;  %v4545_v63 = vrot.slane %v14023_v48, 2  ;;  %v20032_v53 = vshrl.u32 %v16321_v23, 16  ;;  %v20033_v48 = vshll.u32 %v16321_v23, 16 }
 0x487   : > { %v5078_v62 = vadd.f32 %v4983_v52, %v4750_v40  ;;  %v5239_v52 = vsel %vm1454_vm3, %v5229_v22, %v5238_v60  ;;  %v4851_v30 = vsel %vm1115_vm1, %v4846_v58, %v4850_v20 }
 0x488   : > { %v4462_v37 = vpop.f32.mrf.mxu1  ;;  %v4546_v21 = vsel %vm845_vm2, %v4543_v25, %v4545_v63  ;;  %v4852_v16 = vrot.slane %v20032_v53, 2 }
 0x489   : > { %v16773_v18 = vadd.f32 %v4462_v37, %v4290_v1  ;;  %v13913_v1 = vld [vmem:[#allocation2 + $0x54] sm:$0xff]  }
 0x48a   : > { %v5241_v25 = vshrl.u32 %v13913_v1, 16  ;;  %v5244_v22 = vshll.u32 %v13913_v1, 16  ;;  %v5778_v1 = vshrl.u32 %v16765_v29, 16 }
 0x48c   : > { %v4657_v14 = vpop.f32.mrf.mxu2 }
 0x48d   : > { %v4751_v47 = vadd.f32 %v4657_v14, %v16576_v31  ;;  %v5777_v31 = vsel %vm1997_vm4, %v5772_v12, %v5776_v6  ;;  %v4853_v14 = vrot.slane %v20033_v48, 3 }
 0x48e   : > { %v4985_v40 = vpop.f32.mrf.mxu3  ;;  %v5420_v42 = vpop.f32.mrf.mxu0 }
 0x48f   : > { %v5079_v32 = vadd.f32 %v4985_v40, %v4751_v47  ;;  %v5515_v38 = vadd.f32 %v5420_v42, %v5078_v62  ;;  %v5243_v47 = vrot.slane %v5241_v25, 3  ;;  %v5246_v40 = vrot.slane %v5244_v22, 4 }
 0x490   : > { %v5948_v61 = vpop.f32.mrf.mxu1  ;;  %v4854_v24 = vor.u32 %v4853_v14, %v4852_v16 }
 0x491   : > { %v16788_v37 = vadd.f32 %v5948_v61, %v5515_v38  ;;  %12073 = vmatmul.msk.bf16.gmra.mxu2 %vm82_vm6, %v4546_v21  ;;  %12160 = vmatmul.msk.bf16.gmra.mxu0 %vm82_vm6, %v5239_v52  ;;  %v5782_v38 = vshll.u32 %v13171_v41, 16 }
 0x493   : > { %20031 = vst [vmem:[#allocation22_spill] sm:$0xff] %v16788_v37  ;;  %12117 = vmatmul.msk.bf16.gmra.mxu3 %vm82_vm6, %v4851_v30  ;;  %12280 = vmatmul.msk.bf16.gmra.mxu1 %vm82_vm6, %v5777_v31  ;;  %v14024_v30 = vld [vmem:[#allocation2 + $0x58] sm:$0xff]   ;;  %v5247_v31 = vor.u32 %v5246_v40, %v5243_v47  ;;  %v5784_v37 = vrot.slane %v5782_v38, 1 }
 0x494   : > { %v4660_v62 = vpop.f32.mrf.mxu2 }
 0x495   : > { %v4752_v58 = vadd.f32 %v4660_v62, %v16585_v39  ;;  %v4547_v39 = vrot.slane %v14024_v30, 2  ;;  %v5780_v62 = vor.u32 %v5778_v1, %v5776_v6  ;;  %v20035_v1 = vshll.u32 %v16359_v33, 16 }
 0x496   : > { %v4988_v50 = vpop.f32.mrf.mxu3  ;;  %v5422_v12 = vpop.f32.mrf.mxu0 }
 0x497   : > { %v5080_v42 = vadd.f32 %v4988_v50, %v4752_v58  ;;  %v5516_v21 = vadd.f32 %v5422_v12, %v5079_v32  ;;  %v4548_v22 = vsel %vm845_vm2, %v4545_v63, %v4547_v39  ;;  %v5248_v32 = vsel %vm1454_vm3, %v5238_v60, %v5247_v31  ;;  %v13915_v58 = vld [vmem:[#allocation2 + $0x5c] sm:$0xff]  }
 0x498   : > { %v5950_v52 = vpop.f32.mrf.mxu1  ;;  %v5785_v47 = vsel %vm1997_vm4, %v5780_v62, %v5784_v37  ;;  %v5253_v60 = vshll.u32 %v13915_v58, 16  ;;  %v13172_v63 = vld [vmem:[#allocation2 + $0x60] sm:$0xff]  ;;  %v4857_v38 = vrot.slane %v20035_v1, 3 }
 0x499   : > { %v16801_v61 = vadd.f32 %v5950_v52, %v5516_v21  ;;  %v4855_v21 = vsel %vm1115_vm1, %v4850_v20, %v4854_v24 }
 0x49a   : > { %v5255_v62 = vrot.slane %v5253_v60, 4  ;;  %v13917_v60 = vld [vmem:[#allocation2 + $0x64] sm:$0xff]  }
 0x49c   : > { %v4662_v53 = vpop.f32.mrf.mxu2 }
 0x49d   : > { %v4753_v23 = vadd.f32 %v4662_v53, %v16598_v55  ;;  %v5250_v55 = vshrl.u32 %v13915_v58, 16  ;;  %v14025_v58 = vld [vmem:[#allocation2 + $0x60] sm:$0xff]  }
 0x49e   : > { %v4990_v48 = vpop.f32.mrf.mxu3  ;;  %v5425_v25 = vpop.f32.mrf.mxu0 }
 0x49f   : > { %v5081_v29 = vadd.f32 %v4990_v48, %v4753_v23  ;;  %v5517_v50 = vadd.f32 %v5425_v25, %v5080_v42  ;;  %v20034_v42 = vshrl.u32 %v16359_v33, 16  ;;  %v5252_v30 = vrot.slane %v5250_v55, 3 }
 0x4a0   : > { %v5953_v12 = vpop.f32.mrf.mxu1  ;;  %v5786_v25 = vshrl.u32 %v13171_v41, 16 }
 0x4a1   : > { %v16808_v16 = vadd.f32 %v5953_v12, %v5517_v50  ;;  %12074 = vmatmul.msk.bf16.gmra.mxu2 %vm82_vm6, %v4548_v22  ;;  %12161 = vmatmul.msk.bf16.gmra.mxu0 %vm82_vm6, %v5248_v32  ;;  %v4856_v52 = vrot.slane %v20034_v42, 2  ;;  %v5790_v22 = vshll.u32 %v13172_v63, 16  ;;  %v4549_v50 = vrot.slane %v14025_v58, 2 }
 0x4a3   : > { %12118 = vmatmul.msk.bf16.gmra.mxu3 %vm82_vm6, %v4855_v21  ;;  %12281 = vmatmul.msk.bf16.gmra.mxu1 %vm82_vm6, %v5785_v47  ;;  %v4858_v12 = vor.u32 %v4857_v38, %v4856_v52  ;;  %v5788_v21 = vor.u32 %v5786_v25, %v5784_v37  ;;  %v5792_v47 = vrot.slane %v5790_v22, 1  ;;  %v4550_v55 = vsel %vm845_vm2, %v4547_v39, %v4549_v50  ;;  %v13173_v39 = vld [vmem:[#allocation2 + $0x68] sm:$0xff] }
 0x4a4   : > { %v4665_v6 = vpop.f32.mrf.mxu2  ;;  %v5262_v37 = vshll.u32 %v13917_v60, 16 }
 0x4a5   : > { %v4754_v14 = vadd.f32 %v4665_v6, %v16607_v2  ;;  %v5256_v2 = vor.u32 %v5255_v62, %v5252_v30  ;;  %v5793_v30 = vsel %vm1997_vm4, %v5788_v21, %v5792_v47 }
 0x4a6   : > { %v4993_v40 = vpop.f32.mrf.mxu3  ;;  %v5427_v20 = vpop.f32.mrf.mxu0  ;;  %v5264_v58 = vrot.slane %v5262_v37, 4  ;;  %v13919_v37 = vld [vmem:[#allocation2 + $0x6c] sm:$0xff]  }
 0x4a7   : > { %v5082_v53 = vadd.f32 %v4993_v40, %v4754_v14  ;;  %v5518_v23 = vadd.f32 %v5427_v20, %v5081_v29  ;;  %v5257_v29 = vsel %vm1454_vm3, %v5247_v31, %v5256_v2  ;;  %v4859_v20 = vsel %vm1115_vm1, %v4854_v24, %v4858_v12 }
 0x4a8   : > { %v5955_v48 = vpop.f32.mrf.mxu1 }
 0x4a9   : > { %v16819_v32 = vadd.f32 %v5955_v48, %v5518_v23  ;;  %v20037_v48 = vshll.u32 %v16386_v11, 16 }
 0x4ab   : > { %v4861_v25 = vrot.slane %v20037_v48, 3 }
 0x4ac   : > { %v4667_v6 = vpop.f32.mrf.mxu2 }
 0x4ad   : > { %v4755_v42 = vadd.f32 %v4667_v6, %v16619_v19  ;;  %v5259_v19 = vshrl.u32 %v13917_v60, 16 }
 0x4ae   : > { %v4995_v33 = vpop.f32.mrf.mxu3  ;;  %v5430_v1 = vpop.f32.mrf.mxu0 }
 0x4af   : > { %v5083_v41 = vadd.f32 %v4995_v33, %v4755_v42  ;;  %v5519_v14 = vadd.f32 %v5430_v1, %v5082_v53  ;;  %v20036_v53 = vshrl.u32 %v16386_v11, 16  ;;  %v5261_v22 = vrot.slane %v5259_v19, 3 }
 0x4b0   : > { %v5958_v40 = vpop.f32.mrf.mxu1  ;;  %v5794_v33 = vshrl.u32 %v13172_v63, 16  ;;  %v5798_v1 = vshll.u32 %v13173_v39, 16 }
 0x4b1   : > { %v16826_v52 = vadd.f32 %v5958_v40, %v5519_v14  ;;  %12075 = vmatmul.msk.bf16.gmra.mxu2 %vm82_vm6, %v4550_v55  ;;  %12162 = vmatmul.msk.bf16.gmra.mxu0 %vm82_vm6, %v5257_v29  ;;  %v4860_v23 = vrot.slane %v20036_v53, 2  ;;  %v14026_v29 = vld [vmem:[#allocation2 + $0x68] sm:$0xff]  }
 0x4b2   : > { %v4551_v60 = vrot.slane %v14026_v29, 2  ;;  %v5796_v40 = vor.u32 %v5794_v33, %v5792_v47 }
 0x4b3   : > { %12119 = vmatmul.msk.bf16.gmra.mxu3 %vm82_vm6, %v4859_v20  ;;  %12282 = vmatmul.msk.bf16.gmra.mxu1 %vm82_vm6, %v5793_v30  ;;  %v4862_v14 = vor.u32 %v4861_v25, %v4860_v23  ;;  %v5800_v20 = vrot.slane %v5798_v1, 1 }
 0x4b4   : > { %v4670_v31 = vpop.f32.mrf.mxu2  ;;  %v4552_v19 = vsel %vm845_vm2, %v4549_v50, %v4551_v60  ;;  %v5271_v50 = vshll.u32 %v13919_v37, 16 }
 0x4b5   : > { %v4756_v38 = vadd.f32 %v4670_v31, %v16628_v0  ;;  %v5265_v0 = vor.u32 %v5264_v58, %v5261_v22  ;;  %v5801_v48 = vsel %vm1997_vm4, %v5796_v40, %v5800_v20  ;;  %v20038_v58 = vshrl.u32 %v16410_v15, 16 }
 0x4b6   : > { %v4998_v62 = vpop.f32.mrf.mxu3  ;;  %v5432_v24 = vpop.f32.mrf.mxu0  ;;  %v5273_v1 = vrot.slane %v5271_v50, 4 }
 0x4b7   : > { %v5084_v21 = vadd.f32 %v4998_v62, %v4756_v38  ;;  %v5520_v6 = vadd.f32 %v5432_v24, %v5083_v41  ;;  %v5266_v41 = vsel %vm1454_vm3, %v5256_v2, %v5265_v0  ;;  %v4863_v24 = vsel %vm1115_vm1, %v4858_v12, %v4862_v14  ;;  %v16850_v2 = vld [vmem:[#allocation2 + $0x70] sm:$0xff] }
 0x4b8   : > { %v5960_v42 = vpop.f32.mrf.mxu1 }
 0x4b9   : > { %v16837_v55 = vadd.f32 %v5960_v42, %v5520_v6  ;;  %v20039_v6 = vshll.u32 %v16410_v15, 16 }
 0x4bb   : > { %v4865_v42 = vrot.slane %v20039_v6, 3 }
 0x4bc   : > { %v4672_v30 = vpop.f32.mrf.mxu2 }
 0x4bd   : > { %v4757_v31 = vadd.f32 %v4672_v30, %v16640_v28  ;;  %v5268_v28 = vshrl.u32 %v13919_v37, 16 }
 0x4be   : > { %v5000_v11 = vpop.f32.mrf.mxu3  ;;  %v5435_v53 = vpop.f32.mrf.mxu0 }
 0x4bf   : > { %v5085_v63 = vadd.f32 %v5000_v11, %v4757_v31  ;;  %v5521_v38 = vadd.f32 %v5435_v53, %v5084_v21  ;;  %v4864_v21 = vrot.slane %v20038_v58, 2  ;;  %v5270_v33 = vrot.slane %v5268_v28, 3 }
 0x4c0   : > { %v5963_v62 = vpop.f32.mrf.mxu1  ;;  %v5802_v31 = vshrl.u32 %v13173_v39, 16  ;;  %v5806_v11 = vshll.u32 %v16850_v2, 16 }
 0x4c1   : > { %v16844_v23 = vadd.f32 %v5963_v62, %v5521_v38  ;;  %12076 = vmatmul.msk.bf16.gmra.mxu2 %vm82_vm6, %v4552_v19  ;;  %12163 = vmatmul.msk.bf16.gmra.mxu0 %vm82_vm6, %v5266_v41  ;;  %v13202_v19 = vld [vmem:[%s16319_s16 + $0xc0] sm:$0xff]  ;;  %v5274_v37 = vor.u32 %v5273_v1, %v5270_v33  ;;  %v4866_v38 = vor.u32 %v4865_v42, %v4864_v21 }
 0x4c2   : > { %v5804_v62 = vor.u32 %v5802_v31, %v5800_v20  ;;  %6497 = vmatpush.bf16.msra.mxu2 %v13202_v19  ;;  %v13206_v20 = vld [vmem:[%s16319_s16 + $0xe0] sm:$0xff] }
 0x4c3   : > { %12120 = vmatmul.msk.bf16.gmra.mxu3 %vm82_vm6, %v4863_v24  ;;  %12283 = vmatmul.msk.bf16.gmra.mxu1 %vm82_vm6, %v5801_v48  ;;  %v5808_v24 = vrot.slane %v5806_v11, 1  ;;  %v5275_v50 = vsel %vm1454_vm3, %v5265_v0, %v5274_v37  ;;  %v4867_v58 = vsel %vm1115_vm1, %v4862_v14, %v4866_v38  ;;  %v16873_v0 = vld [vmem:[#allocation2 + $0x78] sm:$0xff] }
 0x4c4   : > { %v4675_v47 = vpop.f32.mrf.mxu2  ;;  %6775 = vmatpush.bf16.msra.mxu3 %v13206_v20 }
 0x4c5   : > { %v4758_v12 = vadd.f32 %v4675_v47, %v16649_v26  ;;  %v14027_v26 = vld [vmem:[#allocation2 + $0x70] sm:$0xff]   ;;  %v5809_v21 = vsel %vm1997_vm4, %v5804_v62, %v5808_v24 }
 0x4c6   : > { %v5003_v25 = vpop.f32.mrf.mxu3  ;;  %v5437_v22 = vpop.f32.mrf.mxu0  ;;  %v4553_v41 = vrot.slane %v14027_v26, 2  ;;  %v13921_v47 = vld [vmem:[#allocation2 + $0x74] sm:$0xff]  }
 0x4c7   : > { %v5086_v29 = vadd.f32 %v5003_v25, %v4758_v12  ;;  %v5522_v40 = vadd.f32 %v5437_v22, %v5085_v63 }
 0x4c8   : > { %v5965_v30 = vpop.f32.mrf.mxu1  ;;  %v4554_v39 = vsel %vm845_vm2, %v4551_v60, %v4553_v41  ;;  %v5280_v60 = vshll.u32 %v13921_v47, 16 }
 0x4c9   : > { %v16858_v53 = vadd.f32 %v5965_v30, %v5522_v40  ;;  %v20041_v30 = vshll.u32 %v16435_v13, 16 }
 0x4ca   : > { %v5282_v19 = vrot.slane %v5280_v60, 4  ;;  %v13923_v60 = vld [vmem:[#allocation2 + $0x7c] sm:$0xff]  }
 0x4cb   : > { %v4869_v31 = vrot.slane %v20041_v30, 3 }
 0x4cc   : > { %v4677_v15 = vpop.f32.mrf.mxu2 }
 0x4cd   : > { %v4759_v48 = vadd.f32 %v4677_v15, %v16663_v51  ;;  %v5277_v51 = vshrl.u32 %v13921_v47, 16 }
 0x4ce   : > { %v5005_v28 = vpop.f32.mrf.mxu3  ;;  %v5440_v63 = vpop.f32.mrf.mxu0 }
 0x4cf   : > { %v5087_v12 = vadd.f32 %v5005_v28, %v4759_v48  ;;  %v5523_v25 = vadd.f32 %v5440_v63, %v5086_v29  ;;  %v20040_v29 = vshrl.u32 %v16435_v13, 16  ;;  %v5279_v11 = vrot.slane %v5277_v51, 3  ;;  %v13210_v63 = vld [vmem:[%s16319_s16 + $0x100] sm:$0xff] }
 0x4d0   : > { %v5968_v22 = vpop.f32.mrf.mxu1  ;;  %v5810_v48 = vshrl.u32 %v16850_v2, 16  ;;  %v5814_v28 = vshll.u32 %v16873_v0, 16  ;;  %7103 = vmatpush.bf16.msra.mxu0 %v13210_v63 }
 0x4d1   : > { %v16867_v6 = vadd.f32 %v5968_v22, %v5523_v25  ;;  %12077 = vmatmul.msk.bf16.gmra.mxu2 %vm82_vm6, %v4554_v39  ;;  %12164 = vmatmul.msk.bf16.gmra.mxu0 %vm82_vm6, %v5275_v50  ;;  %v4868_v40 = vrot.slane %v20040_v29, 2  ;;  %v5283_v47 = vor.u32 %v5282_v19, %v5279_v11  ;;  %v20042_v19 = vshrl.u32 %v16461_v59, 16 }
 0x4d2   : > { %v5812_v13 = vor.u32 %v5810_v48, %v5808_v24  ;;  %v5816_v22 = vrot.slane %v5814_v28, 1 }
 0x4d3   : > { %12121 = vmatmul.msk.bf16.gmra.mxu3 %vm82_vm6, %v4867_v58  ;;  %12284 = vmatmul.msk.bf16.gmra.mxu1 %vm82_vm6, %v5809_v21  ;;  %v4870_v25 = vor.u32 %v4869_v31, %v4868_v40  ;;  %v5284_v51 = vsel %vm1454_vm3, %v5274_v37, %v5283_v47  ;;  %v13221_v40 = vld [vmem:[%s16784_s19 + $0x10] sm:$0xff]  ;;  %v13176_v37 = vld [vmem:[#allocation2 + $0x80] sm:$0xff] }
 0x4d4   : > { %v4680_v14 = vpop.f32.mrf.mxu2  ;;  %v5817_v29 = vsel %vm1997_vm4, %v5812_v13, %v5816_v22  ;;  %7938 = vmatpush.bf16.msra.mxu1 %v13221_v40 }
 0x4d5   : > { %v4760_v42 = vadd.f32 %v4680_v14, %v16673_v8  ;;  %v14028_v8 = vld [vmem:[#allocation2 + $0x78] sm:$0xff]  }
 0x4d6   : > { %v5008_v33 = vpop.f32.mrf.mxu3  ;;  %v5442_v1 = vpop.f32.mrf.mxu0  ;;  %v4555_v50 = vrot.slane %v14028_v8, 2 }
 0x4d7   : > { %v5088_v26 = vadd.f32 %v5008_v33, %v4760_v42  ;;  %v5524_v62 = vadd.f32 %v5442_v1, %v5087_v12  ;;  %v4871_v1 = vsel %vm1115_vm1, %v4866_v38, %v4870_v25 }
 0x4d8   : > { %v5970_v15 = vpop.f32.mrf.mxu1  ;;  %v4556_v2 = vsel %vm845_vm2, %v4553_v41, %v4555_v50  ;;  %v5289_v41 = vshll.u32 %v13923_v60, 16 }
 0x4d9   : > { %v16883_v39 = vadd.f32 %v5970_v15, %v5524_v62  ;;  %v20043_v62 = vshll.u32 %v16461_v59, 16 }
 0x4da   : > { %v5291_v28 = vrot.slane %v5289_v41, 4 }
 0x4db   : > { %v4873_v15 = vrot.slane %v20043_v62, 3  ;;  %v20044_v62 = vshrl.u32 %v16485_v4, 16 }
 0x4dc   : > { %v4682_v58 = vpop.f32.mrf.mxu2 }
 0x4dd   : > { %v4761_v21 = vadd.f32 %v4682_v58, %v16685_v44  ;;  %v5286_v44 = vshrl.u32 %v13923_v60, 16  ;;  %v5818_v58 = vshrl.u32 %v16873_v0, 16 }
 0x4de   : > { %v5010_v12 = vpop.f32.mrf.mxu3  ;;  %v5445_v20 = vpop.f32.mrf.mxu0 }
 0x4df   : > { %v5089_v14 = vadd.f32 %v5010_v12, %v4761_v21  ;;  %v5525_v42 = vadd.f32 %v5445_v20, %v5088_v26  ;;  %v4872_v26 = vrot.slane %v20042_v19, 2  ;;  %v5288_v48 = vrot.slane %v5286_v44, 3  ;;  %v14029_v20 = vld [vmem:[#allocation2 + $0x80] sm:$0xff]  }
 0x4e0   : > { %v5973_v33 = vpop.f32.mrf.mxu1  ;;  %v5822_v21 = vshll.u32 %v13176_v37, 16  ;;  %v5820_v60 = vor.u32 %v5818_v58, %v5816_v22  ;;  %v13925_v44 = vld [vmem:[#allocation2 + $0x84] sm:$0xff]  }
 0x4e1   : > { %v16891_v24 = vadd.f32 %v5973_v33, %v5525_v42  ;;  %12078 = vmatmul.msk.bf16.gmra.mxu2 %vm82_vm6, %v4556_v2  ;;  %12165 = vmatmul.msk.bf16.gmra.mxu0 %vm82_vm6, %v5284_v51  ;;  %v5292_v2 = vor.u32 %v5291_v28, %v5288_v48  ;;  %v4874_v51 = vor.u32 %v4873_v15, %v4872_v26  ;;  %v4876_v15 = vrot.slane %v20044_v62, 2 }
 0x4e2   : > { %v5824_v42 = vrot.slane %v5822_v21, 1  ;;  %v20045_v48 = vshll.u32 %v16485_v4, 16 }
 0x4e3   : > { %12122 = vmatmul.msk.bf16.gmra.mxu3 %vm82_vm6, %v4871_v1  ;;  %12285 = vmatmul.msk.bf16.gmra.mxu1 %vm82_vm6, %v5817_v29 }
 0x4e4   : > { %v4685_v30 = vpop.f32.mrf.mxu2  ;;  %v4877_v28 = vrot.slane %v20045_v48, 3 }
 0x4e5   : > { %v4762_v38 = vadd.f32 %v4685_v30, %v16694_v45  ;;  %v4557_v45 = vrot.slane %v14029_v20, 2  ;;  %v5826_v20 = vshrl.u32 %v13176_v37, 16 }
 0x4e6   : > { %v5013_v31 = vpop.f32.mrf.mxu3  ;;  %v5447_v11 = vpop.f32.mrf.mxu0 }
 0x4e7   : > { %v5090_v63 = vadd.f32 %v5013_v31, %v4762_v38  ;;  %v5526_v8 = vadd.f32 %v5447_v11, %v5089_v14  ;;  %v4558_v40 = vsel %vm845_vm2, %v4555_v50, %v4557_v45  ;;  %v5293_v14 = vsel %vm1454_vm3, %v5283_v47, %v5292_v2  ;;  %v13177_v47 = vld [vmem:[#allocation2 + $0x88] sm:$0xff] }
 0x4e8   : > { %v5975_v13 = vpop.f32.mrf.mxu1  ;;  %v4875_v38 = vsel %vm1115_vm1, %v4870_v25, %v4874_v51  ;;  %v5825_v31 = vsel %vm1997_vm4, %v5820_v60, %v5824_v42  ;;  %v5298_v50 = vshll.u32 %v13925_v44, 16  ;;  %v5830_v60 = vshll.u32 %v13177_v47, 16 }
 0x4e9   : > { %v16903_v12 = vadd.f32 %v5975_v13, %v5526_v8 }
 0x4ea   : > { %v5300_v8 = vrot.slane %v5298_v50, 4 }
 0x4ec   : > { %v4687_v33 = vpop.f32.mrf.mxu2 }
 0x4ed   : > { %v4763_v59 = vadd.f32 %v4687_v33, %v16706_v57  ;;  %v5295_v57 = vshrl.u32 %v13925_v44, 16 }
 0x4ee   : > { %v5015_v1 = vpop.f32.mrf.mxu3  ;;  %v5450_v29 = vpop.f32.mrf.mxu0 }
 0x4ef   : > { %v5091_v0 = vadd.f32 %v5015_v1, %v4763_v59  ;;  %v5527_v41 = vadd.f32 %v5450_v29, %v5090_v63  ;;  %v5297_v63 = vrot.slane %v5295_v57, 3  ;;  %v14030_v59 = vld [vmem:[#allocation2 + $0x88] sm:$0xff]   ;;  %v4878_v29 = vor.u32 %v4877_v28, %v4876_v15 }
 0x4f0   : > { %v5978_v30 = vpop.f32.mrf.mxu1  ;;  %v4559_v1 = vrot.slane %v14030_v59, 2  ;;  %v20046_v15 = vshrl.u32 %v16512_v49, 16  ;;  %v20047_v28 = vshll.u32 %v16512_v49, 16 }
 0x4f1   : > { %v16910_v11 = vadd.f32 %v5978_v30, %v5527_v41  ;;  %12079 = vmatmul.msk.bf16.gmra.mxu2 %vm82_vm6, %v4558_v40  ;;  %12166 = vmatmul.msk.bf16.gmra.mxu0 %vm82_vm6, %v5293_v14  ;;  %v5828_v40 = vor.u32 %v5826_v20, %v5824_v42  ;;  %v5832_v14 = vrot.slane %v5830_v60, 1  ;;  %v5834_v60 = vshrl.u32 %v13177_v47, 16 }
 0x4f2   : > { %v4880_v48 = vrot.slane %v20046_v15, 2  ;;  %v16960_v15 = vld [vmem:[#allocation2 + $0x98] sm:$0xff] }
 0x4f3   : > { %12123 = vmatmul.msk.bf16.gmra.mxu3 %vm82_vm6, %v4875_v38  ;;  %12286 = vmatmul.msk.bf16.gmra.mxu1 %vm82_vm6, %v5825_v31  ;;  %v4560_v38 = vsel %vm845_vm2, %v4557_v45, %v4559_v1  ;;  %v13927_v31 = vld [vmem:[#allocation2 + $0x8c] sm:$0xff]   ;;  %v5836_v49 = vor.u32 %v5834_v60, %v5832_v14 }
 0x4f4   : > { %v4690_v22 = vpop.f32.mrf.mxu2  ;;  %v5307_v45 = vshll.u32 %v13927_v31, 16 }
 0x4f5   : > { %v4764_v19 = vadd.f32 %v4690_v22, %v16715_v9  ;;  %v5301_v9 = vor.u32 %v5300_v8, %v5297_v63  ;;  %v4879_v22 = vsel %vm1115_vm1, %v4874_v51, %v4878_v29  ;;  %v4881_v63 = vrot.slane %v20047_v28, 3 }
 0x4f6   : > { %v5018_v26 = vpop.f32.mrf.mxu3  ;;  %v5452_v25 = vpop.f32.mrf.mxu0 }
 0x4f7   : > { %v5092_v13 = vadd.f32 %v5018_v26, %v4764_v19  ;;  %v5528_v58 = vadd.f32 %v5452_v25, %v5091_v0  ;;  %v5302_v0 = vsel %vm1454_vm3, %v5292_v2, %v5301_v9  ;;  %v5833_v19 = vsel %vm1997_vm4, %v5828_v40, %v5832_v14  ;;  %v16934_v2 = vld [vmem:[#allocation2 + $0x90] sm:$0xff]  ;;  %v4788_v40 = vld [vmem:[#allocation2 + $0x98] sm:$0x7] }
 0x4f8   : > { %v5980_v21 = vpop.f32.mrf.mxu1  ;;  %v5838_v59 = vshll.u32 %v16934_v2, 16 }
 0x4f9   : > { %v16921_v33 = vadd.f32 %v5980_v21, %v5528_v58 }
 0x4fc   : > { %v4692_v44 = vpop.f32.mrf.mxu2 }
 0x4fd   : > { %v4765_v41 = vadd.f32 %v4692_v44, %v16727_v7  ;;  %v5304_v7 = vshrl.u32 %v13927_v31, 16 }
 0x4fe   : > { %v5020_v4 = vpop.f32.mrf.mxu3  ;;  %v5455_v30 = vpop.f32.mrf.mxu0 }
 0x4ff   : > { %v5093_v37 = vadd.f32 %v5020_v4, %v4765_v41  ;;  %v5529_v57 = vadd.f32 %v5455_v30, %v5092_v13  ;;  %v5306_v8 = vrot.slane %v5304_v7, 3  ;;  %v5309_v13 = vrot.slane %v5307_v45, 4 }
 0x500   : > { %v5983_v50 = vpop.f32.mrf.mxu1  ;;  %v4802_v4 = vunpack.c.l.b16 %v4788_v40  ;;  %v4882_v30 = vor.u32 %v4881_v63, %v4880_v48 }
 0x501   : > { %v16928_v26 = vadd.f32 %v5983_v50, %v5529_v57  ;;  %12080 = vmatmul.msk.bf16.gmra.mxu2 %vm82_vm6, %v4560_v38  ;;  %12167 = vmatmul.msk.bf16.gmra.mxu0 %vm82_vm6, %v5302_v0  ;;  %v5310_v41 = vor.u32 %v5309_v13, %v5306_v8  ;;  %v5840_v38 = vrot.slane %v5838_v59, 1 }
 0x503   : > { %12124 = vmatmul.msk.bf16.gmra.mxu3 %vm82_vm6, %v4879_v22  ;;  %12287 = vmatmul.msk.bf16.gmra.mxu1 %vm82_vm6, %v5833_v19  ;;  %v5311_v47 = vsel %vm1454_vm3, %v5301_v9, %v5310_v41  ;;  %v4803_v22 = vpack.c.b16 %v4802_v4, %v4802_v4  ;;  %v13928_v19 = vld [vmem:[#allocation2 + $0x94] sm:$0xff]   ;;  %v5842_v4 = vshrl.u32 %v16934_v2, 16 }
 0x504   : > { %v4695_v42 = vpop.f32.mrf.mxu2  ;;  %v5313_v9 = vshrl.u32 %v13928_v19, 16 }
 0x505   : > { %v4766_v25 = vadd.f32 %v4695_v42, %v16736_v54  ;;  %v16946_v54 = vld [vmem:[#allocation2 + $0x90] sm:$0xff]  }
 0x506   : > { %v5023_v51 = vpop.f32.mrf.mxu3  ;;  %v5457_v62 = vpop.f32.mrf.mxu0  ;;  %v4561_v44 = vrot.slane %v16946_v54, 2 }
 0x507   : > { %v5094_v58 = vadd.f32 %v5023_v51, %v4766_v25  ;;  %v16941_v21 = vadd.f32 %v5457_v62, %v5093_v37  ;;  %v4883_v25 = vsel %vm1115_vm1, %v4878_v29, %v4882_v30  ;;  %v5841_v51 = vsel %vm1997_vm4, %v5836_v49, %v5840_v38 }
 0x508   : > { %v16943_v20 = vpop.f32.mrf.mxu1  ;;  %v4562_v50 = vsel %vm845_vm2, %v4559_v1, %v4561_v44  ;;  %v4888_v1 = vshll.u32 %v4803_v22, 16  ;;  %v5316_v62 = vshll.u32 %v13928_v19, 16  ;;  %v5846_v49 = vshll.u32 %v16960_v15, 16 }
 0x50a   : > { %v4890_v13 = vrot.slane %v4888_v1, 3  ;;  %v5318_v60 = vrot.slane %v5316_v62, 4  ;;  %v16973_v1 = vld [vmem:[#allocation2 + $0x14] sm:$0xff] }
 0x50c   : > { %v4697_v0 = vpop.f32.mrf.mxu2 }
 0x50d   : > { %v4767_v31 = vadd.f32 %v4697_v0, %v16748_v3  ;;  %v4885_v3 = vshrl.u32 %v4803_v22, 16  ;;  %v6081_v0 = vld [vmem:[#allocation2 + $0xc] sm:$0xe] }
 0x50e   : > { %v5025_v37 = vpop.f32.mrf.mxu3  ;;  %v5460_v57 = vpop.f32.mrf.mxu0  ;;  %v6171_v22 = vunpack.c.l.b16 %v6081_v0 }
 0x50f   : > { %v5095_v7 = vadd.f32 %v5025_v37, %v4767_v31  ;;  %v5531_v45 = vadd.f32 %v5460_v57, %v5094_v58  ;;  %v4887_v8 = vrot.slane %v4885_v3, 2  ;;  %v5315_v58 = vrot.slane %v5313_v9, 3  ;;  %v6082_v31 = vld [vmem:[#allocation2 + $0x10] sm:$0xf] }
 0x510   : > { %v5988_v42 = vpop.f32.mrf.mxu1  ;;  %v4563_v37 = vrot.slane %v16534_v10, 2  ;;  %v6172_v19 = vunpack.c.l.b16 %v6082_v31 }
 0x511   : > { %v16954_v14 = vadd.f32 %v5988_v42, %v5531_v45  ;;  %12081 = vmatmul.msk.bf16.gmra.mxu2 %vm82_vm6, %v4562_v50  ;;  %12168 = vmatmul.msk.bf16.gmra.mxu0 %vm82_vm6, %v5311_v47  ;;  %v4891_v50 = vor.u32 %v4890_v13, %v4887_v8  ;;  %v16970_v47 = vor.u32 %v5318_v60, %v5315_v58  ;;  %v6632_v13 = vld [vmem:[#allocation2 + $0xc] sm:$0xc] }
 0x512   : > { %v5844_v45 = vor.u32 %v5842_v4, %v5840_v38  ;;  %v4564_v10 = vsel %vm845_vm2, %v4561_v44, %v4563_v37  ;;  %v6242_v4 = vshll.u32 %v16973_v1, 16 }
 0x513   : > { %12125 = vmatmul.msk.bf16.gmra.mxu3 %vm82_vm6, %v4883_v25  ;;  %12288 = vmatmul.msk.bf16.gmra.mxu1 %vm82_vm6, %v5841_v51  ;;  %v5591_v25 = vld [vmem:[#allocation2 + $0xa0] sm:$0x1]  ;;  %v4892_v62 = vsel %vm1115_vm1, %v4882_v30, %v4891_v50  ;;  %v6239_v30 = vshrl.u32 %v16973_v1, 16 }
 0x514   : > { %v4700_v48 = vpop.f32.mrf.mxu2 }
 0x515   : > { %v4768_v29 = vadd.f32 %v4700_v48, %v16758_v43  ;;  %v14032_v43 = vld [vmem:[#allocation2 + $0x98] sm:$0xff]   ;;  %v5320_v48 = vsel %vm1454_vm3, %v5310_v41, %v16970_v47 }
 0x516   : > { %v5028_v28 = vpop.f32.mrf.mxu3  ;;  %v5462_v63 = vpop.f32.mrf.mxu0  ;;  %v13439_v57 = vunpack.c.h.b16 %v14032_v43 }
 0x517   : > { %v5096_v59 = vadd.f32 %v5028_v28, %v4768_v29  ;;  %v16963_v40 = vadd.f32 %v5462_v63, %v5095_v7  ;;  %v5848_v7 = vrot.slane %v5846_v49, 1  ;;  %v6210_v29 = vpack.c.b16 %v6172_v19, %v6171_v22 }
 0x518   : > { %v16965_v54 = vpop.f32.mrf.mxu1  ;;  %v5150_v3 = vpack.c.b16 %v13439_v57, %v13439_v57  ;;  %v6646_v49 = vunpack.c.l.b16 %v6632_v13  ;;  %v6241_v22 = vrot.slane %v6239_v30, 1  ;;  %v6649_v13 = vrot.slane %v16973_v1, 2 }
 0x519   : > { %v5849_v8 = vsel %vm1997_vm4, %v5844_v45, %v5848_v7  ;;  %v6231_v41 = vshrl.u32 %v6210_v29, 16 }
 0x51a   : > { %v5322_v44 = vshrl.u32 %v5150_v3, 16  ;;  %v5325_v60 = vshll.u32 %v5150_v3, 16 }
 0x51c   : > { %v4702_v42 = vpop.f32.mrf.mxu2  ;;  %v5324_v57 = vrot.slane %v5322_v44, 3  ;;  %v5327_v50 = vrot.slane %v5325_v60, 4 }
 0x51d   : > { %v4769_v51 = vadd.f32 %v4702_v42, %v16773_v18  ;;  %v5681_v18 = vunpack.c.l.b16 %v5591_v25  ;;  %v6233_v42 = vrot.slane %v6231_v41, 1  ;;  %v16997_v41 = vld [vmem:[#allocation2 + $0x1c] sm:$0xff] }
 0x51e   : > { %v5030_v2 = vpop.f32.mrf.mxu3  ;;  %v5465_v9 = vpop.f32.mrf.mxu0 }
 0x51f   : > { %v5097_v28 = vadd.f32 %v5030_v2, %v4769_v51  ;;  %v5533_v38 = vadd.f32 %v5465_v9, %v5096_v59  ;;  %v6234_v59 = vshll.u32 %v6210_v29, 16  ;;  %v5701_v0 = vpack.c.b16 %v5681_v18, %v5681_v18  ;;  %v13220_v29 = vld [vmem:[%s16784_s19 + $0x8] sm:$0xff] }
 0x520   : > { %v5993_v63 = vpop.f32.mrf.mxu1  ;;  %v6244_v51 = vrot.slane %v6242_v4, 2  ;;  %v6647_v2 = vpack.c.b16 %v6172_v19, %v6646_v49  ;;  %7939 = vmatpush.bf16.msra.mxu1 %v13220_v29  ;;  %v6934_v29 = vrot.slane %v6239_v30, 2 }
 0x521   : > { %v16980_v58 = vadd.f32 %v5993_v63, %v5533_v38  ;;  %12082 = vmatmul.msk.bf16.gmra.mxu2 %vm82_vm6, %v4564_v10  ;;  %12169 = vmatmul.msk.bf16.gmra.mxu0 %vm82_vm6, %v5320_v48  ;;  %v6236_v25 = vrot.slane %v6234_v59, 2  ;;  %v5854_v48 = vshll.u32 %v5701_v0, 16  ;;  %v5328_v38 = vor.u32 %v5327_v50, %v5324_v57 }
 0x522   : > { %v6245_v63 = vor.u32 %v6244_v51, %v6241_v22  ;;  %v6251_v57 = vshll.u32 %v16997_v41, 16  ;;  %v6930_v50 = vshll.u32 %v6647_v2, 16 }
 0x523   : > { %12126 = vmatmul.msk.bf16.gmra.mxu3 %vm82_vm6, %v4892_v62  ;;  %12289 = vmatmul.msk.bf16.gmra.mxu1 %vm82_vm6, %v5849_v8  ;;  %v5850_v62 = vshrl.u32 %v16960_v15, 16  ;;  %v6648_v8 = vrot.slane %v6647_v2, 2  ;;  %v5856_v44 = vrot.slane %v5854_v48, 1  ;;  %v5329_v15 = vsel %vm1454_vm3, %v16970_v47, %v5328_v38 }
 0x524   : > { %v4705_v31 = vpop.f32.mrf.mxu2  ;;  %v6927_v47 = vshrl.u32 %v6647_v2, 16  ;;  %v6253_v51 = vrot.slane %v6251_v57, 2  ;;  %v6932_v48 = vrot.slane %v6930_v50, 3  ;;  %v6935_v38 = vrot.slane %v6242_v4, 3 }
 0x525   : > { %v4770_v37 = vadd.f32 %v4705_v31, %v16570_v46  ;;  %v6237_v46 = vor.u32 %v6236_v25, %v6233_v42  ;;  %v5852_v18 = vor.u32 %v5850_v62, %v5848_v7  ;;  %v6650_v1 = vsel %vm845_vm2, %v6648_v8, %v6649_v13 }
 0x526   : > { %v5033_v43 = vpop.f32.mrf.mxu3  ;;  %v5467_v45 = vpop.f32.mrf.mxu0  ;;  %v6929_v62 = vrot.slane %v6927_v47, 2  ;;  %v6936_v2 = vor.u32 %v6935_v38, %v6934_v29 }
 0x527   : > { %v5098_v3 = vadd.f32 %v5033_v43, %v4770_v37  ;;  %v16989_v9 = vadd.f32 %v5467_v45, %v5097_v28  ;;  %v6246_v49 = vsel %vm297_vm0, %v6237_v46, %v6245_v63  ;;  %v5857_v7 = vsel %vm1997_vm4, %v5852_v18, %v5856_v44 }
 0x528   : > { %v16991_v10 = vpop.f32.mrf.mxu1 }
 0x52c   : > { %v4707_v60 = vpop.f32.mrf.mxu2 }
 0x52d   : > { %v4771_v19 = vadd.f32 %v4707_v60, %v16579_v35  ;;  %v6248_v35 = vshrl.u32 %v16997_v41, 16  ;;  %v6933_v60 = vor.u32 %v6932_v48, %v6929_v62 }
 0x52e   : > { %v5035_v28 = vpop.f32.mrf.mxu3  ;;  %v5470_v59 = vpop.f32.mrf.mxu0 }
 0x52f   : > { %v5099_v0 = vadd.f32 %v5035_v28, %v4771_v19  ;;  %v5535_v31 = vadd.f32 %v5470_v59, %v5098_v3  ;;  %v6250_v25 = vrot.slane %v6248_v35, 1  ;;  %v6651_v19 = vrot.slane %v16997_v41, 2 }
 0x530   : > { %v5998_v37 = vpop.f32.mrf.mxu1  ;;  %v6937_v4 = vsel %vm1115_vm1, %v6933_v60, %v6936_v2 }
 0x531   : > { %v17004_v43 = vadd.f32 %v5998_v37, %v5535_v31  ;;  %12170 = vmatmul.msk.bf16.gmra.mxu0 %vm82_vm6, %v5329_v15  ;;  %12388 = vmatmul.msk.bf16.vlgmr.msra.gmra.mxu2 %vm82_vm6, %v6246_v49  ;;  %v6254_v44 = vor.u32 %v6253_v51, %v6250_v25  ;;  %v17021_v49 = vld [vmem:[#allocation2 + $0x24] sm:$0xff]  ;;  %v6939_v25 = vrot.slane %v6251_v57, 3 }
 0x532   : > { %v6653_v38 = vrot.slane %v17021_v49, 2 }
 0x533   : > { %12432 = vmatmul.msk.bf16.vlgmr.msra.gmra.mxu3 %vm82_vm6, %v6650_v1  ;;  %12290 = vmatmul.msk.bf16.gmra.mxu1 %vm82_vm6, %v5857_v7  ;;  %v6255_v30 = vsel %vm297_vm0, %v6245_v63, %v6254_v44  ;;  %v6652_v1 = vsel %vm845_vm2, %v6649_v13, %v6651_v19  ;;  %v6260_v63 = vshll.u32 %v17021_v49, 16 }
 0x534   : > { %v4710_v22 = vpop.f32.mrf.mxu2 }
 0x535   : > { %v4772_v45 = vadd.f32 %v4710_v22, %v16594_v56 }
 0x536   : > { %v5038_v42 = vpop.f32.mrf.mxu3  ;;  %v5472_v3 = vpop.f32.mrf.mxu0 }
 0x537   : > { %v5100_v46 = vadd.f32 %v5038_v42, %v4772_v45  ;;  %v17013_v8 = vadd.f32 %v5472_v3, %v5099_v0  ;;  %v6262_v45 = vrot.slane %v6260_v63, 2  ;;  %v6938_v42 = vrot.slane %v6248_v35, 2  ;;  %v17052_v35 = vld [vmem:[#allocation2 + $0x2c] sm:$0xff] }
 0x538   : > { %v17015_v18 = vpop.f32.mrf.mxu1 }
 0x539   : > { %v6940_v29 = vor.u32 %v6939_v25, %v6938_v42  ;;  %v6655_v25 = vrot.slane %v17052_v35, 2 }
 0x53c   : > { %v4712_v56 = vpop.f32.mrf.mxu2 }
 0x53d   : > { %v4773_v28 = vadd.f32 %v4712_v56, %v16601_v34  ;;  %v6257_v34 = vshrl.u32 %v17021_v49, 16 }
 0x53e   : > { %v5040_v59 = vpop.f32.mrf.mxu3  ;;  %v5475_v15 = vpop.f32.mrf.mxu0 }
 0x53f   : > { %v5101_v0 = vadd.f32 %v5040_v59, %v4773_v28  ;;  %v5537_v31 = vadd.f32 %v5475_v15, %v5100_v46  ;;  %v6259_v22 = vrot.slane %v6257_v34, 1  ;;  %v6941_v59 = vsel %vm1115_vm1, %v6936_v2, %v6940_v29 }
 0x540   : > { %v6003_v37 = vpop.f32.mrf.mxu1 }
 0x541   : > { %v17030_v41 = vadd.f32 %v6003_v37, %v5537_v31  ;;  %12389 = vmatmul.msk.bf16.gmra.mxu2 %vm82_vm6, %v6255_v30  ;;  %12476 = vmatmul.msk.bf16.vlgmr.msra.gmra.mxu0 %vm82_vm6, %v6937_v4  ;;  %v6263_v48 = vor.u32 %v6262_v45, %v6259_v22  ;;  %v6654_v4 = vsel %vm845_vm2, %v6651_v19, %v6653_v38  ;;  %v6942_v19 = vrot.slane %v6257_v34, 2  ;;  %v17071_v34 = vld [vmem:[#allocation2 + $0x34] sm:$0xff] }
 0x543   : > { %12433 = vmatmul.msk.bf16.gmra.mxu3 %vm82_vm6, %v6652_v1  ;;  %v6264_v28 = vsel %vm297_vm0, %v6254_v44, %v6263_v48  ;;  %v6269_v44 = vshll.u32 %v17052_v35, 16 }
 0x544   : > { %v4715_v13 = vpop.f32.mrf.mxu2 }
 0x545   : > { %v4774_v7 = vadd.f32 %v4715_v13, %v16613_v5  ;;  %v6271_v13 = vrot.slane %v6269_v44, 2 }
 0x546   : > { %v5043_v47 = vpop.f32.mrf.mxu3  ;;  %v5477_v50 = vpop.f32.mrf.mxu0 }
 0x547   : > { %v5102_v51 = vadd.f32 %v5043_v47, %v4774_v7  ;;  %v17044_v3 = vadd.f32 %v5477_v50, %v5101_v0  ;;  %v6943_v7 = vrot.slane %v6260_v63, 3 }
 0x548   : > { %v17046_v62 = vpop.f32.mrf.mxu1 }
 0x549   : > { %v6944_v42 = vor.u32 %v6943_v7, %v6942_v19 }
 0x54c   : > { %v4717_v46 = vpop.f32.mrf.mxu2 }
 0x54d   : > { %v4775_v60 = vadd.f32 %v4717_v46, %v16622_v27  ;;  %v6266_v27 = vshrl.u32 %v17052_v35, 16  ;;  %v20048_v35 = vld [vmem:[#allocation12_spill] sm:$0xff] }
 0x54e   : > { %v5045_v56 = vpop.f32.mrf.mxu3  ;;  %v5480_v5 = vpop.f32.mrf.mxu0 }
 0x54f   : > { %v5103_v57 = vadd.f32 %v5045_v56, %v4775_v60  ;;  %v5539_v15 = vadd.f32 %v5480_v5, %v5102_v51  ;;  %v6268_v1 = vrot.slane %v6266_v27, 1  ;;  %v6945_v5 = vsel %vm1115_vm1, %v6940_v29, %v6944_v42 }
 0x550   : > { %v6008_v30 = vpop.f32.mrf.mxu1 }
 0x551   : > { %v17055_v0 = vadd.f32 %v6008_v30, %v5539_v15  ;;  %12390 = vmatmul.msk.bf16.gmra.mxu2 %vm82_vm6, %v6264_v28  ;;  %12477 = vmatmul.msk.bf16.gmra.mxu0 %vm82_vm6, %v6941_v59  ;;  %v6272_v45 = vor.u32 %v6271_v13, %v6268_v1 }
 0x553   : > { %12434 = vmatmul.msk.bf16.gmra.mxu3 %vm82_vm6, %v6654_v4  ;;  %v6273_v56 = vsel %vm297_vm0, %v6263_v48, %v6272_v45  ;;  %v6278_v48 = vshll.u32 %v17071_v34, 16 }
 0x554   : > { %v4720_v2 = vpop.f32.mrf.mxu2 }
 0x555   : > { %v4776_v49 = vadd.f32 %v4720_v2, %v16634_v36 }
 0x556   : > { %v5048_v31 = vpop.f32.mrf.mxu3  ;;  %v5482_v37 = vpop.f32.mrf.mxu0 }
 0x557   : > { %v5104_v47 = vadd.f32 %v5048_v31, %v4776_v49  ;;  %v17063_v50 = vadd.f32 %v5482_v37, %v5103_v57  ;;  %v6656_v57 = vsel %vm845_vm2, %v6653_v38, %v6655_v25  ;;  %v6280_v31 = vrot.slane %v6278_v48, 2 }
 0x558   : > { %v17065_v22 = vpop.f32.mrf.mxu1  ;;  %v6946_v38 = vrot.slane %v6266_v27, 2  ;;  %v6947_v37 = vrot.slane %v6269_v44, 3  ;;  %v17090_v27 = vld [vmem:[#allocation2 + $0x3c] sm:$0xff] }
 0x55c   : > { %v4722_v51 = vpop.f32.mrf.mxu2 }
 0x55d   : > { %v4777_v46 = vadd.f32 %v4722_v51, %v16643_v17  ;;  %v6275_v17 = vshrl.u32 %v17071_v34, 16  ;;  %v6657_v51 = vrot.slane %v17071_v34, 2 }
 0x55e   : > { %v5050_v60 = vpop.f32.mrf.mxu3  ;;  %v5485_v36 = vpop.f32.mrf.mxu0 }
 0x55f   : > { %v5105_v63 = vadd.f32 %v5050_v60, %v4777_v46  ;;  %v5541_v28 = vadd.f32 %v5485_v36, %v5104_v47  ;;  %v6277_v49 = vrot.slane %v6275_v17, 1  ;;  %v6948_v47 = vor.u32 %v6947_v37, %v6946_v38  ;;  %v20051_v60 = vld [vmem:[#allocation13_spill] sm:$0xff] }
 0x560   : > { %v6013_v59 = vpop.f32.mrf.mxu1  ;;  %v6950_v38 = vrot.slane %v6275_v17, 2  ;;  %v6951_v37 = vrot.slane %v6278_v48, 3  ;;  %v17110_v48 = vld [vmem:[#allocation2 + $0x44] sm:$0xff] }
 0x561   : > { %v17074_v15 = vadd.f32 %v6013_v59, %v5541_v28  ;;  %12391 = vmatmul.msk.bf16.gmra.mxu2 %vm82_vm6, %v6273_v56  ;;  %12478 = vmatmul.msk.bf16.gmra.mxu0 %vm82_vm6, %v6945_v5  ;;  %v6281_v7 = vor.u32 %v6280_v31, %v6277_v49  ;;  %v6949_v59 = vsel %vm1115_vm1, %v6944_v42, %v6948_v47  ;;  %v6287_v42 = vshll.u32 %v17090_v27, 16 }
 0x563   : > { %12435 = vmatmul.msk.bf16.gmra.mxu3 %vm82_vm6, %v6656_v57  ;;  %v6282_v28 = vsel %vm297_vm0, %v6272_v45, %v6281_v7  ;;  %v6284_v45 = vshrl.u32 %v17090_v27, 16 }
 0x564   : > { %v4725_v29 = vpop.f32.mrf.mxu2 }
 0x565   : > { %v4778_v30 = vadd.f32 %v4725_v29, %v20048_v35  ;;  %v6658_v29 = vsel %vm845_vm2, %v6655_v25, %v6657_v51  ;;  %v6286_v31 = vrot.slane %v6284_v45, 1  ;;  %v6289_v25 = vrot.slane %v6287_v42, 2 }
 0x566   : > { %v5053_v4 = vpop.f32.mrf.mxu3  ;;  %v5487_v2 = vpop.f32.mrf.mxu0 }
 0x567   : > { %v5106_v1 = vadd.f32 %v5053_v4, %v4778_v30  ;;  %v17082_v13 = vadd.f32 %v5487_v2, %v5105_v63  ;;  %v20053_v30 = vld [vmem:[#allocation14_spill] sm:$0xff] }
 0x568   : > { %v17084_v19 = vpop.f32.mrf.mxu1 }
 0x569   : > { %20049 = vst [vmem:[#allocation12_spill] sm:$0xff] %v17082_v13 }
 0x56a   : > { %20050 = vst [vmem:[#allocation23_spill] sm:$0xff] %v17084_v19 }
 0x56c   : > { %v4727_v46 = vpop.f32.mrf.mxu2 }
 0x56d   : > { %v4779_v36 = vadd.f32 %v4727_v46, %v20051_v60 }
 0x56e   : > { %v5055_v56 = vpop.f32.mrf.mxu3  ;;  %v5490_v5 = vpop.f32.mrf.mxu0 }
 0x56f   : > { %v5107_v44 = vadd.f32 %v5055_v56, %v4779_v36  ;;  %v5543_v63 = vadd.f32 %v5490_v5, %v5106_v1  ;;  %v13219_v36 = vld [vmem:[%s16784_s19] sm:$0xff]  ;;  %v6290_v56 = vor.u32 %v6289_v25, %v6286_v31  ;;  %v6952_v5 = vor.u32 %v6951_v37, %v6950_v38  ;;  %v20058_v25 = vld [vmem:[#allocation16_spill] sm:$0xff] }
 0x570   : > { %v6018_v57 = vpop.f32.mrf.mxu1  ;;  %7940 = vmatpush.bf16.msra.mxu1 %v13219_v36 }
 0x571   : > { %v17093_v35 = vadd.f32 %v6018_v57, %v5543_v63  ;;  %12392 = vmatmul.msk.bf16.gmra.mxu2 %vm82_vm6, %v6282_v28  ;;  %12479 = vmatmul.msk.bf16.gmra.mxu0 %vm82_vm6, %v6949_v59  ;;  %v6659_v28 = vrot.slane %v17090_v27, 2  ;;  %v20056_v63 = vld [vmem:[#allocation15_spill] sm:$0xff]  ;;  %v6953_v17 = vsel %vm1115_vm1, %v6948_v47, %v6952_v5  ;;  %v6293_v27 = vshrl.u32 %v17110_v48, 16 }
 0x573   : > { %20052 = vst [vmem:[#allocation13_spill] sm:$0xff] %v17093_v35  ;;  %12436 = vmatmul.msk.bf16.gmra.mxu3 %vm82_vm6, %v6658_v29  ;;  %v6295_v36 = vrot.slane %v6293_v27, 1 }
 0x574   : > { %v4730_v34 = vpop.f32.mrf.mxu2 }
 0x575   : > { %v4780_v4 = vadd.f32 %v4730_v34, %v20053_v30  ;;  %v6291_v30 = vsel %vm297_vm0, %v6281_v7, %v6290_v56  ;;  %v6296_v7 = vshll.u32 %v17110_v48, 16 }
 0x576   : > { %v5058_v2 = vpop.f32.mrf.mxu3  ;;  %v5492_v49 = vpop.f32.mrf.mxu0 }
 0x577   : > { %v5108_v1 = vadd.f32 %v5058_v2, %v4780_v4  ;;  %v17101_v46 = vadd.f32 %v5492_v49, %v5107_v44  ;;  %v6660_v49 = vsel %vm845_vm2, %v6657_v51, %v6659_v28  ;;  %v6954_v51 = vrot.slane %v6284_v45, 2  ;;  %v17129_v45 = vld [vmem:[#allocation2 + $0x4c] sm:$0xff] }
 0x578   : > { %v17103_v60 = vpop.f32.mrf.mxu1 }
 0x579   : > { %20054 = vst [vmem:[#allocation14_spill] sm:$0xff] %v17101_v46 }
 0x57a   : > { %20055 = vst [vmem:[#allocation24_spill] sm:$0xff] %v17103_v60 }
 0x57c   : > { %v4732_v59 = vpop.f32.mrf.mxu2 }
 0x57d   : > { %v4781_v57 = vadd.f32 %v4732_v59, %v20056_v63  ;;  %v6298_v59 = vrot.slane %v6296_v7, 2  ;;  %v6955_v63 = vrot.slane %v6287_v42, 3 }
 0x57e   : > { %v5060_v29 = vpop.f32.mrf.mxu3  ;;  %v5495_v34 = vpop.f32.mrf.mxu0 }
 0x57f   : > { %v5109_v44 = vadd.f32 %v5060_v29, %v4781_v57  ;;  %v5545_v4 = vadd.f32 %v5495_v34, %v5108_v1 }
 0x580   : > { %v6023_v2 = vpop.f32.mrf.mxu1 }
 0x581   : > { %v17113_v31 = vadd.f32 %v6023_v2, %v5545_v4  ;;  %12393 = vmatmul.msk.bf16.gmra.mxu2 %vm82_vm6, %v6291_v30  ;;  %12480 = vmatmul.msk.bf16.gmra.mxu0 %vm82_vm6, %v6953_v17  ;;  %v6299_v30 = vor.u32 %v6298_v59, %v6295_v36  ;;  %v6956_v17 = vor.u32 %v6955_v63, %v6954_v51  ;;  %v6661_v4 = vrot.slane %v17110_v48, 2  ;;  %v20063_v36 = vld [vmem:[#allocation18_spill] sm:$0xff] }
 0x582   : > { %v6302_v48 = vshrl.u32 %v17129_v45, 16 }
 0x583   : > { %20057 = vst [vmem:[#allocation15_spill] sm:$0xff] %v17113_v31  ;;  %12437 = vmatmul.msk.bf16.gmra.mxu3 %vm82_vm6, %v6660_v49  ;;  %v20061_v49 = vld [vmem:[#allocation17_spill] sm:$0xff]  ;;  %v6957_v46 = vsel %vm1115_vm1, %v6952_v5, %v6956_v17 }
 0x584   : > { %v4735_v47 = vpop.f32.mrf.mxu2  ;;  %v6304_v51 = vrot.slane %v6302_v48, 1 }
 0x585   : > { %v4782_v38 = vadd.f32 %v4735_v47, %v20058_v25  ;;  %v6300_v25 = vsel %vm297_vm0, %v6290_v56, %v6299_v30  ;;  %v6305_v56 = vshll.u32 %v17129_v45, 16 }
 0x586   : > { %v5063_v37 = vpop.f32.mrf.mxu3  ;;  %v5497_v1 = vpop.f32.mrf.mxu0 }
 0x587   : > { %v5110_v57 = vadd.f32 %v5063_v37, %v4782_v38  ;;  %v17121_v29 = vadd.f32 %v5497_v1, %v5109_v44  ;;  %v6662_v37 = vsel %vm845_vm2, %v6659_v28, %v6661_v4  ;;  %v6307_v63 = vrot.slane %v6305_v56, 2 }
 0x588   : > { %v17123_v34 = vpop.f32.mrf.mxu1  ;;  %v6958_v28 = vrot.slane %v6293_v27, 2  ;;  %v17148_v27 = vld [vmem:[#allocation2 + $0x54] sm:$0xff] }
 0x589   : > { %20059 = vst [vmem:[#allocation16_spill] sm:$0xff] %v17121_v29 }
 0x58a   : > { %20060 = vst [vmem:[#allocation25_spill] sm:$0xff] %v17123_v34 }
 0x58c   : > { %v4737_v2 = vpop.f32.mrf.mxu2 }
 0x58d   : > { %v4783_v31 = vadd.f32 %v4737_v2, %v20061_v49 }
 0x58e   : > { %v5065_v60 = vpop.f32.mrf.mxu3  ;;  %v5500_v47 = vpop.f32.mrf.mxu0 }
 0x58f   : > { %v5111_v42 = vadd.f32 %v5065_v60, %v4783_v31  ;;  %v5547_v44 = vadd.f32 %v5500_v47, %v5110_v57  ;;  %v6959_v57 = vrot.slane %v6296_v7, 3 }
 0x590   : > { %v6028_v38 = vpop.f32.mrf.mxu1 }
 0x591   : > { %v17132_v1 = vadd.f32 %v6028_v38, %v5547_v44  ;;  %12394 = vmatmul.msk.bf16.gmra.mxu2 %vm82_vm6, %v6300_v25  ;;  %12481 = vmatmul.msk.bf16.gmra.mxu0 %vm82_vm6, %v6957_v46  ;;  %v6308_v46 = vor.u32 %v6307_v63, %v6304_v51  ;;  %v6960_v25 = vor.u32 %v6959_v57, %v6958_v28  ;;  %v6663_v44 = vrot.slane %v17129_v45, 2  ;;  %v20068_v51 = vld [vmem:[#allocation20_spill] sm:$0xff] }
 0x592   : > { %v6311_v45 = vshrl.u32 %v17148_v27, 16 }
 0x593   : > { %20062 = vst [vmem:[#allocation17_spill] sm:$0xff] %v17132_v1  ;;  %12438 = vmatmul.msk.bf16.gmra.mxu3 %vm82_vm6, %v6662_v37  ;;  %v20066_v37 = vld [vmem:[#allocation19_spill] sm:$0xff]  ;;  %v6961_v29 = vsel %vm1115_vm1, %v6956_v17, %v6960_v25 }
 0x594   : > { %v4740_v5 = vpop.f32.mrf.mxu2  ;;  %v6313_v28 = vrot.slane %v6311_v45, 1 }
 0x595   : > { %v4784_v59 = vadd.f32 %v4740_v5, %v20063_v36  ;;  %v6309_v36 = vsel %vm297_vm0, %v6299_v30, %v6308_v46  ;;  %v6314_v30 = vshll.u32 %v17148_v27, 16 }
 0x596   : > { %v5068_v60 = vpop.f32.mrf.mxu3  ;;  %v5502_v31 = vpop.f32.mrf.mxu0 }
 0x597   : > { %v5112_v2 = vadd.f32 %v5068_v60, %v4784_v59  ;;  %v17140_v49 = vadd.f32 %v5502_v31, %v5111_v42  ;;  %v6664_v60 = vsel %vm845_vm2, %v6661_v4, %v6663_v44  ;;  %v6316_v57 = vrot.slane %v6314_v30, 2 }
 0x598   : > { %v17142_v47 = vpop.f32.mrf.mxu1  ;;  %v6962_v4 = vrot.slane %v6302_v48, 2  ;;  %v17167_v48 = vld [vmem:[#allocation2 + $0x5c] sm:$0xff] }
 0x599   : > { %20064 = vst [vmem:[#allocation18_spill] sm:$0xff] %v17140_v49 }
 0x59a   : > { %20065 = vst [vmem:[#allocation26_spill] sm:$0xff] %v17142_v47 }
 0x59c   : > { %v4742_v38 = vpop.f32.mrf.mxu2 }
 0x59d   : > { %v4785_v1 = vadd.f32 %v4742_v38, %v20066_v37 }
 0x59e   : > { %v5070_v34 = vpop.f32.mrf.mxu3  ;;  %v5505_v5 = vpop.f32.mrf.mxu0 }
 0x59f   : > { %v5113_v7 = vadd.f32 %v5070_v34, %v4785_v1  ;;  %v5549_v42 = vadd.f32 %v5505_v5, %v5112_v2  ;;  %v6963_v2 = vrot.slane %v6305_v56, 3 }
 0x5a0   : > { %v6033_v59 = vpop.f32.mrf.mxu1 }
 0x5a1   : > { %v17151_v31 = vadd.f32 %v6033_v59, %v5549_v42  ;;  %12395 = vmatmul.msk.bf16.gmra.mxu2 %vm82_vm6, %v6309_v36  ;;  %12482 = vmatmul.msk.bf16.gmra.mxu0 %vm82_vm6, %v6961_v29  ;;  %v6317_v29 = vor.u32 %v6316_v57, %v6313_v28  ;;  %v6964_v36 = vor.u32 %v6963_v2, %v6962_v4  ;;  %v6665_v42 = vrot.slane %v17148_v27, 2 }
 0x5a2   : > { %v6320_v27 = vshrl.u32 %v17167_v48, 16  ;;  %v6966_v4 = vrot.slane %v6311_v45, 2 }
 0x5a3   : > { %20067 = vst [vmem:[#allocation19_spill] sm:$0xff] %v17151_v31  ;;  %12439 = vmatmul.msk.bf16.gmra.mxu3 %vm82_vm6, %v6664_v60  ;;  %v20071_v60 = vld [vmem:[#allocation21_spill] sm:$0xff]  ;;  %v6965_v49 = vsel %vm1115_vm1, %v6960_v25, %v6964_v36 }
 0x5a4   : > { %v4745_v17 = vpop.f32.mrf.mxu2 }
 0x5a5   : > { %v4786_v63 = vadd.f32 %v4745_v17, %v20068_v51  ;;  %v6318_v51 = vsel %vm297_vm0, %v6308_v46, %v6317_v29  ;;  %v6323_v46 = vshll.u32 %v17167_v48, 16 }
 0x5a6   : > { %v5073_v34 = vpop.f32.mrf.mxu3  ;;  %v5507_v1 = vpop.f32.mrf.mxu0 }
 0x5a7   : > { %v5114_v38 = vadd.f32 %v5073_v34, %v4786_v63  ;;  %v17159_v37 = vadd.f32 %v5507_v1, %v5113_v7  ;;  %v6666_v34 = vsel %vm845_vm2, %v6663_v44, %v6665_v42  ;;  %v6325_v57 = vrot.slane %v6323_v46, 2 }
 0x5a8   : > { %v17161_v5 = vpop.f32.mrf.mxu1  ;;  %v6967_v44 = vrot.slane %v6314_v30, 3 }
 0x5a9   : > { %20069 = vst [vmem:[#allocation20_spill] sm:$0xff] %v17159_v37 }
 0x5aa   : > { %20070 = vst [vmem:[#allocation27_spill] sm:$0xff] %v17161_v5 }
 0x5ac   : > { %v4747_v59 = vpop.f32.mrf.mxu2 }
 0x5ad   : > { %v4787_v31 = vadd.f32 %v4747_v59, %v20071_v60  ;;  %v6968_v60 = vor.u32 %v6967_v44, %v6966_v4  ;;  %v13217_v4 = vld [vmem:[%s16784_s19 + $0x98] sm:$0xff] }
 0x5ae   : > { %v5075_v47 = vpop.f32.mrf.mxu3  ;;  %v5510_v17 = vpop.f32.mrf.mxu0  ;;  %v13226_v44 = vld [vmem:[%s16784_s19 + $0x38] sm:$0xff]  ;;  %8109 = vmatpush.bf16.msrb.mxu2 %v13217_v4  ;;  %v7563_v4 = vld [vmem:[#allocation2 + $0x4] sm:$0xf] }
 0x5af   : > { %v5115_v56 = vadd.f32 %v5075_v47, %v4787_v31  ;;  %v5551_v7 = vadd.f32 %v5510_v17, %v5114_v38  ;;  %v6322_v31 = vrot.slane %v6320_v27, 1  ;;  %v20074_v38 = vld [vmem:[#allocation22_spill] sm:$0xff]  ;;  %v19867_v17 = vrot.slane %v17167_v48, 2  ;;  %8347 = vmatpush.bf16.msrb.mxu3 %v13226_v44 }
 0x5b0   : > { %v6038_v63 = vpop.f32.mrf.mxu1  ;;  %v6969_v30 = vsel %vm1115_vm1, %v6964_v36, %v6968_v60 }
 0x5b1   : > { %v17170_v1 = vadd.f32 %v6038_v63, %v5551_v7  ;;  %12396 = vmatmul.msk.bf16.gmra.mxu2 %vm82_vm6, %v6318_v51  ;;  %12483 = vmatmul.msk.bf16.gmra.mxu0 %vm82_vm6, %v6965_v49  ;;  %v6326_v49 = vor.u32 %v6325_v57, %v6322_v31  ;;  %v6668_v31 = vsel %vm845_vm2, %v6665_v42, %v19867_v17 }
 0x5b3   : > { %20072 = vst [vmem:[#allocation21_spill] sm:$0xff] %v17170_v1  ;;  %12440 = vmatmul.msk.bf16.gmra.mxu3 %vm82_vm6, %v6666_v34  ;;  %v17182_v34 = vld [vmem:[%s17028_s3] ss:$0 sm:$0xff]  ;;  %v6327_v45 = vsel %vm297_vm0, %v6317_v29, %v6326_v49 }
 0x5b4   : > { %v6499_v25 = vpop.f32.mrf.mxu2 }
 0x5b5   : > { %v6594_v59 = vadd.f32 %v6499_v25, %v20074_v38  ;;  %v17189_v25 = vld [vmem:[%s17038_s23] ss:$0 sm:$0xff] }
 0x5b6   : > { %v6777_v28 = vpop.f32.mrf.mxu3  ;;  %v5512_v47 = vpop.f32.mrf.mxu0 }
 0x5b7   : > { %v17177_v2 = vadd.f32 %v5512_v47, %v5115_v56  ;;  %v6872_v7 = vadd.f32 %v6777_v28, %v6594_v59  ;;  %v17186_v56 = vld [vmem:[#allocation2 + $0x64] sm:$0xff] }
 0x5b8   : > { %v19869_v29 = vshrl.u32 %v17186_v56, 16  ;;  %v19868_v36 = vshll.u32 %v17186_v56, 16 }
 0x5b9   : > { %20073 = vst [vmem:[#allocation28_spill] sm:$0xff] %v17177_v2 }
 0x5bc   : > { %v6501_v51 = vpop.f32.mrf.mxu2 }
 0x5bd   : > { %v6595_v28 = vadd.f32 %v6501_v51, %v16801_v61  ;;  %v7362_v61 = vld [vmem:[%s19818_s10] sm:$0xff] }
 0x5be   : > { %v6779_v63 = vpop.f32.mrf.mxu3  ;;  %v7105_v1 = vpop.f32.mrf.mxu0 }
 0x5bf   : > { %v7200_v47 = vadd.f32 %v7105_v1, %v6872_v7  ;;  %v6873_v38 = vadd.f32 %v6779_v63, %v6595_v28 }
 0x5c1   : > { %v7243_v57 = vmul.f32 %v17182_v34, %v7200_v47  ;;  %12397 = vmatmul.msk.bf16.gmra.mxu2 %vm82_vm6, %v6327_v45  ;;  %12484 = vmatmul.msk.bf16.gmra.mxu0 %vm82_vm6, %v6969_v30  ;;  %v6331_v45 = vrot.slane %v19869_v29, 1  ;;  %v6334_v30 = vrot.slane %v19868_v36, 2  ;;  %v6970_v47 = vrot.slane %v6320_v27, 2 }
 0x5c2   : > { %v19870_v27 = vrot.slane %v17186_v56, 2 }
 0x5c3   : > { %12441 = vmatmul.msk.bf16.gmra.mxu3 %vm82_vm6, %v6668_v31  ;;  %v7286_v1 = vadd.f32 %v17189_v25, %v7243_v57  ;;  %v6971_v31 = vrot.slane %v6323_v46, 3  ;;  %v17213_v44 = vor.u32 %v6334_v30, %v6331_v45  ;;  %v13230_v46 = vld [vmem:[%s16784_s19 + $0x58] sm:$0xff] }
 0x5c4   : > { %v6504_v42 = vpop.f32.mrf.mxu2  ;;  %8673 = vmatpush.bf16.msrb.mxu0 %v13230_v46 }
 0x5c5   : > { %v7324_v59 = vmax.f32 %v7286_v1, 0.0  ;;  %v6596_v63 = vadd.f32 %v6504_v42, %v16808_v16  ;;  %v7562_v1 = vld [vmem:[#allocation2] sm:$0xe]  ;;  %v17215_v5 = vor.u32 %v6971_v31, %v6970_v47  ;;  %v7363_v16 = vld [vmem:[%s19818_s10 + $0x8] sm:$0xff] }
 0x5c6   : > { %v6782_v51 = vpop.f32.mrf.mxu3  ;;  %v7107_v7 = vpop.f32.mrf.mxu0  ;;  %v17229_v31 = vld [vmem:[#allocation2 + $0x6c] sm:$0xff] }
 0x5c7   : > { %v7400_v57 = vmul.f32 %v7362_v61, %v7324_v59  ;;  %v7201_v17 = vadd.f32 %v7107_v7, %v6873_v38  ;;  %v13234_v61 = vld [vmem:[%s16784_s19 + $0x78] sm:$0xff]  ;;  %v7615_v38 = vunpack.c.l.b16 %v7563_v4  ;;  %v6874_v59 = vadd.f32 %v6782_v51, %v6596_v63 }
 0x5c8   : > { %9108 = vmatpush.bf16.msrb.mxu1 %v13234_v61  ;;  %v6973_v47 = vsel %vm1115_vm1, %v6968_v60, %v17215_v5  ;;  %v20075_v51 = vrot.slane %v17167_v48, 2  ;;  %v19871_v46 = vshrl.u32 %v17229_v31, 16  ;;  %v19872_v61 = vshll.u32 %v17229_v31, 16 }
 0x5c9   : > { %v7438_v2 = vpack.c.bf16 %v7400_v57, %v7400_v57  ;;  %v7244_v28 = vmul.f32 %v17182_v34, %v7201_v17  ;;  %v7614_v17 = vunpack.c.l.b16 %v7562_v1  ;;  %v8209_v57 = vld [vmem:[#allocation2] sm:$0xc] }
 0x5ca   : > { %v8221_v60 = vunpack.c.l.b16 %v8209_v57  ;;  %v6343_v57 = vrot.slane %v19872_v61, 2 }
 0x5cb   : > { %7476 = vst.msk [vmem:[#allocation2 + $0x8] sm:$0xf] %vm39_vm5, %v7438_v2  ;;  %v7287_v36 = vadd.f32 %v17189_v25, %v7244_v28  ;;  %v6336_v2 = vsel %vm297_vm0, %v6326_v49, %v17213_v44  ;;  %v7653_v63 = vpack.c.b16 %v7615_v38, %v7614_v17 }
 0x5cc   : > { %v6506_v42 = vpop.f32.mrf.mxu2 }
 0x5cd   : > { %v7325_v7 = vmax.f32 %v7287_v36, 0.0  ;;  %v6670_v36 = vsel %vm845_vm2, %v20075_v51, %v19870_v27  ;;  %v6597_v4 = vadd.f32 %v6506_v42, %v16819_v32  ;;  %v7364_v32 = vld [vmem:[%s19818_s10 + $0x10] sm:$0xff]  ;;  %v7677_v42 = vshll.u32 %v7653_v63, 16 }
 0x5ce   : > { %v6784_v45 = vpop.f32.mrf.mxu3  ;;  %v7110_v30 = vpop.f32.mrf.mxu0 }
 0x5cf   : > { %v7401_v28 = vmul.f32 %v7363_v16, %v7325_v7  ;;  %v7202_v29 = vadd.f32 %v7110_v30, %v6874_v59  ;;  %v7674_v16 = vshrl.u32 %v7653_v63, 16  ;;  %v6875_v17 = vadd.f32 %v6784_v45, %v6597_v4 }
 0x5d0   : > { %v17248_v30 = vpack.c.b16 %v7615_v38, %v8221_v60  ;;  %v7679_v4 = vrot.slane %v7677_v42, 2 }
 0x5d1   : > { %v7439_v1 = vpack.c.bf16 %v7401_v28, %v7401_v28  ;;  %v7245_v49 = vmul.f32 %v17182_v34, %v7202_v29  ;;  %12398 = vmatmul.msk.bf16.gmra.mxu2 %vm82_vm6, %v6336_v2  ;;  %12485 = vmatmul.msk.bf16.gmra.mxu0 %vm82_vm6, %v6973_v47  ;;  %v6340_v47 = vrot.slane %v19871_v46, 1  ;;  %v20076_v28 = vshrl.u32 %v17186_v56, 16 }
 0x5d2   : > { %v7676_v45 = vrot.slane %v7674_v16, 1  ;;  %v8500_v37 = vshrl.u32 %v17248_v30, 16 }
 0x5d3   : > { %12442 = vmatmul.msk.bf16.gmra.mxu3 %vm82_vm6, %v6670_v36  ;;  %7477 = vst.msk [vmem:[#allocation2 + $0xc] sm:$0xf] %vm39_vm5, %v7439_v1  ;;  %v7288_v48 = vadd.f32 %v17189_v25, %v7245_v49  ;;  %v6974_v51 = vrot.slane %v20076_v28, 2  ;;  %v20077_v36 = vshll.u32 %v17186_v56, 16  ;;  %v17260_v27 = vor.u32 %v6343_v57, %v6340_v47 }
 0x5d4   : > { %v6509_v29 = vpop.f32.mrf.mxu2  ;;  %v8503_v28 = vshll.u32 %v17248_v30, 16 }
 0x5d5   : > { %v7326_v59 = vmax.f32 %v7288_v48, 0.0  ;;  %v6975_v1 = vrot.slane %v20077_v36, 3  ;;  %v6598_v38 = vadd.f32 %v6509_v29, %v16826_v52  ;;  %v7365_v52 = vld [vmem:[%s19818_s10 + $0x18] sm:$0xff] }
 0x5d6   : > { %v6787_v7 = vpop.f32.mrf.mxu3  ;;  %v7112_v2 = vpop.f32.mrf.mxu0 }
 0x5d7   : > { %v7402_v49 = vmul.f32 %v7364_v32, %v7326_v59  ;;  %v7203_v63 = vadd.f32 %v7112_v2, %v6875_v17  ;;  %v17262_v46 = vor.u32 %v6975_v1, %v6974_v51  ;;  %v7680_v59 = vor.u32 %v7679_v4, %v7676_v45  ;;  %v17272_v2 = vld [vmem:[#allocation2 + $0x74] sm:$0xff] }
 0x5d8   : > { %v6876_v47 = vadd.f32 %v6787_v7, %v6598_v38  ;;  %v20078_v4 = vrot.slane %v17229_v31, 2  ;;  %v20079_v7 = vrot.slane %v17186_v56, 2  ;;  %v6350_v56 = vshll.u32 %v17272_v2, 16 }
 0x5d9   : > { %v7440_v48 = vpack.c.bf16 %v7402_v49, %v7402_v49  ;;  %v7246_v60 = vmul.f32 %v17182_v34, %v7203_v63  ;;  %v6345_v63 = vsel %vm297_vm0, %v17213_v44, %v17260_v27  ;;  %v6347_v44 = vshrl.u32 %v17272_v2, 16 }
 0x5da   : > { %v13742_v61 = vld [vmem:[#allocation2 + $0x8] sm:$0xff]   ;;  %v6672_v38 = vsel %vm845_vm2, %v20079_v7, %v20078_v4 }
 0x5db   : > { %7478 = vst.msk [vmem:[#allocation2 + $0x10] sm:$0xf] %vm39_vm5, %v7440_v48  ;;  %v7289_v32 = vadd.f32 %v17189_v25, %v7246_v60  ;;  %v7682_v42 = vshrl.u32 %v13742_v61, 16  ;;  %v7685_v17 = vshll.u32 %v13742_v61, 16  ;;  %v6977_v61 = vsel %vm1115_vm1, %v17215_v5, %v17262_v46 }
 0x5dc   : > { %v6511_v29 = vpop.f32.mrf.mxu2  ;;  %v8502_v48 = vrot.slane %v8500_v37, 2  ;;  %v8505_v60 = vrot.slane %v8503_v28, 3 }
 0x5dd   : > { %v7327_v57 = vmax.f32 %v7289_v32, 0.0  ;;  %v7684_v36 = vrot.slane %v7682_v42, 1  ;;  %v7687_v1 = vrot.slane %v7685_v17, 2  ;;  %v6599_v35 = vadd.f32 %v6511_v29, %v16837_v55 }
 0x5de   : > { %v6789_v51 = vpop.f32.mrf.mxu3  ;;  %v7115_v49 = vpop.f32.mrf.mxu0  ;;  %v8507_v5 = vrot.slane %v7682_v42, 2  ;;  %v8506_v55 = vor.u32 %v8505_v60, %v8502_v48  ;;  %v8508_v28 = vrot.slane %v7685_v17, 3  ;;  %v6352_v17 = vrot.slane %v6350_v56, 2 }
 0x5df   : > { %v7403_v16 = vmul.f32 %v7365_v52, %v7327_v57  ;;  %v7204_v45 = vadd.f32 %v7115_v49, %v6876_v47  ;;  %v17285_v32 = vor.u32 %v7687_v1, %v7684_v36  ;;  %v7366_v52 = vld [vmem:[%s19818_s10 + $0x20] sm:$0xff]  ;;  %v6877_v42 = vadd.f32 %v6789_v51, %v6599_v35 }
 0x5e0   : > { %v17302_v47 = vor.u32 %v8508_v28, %v8507_v5  ;;  %v6349_v36 = vrot.slane %v6347_v44, 1  ;;  %v20081_v49 = vshll.u32 %v17229_v31, 16  ;;  %v6673_v5 = vrot.slane %v17272_v2, 2 }
 0x5e1   : > { %v7441_v19 = vpack.c.bf16 %v7403_v16, %v7403_v16  ;;  %v7247_v13 = vmul.f32 %v17182_v34, %v7204_v45  ;;  %12399 = vmatmul.msk.bf16.gmra.mxu2 %vm82_vm6, %v6345_v63  ;;  %12486 = vmatmul.msk.bf16.gmra.mxu0 %vm82_vm6, %v6977_v61  ;;  %v7689_v37 = vsel %vm297_vm0, %v7680_v59, %v17285_v32 }
 0x5e2   : > { %12521 = vmatmul.msk.bf16.vlgmr.msra.gmra.mxu1 %vm82_vm6, %v7689_v37  ;;  %v6979_v63 = vrot.slane %v20081_v49, 3  ;;  %v17314_v61 = vsel %vm1115_vm1, %v8506_v55, %v17302_v47  ;;  %v17318_v4 = vor.u32 %v6352_v17, %v6349_v36 }
 0x5e3   : > { %12443 = vmatmul.msk.bf16.gmra.mxu3 %vm82_vm6, %v6672_v38  ;;  %7479 = vst.msk [vmem:[#allocation2 + $0x14] sm:$0xf] %vm39_vm5, %v7441_v19  ;;  %v7290_v16 = vadd.f32 %v17189_v25, %v7247_v13  ;;  %v20080_v19 = vshrl.u32 %v17229_v31, 16 }
 0x5e4   : > { %v6514_v29 = vpop.f32.mrf.mxu2 }
 0x5e5   : > { %v7328_v59 = vmax.f32 %v7290_v16, 0.0  ;;  %v6978_v13 = vrot.slane %v20080_v19, 2  ;;  %v6600_v60 = vadd.f32 %v6514_v29, %v16844_v23  ;;  %v7367_v16 = vld [vmem:[%s19818_s10 + $0x28] sm:$0xff]  ;;  %v6354_v19 = vsel %vm297_vm0, %v17260_v27, %v17318_v4 }
 0x5e6   : > { %v6792_v57 = vpop.f32.mrf.mxu3  ;;  %v7117_v1 = vpop.f32.mrf.mxu0 }
 0x5e7   : > { %v7404_v35 = vmul.f32 %v7366_v52, %v7328_v59  ;;  %v7205_v51 = vadd.f32 %v7117_v1, %v6877_v42  ;;  %v17320_v7 = vor.u32 %v6979_v63, %v6978_v13  ;;  %v17328_v52 = vld [vmem:[#allocation2 + $0x7c] sm:$0xff]  ;;  %v6878_v29 = vadd.f32 %v6792_v57, %v6600_v60 }
 0x5e8   : > { %v19876_v60 = vshrl.u32 %v17328_v52, 16  ;;  %v19873_v27 = vshll.u32 %v17328_v52, 16 }
 0x5e9   : > { %v7442_v48 = vpack.c.bf16 %v7404_v35, %v7404_v35  ;;  %v7248_v45 = vmul.f32 %v17182_v34, %v7205_v51  ;;  %v6981_v13 = vsel %vm1115_vm1, %v17262_v46, %v17320_v7  ;;  %v20082_v35 = vrot.slane %v17229_v31, 2 }
 0x5ea   : > { %v13743_v38 = vld [vmem:[#allocation2 + $0x10] sm:$0xff]  }
 0x5eb   : > { %7480 = vst.msk [vmem:[#allocation2 + $0x18] sm:$0xf] %vm39_vm5, %v7442_v48  ;;  %v7291_v37 = vadd.f32 %v17189_v25, %v7248_v45  ;;  %v7691_v55 = vshrl.u32 %v13743_v38, 16  ;;  %v7694_v28 = vshll.u32 %v13743_v38, 16  ;;  %v6674_v57 = vsel %vm845_vm2, %v20082_v35, %v6673_v5 }
 0x5ec   : > { %v6516_v23 = vpop.f32.mrf.mxu2 }
 0x5ed   : > { %v7329_v42 = vmax.f32 %v7291_v37, 0.0  ;;  %v7693_v36 = vrot.slane %v7691_v55, 1  ;;  %v7696_v1 = vrot.slane %v7694_v28, 2  ;;  %v6601_v48 = vadd.f32 %v6516_v23, %v16858_v53  ;;  %v7368_v23 = vld [vmem:[%s19818_s10 + $0x30] sm:$0xff] }
 0x5ee   : > { %v6794_v59 = vpop.f32.mrf.mxu3  ;;  %v7120_v17 = vpop.f32.mrf.mxu0  ;;  %v8511_v46 = vrot.slane %v7691_v55, 2  ;;  %v8512_v53 = vrot.slane %v7694_v28, 3  ;;  %v6361_v55 = vrot.slane %v19873_v27, 2 }
 0x5ef   : > { %v7405_v49 = vmul.f32 %v7367_v16, %v7329_v42  ;;  %v7206_v63 = vadd.f32 %v7120_v17, %v6878_v29  ;;  %v17341_v51 = vor.u32 %v7696_v1, %v7693_v36  ;;  %v17356_v16 = vld [vmem:[#allocation2 + $0x10] sm:$0xf]  ;;  %v6879_v28 = vadd.f32 %v6794_v59, %v6601_v48  ;;  %v10321_v17 = vld [vmem:[#allocation2 + $0xc] sm:$0xc] }
 0x5f0   : > { %20083 = vst [vmem:[#allocation22_spill] sm:$0xff] %v17356_v16  ;;  %v17365_v42 = vor.u32 %v8512_v53, %v8511_v46 }
 0x5f1   : > { %v7443_v45 = vpack.c.bf16 %v7405_v49, %v7405_v49  ;;  %v7249_v38 = vmul.f32 %v17182_v34, %v7206_v63  ;;  %12400 = vmatmul.msk.bf16.gmra.mxu2 %vm82_vm6, %v6354_v19  ;;  %12487 = vmatmul.msk.bf16.gmra.mxu0 %vm82_vm6, %v6981_v13  ;;  %v7698_v31 = vsel %vm297_vm0, %v17285_v32, %v17341_v51  ;;  %v6358_v32 = vrot.slane %v19876_v60, 1 }
 0x5f2   : > { %12522 = vmatmul.msk.bf16.gmra.mxu1 %vm82_vm6, %v7698_v31  ;;  %v6982_v13 = vrot.slane %v6347_v44, 2  ;;  %v6983_v49 = vrot.slane %v6350_v56, 3  ;;  %v17374_v63 = vsel %vm1115_vm1, %v17302_v47, %v17365_v42  ;;  %v17376_v35 = vld [vmem:[#allocation2 + $0x14] sm:$0xff]  ;;  %v10333_v31 = vunpack.c.l.b16 %v10321_v17 }
 0x5f3   : > { %12444 = vmatmul.msk.bf16.gmra.mxu3 %vm82_vm6, %v6674_v57  ;;  %7481 = vst.msk [vmem:[#allocation2 + $0x1c] sm:$0xf] %vm39_vm5, %v7443_v45  ;;  %v7292_v37 = vadd.f32 %v17189_v25, %v7249_v38  ;;  %v19874_v57 = vunpack.c.l.b16 %v17356_v16  ;;  %v17379_v45 = vor.u32 %v6361_v55, %v6358_v32  ;;  %v19875_v38 = vrot.slane %v17328_v52, 2 }
 0x5f4   : > { %v6519_v29 = vpop.f32.mrf.mxu2  ;;  %20084 = vst [vmem:[#allocation29_spill] sm:$0xff] %v17376_v35  ;;  %v17384_v53 = vor.u32 %v6983_v49, %v6982_v13 }
 0x5f5   : > { %v7330_v36 = vmax.f32 %v7292_v37, 0.0  ;;  %v6602_v46 = vadd.f32 %v6519_v29, %v16867_v6  ;;  %v19879_v37 = vshrl.u32 %v17376_v35, 16  ;;  %v17389_v27 = vpack.c.b16 %v19874_v57, %v10333_v31  ;;  %v7369_v6 = vld [vmem:[%s19818_s10 + $0x38] sm:$0xff] }
 0x5f6   : > { %v6797_v1 = vpop.f32.mrf.mxu3  ;;  %v7122_v19 = vpop.f32.mrf.mxu0  ;;  %v6676_v17 = vsel %vm845_vm2, %v6673_v5, %v19875_v38 }
 0x5f7   : > { %v7406_v59 = vmul.f32 %v7368_v23, %v7330_v36  ;;  %v7207_v48 = vadd.f32 %v7122_v19, %v6879_v28  ;;  %20085 = vst [vmem:[#allocation30_spill] sm:$0xff] %v17389_v27  ;;  %v19878_v28 = vshll.u32 %v17376_v35, 16  ;;  %v6363_v36 = vsel %vm297_vm0, %v17318_v4, %v17379_v45  ;;  %v17405_v19 = vld [vmem:[#allocation2 + $0x84] sm:$0xff] }
 0x5f8   : > { %v6880_v13 = vadd.f32 %v6797_v1, %v6602_v46  ;;  %v10612_v4 = vshrl.u32 %v17389_v27, 16  ;;  %v10619_v2 = vrot.slane %v19879_v37, 2 }
 0x5f9   : > { %v7444_v44 = vpack.c.bf16 %v7406_v59, %v7406_v59  ;;  %v7250_v56 = vmul.f32 %v17182_v34, %v7207_v48  ;;  %v10620_v1 = vrot.slane %v19878_v28, 3 }
 0x5fa   : > { %v13744_v47 = vld [vmem:[#allocation2 + $0x18] sm:$0xff]  }
 0x5fb   : > { %7482 = vst.msk [vmem:[#allocation2 + $0x20] sm:$0xf] %vm39_vm5, %v7444_v44  ;;  %v7293_v23 = vadd.f32 %v17189_v25, %v7250_v56  ;;  %v7700_v32 = vshrl.u32 %v13744_v47, 16  ;;  %v7703_v55 = vshll.u32 %v13744_v47, 16  ;;  %v6985_v56 = vsel %vm1115_vm1, %v17320_v7, %v17384_v53 }
 0x5fc   : > { %v6521_v29 = vpop.f32.mrf.mxu2  ;;  %v10615_v47 = vshll.u32 %v17389_v27, 16  ;;  %v19880_v7 = vshll.u32 %v17405_v19, 16 }
 0x5fd   : > { %v7331_v49 = vmax.f32 %v7293_v23, 0.0  ;;  %v7702_v48 = vrot.slane %v7700_v32, 1  ;;  %v7705_v31 = vrot.slane %v7703_v55, 2  ;;  %v6603_v46 = vadd.f32 %v6521_v29, %v16883_v39 }
 0x5fe   : > { %v6799_v59 = vpop.f32.mrf.mxu3  ;;  %v7125_v44 = vpop.f32.mrf.mxu0  ;;  %v19881_v23 = vshrl.u32 %v17405_v19, 16  ;;  %v8516_v39 = vrot.slane %v7703_v55, 3  ;;  %v10614_v29 = vrot.slane %v10612_v4, 2 }
 0x5ff   : > { %v7407_v5 = vmul.f32 %v7369_v6, %v7331_v49  ;;  %v7208_v57 = vadd.f32 %v7125_v44, %v6880_v13  ;;  %v17414_v38 = vor.u32 %v7705_v31, %v7702_v48  ;;  %v8515_v13 = vrot.slane %v7700_v32, 2 }
 0x600   : > { %v10617_v49 = vrot.slane %v10615_v47, 3  ;;  %v17431_v48 = vor.u32 %v10620_v1, %v10619_v2  ;;  %v6881_v32 = vadd.f32 %v6799_v59, %v6603_v46  ;;  %v6367_v55 = vrot.slane %v19881_v23, 1 }
 0x601   : > { %v7445_v60 = vpack.c.bf16 %v7407_v5, %v7407_v5  ;;  %v7251_v16 = vmul.f32 %v17182_v34, %v7208_v57  ;;  %12401 = vmatmul.msk.bf16.gmra.mxu2 %vm82_vm6, %v6363_v36  ;;  %12488 = vmatmul.msk.bf16.gmra.mxu0 %vm82_vm6, %v6985_v56  ;;  %v7707_v6 = vsel %vm297_vm0, %v17341_v51, %v17414_v38  ;;  %v7370_v36 = vld [vmem:[%s19818_s10 + $0x40] sm:$0xff]  ;;  %v20087_v47 = vshll.u32 %v17328_v52, 16 }
 0x602   : > { %12523 = vmatmul.msk.bf16.gmra.mxu1 %vm82_vm6, %v7707_v6  ;;  %v17436_v51 = vor.u32 %v8516_v39, %v8515_v13  ;;  %v17451_v59 = vld [vmem:[#allocation2 + $0x1c] sm:$0xff]  ;;  %v10618_v1 = vor.u32 %v10617_v49, %v10614_v29 }
 0x603   : > { %12445 = vmatmul.msk.bf16.gmra.mxu3 %vm82_vm6, %v6676_v17  ;;  %7483 = vst.msk [vmem:[#allocation2 + $0x24] sm:$0xf] %vm39_vm5, %v7445_v60  ;;  %v7294_v57 = vadd.f32 %v17189_v25, %v7251_v16  ;;  %v6370_v60 = vrot.slane %v19880_v7, 2  ;;  %v20086_v16 = vshrl.u32 %v17328_v52, 16  ;;  %v6987_v2 = vrot.slane %v20087_v47, 3 }
 0x604   : > { %v6524_v31 = vpop.f32.mrf.mxu2  ;;  %v17449_v5 = vsel %vm1115_vm1, %v17365_v42, %v17436_v51  ;;  %20088 = vst [vmem:[#allocation31_spill] sm:$0xff] %v17451_v59  ;;  %v17455_v13 = vsel %vm1115_vm1, %v10618_v1, %v17431_v48  ;;  %v19882_v42 = vrot.slane %v17405_v19, 2  ;;  %v19884_v49 = vshrl.u32 %v17451_v59, 16 }
 0x605   : > { %v7332_v17 = vmax.f32 %v7294_v57, 0.0  ;;  %v6986_v4 = vrot.slane %v20086_v16, 2  ;;  %20089 = vst [vmem:[#allocation32_spill] sm:$0xff] %v17455_v13  ;;  %v6604_v57 = vadd.f32 %v6524_v31, %v16891_v24  ;;  %v17459_v47 = vor.u32 %v6370_v60, %v6367_v55  ;;  %v13225_v55 = vld [vmem:[%s16784_s19 + $0x30] sm:$0xff]  ;;  %v7371_v60 = vld [vmem:[%s19818_s10 + $0x48] sm:$0xff] }
 0x606   : > { %v6802_v44 = vpop.f32.mrf.mxu3  ;;  %v7127_v56 = vpop.f32.mrf.mxu0  ;;  %8348 = vmatpush.bf16.msrb.mxu3 %v13225_v55  ;;  %v20090_v7 = vrot.slane %v17328_v52, 2 }
 0x607   : > { %v7408_v46 = vmul.f32 %v7370_v36, %v7332_v17  ;;  %v7209_v6 = vadd.f32 %v7127_v56, %v6881_v32  ;;  %v17462_v28 = vor.u32 %v6987_v2, %v6986_v4  ;;  %v19883_v36 = vshll.u32 %v17451_v59, 16  ;;  %v13216_v17 = vld [vmem:[%s16784_s19 + $0x90] sm:$0xff] }
 0x608   : > { %v17477_v4 = vld [vmem:[#allocation2 + $0x8c] sm:$0xff]  ;;  %v6882_v2 = vadd.f32 %v6802_v44, %v6604_v57  ;;  %8110 = vmatpush.bf16.msrb.mxu2 %v13216_v17  ;;  %v6372_v37 = vsel %vm297_vm0, %v17379_v45, %v17459_v47  ;;  %v6678_v23 = vsel %vm845_vm2, %v20090_v7, %v19882_v42  ;;  %v10623_v57 = vrot.slane %v19884_v49, 2 }
 0x609   : > { %v7446_v39 = vpack.c.bf16 %v7408_v46, %v7408_v46  ;;  %v7252_v16 = vmul.f32 %v17182_v34, %v7209_v6  ;;  %v6989_v44 = vsel %vm1115_vm1, %v17384_v53, %v17462_v28  ;;  %v10624_v45 = vrot.slane %v19883_v36, 3 }
 0x60a   : > { %v17464_v29 = vld [vmem:[#allocation2 + $0x20] sm:$0xff]   ;;  %v19886_v52 = vshrl.u32 %v17477_v4, 16 }
 0x60b   : > { %7484 = vst.msk [vmem:[#allocation2 + $0x28] sm:$0xf] %vm39_vm5, %v7446_v39  ;;  %v7295_v32 = vadd.f32 %v17189_v25, %v7252_v16  ;;  %v7709_v24 = vshrl.u32 %v17464_v29, 16  ;;  %v7712_v31 = vshll.u32 %v17464_v29, 16 }
 0x60c   : > { %v6526_v56 = vpop.f32.mrf.mxu2 }
 0x60d   : > { %v7333_v1 = vmax.f32 %v7295_v32, 0.0  ;;  %v7711_v6 = vrot.slane %v7709_v24, 1  ;;  %v7714_v39 = vrot.slane %v7712_v31, 2  ;;  %v6605_v13 = vadd.f32 %v6526_v56, %v16903_v12 }
 0x60e   : > { %v6804_v46 = vpop.f32.mrf.mxu3  ;;  %v7130_v16 = vpop.f32.mrf.mxu0  ;;  %v19885_v12 = vshll.u32 %v17477_v4, 16  ;;  %v8520_v56 = vrot.slane %v7712_v31, 3  ;;  %v6376_v31 = vrot.slane %v19886_v52, 1 }
 0x60f   : > { %v7409_v32 = vmul.f32 %v7371_v60, %v7333_v1  ;;  %v7210_v17 = vadd.f32 %v7130_v16, %v6882_v2  ;;  %v17492_v55 = vor.u32 %v7714_v39, %v7711_v6  ;;  %v8519_v60 = vrot.slane %v7709_v24, 2  ;;  %v13229_v1 = vld [vmem:[%s16784_s19 + $0x50] sm:$0xff] }
 0x610   : > { %v7372_v6 = vld [vmem:[%s19818_s10 + $0x50] sm:$0xff]  ;;  %8674 = vmatpush.bf16.msrb.mxu0 %v13229_v1 }
 0x611   : > { %v7447_v7 = vpack.c.bf16 %v7409_v32, %v7409_v32  ;;  %v7253_v42 = vmul.f32 %v17182_v34, %v7210_v17  ;;  %12402 = vmatmul.msk.bf16.gmra.mxu2 %vm82_vm6, %v6372_v37  ;;  %12489 = vmatmul.msk.bf16.gmra.mxu0 %vm82_vm6, %v6989_v44  ;;  %v7716_v53 = vsel %vm297_vm0, %v17414_v38, %v17492_v55  ;;  %v20092_v17 = vshll.u32 %v17405_v19, 16 }
 0x612   : > { %12524 = vmatmul.msk.bf16.gmra.mxu1 %vm82_vm6, %v7716_v53  ;;  %v17510_v37 = vor.u32 %v10624_v45, %v10623_v57  ;;  %v17515_v24 = vor.u32 %v8520_v56, %v8519_v60  ;;  %v20091_v57 = vshrl.u32 %v17405_v19, 16 }
 0x613   : > { %12446 = vmatmul.msk.bf16.gmra.mxu3 %vm82_vm6, %v6678_v23  ;;  %7485 = vst.msk [vmem:[#allocation2 + $0x2c] sm:$0xf] %vm39_vm5, %v7447_v7  ;;  %v7296_v2 = vadd.f32 %v17189_v25, %v7253_v42  ;;  %v6883_v23 = vadd.f32 %v6804_v46, %v6605_v13  ;;  %v6379_v42 = vrot.slane %v19885_v12, 2  ;;  %v6991_v45 = vrot.slane %v20092_v17, 3  ;;  %v17530_v46 = vld [vmem:[#allocation2 + $0x24] sm:$0xff] }
 0x614   : > { %v6529_v38 = vpop.f32.mrf.mxu2  ;;  %v6990_v32 = vrot.slane %v20091_v57, 2  ;;  %v17528_v13 = vsel %vm1115_vm1, %v17436_v51, %v17515_v24  ;;  %20093 = vst [vmem:[#allocation33_spill] sm:$0xff] %v17530_v46  ;;  %v17535_v60 = vsel %vm1115_vm1, %v17431_v48, %v17510_v37  ;;  %v6679_v51 = vrot.slane %v17477_v4, 2 }
 0x615   : > { %v7334_v39 = vmax.f32 %v7296_v2, 0.0  ;;  %20094 = vst [vmem:[#allocation34_spill] sm:$0xff] %v17535_v60  ;;  %v6606_v2 = vadd.f32 %v6529_v38, %v16910_v11  ;;  %v17539_v57 = vor.u32 %v6379_v42, %v6376_v31  ;;  %v13233_v38 = vld [vmem:[%s16784_s19 + $0x70] sm:$0xff]  ;;  %v7373_v31 = vld [vmem:[%s19818_s10 + $0x58] sm:$0xff]  ;;  %v20095_v12 = vrot.slane %v17405_v19, 2 }
 0x616   : > { %v6807_v16 = vpop.f32.mrf.mxu3  ;;  %v7132_v44 = vpop.f32.mrf.mxu0  ;;  %v17542_v17 = vor.u32 %v6991_v45, %v6990_v32  ;;  %v17556_v42 = vld [vmem:[#allocation2 + $0x94] sm:$0xff]  ;;  %9109 = vmatpush.bf16.msrb.mxu1 %v13233_v38  ;;  %v20096_v60 = vshll.u32 %v17530_v46, 16 }
 0x617   : > { %v7410_v7 = vmul.f32 %v7372_v6, %v7334_v39  ;;  %v7211_v53 = vadd.f32 %v7132_v44, %v6883_v23  ;;  %v19890_v6 = vshrl.u32 %v17530_v46, 16  ;;  %v6884_v32 = vadd.f32 %v6807_v16, %v6606_v2 }
 0x618   : > { %v6381_v49 = vsel %vm297_vm0, %v17459_v47, %v17539_v57  ;;  %v6680_v52 = vsel %vm845_vm2, %v20095_v12, %v6679_v51  ;;  %v6993_v16 = vsel %vm1115_vm1, %v17462_v28, %v17542_v17  ;;  %v10628_v47 = vrot.slane %v20096_v60, 3 }
 0x619   : > { %v7448_v56 = vpack.c.bf16 %v7410_v7, %v7410_v7  ;;  %v7254_v1 = vmul.f32 %v17182_v34, %v7211_v53  ;;  %v10627_v2 = vrot.slane %v19890_v6, 2  ;;  %v19892_v19 = vshrl.u32 %v17556_v42, 16 }
 0x61a   : > { %v17544_v36 = vld [vmem:[#allocation2 + $0x28] sm:$0xff]  }
 0x61b   : > { %7486 = vst.msk [vmem:[#allocation2 + $0x30] sm:$0xf] %vm39_vm5, %v7448_v56  ;;  %v7297_v48 = vadd.f32 %v17189_v25, %v7254_v1  ;;  %v7718_v23 = vshrl.u32 %v17544_v36, 16  ;;  %v7721_v11 = vshll.u32 %v17544_v36, 16 }
 0x61c   : > { %v6531_v44 = vpop.f32.mrf.mxu2 }
 0x61d   : > { %v7335_v45 = vmax.f32 %v7297_v48, 0.0  ;;  %v7720_v53 = vrot.slane %v7718_v23, 1  ;;  %v7723_v56 = vrot.slane %v7721_v11, 2  ;;  %v6607_v27 = vadd.f32 %v6531_v44, %v16921_v33 }
 0x61e   : > { %v6809_v7 = vpop.f32.mrf.mxu3  ;;  %v7135_v1 = vpop.f32.mrf.mxu0  ;;  %v19891_v33 = vshll.u32 %v17556_v42, 16  ;;  %v8524_v60 = vrot.slane %v7721_v11, 3 }
 0x61f   : > { %v7411_v48 = vmul.f32 %v7373_v31, %v7335_v45  ;;  %v7212_v38 = vadd.f32 %v7135_v1, %v6884_v32  ;;  %v17571_v39 = vor.u32 %v7723_v56, %v7720_v53  ;;  %v8523_v31 = vrot.slane %v7718_v23, 2 }
 0x620   : > { %v17588_v32 = vor.u32 %v10628_v47, %v10627_v2  ;;  %v6885_v23 = vadd.f32 %v6809_v7, %v6607_v27  ;;  %v6385_v56 = vrot.slane %v19892_v19, 1  ;;  %v20097_v1 = vshrl.u32 %v17477_v4, 16 }
 0x621   : > { %v7449_v59 = vpack.c.bf16 %v7411_v48, %v7411_v48  ;;  %v7255_v12 = vmul.f32 %v17182_v34, %v7212_v38  ;;  %12403 = vmatmul.msk.bf16.gmra.mxu2 %vm82_vm6, %v6381_v49  ;;  %12490 = vmatmul.msk.bf16.gmra.mxu0 %vm82_vm6, %v6993_v16  ;;  %v7725_v28 = vsel %vm297_vm0, %v17492_v55, %v17571_v39  ;;  %v7374_v49 = vld [vmem:[%s19818_s10 + $0x60] sm:$0xff]  ;;  %v20098_v2 = vshll.u32 %v17477_v4, 16 }
 0x622   : > { %12525 = vmatmul.msk.bf16.gmra.mxu1 %vm82_vm6, %v7725_v28  ;;  %v17593_v55 = vor.u32 %v8524_v60, %v8523_v31  ;;  %v6994_v16 = vrot.slane %v20097_v1, 2  ;;  %v17613_v31 = vsel %vm1115_vm1, %v17510_v37, %v17588_v32  ;;  %v7375_v37 = vld [vmem:[%s19818_s10 + $0x68] sm:$0xff] }
 0x623   : > { %12447 = vmatmul.msk.bf16.gmra.mxu3 %vm82_vm6, %v6680_v52  ;;  %7487 = vst.msk [vmem:[#allocation2 + $0x34] sm:$0xf] %vm39_vm5, %v7449_v59  ;;  %v7298_v44 = vadd.f32 %v17189_v25, %v7255_v12  ;;  %v6388_v59 = vrot.slane %v19891_v33, 2  ;;  %v6995_v48 = vrot.slane %v20098_v2, 3 }
 0x624   : > { %v6534_v45 = vpop.f32.mrf.mxu2  ;;  %v17606_v38 = vsel %vm1115_vm1, %v17515_v24, %v17593_v55  ;;  %20099 = vst [vmem:[#allocation35_spill] sm:$0xff] %v17613_v31 }
 0x625   : > { %v7336_v52 = vmax.f32 %v7298_v44, 0.0  ;;  %v6608_v12 = vadd.f32 %v6534_v45, %v16928_v26  ;;  %v17615_v60 = vor.u32 %v6388_v59, %v6385_v56  ;;  %v17617_v44 = vor.u32 %v6995_v48, %v6994_v16  ;;  %v17631_v56 = vld [vmem:[#allocation2 + $0x2c] sm:$0xff] }
 0x626   : > { %v6812_v53 = vpop.f32.mrf.mxu3  ;;  %v7137_v11 = vpop.f32.mrf.mxu0  ;;  %20100 = vst [vmem:[#allocation36_spill] sm:$0xff] %v17631_v56 }
 0x627   : > { %v7412_v27 = vmul.f32 %v7374_v49, %v7336_v52  ;;  %v7213_v7 = vadd.f32 %v7137_v11, %v6885_v23  ;;  %v19897_v49 = vrot.slane %v17556_v42, 2  ;;  %v17629_v52 = vld [vmem:[#allocation2 + $0x9c] sm:$0xff]  ;;  %v6886_v11 = vadd.f32 %v6812_v53, %v6608_v12 }
 0x628   : > { %v19898_v31 = vrot.slane %v17629_v52, 2 }
 0x629   : > { %v7450_v47 = vpack.c.bf16 %v7412_v27, %v7412_v27  ;;  %v7256_v28 = vmul.f32 %v17182_v34, %v7213_v7  ;;  %v6058_v27 = vadd.f32 %v16943_v20, %v16941_v21  ;;  %v6682_v53 = vsel %vm845_vm2, %v6679_v51, %v19897_v49 }
 0x62a   : > { %v17619_v1 = vld [vmem:[#allocation2 + $0x30] sm:$0xff]   ;;  %v19896_v20 = vshrl.u32 %v17629_v52, 16 }
 0x62b   : > { %7488 = vst.msk [vmem:[#allocation2 + $0x38] sm:$0xf] %vm39_vm5, %v7450_v47  ;;  %v7299_v24 = vadd.f32 %v17189_v25, %v7256_v28  ;;  %v7727_v26 = vshrl.u32 %v17619_v1, 16  ;;  %v7730_v45 = vshll.u32 %v17619_v1, 16  ;;  %v6390_v47 = vsel %vm297_vm0, %v17539_v57, %v17615_v60 }
 0x62c   : > { %v6536_v23 = vpop.f32.mrf.mxu2  ;;  %v6997_v28 = vsel %vm1115_vm1, %v17542_v17, %v17617_v44  ;;  %v19893_v57 = vshll.u32 %v17631_v56, 16 }
 0x62d   : > { %v7337_v59 = vmax.f32 %v7299_v24, 0.0  ;;  %v7729_v2 = vrot.slane %v7727_v26, 1  ;;  %v7732_v48 = vrot.slane %v7730_v45, 2  ;;  %v6609_v21 = vadd.f32 %v6536_v23, %v6058_v27  ;;  %v6119_v27 = vld [vmem:[#allocation2 + $0xa4] sm:$0x3] }
 0x62e   : > { %v6814_v16 = vpop.f32.mrf.mxu3  ;;  %v7140_v7 = vpop.f32.mrf.mxu0  ;;  %v19894_v24 = vshrl.u32 %v17631_v56, 16  ;;  %v8527_v51 = vrot.slane %v7727_v26, 2  ;;  %v8528_v23 = vrot.slane %v7730_v45, 3  ;;  %v10632_v45 = vrot.slane %v19893_v57, 3  ;;  %v17732_v56 = vld [vmem:[%s17028_s3] ss:$0 sm:$0xff] }
 0x62f   : > { %v7413_v6 = vmul.f32 %v7375_v37, %v7337_v59  ;;  %v7214_v33 = vadd.f32 %v7140_v7, %v6886_v11  ;;  %v17646_v12 = vor.u32 %v7732_v48, %v7729_v2  ;;  %v19895_v37 = vshll.u32 %v17629_v52, 16 }
 0x630   : > { %v17667_v26 = vor.u32 %v8528_v23, %v8527_v51  ;;  %v6887_v59 = vadd.f32 %v6814_v16, %v6609_v21  ;;  %v20102_v16 = vshll.u32 %v17556_v42, 16 }
 0x631   : > { %v7451_v19 = vpack.c.bf16 %v7413_v6, %v7413_v6  ;;  %v7257_v17 = vmul.f32 %v17182_v34, %v7214_v33  ;;  %12404 = vmatmul.msk.bf16.gmra.mxu2 %vm82_vm6, %v6390_v47  ;;  %12491 = vmatmul.msk.bf16.gmra.mxu0 %vm82_vm6, %v6997_v28  ;;  %v7734_v4 = vsel %vm297_vm0, %v17571_v39, %v17646_v12  ;;  %v7376_v33 = vld [vmem:[%s19818_s10 + $0x70] sm:$0xff]  ;;  %v6394_v39 = vrot.slane %v19896_v20, 1  ;;  %v13215_v20 = vld [vmem:[%s16784_s19 + $0x88] sm:$0xff] }
 0x632   : > { %12526 = vmatmul.msk.bf16.gmra.mxu1 %vm82_vm6, %v7734_v4  ;;  %v6397_v47 = vrot.slane %v19895_v37, 2  ;;  %v20101_v28 = vshrl.u32 %v17556_v42, 16  ;;  %v6999_v21 = vrot.slane %v20102_v16, 3  ;;  %v17684_v23 = vld [vmem:[#allocation2 + $0x34] sm:$0xff]  ;;  %8111 = vmatpush.bf16.msrb.mxu2 %v13215_v20 }
 0x633   : > { %12448 = vmatmul.msk.bf16.gmra.mxu3 %vm82_vm6, %v6682_v53  ;;  %7489 = vst.msk [vmem:[#allocation2 + $0x3c] sm:$0xf] %vm39_vm5, %v7451_v19  ;;  %v7300_v6 = vadd.f32 %v17189_v25, %v7257_v17  ;;  %v10631_v19 = vrot.slane %v19894_v24, 2  ;;  %v17682_v17 = vsel %vm1115_vm1, %v17593_v55, %v17667_v26 }
 0x634   : > { %v6539_v11 = vpop.f32.mrf.mxu2  ;;  %v6998_v53 = vrot.slane %v20101_v28, 2  ;;  %20103 = vst [vmem:[#allocation37_spill] sm:$0xff] %v17684_v23  ;;  %v13224_v28 = vld [vmem:[%s16784_s19 + $0x28] sm:$0xff]  ;;  %v17692_v16 = vor.u32 %v6397_v47, %v6394_v39  ;;  %v6060_v39 = vadd.f32 %v16965_v54, %v16963_v40  ;;  %v13214_v47 = vld [vmem:[%s16784_s19 + $0x80] sm:$0xff]  ;;  %v20104_v54 = vrot.slane %v17556_v42, 2 }
 0x635   : > { %v7338_v2 = vmax.f32 %v7300_v6, 0.0  ;;  %v6209_v6 = vunpack.c.l.b16 %v6119_v27  ;;  %v6610_v24 = vadd.f32 %v6539_v11, %v16954_v14  ;;  %v17690_v49 = vor.u32 %v10632_v45, %v10631_v19  ;;  %8349 = vmatpush.bf16.msrb.mxu3 %v13224_v28 }
 0x636   : > { %v6817_v48 = vpop.f32.mrf.mxu3  ;;  %v7142_v7 = vpop.f32.mrf.mxu0  ;;  %v17695_v55 = vor.u32 %v6999_v21, %v6998_v53  ;;  %v19903_v11 = vshrl.u32 %v17684_v23, 16  ;;  %v13223_v53 = vld [vmem:[%s16784_s19 + $0x20] sm:$0xff]  ;;  %v6399_v40 = vsel %vm297_vm0, %v17615_v60, %v17692_v16  ;;  %8112 = vmatpush.bf16.msrb.mxu2 %v13214_v47 }
 0x637   : > { %v7414_v4 = vmul.f32 %v7376_v33, %v7338_v2  ;;  %v7215_v51 = vadd.f32 %v7142_v7, %v6887_v59  ;;  %v7377_v2 = vld [vmem:[%s19818_s10 + $0x78] sm:$0xff]  ;;  %v17709_v27 = vpack.c.b16 %v6209_v6, %v6209_v6 }
 0x639   : > { %v7452_v57 = vpack.c.bf16 %v7414_v4, %v7414_v4  ;;  %v7258_v37 = vmul.f32 %v17182_v34, %v7215_v51  ;;  %v6684_v4 = vsel %vm845_vm2, %v20104_v54, %v19898_v31  ;;  %v6404_v42 = vshll.u32 %v17709_v27, 16  ;;  %8350 = vmatpush.bf16.msrb.mxu3 %v13223_v53 }
 0x63a   : > { %v17697_v33 = vld [vmem:[#allocation2 + $0x38] sm:$0xff]  }
 0x63b   : > { %7490 = vst.msk [vmem:[#allocation2 + $0x40] sm:$0xf] %vm39_vm5, %v7452_v57  ;;  %v7301_v59 = vadd.f32 %v17189_v25, %v7258_v37  ;;  %v7736_v14 = vshrl.u32 %v17697_v33, 16  ;;  %v7739_v34 = vshll.u32 %v17697_v33, 16  ;;  %v6888_v37 = vadd.f32 %v6817_v48, %v6610_v24 }
 0x63c   : > { %v6541_v57 = vpop.f32.mrf.mxu2  ;;  %v7001_v24 = vsel %vm1115_vm1, %v17617_v44, %v17695_v55  ;;  %v6401_v25 = vshrl.u32 %v17709_v27, 16 }
 0x63d   : > { %v7339_v19 = vmax.f32 %v7301_v59, 0.0  ;;  %v7738_v7 = vrot.slane %v7736_v14, 1  ;;  %v7741_v20 = vrot.slane %v7739_v34, 2  ;;  %v8531_v48 = vrot.slane %v7736_v14, 2 }
 0x63e   : > { %v6819_v45 = vpop.f32.mrf.mxu3  ;;  %v7145_v21 = vpop.f32.mrf.mxu0  ;;  %v10635_v59 = vrot.slane %v19903_v11, 2  ;;  %v6611_v60 = vadd.f32 %v6541_v57, %v6060_v39  ;;  %v8532_v54 = vrot.slane %v7739_v34, 3  ;;  %v20105_v39 = vshll.u32 %v17684_v23, 16 }
 0x63f   : > { %v7415_v51 = vmul.f32 %v7377_v2, %v7339_v19  ;;  %v7216_v6 = vadd.f32 %v7145_v21, %v6888_v37  ;;  %v17725_v28 = vor.u32 %v7741_v20, %v7738_v7  ;;  %v17750_v37 = vld [vmem:[%s17038_s23] ss:$0 sm:$0xff]  ;;  %v6403_v53 = vrot.slane %v6401_v25, 1 }
 0x640   : > { %v10636_v2 = vrot.slane %v20105_v39, 3  ;;  %v17744_v34 = vor.u32 %v8532_v54, %v8531_v48  ;;  %v7378_v20 = vld [vmem:[%s19818_s10 + $0x80] sm:$0xff]  ;;  %v6406_v21 = vrot.slane %v6404_v42, 2  ;;  %v20109_v54 = vshll.u32 %v17629_v52, 16 }
 0x641   : > { %v7453_v31 = vpack.c.bf16 %v7415_v51, %v7415_v51  ;;  %v7259_v44 = vmul.f32 %v17732_v56, %v7216_v6  ;;  %12405 = vmatmul.msk.bf16.gmra.mxu2 %vm82_vm6, %v6399_v40  ;;  %12492 = vmatmul.msk.bf16.gmra.mxu0 %vm82_vm6, %v7001_v24  ;;  %v7743_v14 = vsel %vm297_vm0, %v17646_v12, %v17725_v28  ;;  %v20108_v6 = vshrl.u32 %v17629_v52, 16 }
 0x642   : > { %12527 = vmatmul.msk.bf16.gmra.mxu1 %vm82_vm6, %v7743_v14  ;;  %v17746_v57 = vld [vmem:[#allocation2 + $0x3c] sm:$0xff]  ;;  %v17756_v12 = vsel %vm1115_vm1, %v17588_v32, %v17690_v49  ;;  %v10637_v7 = vor.u32 %v10636_v2, %v10635_v59  ;;  %v7003_v25 = vrot.slane %v20109_v54, 3  ;;  %v6910_v14 = vld [vmem:[#allocation2 + $0xa4] sm:$0x7] }
 0x643   : > { %12449 = vmatmul.msk.bf16.gmra.mxu3 %vm82_vm6, %v6684_v4  ;;  %20106 = vst [vmem:[#allocation38_spill] sm:$0xff] %v17746_v57  ;;  %v7302_v19 = vadd.f32 %v17750_v37, %v7259_v44  ;;  %v19902_v40 = vshrl.u32 %v17746_v57, 16  ;;  %v6889_v4 = vadd.f32 %v6819_v45, %v6611_v60  ;;  %v19901_v32 = vshll.u32 %v17746_v57, 16 }
 0x644   : > { %7491 = vst.msk [vmem:[#allocation2 + $0x44] sm:$0xf] %vm39_vm5, %v7453_v31  ;;  %v6544_v47 = vpop.f32.mrf.mxu2  ;;  %v17764_v31 = vsel %vm1115_vm1, %v17667_v26, %v17744_v34  ;;  %v7002_v59 = vrot.slane %v20108_v6, 2  ;;  %v17774_v42 = vsel %vm1115_vm1, %v17690_v49, %v10637_v7  ;;  %v6407_v45 = vor.u32 %v6406_v21, %v6403_v53 }
 0x645   : > { %20107 = vst [vmem:[#allocation39_spill] sm:$0xff] %v17756_v12  ;;  %v7340_v24 = vmax.f32 %v7302_v19, 0.0  ;;  %v10639_v60 = vrot.slane %v19902_v40, 2  ;;  %v10640_v39 = vrot.slane %v19901_v32, 3  ;;  %v6612_v19 = vadd.f32 %v6544_v47, %v16980_v58  ;;  %v13228_v58 = vld [vmem:[%s16784_s19 + $0x48] sm:$0xff] }
 0x646   : > { %v6822_v48 = vpop.f32.mrf.mxu3  ;;  %v7147_v51 = vpop.f32.mrf.mxu0  ;;  %20110 = vst [vmem:[#allocation40_spill] sm:$0xff] %v17774_v42  ;;  %v17782_v54 = vor.u32 %v7003_v25, %v7002_v59  ;;  %v6685_v21 = vrot.slane %v17709_v27, 2  ;;  %v6062_v47 = vadd.f32 %v16991_v10, %v16989_v9  ;;  %v7379_v59 = vld [vmem:[%s19818_s10 + $0x88] sm:$0xff]  ;;  %8675 = vmatpush.bf16.msrb.mxu0 %v13228_v58 }
 0x647   : > { %v7416_v26 = vmul.f32 %v7378_v20, %v7340_v24  ;;  %v7217_v44 = vadd.f32 %v7147_v51, %v6889_v4  ;;  %v6924_v20 = vunpack.c.l.b16 %v6910_v14  ;;  %v17786_v4 = vor.u32 %v10640_v39, %v10639_v60 }
 0x648   : > { %v6890_v27 = vadd.f32 %v6822_v48, %v6612_v19  ;;  %v7005_v10 = vsel %vm1115_vm1, %v17695_v55, %v17782_v54  ;;  %v13227_v19 = vld [vmem:[%s16784_s19 + $0x40] sm:$0xff] }
 0x649   : > { %v7454_v2 = vpack.c.bf16 %v7416_v26, %v7416_v26  ;;  %v7260_v6 = vmul.f32 %v17732_v56, %v7217_v44  ;;  %v6408_v26 = vsel %vm297_vm0, %v17692_v16, %v6407_v45  ;;  %v17803_v44 = vsel %vm1115_vm1, %v10637_v7, %v17786_v4 }
 0x64a   : > { %20111 = vst [vmem:[#allocation41_spill] sm:$0xff] %v17803_v44  ;;  %v20112_v7 = vrot.slane %v17629_v52, 2  ;;  %8676 = vmatpush.bf16.msrb.mxu0 %v13227_v19 }
 0x64b   : > { %v17784_v49 = vld [vmem:[#allocation2 + $0x40] sm:$0xff]   ;;  %7492 = vst.msk [vmem:[#allocation2 + $0x48] sm:$0xf] %vm39_vm5, %v7454_v2  ;;  %v7303_v53 = vadd.f32 %v17750_v37, %v7260_v6  ;;  %v6925_v6 = vpack.c.b16 %v6924_v20, %v6924_v20 }
 0x64c   : > { %v7745_v24 = vshrl.u32 %v17784_v49, 16  ;;  %v7748_v51 = vshll.u32 %v17784_v49, 16  ;;  %v6546_v25 = vpop.f32.mrf.mxu2  ;;  %v6686_v11 = vsel %vm845_vm2, %v20112_v7, %v6685_v21 }
 0x64d   : > { %v7341_v14 = vmax.f32 %v7303_v53, 0.0  ;;  %v6613_v53 = vadd.f32 %v6546_v25, %v6062_v47  ;;  %v7007_v52 = vshrl.u32 %v6925_v6, 16  ;;  %v7010_v20 = vshll.u32 %v6925_v6, 16 }
 0x64e   : > { %v6824_v60 = vpop.f32.mrf.mxu3  ;;  %v7747_v39 = vrot.slane %v7745_v24, 1  ;;  %v7750_v2 = vrot.slane %v7748_v51, 2  ;;  %v7150_v9 = vpop.f32.mrf.mxu0  ;;  %v8535_v32 = vrot.slane %v7745_v24, 2  ;;  %v8536_v40 = vrot.slane %v7748_v51, 3 }
 0x64f   : > { %v7417_v16 = vmul.f32 %v7379_v59, %v7341_v14  ;;  %v7218_v45 = vadd.f32 %v7150_v9, %v6890_v27  ;;  %v6891_v47 = vadd.f32 %v6824_v60, %v6613_v53  ;;  %v7012_v27 = vrot.slane %v7010_v20, 3  ;;  %v17838_v14 = vpop.f32.mrf.mxu1  ;;  %v17858_v20 = vld [vmem:[#allocation2 + $0x8] sm:$0xff]  }
 0x650   : > { %v17811_v48 = vor.u32 %v7750_v2, %v7747_v39  ;;  %v17814_v44 = vor.u32 %v8536_v40, %v8535_v32 }
 0x651   : > { %v7455_v58 = vpack.c.bf16 %v7417_v16, %v7417_v16  ;;  %v7261_v42 = vmul.f32 %v17732_v56, %v7218_v45  ;;  %12406 = vmatmul.msk.bf16.gmra.mxu2 %vm82_vm6, %v6408_v26  ;;  %12493 = vmatmul.msk.bf16.gmra.mxu0 %vm82_vm6, %v7005_v10  ;;  %v7009_v26 = vrot.slane %v7007_v52, 2  ;;  %v8223_v52 = vrot.slane %v17248_v30, 2 }
 0x652   : > { %v7752_v55 = vsel %vm297_vm0, %v17725_v28, %v17811_v48  ;;  %v17827_v40 = vsel %vm1115_vm1, %v17744_v34, %v17814_v44  ;;  %v17829_v32 = vld [vmem:[#allocation2 + $0x44] sm:$0xff] }
 0x653   : > { %12450 = vmatmul.msk.bf16.gmra.mxu3 %vm82_vm6, %v6686_v11  ;;  %12528 = vmatmul.msk.bf16.gmra.mxu1 %vm82_vm6, %v7752_v55  ;;  %20113 = vst [vmem:[#allocation42_spill] sm:$0xff] %v17829_v32  ;;  %v7304_v21 = vadd.f32 %v17750_v37, %v7261_v42  ;;  %v7380_v11 = vld [vmem:[%s19818_s10 + $0x90] sm:$0xff]  ;;  %v19907_v24 = vshrl.u32 %v17829_v32, 16  ;;  %v19906_v51 = vshll.u32 %v17829_v32, 16  ;;  %v7013_v16 = vor.u32 %v7012_v27, %v7009_v26  ;;  %v7381_v55 = vld [vmem:[%s19818_s10 + $0x98] sm:$0xff] }
 0x654   : > { %7493 = vst.msk [vmem:[#allocation2 + $0x4c] sm:$0xf] %vm39_vm5, %v7455_v58  ;;  %v6549_v28 = vpop.f32.mrf.mxu2  ;;  %v6064_v27 = vadd.f32 %v17015_v18, %v17013_v8 }
 0x655   : > { %v7342_v59 = vmax.f32 %v7304_v21, 0.0  ;;  %v10643_v2 = vrot.slane %v19907_v24, 2  ;;  %v10644_v9 = vrot.slane %v19906_v51, 3  ;;  %v6614_v6 = vadd.f32 %v6549_v28, %v17004_v43 }
 0x656   : > { %v6827_v34 = vpop.f32.mrf.mxu3  ;;  %v7152_v25 = vpop.f32.mrf.mxu0  ;;  %v19908_v21 = vrot.slane %v17858_v20, 2  ;;  %v7014_v30 = vsel %vm1115_vm1, %v17782_v54, %v7013_v16 }
 0x657   : > { %v7418_v39 = vmul.f32 %v7380_v11, %v7342_v59  ;;  %v7219_v42 = vadd.f32 %v7152_v25, %v6891_v47  ;;  %v17848_v7 = vor.u32 %v10644_v9, %v10643_v2  ;;  %v6892_v28 = vadd.f32 %v6827_v34, %v6614_v6 }
 0x658   : > { %v8225_v6 = vsel %vm845_vm2, %v8223_v52, %v19908_v21 }
 0x659   : > { %v7456_v10 = vpack.c.bf16 %v7418_v39, %v7418_v39  ;;  %v7262_v60 = vmul.f32 %v17732_v56, %v7219_v42  ;;  %v17864_v11 = vsel %vm1115_vm1, %v17786_v4, %v17848_v7 }
 0x65a   : > { %20114 = vst [vmem:[#allocation43_spill] sm:$0xff] %v17864_v11 }
 0x65b   : > { %v17846_v45 = vld [vmem:[#allocation2 + $0x48] sm:$0xff]   ;;  %7494 = vst.msk [vmem:[#allocation2 + $0x50] sm:$0xf] %vm39_vm5, %v7456_v10  ;;  %v7305_v19 = vadd.f32 %v17750_v37, %v7262_v60 }
 0x65c   : > { %v7754_v53 = vshrl.u32 %v17846_v45, 16  ;;  %v7757_v58 = vshll.u32 %v17846_v45, 16  ;;  %v6551_v43 = vpop.f32.mrf.mxu2 }
 0x65d   : > { %v7343_v47 = vmax.f32 %v7305_v19, 0.0  ;;  %v6615_v34 = vadd.f32 %v6551_v43, %v6064_v27 }
 0x65e   : > { %v6829_v59 = vpop.f32.mrf.mxu3  ;;  %v7756_v25 = vrot.slane %v7754_v53, 1  ;;  %v7759_v26 = vrot.slane %v7757_v58, 2  ;;  %v7155_v39 = vpop.f32.mrf.mxu0  ;;  %v8539_v42 = vrot.slane %v7754_v53, 2  ;;  %v8540_v2 = vrot.slane %v7757_v58, 3 }
 0x65f   : > { %v7419_v9 = vmul.f32 %v7381_v55, %v7343_v47  ;;  %v7220_v10 = vadd.f32 %v7155_v39, %v6892_v28  ;;  %v17870_v60 = vpop.f32.mrf.mxu1  ;;  %v13232_v55 = vld [vmem:[%s16784_s19 + $0x68] sm:$0xff]  ;;  %v6893_v47 = vadd.f32 %v6829_v59, %v6615_v34 }
 0x660   : > { %v17872_v4 = vor.u32 %v7759_v26, %v7756_v25  ;;  %v17877_v19 = vor.u32 %v8540_v2, %v8539_v42  ;;  %9110 = vmatpush.bf16.msrb.mxu1 %v13232_v55 }
 0x661   : > { %v7457_v8 = vpack.c.bf16 %v7419_v9, %v7419_v9  ;;  %v7263_v18 = vmul.f32 %v17732_v56, %v7220_v10  ;;  %12494 = vmatmul.msk.bf16.gmra.mxu0 %vm82_vm6, %v7014_v30  ;;  %12556 = vmatmul.msk.bf16.vlgmr.msrb.gmra.mxu2 %vm82_vm6, %v17858_v20 }
 0x662   : > { %v7761_v54 = vsel %vm297_vm0, %v17811_v48, %v17872_v4  ;;  %v17891_v16 = vsel %vm1115_vm1, %v17814_v44, %v17877_v19  ;;  %v17893_v53 = vld [vmem:[#allocation2 + $0x4c] sm:$0xff]  ;;  %v7382_v48 = vld [vmem:[%s19818_s10 + $0xa0] sm:$0xff] }
 0x663   : > { %12600 = vmatmul.msk.bf16.vlgmr.msrb.gmra.mxu3 %vm82_vm6, %v8225_v6  ;;  %12529 = vmatmul.msk.bf16.gmra.mxu1 %vm82_vm6, %v7761_v54  ;;  %20115 = vst [vmem:[#allocation44_spill] sm:$0xff] %v17893_v53  ;;  %v7306_v58 = vadd.f32 %v17750_v37, %v7263_v18  ;;  %v19905_v52 = vshrl.u32 %v17893_v53, 16  ;;  %v19904_v28 = vshll.u32 %v17893_v53, 16 }
 0x664   : > { %7495 = vst.msk [vmem:[#allocation2 + $0x54] sm:$0xf] %vm39_vm5, %v7457_v8  ;;  %v6554_v43 = vpop.f32.mrf.mxu2 }
 0x665   : > { %v7344_v25 = vmax.f32 %v7306_v58, 0.0  ;;  %v10647_v42 = vrot.slane %v19905_v52, 2  ;;  %v10648_v2 = vrot.slane %v19904_v28, 3  ;;  %v6616_v10 = vadd.f32 %v6554_v43, %v17030_v41  ;;  %v7383_v58 = vld [vmem:[%s19818_s10 + $0xa8] sm:$0xff]  ;;  %v17922_v41 = vld [vmem:[#allocation2 + $0x10] sm:$0xff]  }
 0x666   : > { %v6832_v44 = vpop.f32.mrf.mxu3  ;;  %v7157_v26 = vpop.f32.mrf.mxu0 }
 0x667   : > { %v7420_v27 = vmul.f32 %v7382_v48, %v7344_v25  ;;  %v7221_v39 = vadd.f32 %v7157_v26, %v6893_v47  ;;  %v17903_v30 = vpop.f32.mrf.mxu1  ;;  %v17913_v34 = vor.u32 %v10648_v2, %v10647_v42  ;;  %v19911_v48 = vrot.slane %v17922_v41, 2 }
 0x668   : > { %v6894_v47 = vadd.f32 %v6832_v44, %v6616_v10  ;;  %v6066_v42 = vadd.f32 %v17046_v62, %v17044_v3 }
 0x669   : > { %v7458_v9 = vpack.c.bf16 %v7420_v27, %v7420_v27  ;;  %v7264_v6 = vmul.f32 %v17732_v56, %v7221_v39  ;;  %v17928_v43 = vsel %vm1115_vm1, %v17848_v7, %v17913_v34  ;;  %v20117_v7 = vrot.slane %v17858_v20, 2 }
 0x66a   : > { %20116 = vst [vmem:[#allocation45_spill] sm:$0xff] %v17928_v43 }
 0x66b   : > { %v17911_v59 = vld [vmem:[#allocation2 + $0x50] sm:$0xff]   ;;  %7496 = vst.msk [vmem:[#allocation2 + $0x58] sm:$0xf] %vm39_vm5, %v7458_v9  ;;  %v7307_v8 = vadd.f32 %v17750_v37, %v7264_v6  ;;  %v8227_v44 = vsel %vm845_vm2, %v20117_v7, %v19911_v48 }
 0x66c   : > { %v7763_v18 = vshrl.u32 %v17911_v59, 16  ;;  %v7766_v54 = vshll.u32 %v17911_v59, 16  ;;  %v6556_v55 = vpop.f32.mrf.mxu2 }
 0x66d   : > { %v7345_v25 = vmax.f32 %v7307_v8, 0.0  ;;  %v6617_v21 = vadd.f32 %v6556_v55, %v6066_v42 }
 0x66e   : > { %v6834_v26 = vpop.f32.mrf.mxu3  ;;  %v7765_v27 = vrot.slane %v7763_v18, 1  ;;  %v7768_v39 = vrot.slane %v7766_v54, 2  ;;  %v7160_v2 = vpop.f32.mrf.mxu0  ;;  %v8543_v9 = vrot.slane %v7763_v18, 2  ;;  %v8544_v6 = vrot.slane %v7766_v54, 3 }
 0x66f   : > { %v7421_v28 = vmul.f32 %v7383_v58, %v7345_v25  ;;  %v7222_v52 = vadd.f32 %v7160_v2, %v6894_v47  ;;  %v17932_v51 = vpop.f32.mrf.mxu1  ;;  %v6895_v58 = vadd.f32 %v6834_v26, %v6617_v21 }
 0x670   : > { %v17934_v24 = vor.u32 %v7768_v39, %v7765_v27  ;;  %v17941_v10 = vor.u32 %v8544_v6, %v8543_v9 }
 0x671   : > { %v7459_v8 = vpack.c.bf16 %v7421_v28, %v7421_v28  ;;  %v7265_v3 = vmul.f32 %v17732_v56, %v7222_v52  ;;  %12557 = vmatmul.msk.bf16.gmra.mxu2 %vm82_vm6, %v17922_v41  ;;  %12644 = vmatmul.msk.bf16.vlgmr.msrb.gmra.mxu0 %vm82_vm6, %v17314_v61  ;;  %v7384_v61 = vld [vmem:[%s19818_s10 + $0xb0] sm:$0xff] }
 0x672   : > { %v7770_v62 = vsel %vm297_vm0, %v17872_v4, %v17934_v24  ;;  %v17956_v20 = vsel %vm1115_vm1, %v17877_v19, %v17941_v10  ;;  %v17958_v52 = vld [vmem:[#allocation2 + $0x54] sm:$0xff] }
 0x673   : > { %12601 = vmatmul.msk.bf16.gmra.mxu3 %vm82_vm6, %v8227_v44  ;;  %12530 = vmatmul.msk.bf16.gmra.mxu1 %vm82_vm6, %v7770_v62  ;;  %20118 = vst [vmem:[#allocation46_spill] sm:$0xff] %v17958_v52  ;;  %v7308_v28 = vadd.f32 %v17750_v37, %v7265_v3  ;;  %v19910_v18 = vshrl.u32 %v17958_v52, 16  ;;  %v19909_v54 = vshll.u32 %v17958_v52, 16  ;;  %v7385_v62 = vld [vmem:[%s19818_s10 + $0xb8] sm:$0xff] }
 0x674   : > { %7497 = vst.msk [vmem:[#allocation2 + $0x5c] sm:$0xf] %vm39_vm5, %v7459_v8  ;;  %v6559_v4 = vpop.f32.mrf.mxu2 }
 0x675   : > { %v7346_v55 = vmax.f32 %v7308_v28, 0.0  ;;  %v10651_v42 = vrot.slane %v19910_v18, 2  ;;  %v10652_v2 = vrot.slane %v19909_v54, 3  ;;  %v6618_v6 = vadd.f32 %v6559_v4, %v17055_v0  ;;  %v17986_v0 = vld [vmem:[#allocation2 + $0x18] sm:$0xff]  }
 0x676   : > { %v6837_v47 = vpop.f32.mrf.mxu3  ;;  %v7162_v19 = vpop.f32.mrf.mxu0 }
 0x677   : > { %v7422_v25 = vmul.f32 %v7384_v61, %v7346_v55  ;;  %v7223_v27 = vadd.f32 %v7162_v19, %v6895_v58  ;;  %v17967_v39 = vpop.f32.mrf.mxu1  ;;  %v17977_v21 = vor.u32 %v10652_v2, %v10651_v42  ;;  %v6896_v58 = vadd.f32 %v6837_v47, %v6618_v6 }
 0x678   : > { %v6068_v42 = vadd.f32 %v17065_v22, %v17063_v50  ;;  %v20121_v47 = vrot.slane %v17922_v41, 2 }
 0x679   : > { %v7460_v9 = vpack.c.bf16 %v7422_v25, %v7422_v25  ;;  %v7266_v7 = vmul.f32 %v17732_v56, %v7223_v27  ;;  %v17992_v4 = vsel %vm1115_vm1, %v17913_v34, %v17977_v21  ;;  %v20120_v34 = vrot.slane %v17986_v0, 2 }
 0x67a   : > { %20119 = vst [vmem:[#allocation47_spill] sm:$0xff] %v17992_v4 }
 0x67b   : > { %v17975_v44 = vld [vmem:[#allocation2 + $0x58] sm:$0xff]   ;;  %7498 = vst.msk [vmem:[#allocation2 + $0x60] sm:$0xf] %vm39_vm5, %v7460_v9  ;;  %v7309_v26 = vadd.f32 %v17750_v37, %v7266_v7  ;;  %v8229_v6 = vsel %vm845_vm2, %v20121_v47, %v20120_v34 }
 0x67c   : > { %v7772_v8 = vshrl.u32 %v17975_v44, 16  ;;  %v7775_v3 = vshll.u32 %v17975_v44, 16  ;;  %v6561_v28 = vpop.f32.mrf.mxu2 }
 0x67d   : > { %v7347_v55 = vmax.f32 %v7309_v26, 0.0  ;;  %v6619_v43 = vadd.f32 %v6561_v28, %v6068_v42 }
 0x67e   : > { %v6839_v19 = vpop.f32.mrf.mxu3  ;;  %v7774_v25 = vrot.slane %v7772_v8, 1  ;;  %v7777_v27 = vrot.slane %v7775_v3, 2  ;;  %v7165_v2 = vpop.f32.mrf.mxu0  ;;  %v8547_v9 = vrot.slane %v7772_v8, 2  ;;  %v8548_v7 = vrot.slane %v7775_v3, 3 }
 0x67f   : > { %v7423_v54 = vmul.f32 %v7385_v62, %v7347_v55  ;;  %v7224_v18 = vadd.f32 %v7165_v2, %v6896_v58  ;;  %v17996_v48 = vpop.f32.mrf.mxu1  ;;  %v6897_v62 = vadd.f32 %v6839_v19, %v6619_v43 }
 0x680   : > { %v17998_v61 = vor.u32 %v7777_v27, %v7774_v25  ;;  %v18005_v26 = vor.u32 %v8548_v7, %v8547_v9 }
 0x681   : > { %v7461_v4 = vpack.c.bf16 %v7423_v54, %v7423_v54  ;;  %v7267_v50 = vmul.f32 %v17732_v56, %v7224_v18  ;;  %12558 = vmatmul.msk.bf16.gmra.mxu2 %vm82_vm6, %v17986_v0  ;;  %12645 = vmatmul.msk.bf16.gmra.mxu0 %vm82_vm6, %v17374_v63  ;;  %v7386_v63 = vld [vmem:[%s19818_s10 + $0xc0] sm:$0xff] }
 0x682   : > { %v7779_v22 = vsel %vm297_vm0, %v17934_v24, %v17998_v61  ;;  %v18020_v41 = vsel %vm1115_vm1, %v17941_v10, %v18005_v26  ;;  %v18022_v18 = vld [vmem:[#allocation2 + $0x5c] sm:$0xff] }
 0x683   : > { %12602 = vmatmul.msk.bf16.gmra.mxu3 %vm82_vm6, %v8229_v6  ;;  %12531 = vmatmul.msk.bf16.gmra.mxu1 %vm82_vm6, %v7779_v22  ;;  %20122 = vst [vmem:[#allocation48_spill] sm:$0xff] %v18022_v18  ;;  %v7310_v54 = vadd.f32 %v17750_v37, %v7267_v50  ;;  %v19913_v8 = vshrl.u32 %v18022_v18, 16  ;;  %v19912_v3 = vshll.u32 %v18022_v18, 16  ;;  %v7387_v50 = vld [vmem:[%s19818_s10 + $0xc8] sm:$0xff] }
 0x684   : > { %7499 = vst.msk [vmem:[#allocation2 + $0x64] sm:$0xf] %vm39_vm5, %v7461_v4  ;;  %v6564_v24 = vpop.f32.mrf.mxu2 }
 0x685   : > { %v7348_v28 = vmax.f32 %v7310_v54, 0.0  ;;  %v10655_v4 = vrot.slane %v19913_v8, 2  ;;  %v10656_v42 = vrot.slane %v19912_v3, 3  ;;  %v6620_v9 = vadd.f32 %v6564_v24, %v17074_v15 }
 0x686   : > { %v6842_v58 = vpop.f32.mrf.mxu3  ;;  %v7167_v10 = vpop.f32.mrf.mxu0 }
 0x687   : > { %v7424_v55 = vmul.f32 %v7386_v63, %v7348_v28  ;;  %v7225_v25 = vadd.f32 %v7167_v10, %v6897_v62  ;;  %v18031_v27 = vpop.f32.mrf.mxu1  ;;  %v18041_v43 = vor.u32 %v10656_v42, %v10655_v4  ;;  %v6898_v63 = vadd.f32 %v6842_v58, %v6620_v9 }
 0x688   : > { %v20127_v58 = vrot.slane %v17986_v0, 2 }
 0x689   : > { %v7462_v2 = vpack.c.bf16 %v7424_v55, %v7424_v55  ;;  %v7268_v7 = vmul.f32 %v17732_v56, %v7225_v25  ;;  %v18054_v54 = vsel %vm1115_vm1, %v17977_v21, %v18041_v43  ;;  %v20124_v55 = vld [vmem:[#allocation12_spill] sm:$0xff]  ;;  %v20125_v25 = vld [vmem:[#allocation23_spill] sm:$0xff]  ;;  %v20126_v21 = vrot.slane %v17464_v29, 2 }
 0x68a   : > { %20123 = vst [vmem:[#allocation49_spill] sm:$0xff] %v18054_v54  ;;  %v6070_v4 = vadd.f32 %v20125_v25, %v20124_v55 }
 0x68b   : > { %v18039_v34 = vld [vmem:[#allocation2 + $0x60] sm:$0xff]   ;;  %7500 = vst.msk [vmem:[#allocation2 + $0x68] sm:$0xf] %vm39_vm5, %v7462_v2  ;;  %v7311_v19 = vadd.f32 %v17750_v37, %v7268_v7  ;;  %v8231_v9 = vsel %vm845_vm2, %v20127_v58, %v20126_v21 }
 0x68c   : > { %v7781_v47 = vshrl.u32 %v18039_v34, 16  ;;  %v7784_v6 = vshll.u32 %v18039_v34, 16  ;;  %v6566_v22 = vpop.f32.mrf.mxu2 }
 0x68d   : > { %v7349_v24 = vmax.f32 %v7311_v19, 0.0  ;;  %v6621_v12 = vadd.f32 %v6566_v22, %v6070_v4 }
 0x68e   : > { %v6844_v62 = vpop.f32.mrf.mxu3  ;;  %v7783_v28 = vrot.slane %v7781_v47, 1  ;;  %v7786_v10 = vrot.slane %v7784_v6, 2  ;;  %v7170_v42 = vpop.f32.mrf.mxu0  ;;  %v8551_v2 = vrot.slane %v7781_v47, 2  ;;  %v8552_v7 = vrot.slane %v7784_v6, 3  ;;  %v14038_v47 = vld [vmem:[#allocation2 + $0x20] sm:$0xff]  }
 0x68f   : > { %v7425_v3 = vmul.f32 %v7387_v50, %v7349_v24  ;;  %v7226_v8 = vadd.f32 %v7170_v42, %v6898_v63  ;;  %v18058_v11 = vpop.f32.mrf.mxu1  ;;  %v6899_v63 = vadd.f32 %v6844_v62, %v6621_v12 }
 0x690   : > { %v18060_v15 = vor.u32 %v7786_v10, %v7783_v28  ;;  %v18067_v19 = vor.u32 %v8552_v7, %v8551_v2  ;;  %v20129_v7 = vld [vmem:[#allocation13_spill] sm:$0xff] }
 0x691   : > { %v7463_v54 = vpack.c.bf16 %v7425_v3, %v7425_v3  ;;  %v7269_v55 = vmul.f32 %v17732_v56, %v7226_v8  ;;  %12559 = vmatmul.msk.bf16.gmra.mxu2 %vm82_vm6, %v14038_v47  ;;  %12646 = vmatmul.msk.bf16.gmra.mxu0 %vm82_vm6, %v17449_v5  ;;  %v7388_v5 = vld [vmem:[%s19818_s10 + $0xd0] sm:$0xff] }
 0x692   : > { %v7788_v6 = vsel %vm297_vm0, %v17998_v61, %v18060_v15  ;;  %v18081_v0 = vsel %vm1115_vm1, %v18005_v26, %v18067_v19  ;;  %v18083_v8 = vld [vmem:[#allocation2 + $0x64] sm:$0xff] }
 0x693   : > { %12603 = vmatmul.msk.bf16.gmra.mxu3 %vm82_vm6, %v8231_v9  ;;  %12532 = vmatmul.msk.bf16.gmra.mxu1 %vm82_vm6, %v7788_v6  ;;  %20128 = vst [vmem:[#allocation12_spill] sm:$0xff] %v18083_v8  ;;  %v7312_v3 = vadd.f32 %v17750_v37, %v7269_v55  ;;  %v19915_v50 = vshrl.u32 %v18083_v8, 16  ;;  %v19914_v22 = vshll.u32 %v18083_v8, 16  ;;  %v7389_v6 = vld [vmem:[%s19818_s10 + $0xd8] sm:$0xff] }
 0x694   : > { %7501 = vst.msk [vmem:[#allocation2 + $0x6c] sm:$0xf] %vm39_vm5, %v7463_v54  ;;  %v6569_v61 = vpop.f32.mrf.mxu2 }
 0x695   : > { %v7350_v24 = vmax.f32 %v7312_v3, 0.0  ;;  %v10659_v54 = vrot.slane %v19915_v50, 2  ;;  %v10660_v42 = vrot.slane %v19914_v22, 3  ;;  %v6622_v21 = vadd.f32 %v6569_v61, %v20129_v7 }
 0x696   : > { %v6847_v28 = vpop.f32.mrf.mxu3  ;;  %v7172_v26 = vpop.f32.mrf.mxu0 }
 0x697   : > { %v7426_v10 = vmul.f32 %v7388_v5, %v7350_v24  ;;  %v7227_v25 = vadd.f32 %v7172_v26, %v6899_v63  ;;  %v18092_v4 = vpop.f32.mrf.mxu1  ;;  %v10661_v12 = vor.u32 %v10660_v42, %v10659_v54  ;;  %v6900_v63 = vadd.f32 %v6847_v28, %v6622_v21  ;;  %v20131_v54 = vld [vmem:[#allocation14_spill] sm:$0xff]  ;;  %v20132_v42 = vld [vmem:[#allocation24_spill] sm:$0xff] }
 0x698   : > { %v20134_v28 = vrot.slane %v17464_v29, 2 }
 0x699   : > { %v7464_v2 = vpack.c.bf16 %v7426_v10, %v7426_v10  ;;  %v7270_v58 = vmul.f32 %v17732_v56, %v7227_v25  ;;  %v18112_v61 = vsel %vm1115_vm1, %v18041_v43, %v10661_v12  ;;  %v20133_v43 = vrot.slane %v17544_v36, 2 }
 0x69a   : > { %20130 = vst [vmem:[#allocation23_spill] sm:$0xff] %v18112_v61 }
 0x69b   : > { %v18100_v9 = vld [vmem:[#allocation2 + $0x68] sm:$0xff]   ;;  %7502 = vst.msk [vmem:[#allocation2 + $0x70] sm:$0xf] %vm39_vm5, %v7464_v2  ;;  %v7313_v62 = vadd.f32 %v17750_v37, %v7270_v58  ;;  %v6072_v2 = vadd.f32 %v20132_v42, %v20131_v54  ;;  %v8233_v21 = vsel %vm845_vm2, %v20134_v28, %v20133_v43 }
 0x69c   : > { %v7790_v55 = vshrl.u32 %v18100_v9, 16  ;;  %v7793_v47 = vshll.u32 %v18100_v9, 16  ;;  %v6571_v3 = vpop.f32.mrf.mxu2  ;;  %v20136_v42 = vld [vmem:[#allocation15_spill] sm:$0xff] }
 0x69d   : > { %v7351_v24 = vmax.f32 %v7313_v62, 0.0  ;;  %v6623_v52 = vadd.f32 %v6571_v3, %v6072_v2 }
 0x69e   : > { %v6849_v26 = vpop.f32.mrf.mxu3  ;;  %v7792_v10 = vrot.slane %v7790_v55, 1  ;;  %v7795_v25 = vrot.slane %v7793_v47, 2  ;;  %v7175_v7 = vpop.f32.mrf.mxu0  ;;  %v8555_v58 = vrot.slane %v7790_v55, 2  ;;  %v8556_v22 = vrot.slane %v7793_v47, 3 }
 0x69f   : > { %v7427_v50 = vmul.f32 %v7389_v6, %v7351_v24  ;;  %v7228_v8 = vadd.f32 %v7175_v7, %v6900_v63  ;;  %v18116_v18 = vpop.f32.mrf.mxu1  ;;  %v6901_v6 = vadd.f32 %v6849_v26, %v6623_v52 }
 0x6a0   : > { %v7796_v5 = vor.u32 %v7795_v25, %v7792_v10  ;;  %v8557_v62 = vor.u32 %v8556_v22, %v8555_v58 }
 0x6a1   : > { %v7465_v61 = vpack.c.bf16 %v7427_v50, %v7427_v50  ;;  %v7271_v53 = vmul.f32 %v17732_v56, %v7228_v8  ;;  %12560 = vmatmul.msk.bf16.gmra.mxu2 %vm82_vm6, %v17544_v36  ;;  %12647 = vmatmul.msk.bf16.gmra.mxu0 %vm82_vm6, %v17528_v13  ;;  %v7390_v13 = vld [vmem:[%s19818_s10 + $0xe0] sm:$0xff] }
 0x6a2   : > { %v7797_v55 = vsel %vm297_vm0, %v18060_v15, %v7796_v5  ;;  %v18134_v29 = vsel %vm1115_vm1, %v18067_v19, %v8557_v62  ;;  %v18136_v50 = vld [vmem:[#allocation2 + $0x6c] sm:$0xff] }
 0x6a3   : > { %12604 = vmatmul.msk.bf16.gmra.mxu3 %vm82_vm6, %v8233_v21  ;;  %12533 = vmatmul.msk.bf16.gmra.mxu1 %vm82_vm6, %v7797_v55  ;;  %20135 = vst [vmem:[#allocation13_spill] sm:$0xff] %v18136_v50  ;;  %v7314_v8 = vadd.f32 %v17750_v37, %v7271_v53  ;;  %v19925_v15 = vshrl.u32 %v18136_v50, 16  ;;  %v19924_v47 = vshll.u32 %v18136_v50, 16  ;;  %v7391_v21 = vld [vmem:[%s19818_s10 + $0xe8] sm:$0xff] }
 0x6a4   : > { %7503 = vst.msk [vmem:[#allocation2 + $0x74] sm:$0xf] %vm39_vm5, %v7465_v61  ;;  %v6574_v22 = vpop.f32.mrf.mxu2 }
 0x6a5   : > { %v7352_v3 = vmax.f32 %v7314_v8, 0.0  ;;  %v10663_v53 = vrot.slane %v19925_v15, 2  ;;  %v10664_v61 = vrot.slane %v19924_v47, 3  ;;  %v6624_v2 = vadd.f32 %v6574_v22, %v20136_v42 }
 0x6a6   : > { %v6852_v63 = vpop.f32.mrf.mxu3  ;;  %v7177_v19 = vpop.f32.mrf.mxu0 }
 0x6a7   : > { %v7428_v24 = vmul.f32 %v7390_v13, %v7352_v3  ;;  %v7229_v10 = vadd.f32 %v7177_v19, %v6901_v6  ;;  %v18145_v25 = vpop.f32.mrf.mxu1  ;;  %v18155_v52 = vor.u32 %v10664_v61, %v10663_v53  ;;  %v6902_v22 = vadd.f32 %v6852_v63, %v6624_v2  ;;  %v20139_v53 = vld [vmem:[#allocation25_spill] sm:$0xff] }
 0x6a8   : > { %v20140_v63 = vrot.slane %v17619_v1, 2  ;;  %v20141_v2 = vrot.slane %v17544_v36, 2 }
 0x6a9   : > { %v7466_v54 = vpack.c.bf16 %v7428_v24, %v7428_v24  ;;  %v7272_v7 = vmul.f32 %v17732_v56, %v7229_v10  ;;  %v18167_v13 = vsel %vm1115_vm1, %v10661_v12, %v18155_v52  ;;  %v20138_v10 = vld [vmem:[#allocation16_spill] sm:$0xff] }
 0x6aa   : > { %20137 = vst [vmem:[#allocation14_spill] sm:$0xff] %v18167_v13  ;;  %v6074_v61 = vadd.f32 %v20139_v53, %v20138_v10 }
 0x6ab   : > { %v18153_v58 = vld [vmem:[#allocation2 + $0x70] sm:$0xff]   ;;  %7504 = vst.msk [vmem:[#allocation2 + $0x78] sm:$0xf] %vm39_vm5, %v7466_v54  ;;  %v7315_v26 = vadd.f32 %v17750_v37, %v7272_v7 }
 0x6ac   : > { %v7799_v43 = vshrl.u32 %v18153_v58, 16  ;;  %v7802_v28 = vshll.u32 %v18153_v58, 16  ;;  %v6576_v55 = vpop.f32.mrf.mxu2 }
 0x6ad   : > { %v7353_v6 = vmax.f32 %v7315_v26, 0.0  ;;  %v6625_v12 = vadd.f32 %v6576_v55, %v6074_v61  ;;  %v8235_v26 = vsel %vm845_vm2, %v20141_v2, %v20140_v63  ;;  %v20143_v2 = vld [vmem:[#allocation17_spill] sm:$0xff] }
 0x6ae   : > { %v6854_v3 = vpop.f32.mrf.mxu3  ;;  %v7801_v19 = vrot.slane %v7799_v43, 1  ;;  %v7804_v24 = vrot.slane %v7802_v28, 2  ;;  %v7180_v54 = vpop.f32.mrf.mxu0  ;;  %v8559_v42 = vrot.slane %v7799_v43, 2  ;;  %v8560_v7 = vrot.slane %v7802_v28, 3 }
 0x6af   : > { %v7429_v47 = vmul.f32 %v7391_v21, %v7353_v6  ;;  %v7230_v15 = vadd.f32 %v7180_v54, %v6902_v22  ;;  %v18171_v50 = vpop.f32.mrf.mxu1  ;;  %v13231_v21 = vld [vmem:[%s16784_s19 + $0x60] sm:$0xff]  ;;  %v6903_v6 = vadd.f32 %v6854_v3, %v6625_v12 }
 0x6b0   : > { %v18173_v8 = vor.u32 %v7804_v24, %v7801_v19  ;;  %v18180_v13 = vor.u32 %v8560_v7, %v8559_v42  ;;  %9111 = vmatpush.bf16.msrb.mxu1 %v13231_v21  ;;  %v7393_v21 = vld [vmem:[%s19818_s10 + $0xf8] sm:$0xff] }
 0x6b1   : > { %v7467_v10 = vpack.c.bf16 %v7429_v47, %v7429_v47  ;;  %v7273_v43 = vmul.f32 %v17732_v56, %v7230_v15  ;;  %12561 = vmatmul.msk.bf16.gmra.mxu2 %vm82_vm6, %v17619_v1  ;;  %12648 = vmatmul.msk.bf16.gmra.mxu0 %vm82_vm6, %v17606_v38  ;;  %v7392_v38 = vld [vmem:[%s19818_s10 + $0xf0] sm:$0xff] }
 0x6b2   : > { %v7806_v28 = vsel %vm297_vm0, %v7796_v5, %v18173_v8  ;;  %v18193_v36 = vsel %vm1115_vm1, %v8557_v62, %v18180_v13  ;;  %v18195_v47 = vld [vmem:[#allocation2 + $0x74] sm:$0xff] }
 0x6b3   : > { %12605 = vmatmul.msk.bf16.gmra.mxu3 %vm82_vm6, %v8235_v26  ;;  %12534 = vmatmul.msk.bf16.gmra.mxu1 %vm82_vm6, %v7806_v28  ;;  %20142 = vst [vmem:[#allocation24_spill] sm:$0xff] %v18195_v47  ;;  %v7316_v15 = vadd.f32 %v17750_v37, %v7273_v43  ;;  %v19929_v55 = vshrl.u32 %v18195_v47, 16  ;;  %v19928_v22 = vshll.u32 %v18195_v47, 16 }
 0x6b4   : > { %7505 = vst.msk [vmem:[#allocation2 + $0x7c] sm:$0xf] %vm39_vm5, %v7467_v10  ;;  %v6579_v5 = vpop.f32.mrf.mxu2 }
 0x6b5   : > { %v7354_v19 = vmax.f32 %v7316_v15, 0.0  ;;  %v10667_v42 = vrot.slane %v19929_v55, 2  ;;  %v10668_v7 = vrot.slane %v19928_v22, 3  ;;  %v6626_v26 = vadd.f32 %v6579_v5, %v20143_v2 }
 0x6b6   : > { %v6857_v62 = vpop.f32.mrf.mxu3  ;;  %v7182_v24 = vpop.f32.mrf.mxu0 }
 0x6b7   : > { %v7430_v53 = vmul.f32 %v7392_v38, %v7354_v19  ;;  %v7231_v61 = vadd.f32 %v7182_v24, %v6903_v6  ;;  %v18205_v54 = vpop.f32.mrf.mxu1  ;;  %v10669_v12 = vor.u32 %v10668_v7, %v10667_v42  ;;  %v6904_v19 = vadd.f32 %v6857_v62, %v6626_v26  ;;  %v20145_v7 = vld [vmem:[#allocation18_spill] sm:$0xff] }
 0x6b8   : > { %v20148_v62 = vrot.slane %v17619_v1, 2 }
 0x6b9   : > { %v7468_v63 = vpack.c.bf16 %v7430_v53, %v7430_v53  ;;  %v7274_v10 = vmul.f32 %v17732_v56, %v7231_v61  ;;  %v18225_v6 = vsel %vm1115_vm1, %v18155_v52, %v10669_v12  ;;  %v20147_v52 = vrot.slane %v17697_v33, 2 }
 0x6ba   : > { %20144 = vst [vmem:[#allocation15_spill] sm:$0xff] %v18225_v6 }
 0x6bb   : > { %v18213_v3 = vld [vmem:[#allocation2 + $0x78] sm:$0xff]   ;;  %7506 = vst.msk [vmem:[#allocation2 + $0x80] sm:$0xf] %vm39_vm5, %v7468_v63  ;;  %v7317_v43 = vadd.f32 %v17750_v37, %v7274_v10  ;;  %v20146_v63 = vld [vmem:[#allocation26_spill] sm:$0xff]  ;;  %v8237_v26 = vsel %vm845_vm2, %v20148_v62, %v20147_v52 }
 0x6bc   : > { %v7808_v28 = vshrl.u32 %v18213_v3, 16  ;;  %v7811_v15 = vshll.u32 %v18213_v3, 16  ;;  %v6581_v38 = vpop.f32.mrf.mxu2  ;;  %v6076_v2 = vadd.f32 %v20146_v63, %v20145_v7  ;;  %v20150_v7 = vld [vmem:[#allocation19_spill] sm:$0xff] }
 0x6bd   : > { %v7355_v24 = vmax.f32 %v7317_v43, 0.0 }
 0x6be   : > { %v6859_v53 = vpop.f32.mrf.mxu3  ;;  %v7810_v61 = vrot.slane %v7808_v28, 1  ;;  %v7813_v42 = vrot.slane %v7811_v15, 2  ;;  %v7185_v10 = vpop.f32.mrf.mxu0  ;;  %v8563_v22 = vrot.slane %v7808_v28, 2  ;;  %v8564_v55 = vrot.slane %v7811_v15, 3 }
 0x6bf   : > { %v7431_v47 = vmul.f32 %v7393_v21, %v7355_v24  ;;  %v7232_v32 = vadd.f32 %v7185_v10, %v6904_v19  ;;  %v18229_v57 = vpop.f32.mrf.mxu1  ;;  %v6627_v23 = vadd.f32 %v6581_v38, %v6076_v2 }
 0x6c0   : > { %v7814_v5 = vor.u32 %v7813_v42, %v7810_v61  ;;  %v8565_v43 = vor.u32 %v8564_v55, %v8563_v22 }
 0x6c1   : > { %v7469_v6 = vpack.c.bf16 %v7431_v47, %v7431_v47  ;;  %v7275_v46 = vmul.f32 %v17732_v56, %v7232_v32  ;;  %12562 = vmatmul.msk.bf16.gmra.mxu2 %vm82_vm6, %v17697_v33  ;;  %12649 = vmatmul.msk.bf16.gmra.mxu0 %vm82_vm6, %v17682_v17  ;;  %v7394_v17 = vld [vmem:[%s19818_s10 + $0x100] sm:$0xff]  ;;  %v6905_v15 = vadd.f32 %v6859_v53, %v6627_v23 }
 0x6c2   : > { %v7815_v28 = vsel %vm297_vm0, %v18173_v8, %v7814_v5  ;;  %v18247_v1 = vsel %vm1115_vm1, %v18180_v13, %v8565_v43  ;;  %v18249_v47 = vld [vmem:[#allocation2 + $0x7c] sm:$0xff] }
 0x6c3   : > { %12606 = vmatmul.msk.bf16.gmra.mxu3 %vm82_vm6, %v8237_v26  ;;  %12535 = vmatmul.msk.bf16.gmra.mxu1 %vm82_vm6, %v7815_v28  ;;  %20149 = vst [vmem:[#allocation16_spill] sm:$0xff] %v18249_v47  ;;  %v7318_v32 = vadd.f32 %v17750_v37, %v7275_v46  ;;  %v19941_v8 = vshrl.u32 %v18249_v47, 16  ;;  %v19940_v22 = vshll.u32 %v18249_v47, 16  ;;  %v7395_v26 = vld [vmem:[%s19818_s10 + $0x108] sm:$0xff] }
 0x6c4   : > { %7507 = vst.msk [vmem:[#allocation2 + $0x84] sm:$0xf] %vm39_vm5, %v7469_v6  ;;  %v6584_v55 = vpop.f32.mrf.mxu2 }
 0x6c5   : > { %v7356_v21 = vmax.f32 %v7318_v32, 0.0  ;;  %v10671_v46 = vrot.slane %v19941_v8, 2  ;;  %v10672_v6 = vrot.slane %v19940_v22, 3  ;;  %v6628_v63 = vadd.f32 %v6584_v55, %v20150_v7 }
 0x6c6   : > { %v6862_v38 = vpop.f32.mrf.mxu3  ;;  %v7187_v13 = vpop.f32.mrf.mxu0 }
 0x6c7   : > { %v7432_v19 = vmul.f32 %v7394_v17, %v7356_v21  ;;  %v7233_v24 = vadd.f32 %v7187_v13, %v6905_v15  ;;  %v18258_v61 = vpop.f32.mrf.mxu1  ;;  %v18268_v23 = vor.u32 %v10672_v6, %v10671_v46  ;;  %v6906_v55 = vadd.f32 %v6862_v38, %v6628_v63  ;;  %v20153_v46 = vld [vmem:[#allocation27_spill] sm:$0xff] }
 0x6c8   : > { %v20155_v38 = vrot.slane %v17697_v33, 2 }
 0x6c9   : > { %v7470_v42 = vpack.c.bf16 %v7432_v19, %v7432_v19  ;;  %v7276_v2 = vmul.f32 %v17732_v56, %v7233_v24  ;;  %v18280_v17 = vsel %vm1115_vm1, %v10669_v12, %v18268_v23  ;;  %v20152_v24 = vld [vmem:[#allocation20_spill] sm:$0xff]  ;;  %v20154_v12 = vrot.slane %v17784_v49, 2 }
 0x6ca   : > { %20151 = vst [vmem:[#allocation25_spill] sm:$0xff] %v18280_v17  ;;  %v6078_v6 = vadd.f32 %v20153_v46, %v20152_v24 }
 0x6cb   : > { %v18266_v10 = vld [vmem:[#allocation2 + $0x80] sm:$0xff]   ;;  %7508 = vst.msk [vmem:[#allocation2 + $0x88] sm:$0xf] %vm39_vm5, %v7470_v42  ;;  %v7319_v53 = vadd.f32 %v17750_v37, %v7276_v2  ;;  %v8239_v63 = vsel %vm845_vm2, %v20155_v38, %v20154_v12 }
 0x6cc   : > { %v7817_v52 = vshrl.u32 %v18266_v10, 16  ;;  %v7820_v62 = vshll.u32 %v18266_v10, 16  ;;  %v6586_v28 = vpop.f32.mrf.mxu2  ;;  %v14040_v12 = vld [vmem:[%s17038_s23] ss:$0 sm:$0xff] }
 0x6cd   : > { %v7357_v15 = vmax.f32 %v7319_v53, 0.0  ;;  %v6629_v35 = vadd.f32 %v6586_v28, %v6078_v6  ;;  %v20158_v6 = vld [vmem:[#allocation21_spill] sm:$0xff] }
 0x6ce   : > { %v6864_v21 = vpop.f32.mrf.mxu3  ;;  %v7819_v13 = vrot.slane %v7817_v52, 1  ;;  %v7822_v19 = vrot.slane %v7820_v62, 2  ;;  %v7190_v42 = vpop.f32.mrf.mxu0  ;;  %v8567_v7 = vrot.slane %v7817_v52, 2  ;;  %v8568_v2 = vrot.slane %v7820_v62, 3 }
 0x6cf   : > { %v7433_v22 = vmul.f32 %v7395_v26, %v7357_v15  ;;  %v7234_v8 = vadd.f32 %v7190_v42, %v6906_v55  ;;  %v6907_v26 = vadd.f32 %v6864_v21, %v6629_v35 }
 0x6d0   : > { %v18284_v47 = vpop.f32.mrf.mxu1  ;;  %v18286_v32 = vor.u32 %v7822_v19, %v7819_v13  ;;  %v18293_v53 = vor.u32 %v8568_v2, %v8567_v7  ;;  %v14039_v7 = vld [vmem:[%s17028_s3] ss:$0 sm:$0xff] }
 0x6d1   : > { %v7471_v17 = vpack.c.bf16 %v7433_v22, %v7433_v22  ;;  %v7277_v24 = vmul.f32 %v17732_v56, %v7234_v8  ;;  %12563 = vmatmul.msk.bf16.gmra.mxu2 %vm82_vm6, %v17784_v49  ;;  %12650 = vmatmul.msk.bf16.gmra.mxu0 %vm82_vm6, %v17764_v31  ;;  %v7396_v31 = vld [vmem:[%s19818_s10 + $0x110] sm:$0xff] }
 0x6d2   : > { %v7824_v52 = vsel %vm297_vm0, %v7814_v5, %v18286_v32  ;;  %v18306_v33 = vsel %vm1115_vm1, %v8565_v43, %v18293_v53  ;;  %v18308_v22 = vld [vmem:[#allocation2 + $0x84] sm:$0xff] }
 0x6d3   : > { %12607 = vmatmul.msk.bf16.gmra.mxu3 %vm82_vm6, %v8239_v63  ;;  %12536 = vmatmul.msk.bf16.gmra.mxu1 %vm82_vm6, %v7824_v52  ;;  %20156 = vst [vmem:[#allocation17_spill] sm:$0xff] %v18306_v33  ;;  %v7320_v56 = vadd.f32 %v17750_v37, %v7277_v24  ;;  %v19947_v8 = vshrl.u32 %v18308_v22, 16  ;;  %v19946_v62 = vshll.u32 %v18308_v22, 16  ;;  %v7397_v52 = vld [vmem:[%s19818_s10 + $0x118] sm:$0xff] }
 0x6d4   : > { %20157 = vst [vmem:[#allocation18_spill] sm:$0xff] %v18308_v22  ;;  %v6589_v5 = vpop.f32.mrf.mxu2 }
 0x6d5   : > { %7509 = vst.msk [vmem:[#allocation2 + $0x8c] sm:$0xf] %vm39_vm5, %v7471_v17  ;;  %v7358_v43 = vmax.f32 %v7320_v56, 0.0  ;;  %v10675_v37 = vrot.slane %v19947_v8, 2  ;;  %v10676_v19 = vrot.slane %v19946_v62, 3  ;;  %v6630_v42 = vadd.f32 %v6589_v5, %v20158_v6 }
 0x6d6   : > { %v6867_v28 = vpop.f32.mrf.mxu3  ;;  %v7192_v55 = vpop.f32.mrf.mxu0 }
 0x6d7   : > { %v7434_v15 = vmul.f32 %v7396_v31, %v7358_v43  ;;  %v7235_v13 = vadd.f32 %v7192_v55, %v6907_v26  ;;  %v18327_v21 = vor.u32 %v10676_v19, %v10675_v37  ;;  %v6908_v26 = vadd.f32 %v6867_v28, %v6630_v42  ;;  %v20160_v37 = vld [vmem:[#allocation28_spill] sm:$0xff] }
 0x6d8   : > { %v18317_v17 = vpop.f32.mrf.mxu1  ;;  %v6080_v19 = vadd.f32 %v17838_v14, %v20160_v37  ;;  %v20162_v28 = vrot.slane %v17784_v49, 2 }
 0x6d9   : > { %v7472_v46 = vpack.c.bf16 %v7434_v15, %v7434_v15  ;;  %v7278_v2 = vmul.f32 %v14039_v7, %v7235_v13  ;;  %v18340_v5 = vsel %vm1115_vm1, %v18268_v23, %v18327_v21  ;;  %v20161_v23 = vrot.slane %v17846_v45, 2 }
 0x6da   : > { %20159 = vst [vmem:[#allocation26_spill] sm:$0xff] %v18340_v5 }
 0x6db   : > { %7510 = vst.msk [vmem:[#allocation2 + $0x90] sm:$0xf] %vm39_vm5, %v7472_v46  ;;  %v7321_v38 = vadd.f32 %v14040_v12, %v7278_v2  ;;  %v8241_v42 = vsel %vm845_vm2, %v20162_v28, %v20161_v23 }
 0x6dc   : > { %v18325_v35 = vld [vmem:[#allocation2 + $0x88] sm:$0xff]   ;;  %v6591_v56 = vpop.f32.mrf.mxu2 }
 0x6dd   : > { %v7826_v63 = vshrl.u32 %v18325_v35, 16  ;;  %v7829_v24 = vshll.u32 %v18325_v35, 16  ;;  %v7359_v43 = vmax.f32 %v7321_v38, 0.0  ;;  %v6631_v33 = vadd.f32 %v6591_v56, %v6080_v19 }
 0x6de   : > { %v6869_v55 = vpop.f32.mrf.mxu3  ;;  %v7195_v46 = vpop.f32.mrf.mxu0 }
 0x6df   : > { %v7828_v15 = vrot.slane %v7826_v63, 1  ;;  %v7831_v13 = vrot.slane %v7829_v24, 2  ;;  %v8571_v6 = vrot.slane %v7826_v63, 2  ;;  %v8572_v2 = vrot.slane %v7829_v24, 3 }
 0x6e0   : > { %v7435_v62 = vmul.f32 %v7397_v52, %v7359_v43  ;;  %v7236_v8 = vadd.f32 %v7195_v46, %v6908_v26  ;;  %v18344_v22 = vpop.f32.mrf.mxu1  ;;  %v6909_v56 = vadd.f32 %v6869_v55, %v6631_v33  ;;  %v13257_v46 = vld [vmem:[%s16784_s19 + $0xb8] sm:$0xff] }
 0x6e1   : > { %v18346_v31 = vor.u32 %v7831_v13, %v7828_v15  ;;  %v18353_v38 = vor.u32 %v8572_v2, %v8571_v6  ;;  %12564 = vmatmul.msk.bf16.gmra.mxu2 %vm82_vm6, %v17846_v45  ;;  %12651 = vmatmul.msk.bf16.gmra.mxu0 %vm82_vm6, %v17827_v40  ;;  %v13279_v6 = vld [vmem:[%s16784_s19 + $0xd8] sm:$0xff] }
 0x6e2   : > { %v7473_v5 = vpack.c.bf16 %v7435_v62, %v7435_v62  ;;  %v7279_v14 = vmul.f32 %v14039_v7, %v7236_v8  ;;  %v18369_v8 = vld [vmem:[#allocation2 + $0x8c] sm:$0xff]  ;;  %9634 = vmatpush.bf16.msra.mxu2 %v13257_v46  ;;  %10183 = vmatpush.bf16.msra.mxu3 %v13279_v6 }
 0x6e3   : > { %v7833_v63 = vsel %vm297_vm0, %v18286_v32, %v18346_v31  ;;  %12608 = vmatmul.msk.bf16.gmra.mxu3 %vm82_vm6, %v8241_v42  ;;  %v18367_v49 = vsel %vm1115_vm1, %v18293_v53, %v18353_v38  ;;  %20163 = vst [vmem:[#allocation19_spill] sm:$0xff] %v18369_v8  ;;  %v7398_v32 = vld [vmem:[%s19818_s10 + $0x120] sm:$0xff]  ;;  %v19952_v24 = vshrl.u32 %v18369_v8, 16  ;;  %v19950_v52 = vshll.u32 %v18369_v8, 16 }
 0x6e4   : > { %12537 = vmatmul.msk.bf16.gmra.mxu1 %vm82_vm6, %v7833_v63  ;;  %7511 = vst.msk [vmem:[#allocation2 + $0x94] sm:$0xf] %vm39_vm5, %v7473_v5  ;;  %v7322_v40 = vadd.f32 %v14040_v12, %v7279_v14  ;;  %v8114_v62 = vpop.f32.mrf.mxu2 }
 0x6e5   : > { %v8115_v53 = vadd.f32 %v8114_v62, %v17870_v60  ;;  %v10679_v2 = vrot.slane %v19952_v24, 2  ;;  %v10680_v23 = vrot.slane %v19950_v52, 3 }
 0x6e6   : > { %v7360_v26 = vmax.f32 %v7322_v40, 0.0  ;;  %v8352_v43 = vpop.f32.mrf.mxu3  ;;  %v7197_v15 = vpop.f32.mrf.mxu0  ;;  %v7399_v40 = vld [vmem:[%s19818_s10 + $0x128] sm:$0xff] }
 0x6e7   : > { %v8447_v37 = vadd.f32 %v8352_v43, %v8115_v53  ;;  %v7237_v5 = vadd.f32 %v7197_v15, %v6909_v56  ;;  %v18388_v55 = vor.u32 %v10680_v23, %v10679_v2 }
 0x6e8   : > { %v7436_v13 = vmul.f32 %v7398_v32, %v7360_v26  ;;  %v18378_v19 = vpop.f32.mrf.mxu1 }
 0x6e9   : > { %v7280_v33 = vmul.f32 %v14039_v7, %v7237_v5  ;;  %v8242_v7 = vrot.slane %v17911_v59, 2  ;;  %v18400_v62 = vsel %vm1115_vm1, %v18327_v21, %v18388_v55 }
 0x6ea   : > { %v7474_v28 = vpack.c.bf16 %v7436_v13, %v7436_v13  ;;  %20164 = vst [vmem:[#allocation20_spill] sm:$0xff] %v18400_v62 }
 0x6eb   : > { %v18386_v60 = vld [vmem:[#allocation2 + $0x90] sm:$0xff]   ;;  %v7323_v42 = vadd.f32 %v14040_v12, %v7280_v33  ;;  %v13283_v33 = vld [vmem:[%s16784_s19 + $0xf8] sm:$0xff] }
 0x6ec   : > { %7512 = vst.msk [vmem:[#allocation2 + $0x98] sm:$0xf] %vm39_vm5, %v7474_v28  ;;  %v7835_v14 = vshrl.u32 %v18386_v60, 16  ;;  %v7838_v63 = vshll.u32 %v18386_v60, 16  ;;  %v8116_v32 = vpop.f32.mrf.mxu2  ;;  %10459 = vmatpush.bf16.msra.mxu0 %v13283_v33 }
 0x6ed   : > { %v7361_v56 = vmax.f32 %v7323_v42, 0.0  ;;  %v8117_v12 = vadd.f32 %v8116_v32, %v17903_v30  ;;  %v20165_v30 = vrot.slane %v17846_v45, 2 }
 0x6ee   : > { %v8354_v26 = vpop.f32.mrf.mxu3  ;;  %v7837_v53 = vrot.slane %v7835_v14, 1  ;;  %v7840_v43 = vrot.slane %v7838_v63, 2  ;;  %v8678_v15 = vpop.f32.mrf.mxu0  ;;  %v8575_v13 = vrot.slane %v7835_v14, 2  ;;  %v8576_v5 = vrot.slane %v7838_v63, 3 }
 0x6ef   : > { %v7437_v46 = vmul.f32 %v7399_v40, %v7361_v56  ;;  %v8448_v6 = vadd.f32 %v8354_v26, %v8117_v12  ;;  %v18403_v2 = vadd.f32 %v8678_v15, %v8447_v37  ;;  %v8243_v14 = vsel %vm845_vm2, %v20165_v30, %v8242_v7  ;;  %v13287_v40 = vld [vmem:[%s16784_s19 + $0x118] sm:$0xff] }
 0x6f0   : > { %v18405_v23 = vpop.f32.mrf.mxu1  ;;  %v7841_v28 = vor.u32 %v7840_v43, %v7837_v53  ;;  %v18408_v21 = vor.u32 %v8576_v5, %v8575_v13  ;;  %10785 = vmatpush.bf16.msra.mxu1 %v13287_v40  ;;  %v8244_v30 = vrot.slane %v17975_v44, 2 }
 0x6f1   : > { %v7475_v42 = vpack.c.bf16 %v7437_v46, %v7437_v46  ;;  %12565 = vmatmul.msk.bf16.gmra.mxu2 %vm82_vm6, %v17911_v59  ;;  %12652 = vmatmul.msk.bf16.gmra.mxu0 %vm82_vm6, %v17891_v16 }
 0x6f2   : > { %v7842_v37 = vsel %vm297_vm0, %v18346_v31, %v7841_v28  ;;  %v18425_v59 = vsel %vm1115_vm1, %v18353_v38, %v18408_v21 }
 0x6f3   : > { %12609 = vmatmul.msk.bf16.gmra.mxu3 %vm82_vm6, %v8243_v14  ;;  %v7564_v63 = vld [vmem:[#allocation2 + $0x98] sm:$0x3]  ;;  %7513 = vst.msk [vmem:[#allocation2 + $0x9c] sm:$0xf] %vm39_vm5, %v7475_v42 }
 0x6f4   : > { %12538 = vmatmul.msk.bf16.gmra.mxu1 %vm82_vm6, %v7842_v37  ;;  %v7652_v45 = vunpack.c.l.b16 %v7564_v63  ;;  %v8119_v32 = vpop.f32.mrf.mxu2  ;;  %v18437_v33 = vld [vmem:[#allocation2 + $0x94] sm:$0xff] }
 0x6f5   : > { %v8120_v16 = vadd.f32 %v8119_v32, %v17932_v51  ;;  %20166 = vst [vmem:[#allocation27_spill] sm:$0xff] %v18437_v33  ;;  %v13930_v32 = vld [vmem:[#allocation2 + $0x4] sm:$0xf0]  }
 0x6f6   : > { %v8357_v31 = vpop.f32.mrf.mxu3  ;;  %v18429_v56 = vpack.c.b16 %v7652_v45, %v7652_v45  ;;  %v8680_v12 = vpop.f32.mrf.mxu0 }
 0x6f7   : > { %v8449_v26 = vadd.f32 %v8357_v31, %v8120_v16  ;;  %v18431_v53 = vadd.f32 %v8680_v12, %v8448_v6  ;;  %v13763_v16 = vld [vmem:[#allocation2 + $0x4] sm:$0x8]  ;;  %v19951_v31 = vshrl.u32 %v18437_v33, 16 }
 0x6f8   : > { %v18433_v43 = vpop.f32.mrf.mxu1  ;;  %v7844_v38 = vshrl.u32 %v18429_v56, 16  ;;  %v7847_v15 = vshll.u32 %v18429_v56, 16 }
 0x6fa   : > { %v7846_v13 = vrot.slane %v7844_v38, 1  ;;  %v7849_v5 = vrot.slane %v7847_v15, 2  ;;  %v18441_v6 = vld [vmem:[#allocation2 + $0x9c] sm:$0xff]  ;;  %v13932_v38 = vld [vmem:[#allocation2 + $0xc] sm:$0xff]   ;;  %v19953_v15 = vshll.u32 %v18437_v33, 16 }
 0x6fb   : > { %20167 = vst [vmem:[#allocation21_spill] sm:$0xff] %v18441_v6  ;;  %v20182_v33 = vld [vmem:[#allocation29_spill] sm:$0xff] }
 0x6fc   : > { %v8121_v46 = vpop.f32.mrf.mxu2  ;;  %v7850_v14 = vor.u32 %v7849_v5, %v7846_v13  ;;  %v19954_v13 = vshrl.u32 %v18441_v6, 16  ;;  %v19955_v5 = vshll.u32 %v18441_v6, 16  ;;  %v13285_v6 = vld [vmem:[%s16784_s19 + $0x108] sm:$0xff]  ;;  %v20183_v8 = vshrl.u32 %v20182_v33, 16 }
 0x6fd   : > { %v8122_v51 = vadd.f32 %v8121_v46, %v17967_v39  ;;  %v8245_v39 = vsel %vm845_vm2, %v8242_v7, %v8244_v30  ;;  %v10683_v7 = vrot.slane %v19951_v31, 2 }
 0x6fe   : > { %v8359_v42 = vpop.f32.mrf.mxu3  ;;  %v8683_v37 = vpop.f32.mrf.mxu0  ;;  %v7851_v12 = vsel %vm297_vm0, %v7841_v28, %v7850_v14  ;;  %v8853_v28 = vshrl.u32 %v13932_v38, 16 }
 0x6ff   : > { %v8450_v63 = vadd.f32 %v8359_v42, %v8122_v51  ;;  %v18443_v40 = vadd.f32 %v8683_v37, %v8449_v26  ;;  %v13764_v26 = vor.u32 %v13930_v32, %v13763_v16  ;;  %v8856_v51 = vshll.u32 %v13932_v38, 16 }
 0x700   : > { %v18445_v45 = vpop.f32.mrf.mxu1  ;;  %v10684_v37 = vrot.slane %v19953_v15, 3  ;;  %v10687_v32 = vrot.slane %v19954_v13, 2  ;;  %v8855_v31 = vrot.slane %v8853_v28, 3 }
 0x701   : > { %12566 = vmatmul.msk.bf16.gmra.mxu2 %vm82_vm6, %v17975_v44  ;;  %12653 = vmatmul.msk.bf16.gmra.mxu0 %vm82_vm6, %v17956_v20  ;;  %v8845_v14 = vshrl.u32 %v13764_v26, 16  ;;  %v8848_v52 = vshll.u32 %v13764_v26, 16  ;;  %v8858_v38 = vrot.slane %v8856_v51, 4 }
 0x703   : > { %12610 = vmatmul.msk.bf16.gmra.mxu3 %vm82_vm6, %v8245_v39  ;;  %v8847_v62 = vrot.slane %v8845_v14, 3  ;;  %v8850_v13 = vrot.slane %v8848_v52, 4  ;;  %v8859_v28 = vor.u32 %v8858_v38, %v8855_v31  ;;  %v13934_v14 = vld [vmem:[#allocation2 + $0x14] sm:$0xff]  }
 0x704   : > { %12539 = vmatmul.msk.bf16.gmra.mxu1 %vm82_vm6, %v7851_v12  ;;  %v8124_v44 = vpop.f32.mrf.mxu2 }
 0x705   : > { %v8125_v20 = vadd.f32 %v8124_v44, %v17996_v48  ;;  %v10688_v48 = vrot.slane %v19955_v5, 3  ;;  %v10685_v44 = vor.u32 %v10684_v37, %v10683_v7  ;;  %v8246_v7 = vrot.slane %v18039_v34, 2  ;;  %v13276_v5 = vld [vmem:[%s16784_s19 + $0xc0] sm:$0xff] }
 0x706   : > { %v8362_v46 = vpop.f32.mrf.mxu3  ;;  %v8685_v42 = vpop.f32.mrf.mxu0 }
 0x707   : > { %v8451_v16 = vadd.f32 %v8362_v46, %v8125_v20  ;;  %v18466_v39 = vadd.f32 %v8685_v42, %v8450_v63  ;;  %v18472_v24 = vor.u32 %v10688_v48, %v10687_v32  ;;  %v18476_v15 = vsel %vm1115_vm1, %v18388_v55, %v10685_v44 }
 0x708   : > { %v18468_v12 = vpop.f32.mrf.mxu1  ;;  %20169 = vst [vmem:[#allocation50_spill] sm:$0xff] %v18476_v15  ;;  %v8851_v55 = vor.u32 %v8850_v13, %v8847_v62  ;;  %v8247_v52 = vsel %vm845_vm2, %v8244_v30, %v8246_v7  ;;  %v8862_v62 = vshrl.u32 %v13934_v14, 16  ;;  %v8865_v13 = vshll.u32 %v13934_v14, 16 }
 0x709   : > { %20168 = vst [vmem:[#allocation28_spill] sm:$0xff] %v18472_v24  ;;  %v18480_v63 = vsel %vm1115_vm1, %v10685_v44, %v18472_v24 }
 0x70a   : > { %20170 = vst [vmem:[#allocation51_spill] sm:$0xff] %v18480_v63 }
 0x70c   : > { %v8126_v20 = vpop.f32.mrf.mxu2 }
 0x70d   : > { %v8127_v26 = vadd.f32 %v8126_v20, %v18031_v27  ;;  %v8860_v27 = vsel %vm1454_vm3, %v8851_v55, %v8859_v28  ;;  %v8867_v20 = vrot.slane %v8865_v13, 4  ;;  %v8248_v55 = vrot.slane %v18100_v9, 2 }
 0x70e   : > { %v8364_v46 = vpop.f32.mrf.mxu3  ;;  %v8688_v51 = vpop.f32.mrf.mxu0 }
 0x70f   : > { %v8452_v42 = vadd.f32 %v8364_v46, %v8127_v26  ;;  %v18484_v37 = vadd.f32 %v8688_v51, %v8451_v16 }
 0x710   : > { %v18486_v32 = vpop.f32.mrf.mxu1 }
 0x711   : > { %12567 = vmatmul.msk.bf16.gmra.mxu2 %vm82_vm6, %v18039_v34  ;;  %12654 = vmatmul.msk.bf16.gmra.mxu0 %vm82_vm6, %v18020_v41  ;;  %v8864_v41 = vrot.slane %v8862_v62, 3 }
 0x713   : > { %12611 = vmatmul.msk.bf16.gmra.mxu3 %vm82_vm6, %v8247_v52  ;;  %v8868_v52 = vor.u32 %v8867_v20, %v8864_v41 }
 0x714   : > { %12688 = vmatmul.msk.bf16.vlgmr.msrb.gmra.mxu1 %vm82_vm6, %v8860_v27  ;;  %v8129_v31 = vpop.f32.mrf.mxu2 }
 0x715   : > { %v8130_v16 = vadd.f32 %v8129_v31, %v18058_v11 }
 0x716   : > { %v8367_v48 = vpop.f32.mrf.mxu3  ;;  %v8690_v44 = vpop.f32.mrf.mxu0 }
 0x717   : > { %v8453_v34 = vadd.f32 %v8367_v48, %v8130_v16  ;;  %v18497_v38 = vadd.f32 %v8690_v44, %v8452_v42  ;;  %v8249_v42 = vsel %vm845_vm2, %v8246_v7, %v8248_v55  ;;  %v13936_v16 = vld [vmem:[#allocation2 + $0x1c] sm:$0xff]  }
 0x718   : > { %v18499_v30 = vpop.f32.mrf.mxu1  ;;  %v8871_v44 = vshrl.u32 %v13936_v16, 16 }
 0x71c   : > { %v8131_v26 = vpop.f32.mrf.mxu2 }
 0x71d   : > { %v8132_v46 = vadd.f32 %v8131_v26, %v18092_v4  ;;  %v8869_v4 = vsel %vm1454_vm3, %v8859_v28, %v8868_v52 }
 0x71e   : > { %v8369_v51 = vpop.f32.mrf.mxu3  ;;  %v8693_v27 = vpop.f32.mrf.mxu0 }
 0x71f   : > { %v8454_v11 = vadd.f32 %v8369_v51, %v8132_v46  ;;  %v18503_v31 = vadd.f32 %v8693_v27, %v8453_v34  ;;  %v8874_v34 = vshll.u32 %v13936_v16, 16  ;;  %v8250_v27 = vrot.slane %v18153_v58, 2 }
 0x720   : > { %v18505_v14 = vpop.f32.mrf.mxu1 }
 0x721   : > { %12568 = vmatmul.msk.bf16.gmra.mxu2 %vm82_vm6, %v18100_v9  ;;  %12655 = vmatmul.msk.bf16.gmra.mxu0 %vm82_vm6, %v18081_v0  ;;  %v8873_v0 = vrot.slane %v8871_v44, 3  ;;  %v8876_v26 = vrot.slane %v8874_v34, 4 }
 0x723   : > { %12612 = vmatmul.msk.bf16.gmra.mxu3 %vm82_vm6, %v8249_v42  ;;  %v8877_v42 = vor.u32 %v8876_v26, %v8873_v0  ;;  %v13278_v26 = vld [vmem:[%s16784_s19 + $0xd0] sm:$0xff] }
 0x724   : > { %12689 = vmatmul.msk.bf16.gmra.mxu1 %vm82_vm6, %v8869_v4  ;;  %v8134_v48 = vpop.f32.mrf.mxu2  ;;  %10184 = vmatpush.bf16.msra.mxu3 %v13278_v26 }
 0x725   : > { %v8135_v62 = vadd.f32 %v8134_v48, %v18116_v18 }
 0x726   : > { %v8372_v13 = vpop.f32.mrf.mxu3  ;;  %v8695_v41 = vpop.f32.mrf.mxu0 }
 0x727   : > { %v8455_v9 = vadd.f32 %v8372_v13, %v8135_v62  ;;  %v18516_v20 = vadd.f32 %v8695_v41, %v8454_v11  ;;  %v8251_v11 = vsel %vm845_vm2, %v8248_v55, %v8250_v27  ;;  %v13938_v62 = vld [vmem:[#allocation2 + $0x24] sm:$0xff]   ;;  %v13256_v13 = vld [vmem:[%s16784_s19 + $0xb0] sm:$0xff] }
 0x728   : > { %v18518_v7 = vpop.f32.mrf.mxu1  ;;  %9635 = vmatpush.bf16.msra.mxu2 %v13256_v13 }
 0x72c   : > { %v8136_v28 = vpop.f32.mrf.mxu2 }
 0x72d   : > { %v8137_v46 = vadd.f32 %v8136_v28, %v18145_v25  ;;  %v8878_v25 = vsel %vm1454_vm3, %v8868_v52, %v8877_v42 }
 0x72e   : > { %v8374_v51 = vpop.f32.mrf.mxu3  ;;  %v8698_v18 = vpop.f32.mrf.mxu0 }
 0x72f   : > { %v8456_v4 = vadd.f32 %v8374_v51, %v8137_v46  ;;  %v18522_v48 = vadd.f32 %v8698_v18, %v8455_v9  ;;  %v8883_v9 = vshll.u32 %v13938_v62, 16 }
 0x730   : > { %v18524_v16 = vpop.f32.mrf.mxu1 }
 0x731   : > { %12569 = vmatmul.msk.bf16.gmra.mxu2 %vm82_vm6, %v18153_v58  ;;  %12656 = vmatmul.msk.bf16.gmra.mxu0 %vm82_vm6, %v18134_v29  ;;  %v8880_v58 = vshrl.u32 %v13938_v62, 16  ;;  %v8885_v46 = vrot.slane %v8883_v9, 4  ;;  %v13940_v9 = vld [vmem:[#allocation2 + $0x2c] sm:$0xff]  }
 0x733   : > { %12613 = vmatmul.msk.bf16.gmra.mxu3 %vm82_vm6, %v8251_v11  ;;  %v8882_v28 = vrot.slane %v8880_v58, 3 }
 0x734   : > { %12690 = vmatmul.msk.bf16.gmra.mxu1 %vm82_vm6, %v8878_v25  ;;  %v8139_v44 = vpop.f32.mrf.mxu2 }
 0x735   : > { %v8140_v34 = vadd.f32 %v8139_v44, %v18171_v50  ;;  %v8252_v50 = vrot.slane %v18213_v3, 2  ;;  %v8886_v25 = vor.u32 %v8885_v46, %v8882_v28  ;;  %v8889_v28 = vshrl.u32 %v13940_v9, 16 }
 0x736   : > { %v8377_v41 = vpop.f32.mrf.mxu3  ;;  %v8700_v55 = vpop.f32.mrf.mxu0 }
 0x737   : > { %v8457_v0 = vadd.f32 %v8377_v41, %v8140_v34  ;;  %v18536_v29 = vadd.f32 %v8700_v55, %v8456_v4  ;;  %v13282_v34 = vld [vmem:[%s16784_s19 + $0xf0] sm:$0xff]  ;;  %v8253_v58 = vsel %vm845_vm2, %v8250_v27, %v8252_v50 }
 0x738   : > { %v18538_v52 = vpop.f32.mrf.mxu1  ;;  %v13286_v41 = vld [vmem:[%s16784_s19 + $0x110] sm:$0xff]  ;;  %10460 = vmatpush.bf16.msra.mxu0 %v13282_v34  ;;  %v8254_v34 = vrot.slane %v18266_v10, 2 }
 0x739   : > { %10786 = vmatpush.bf16.msra.mxu1 %v13286_v41 }
 0x73c   : > { %v8141_v51 = vpop.f32.mrf.mxu2 }
 0x73d   : > { %v8142_v18 = vadd.f32 %v8141_v51, %v18205_v54  ;;  %v8887_v54 = vsel %vm1454_vm3, %v8877_v42, %v8886_v25  ;;  %v8891_v42 = vrot.slane %v8889_v28, 3  ;;  %10787 = vmatpush.bf16.msra.mxu1 %v13285_v6 }
 0x73e   : > { %v8379_v11 = vpop.f32.mrf.mxu3  ;;  %v8703_v62 = vpop.f32.mrf.mxu0 }
 0x73f   : > { %v8458_v13 = vadd.f32 %v8379_v11, %v8142_v18  ;;  %v18543_v44 = vadd.f32 %v8703_v62, %v8457_v0 }
 0x740   : > { %v18545_v4 = vpop.f32.mrf.mxu1 }
 0x741   : > { %12570 = vmatmul.msk.bf16.gmra.mxu2 %vm82_vm6, %v18213_v3  ;;  %12657 = vmatmul.msk.bf16.gmra.mxu0 %vm82_vm6, %v18193_v36  ;;  %v8892_v3 = vshll.u32 %v13940_v9, 16 }
 0x743   : > { %12614 = vmatmul.msk.bf16.gmra.mxu3 %vm82_vm6, %v8253_v58  ;;  %v8894_v18 = vrot.slane %v8892_v3, 4 }
 0x744   : > { %12691 = vmatmul.msk.bf16.gmra.mxu1 %vm82_vm6, %v8887_v54  ;;  %v8144_v55 = vpop.f32.mrf.mxu2 }
 0x745   : > { %v8145_v0 = vadd.f32 %v8144_v55, %v18229_v57  ;;  %v8895_v41 = vor.u32 %v8894_v18, %v8891_v42 }
 0x746   : > { %v8382_v26 = vpop.f32.mrf.mxu3  ;;  %v8705_v46 = vpop.f32.mrf.mxu0 }
 0x747   : > { %v8459_v27 = vadd.f32 %v8382_v26, %v8145_v0  ;;  %v18558_v51 = vadd.f32 %v8705_v46, %v8458_v13  ;;  %v8255_v13 = vsel %vm845_vm2, %v8252_v50, %v8254_v34  ;;  %v13942_v0 = vld [vmem:[#allocation2 + $0x34] sm:$0xff]  }
 0x748   : > { %v18560_v36 = vpop.f32.mrf.mxu1  ;;  %v8898_v46 = vshrl.u32 %v13942_v0, 16 }
 0x74c   : > { %v8146_v11 = vpop.f32.mrf.mxu2 }
 0x74d   : > { %v8147_v62 = vadd.f32 %v8146_v11, %v18258_v61  ;;  %v8896_v61 = vsel %vm1454_vm3, %v8886_v25, %v8895_v41 }
 0x74e   : > { %v8384_v58 = vpop.f32.mrf.mxu3  ;;  %v8708_v54 = vpop.f32.mrf.mxu0 }
 0x74f   : > { %v8460_v57 = vadd.f32 %v8384_v58, %v8147_v62  ;;  %v18564_v55 = vadd.f32 %v8708_v54, %v8459_v27  ;;  %v8901_v27 = vshll.u32 %v13942_v0, 16  ;;  %v8256_v54 = vrot.slane %v18325_v35, 2 }
 0x750   : > { %v18566_v9 = vpop.f32.mrf.mxu1 }
 0x751   : > { %12571 = vmatmul.msk.bf16.gmra.mxu2 %vm82_vm6, %v18266_v10  ;;  %12658 = vmatmul.msk.bf16.gmra.mxu0 %vm82_vm6, %v18247_v1  ;;  %v8900_v1 = vrot.slane %v8898_v46, 3  ;;  %v8903_v11 = vrot.slane %v8901_v27, 4 }
 0x753   : > { %12615 = vmatmul.msk.bf16.gmra.mxu3 %vm82_vm6, %v8255_v13  ;;  %v8904_v13 = vor.u32 %v8903_v11, %v8900_v1 }
 0x754   : > { %12692 = vmatmul.msk.bf16.gmra.mxu1 %vm82_vm6, %v8896_v61  ;;  %v8149_v26 = vpop.f32.mrf.mxu2 }
 0x755   : > { %v8150_v28 = vadd.f32 %v8149_v26, %v18284_v47 }
 0x756   : > { %v8387_v3 = vpop.f32.mrf.mxu3  ;;  %v8710_v42 = vpop.f32.mrf.mxu0 }
 0x757   : > { %v8461_v10 = vadd.f32 %v8387_v3, %v8150_v28  ;;  %v18577_v18 = vadd.f32 %v8710_v42, %v8460_v57  ;;  %v8257_v57 = vsel %vm845_vm2, %v8254_v34, %v8256_v54  ;;  %v20171_v28 = vld [vmem:[#allocation17_spill] sm:$0xff] }
 0x758   : > { %v18579_v50 = vpop.f32.mrf.mxu1  ;;  %v13944_v3 = vld [vmem:[#allocation2 + $0x3c] sm:$0xff]  }
 0x75c   : > { %v8151_v25 = vpop.f32.mrf.mxu2 }
 0x75d   : > { %v8152_v62 = vadd.f32 %v8151_v25, %v18317_v17  ;;  %v8905_v17 = vsel %vm1454_vm3, %v8895_v41, %v8904_v13  ;;  %v13277_v41 = vld [vmem:[%s16784_s19 + $0xc8] sm:$0xff] }
 0x75e   : > { %v8389_v58 = vpop.f32.mrf.mxu3  ;;  %v8713_v61 = vpop.f32.mrf.mxu0  ;;  %10185 = vmatpush.bf16.msra.mxu3 %v13277_v41 }
 0x75f   : > { %v8462_v47 = vadd.f32 %v8389_v58, %v8152_v62  ;;  %v18583_v26 = vadd.f32 %v8713_v61, %v8461_v10  ;;  %v8907_v10 = vshrl.u32 %v13944_v3, 16  ;;  %v13255_v62 = vld [vmem:[%s16784_s19 + $0xa8] sm:$0xff] }
 0x760   : > { %9636 = vmatpush.bf16.msra.mxu2 %v13255_v62 }
 0x761   : > { %v18585_v0 = vpop.f32.mrf.mxu1  ;;  %12572 = vmatmul.msk.bf16.gmra.mxu2 %vm82_vm6, %v18325_v35  ;;  %12659 = vmatmul.msk.bf16.gmra.mxu0 %vm82_vm6, %v20171_v28  ;;  %v8910_v35 = vshll.u32 %v13944_v3, 16  ;;  %v8909_v58 = vrot.slane %v8907_v10, 3 }
 0x762   : > { %10186 = vmatpush.bf16.msra.mxu3 %v13276_v5 }
 0x763   : > { %12616 = vmatmul.msk.bf16.gmra.mxu3 %vm82_vm6, %v8257_v57  ;;  %v8912_v61 = vrot.slane %v8910_v35, 4  ;;  %v13946_v35 = vld [vmem:[#allocation2 + $0x44] sm:$0xff]  }
 0x764   : > { %12693 = vmatmul.msk.bf16.gmra.mxu1 %vm82_vm6, %v8905_v17  ;;  %v8154_v46 = vpop.f32.mrf.mxu2  ;;  %v8258_v17 = vrot.slane %v18386_v60, 2 }
 0x765   : > { %v8155_v27 = vadd.f32 %v8154_v46, %v18344_v22  ;;  %v8913_v3 = vor.u32 %v8912_v61, %v8909_v58  ;;  %v8919_v58 = vshll.u32 %v13946_v35, 16 }
 0x766   : > { %v8392_v42 = vpop.f32.mrf.mxu3  ;;  %v8715_v1 = vpop.f32.mrf.mxu0  ;;  %v8259_v10 = vsel %vm845_vm2, %v8256_v54, %v8258_v17 }
 0x767   : > { %v8463_v11 = vadd.f32 %v8392_v42, %v8155_v27  ;;  %v18596_v34 = vadd.f32 %v8715_v1, %v8462_v47  ;;  %v13254_v1 = vld [vmem:[%s16784_s19 + $0xa0] sm:$0xff] }
 0x768   : > { %9637 = vmatpush.bf16.msra.mxu2 %v13254_v1 }
 0x769   : > { %20172 = vst [vmem:[#allocation17_spill] sm:$0xff] %v18596_v34  ;;  %v18598_v25 = vpop.f32.mrf.mxu1 }
 0x76c   : > { %v8156_v57 = vpop.f32.mrf.mxu2 }
 0x76d   : > { %v8157_v22 = vadd.f32 %v8156_v57, %v18378_v19  ;;  %v8914_v19 = vsel %vm1454_vm3, %v8904_v13, %v8913_v3  ;;  %v13281_v13 = vld [vmem:[%s16784_s19 + $0xe8] sm:$0xff] }
 0x76e   : > { %v8394_v28 = vpop.f32.mrf.mxu3  ;;  %v8718_v46 = vpop.f32.mrf.mxu0  ;;  %10461 = vmatpush.bf16.msra.mxu0 %v13281_v13 }
 0x76f   : > { %v8464_v47 = vadd.f32 %v8394_v28, %v8157_v22  ;;  %v18604_v27 = vadd.f32 %v8718_v46, %v8463_v11  ;;  %v8921_v28 = vrot.slane %v8919_v58, 4  ;;  %v8485_v46 = vld [vmem:[#allocation2 + $0x98] sm:$0x7] }
 0x770   : > { %v8497_v5 = vunpack.c.l.b16 %v8485_v46  ;;  %v18633_v58 = vld [vmem:[#allocation2 + $0x98] sm:$0xff]   ;;  %v20178_v46 = vld [vmem:[#allocation22_spill] sm:$0xff] }
 0x771   : > { %20173 = vst [vmem:[#allocation52_spill] sm:$0xff] %v18604_v27  ;;  %v18606_v42 = vpop.f32.mrf.mxu1  ;;  %12573 = vmatmul.msk.bf16.gmra.mxu2 %vm82_vm6, %v18386_v60  ;;  %12660 = vmatmul.msk.bf16.gmra.mxu0 %vm82_vm6, %v18367_v49  ;;  %v8916_v60 = vshrl.u32 %v13946_v35, 16 }
 0x772   : > { %20177 = vst [vmem:[#allocation56_spill] sm:$0xff] %v18633_v58  ;;  %v8498_v13 = vpack.c.b16 %v8497_v5, %v8497_v5 }
 0x773   : > { %12617 = vmatmul.msk.bf16.gmra.mxu3 %vm82_vm6, %v8259_v10  ;;  %v8918_v22 = vrot.slane %v8916_v60, 3  ;;  %v13280_v60 = vld [vmem:[%s16784_s19 + $0xe0] sm:$0xff] }
 0x774   : > { %12694 = vmatmul.msk.bf16.gmra.mxu1 %vm82_vm6, %v8914_v19  ;;  %v8159_v11 = vpop.f32.mrf.mxu2  ;;  %v8260_v19 = vrot.slane %v18429_v56, 2  ;;  %10462 = vmatpush.bf16.msra.mxu0 %v13280_v60 }
 0x775   : > { %v8160_v62 = vadd.f32 %v8159_v11, %v18405_v23  ;;  %v18626_v35 = vor.u32 %v8921_v28, %v8918_v22  ;;  %v13235_v28 = vld [vmem:[#allocation2 + $0x8] sm:$0xff] }
 0x776   : > { %v8397_v41 = vpop.f32.mrf.mxu3  ;;  %v8720_v54 = vpop.f32.mrf.mxu0 }
 0x777   : > { %v8465_v61 = vadd.f32 %v8397_v41, %v8160_v62  ;;  %v18619_v57 = vadd.f32 %v8720_v54, %v8464_v47  ;;  %v9772_v47 = vld [vmem:[#allocation2 + $0xc] sm:$0xe]  ;;  %v8923_v56 = vsel %vm1454_vm3, %v8913_v3, %v18626_v35 }
 0x778   : > { %v9860_v22 = vunpack.c.l.b16 %v9772_v47 }
 0x779   : > { %20174 = vst [vmem:[#allocation53_spill] sm:$0xff] %v18619_v57  ;;  %v18621_v49 = vpop.f32.mrf.mxu1 }
 0x77c   : > { %v8161_v1 = vpop.f32.mrf.mxu2 }
 0x77d   : > { %v8162_v10 = vadd.f32 %v8161_v1, %v18433_v43  ;;  %v8261_v43 = vsel %vm845_vm2, %v8258_v17, %v8260_v19  ;;  %v20179_v1 = vunpack.c.l.b16 %v20178_v46  ;;  %v8583_v17 = vshll.u32 %v8498_v13, 16  ;;  %v18646_v19 = vld [vmem:[#allocation2 + $0x10] sm:$0xff] }
 0x77e   : > { %v8399_v23 = vpop.f32.mrf.mxu3  ;;  %v8723_v11 = vpop.f32.mrf.mxu0 }
 0x77f   : > { %v8466_v62 = vadd.f32 %v8399_v23, %v8162_v10  ;;  %v18628_v41 = vadd.f32 %v8723_v11, %v8465_v61  ;;  %v13948_v61 = vld [vmem:[#allocation2 + $0x4c] sm:$0xff]   ;;  %v9899_v5 = vpack.c.b16 %v20179_v1, %v9860_v22  ;;  %v8580_v23 = vshrl.u32 %v8498_v13, 16 }
 0x780   : > { %v8925_v11 = vshrl.u32 %v13948_v61, 16  ;;  %v8928_v47 = vshll.u32 %v13948_v61, 16  ;;  %v8585_v1 = vrot.slane %v8583_v17, 3  ;;  %v9401_v13 = vshll.u32 %v18646_v19, 16 }
 0x781   : > { %20175 = vst [vmem:[#allocation54_spill] sm:$0xff] %v18628_v41  ;;  %v18630_v54 = vpop.f32.mrf.mxu1  ;;  %12574 = vmatmul.msk.bf16.gmra.mxu2 %vm82_vm6, %v18633_v58  ;;  %12661 = vmatmul.msk.bf16.gmra.mxu0 %vm82_vm6, %v18425_v59  ;;  %v9920_v22 = vshrl.u32 %v9899_v5, 16  ;;  %v9923_v60 = vshll.u32 %v9899_v5, 16  ;;  %v8582_v46 = vrot.slane %v8580_v23, 2  ;;  %v9394_v5 = vshrl.u32 %v13235_v28, 16 }
 0x782   : > { %20176 = vst [vmem:[#allocation55_spill] sm:$0xff] %v18630_v54  ;;  %v8927_v41 = vrot.slane %v8925_v11, 3  ;;  %v8930_v58 = vrot.slane %v8928_v47, 4  ;;  %v9403_v23 = vrot.slane %v9401_v13, 1 }
 0x783   : > { %12618 = vmatmul.msk.bf16.gmra.mxu3 %vm82_vm6, %v8261_v43  ;;  %v9396_v43 = vshll.u32 %v13235_v28, 16 }
 0x784   : > { %12695 = vmatmul.msk.bf16.gmra.mxu1 %vm82_vm6, %v8923_v56  ;;  %v8164_v10 = vpop.f32.mrf.mxu2 }
 0x785   : > { %v8165_v59 = vadd.f32 %v8164_v10, %v18445_v45  ;;  %v9930_v45 = vrot.slane %v20183_v8, 1  ;;  %v20184_v10 = vshll.u32 %v20182_v33, 16 }
 0x786   : > { %v8402_v3 = vpop.f32.mrf.mxu3  ;;  %v8725_v24 = vpop.f32.mrf.mxu0 }
 0x787   : > { %v8467_v63 = vadd.f32 %v8402_v3, %v8165_v59  ;;  %v18649_v56 = vadd.f32 %v8725_v24, %v8466_v62  ;;  %v9933_v61 = vrot.slane %v20184_v10, 2  ;;  %v9398_v59 = vrot.slane %v9396_v43, 1 }
 0x788   : > { %v9922_v24 = vrot.slane %v9920_v22, 1  ;;  %v9925_v62 = vrot.slane %v9923_v60, 2 }
 0x789   : > { %20180 = vst [vmem:[#allocation22_spill] sm:$0xff] %v18649_v56  ;;  %v18651_v15 = vpop.f32.mrf.mxu1  ;;  %v8586_v56 = vor.u32 %v8585_v1, %v8582_v46  ;;  %v9934_v27 = vor.u32 %v9933_v61, %v9930_v45  ;;  %v9399_v8 = vor.u32 %v9398_v59, %v9394_v5  ;;  %v20185_v45 = vld [vmem:[#allocation31_spill] sm:$0xff]  ;;  %v9405_v5 = vshrl.u32 %v18646_v19, 16 }
 0x78a   : > { %20181 = vst [vmem:[#allocation57_spill] sm:$0xff] %v18651_v15  ;;  %v8931_v15 = vor.u32 %v8930_v58, %v8927_v41  ;;  %v9926_v47 = vor.u32 %v9925_v62, %v9922_v24  ;;  %v20186_v10 = vshrl.u32 %v20185_v45, 16  ;;  %v20187_v59 = vshll.u32 %v20185_v45, 16 }
 0x78b   : > { %v8587_v43 = vsel %vm1115_vm1, %v18408_v21, %v8586_v56  ;;  %v9404_v28 = vsel %vm1997_vm4, %v9399_v8, %v9403_v23 }
 0x78c   : > { %v8166_v3 = vpop.f32.mrf.mxu2  ;;  %v9939_v61 = vrot.slane %v20186_v10, 1  ;;  %v9942_v24 = vrot.slane %v20187_v59, 2 }
 0x78d   : > { %v8167_v17 = vadd.f32 %v8166_v3, %v18468_v12  ;;  %v9935_v12 = vsel %vm297_vm0, %v9926_v47, %v9934_v27 }
 0x78e   : > { %v8404_v57 = vpop.f32.mrf.mxu3  ;;  %v8728_v34 = vpop.f32.mrf.mxu0  ;;  %v9943_v47 = vor.u32 %v9942_v24, %v9939_v61 }
 0x78f   : > { %v8468_v54 = vadd.f32 %v8404_v57, %v8167_v17  ;;  %v18660_v33 = vadd.f32 %v8728_v34, %v8467_v63  ;;  %v8932_v63 = vsel %vm1454_vm3, %v18626_v35, %v8931_v15  ;;  %v13950_v34 = vld [vmem:[#allocation2 + $0x54] sm:$0xff]  }
 0x790   : > { %v18675_v57 = vld [vmem:[#allocation2 + $0x18] sm:$0xff]  ;;  %v8934_v58 = vshrl.u32 %v13950_v34, 16  ;;  %v8937_v56 = vshll.u32 %v13950_v34, 16 }
 0x791   : > { %v9113_v11 = vpop.f32.mrf.mxu1  ;;  %12662 = vmatmul.msk.bf16.gmra.mxu0 %vm82_vm6, %v8587_v43  ;;  %12808 = vmatmul.msk.bf16.vlgmr.msra.gmra.mxu2 %vm82_vm6, %v9404_v28  ;;  %v9409_v13 = vshll.u32 %v18675_v57, 16 }
 0x792   : > { %v18663_v6 = vadd.f32 %v9113_v11, %v18403_v2  ;;  %v8939_v62 = vrot.slane %v8937_v56, 4 }
 0x793   : > { %12924 = vmatmul.msk.bf16.vlgmr.msra.gmra.mxu3 %vm82_vm6, %v9935_v12  ;;  %v9411_v17 = vrot.slane %v9409_v13, 1  ;;  %v9407_v12 = vor.u32 %v9405_v5, %v9403_v23 }
 0x794   : > { %12696 = vmatmul.msk.bf16.gmra.mxu1 %vm82_vm6, %v8932_v63  ;;  %v8169_v2 = vpop.f32.mrf.mxu2  ;;  %v20188_v63 = vld [vmem:[#allocation30_spill] sm:$0xff] }
 0x795   : > { %v8170_v21 = vadd.f32 %v8169_v2, %v18486_v32  ;;  %v8936_v32 = vrot.slane %v8934_v58, 3  ;;  %v10335_v34 = vrot.slane %v20188_v63, 2  ;;  %v9412_v19 = vsel %vm1997_vm4, %v9407_v12, %v9411_v17 }
 0x796   : > { %v8407_v41 = vpop.f32.mrf.mxu3  ;;  %v8730_v22 = vpop.f32.mrf.mxu0  ;;  %v9413_v12 = vshrl.u32 %v18675_v57, 16 }
 0x797   : > { %v8469_v60 = vadd.f32 %v8407_v41, %v8170_v21  ;;  %v18678_v46 = vadd.f32 %v8730_v22, %v8468_v54  ;;  %v14041_v54 = vld [vmem:[#allocation2 + $0x14] sm:$0xff]  ;;  %v8940_v43 = vor.u32 %v8939_v62, %v8936_v32  ;;  %v13952_v22 = vld [vmem:[#allocation2 + $0x5c] sm:$0xff]  }
 0x798   : > { %v10336_v8 = vrot.slane %v14041_v54, 2  ;;  %v8943_v45 = vshrl.u32 %v13952_v22, 16  ;;  %v8946_v10 = vshll.u32 %v13952_v22, 16  ;;  %v20189_v62 = vld [vmem:[#allocation33_spill] sm:$0xff] }
 0x799   : > { %v9115_v1 = vpop.f32.mrf.mxu1  ;;  %v8941_v23 = vsel %vm1454_vm3, %v8931_v15, %v8940_v43  ;;  %v20191_v54 = vshll.u32 %v20189_v62, 16 }
 0x79a   : > { %v18681_v35 = vadd.f32 %v9115_v1, %v18431_v53  ;;  %v10337_v56 = vsel %vm845_vm2, %v10335_v34, %v10336_v8  ;;  %v14042_v34 = vld [vmem:[#allocation2 + $0x1c] sm:$0xff] }
 0x79c   : > { %v8171_v3 = vpop.f32.mrf.mxu2 }
 0x79d   : > { %v8172_v11 = vadd.f32 %v8171_v3, %v18499_v30  ;;  %v9944_v30 = vsel %vm297_vm0, %v9934_v27, %v9943_v47  ;;  %v20190_v3 = vshrl.u32 %v20189_v62, 16 }
 0x79e   : > { %v8409_v53 = vpop.f32.mrf.mxu3  ;;  %v8733_v28 = vpop.f32.mrf.mxu0 }
 0x79f   : > { %v8470_v2 = vadd.f32 %v8409_v53, %v8172_v11  ;;  %v18691_v21 = vadd.f32 %v8733_v28, %v8469_v60  ;;  %v9948_v5 = vrot.slane %v20190_v3, 1  ;;  %v9951_v11 = vrot.slane %v20191_v54, 2 }
 0x7a0   : > { %v8948_v53 = vrot.slane %v8946_v10, 4 }
 0x7a1   : > { %v9118_v41 = vpop.f32.mrf.mxu1  ;;  %12809 = vmatmul.msk.bf16.gmra.mxu2 %vm82_vm6, %v9412_v19  ;;  %12968 = vmatmul.msk.bf16.vlgmr.msra.gmra.mxu0 %vm82_vm6, %v10337_v56  ;;  %v9952_v19 = vor.u32 %v9951_v11, %v9948_v5  ;;  %v20192_v11 = vld [vmem:[#allocation36_spill] sm:$0xff] }
 0x7a2   : > { %v18694_v58 = vadd.f32 %v9118_v41, %v18443_v40  ;;  %v18704_v40 = vld [vmem:[#allocation2 + $0x20] sm:$0xff] }
 0x7a3   : > { %12925 = vmatmul.msk.bf16.gmra.mxu3 %vm82_vm6, %v9944_v30  ;;  %v9417_v32 = vshll.u32 %v18704_v40, 16 }
 0x7a4   : > { %12697 = vmatmul.msk.bf16.gmra.mxu1 %vm82_vm6, %v8941_v23  ;;  %v8174_v60 = vpop.f32.mrf.mxu2  ;;  %v9415_v23 = vor.u32 %v9413_v12, %v9411_v17  ;;  %v13954_v17 = vld [vmem:[#allocation2 + $0x64] sm:$0xff]  }
 0x7a5   : > { %v8175_v1 = vadd.f32 %v8174_v60, %v18505_v14  ;;  %v8945_v14 = vrot.slane %v8943_v45, 3  ;;  %v9419_v63 = vrot.slane %v9417_v32, 1  ;;  %v8955_v32 = vshll.u32 %v13954_v17, 16 }
 0x7a6   : > { %v8412_v13 = vpop.f32.mrf.mxu3  ;;  %v8735_v61 = vpop.f32.mrf.mxu0 }
 0x7a7   : > { %v8471_v59 = vadd.f32 %v8412_v13, %v8175_v1  ;;  %v18707_v27 = vadd.f32 %v8735_v61, %v8470_v2  ;;  %v10338_v2 = vrot.slane %v14042_v34, 2  ;;  %v8949_v56 = vor.u32 %v8948_v53, %v8945_v14 }
 0x7a8   : > { %v9420_v45 = vsel %vm1997_vm4, %v9415_v23, %v9419_v63  ;;  %v20193_v14 = vshrl.u32 %v20192_v11, 16  ;;  %v8957_v34 = vrot.slane %v8955_v32, 4  ;;  %v14043_v23 = vld [vmem:[#allocation2 + $0x24] sm:$0xff] }
 0x7a9   : > { %v9120_v24 = vpop.f32.mrf.mxu1  ;;  %v10339_v57 = vsel %vm845_vm2, %v10336_v8, %v10338_v2  ;;  %v8950_v10 = vsel %vm1454_vm3, %v8940_v43, %v8949_v56  ;;  %v8952_v8 = vshrl.u32 %v13954_v17, 16 }
 0x7aa   : > { %v18710_v15 = vadd.f32 %v9120_v24, %v18466_v39  ;;  %v9957_v53 = vrot.slane %v20193_v14, 1 }
 0x7ac   : > { %v8176_v28 = vpop.f32.mrf.mxu2 }
 0x7ad   : > { %v8177_v41 = vadd.f32 %v8176_v28, %v18518_v7  ;;  %v9953_v7 = vsel %vm297_vm0, %v9943_v47, %v9952_v19  ;;  %v20194_v28 = vshll.u32 %v20192_v11, 16 }
 0x7ae   : > { %v8414_v39 = vpop.f32.mrf.mxu3  ;;  %v8738_v30 = vpop.f32.mrf.mxu0 }
 0x7af   : > { %v8472_v22 = vadd.f32 %v8414_v39, %v8177_v41  ;;  %v18719_v60 = vadd.f32 %v8738_v30, %v8471_v59  ;;  %v9960_v12 = vrot.slane %v20194_v28, 2  ;;  %v9421_v39 = vshrl.u32 %v18704_v40, 16 }
 0x7b1   : > { %v9123_v1 = vpop.f32.mrf.mxu1  ;;  %12810 = vmatmul.msk.bf16.gmra.mxu2 %vm82_vm6, %v9420_v45  ;;  %12969 = vmatmul.msk.bf16.gmra.mxu0 %vm82_vm6, %v10339_v57  ;;  %v9961_v45 = vor.u32 %v9960_v12, %v9957_v53  ;;  %v20195_v12 = vld [vmem:[#allocation37_spill] sm:$0xff] }
 0x7b2   : > { %v18722_v13 = vadd.f32 %v9123_v1, %v18484_v37  ;;  %v18732_v37 = vld [vmem:[#allocation2 + $0x28] sm:$0xff] }
 0x7b3   : > { %12926 = vmatmul.msk.bf16.gmra.mxu3 %vm82_vm6, %v9953_v7  ;;  %v9425_v54 = vshll.u32 %v18732_v37, 16 }
 0x7b4   : > { %12698 = vmatmul.msk.bf16.gmra.mxu1 %vm82_vm6, %v8950_v10  ;;  %v8179_v61 = vpop.f32.mrf.mxu2  ;;  %v9423_v10 = vor.u32 %v9421_v39, %v9419_v63  ;;  %v13956_v63 = vld [vmem:[#allocation2 + $0x6c] sm:$0xff]  }
 0x7b5   : > { %v8180_v59 = vadd.f32 %v8179_v61, %v18524_v16  ;;  %v8954_v16 = vrot.slane %v8952_v8, 3  ;;  %v9427_v30 = vrot.slane %v9425_v54, 1  ;;  %v8964_v54 = vshll.u32 %v13956_v63, 16 }
 0x7b6   : > { %v8417_v24 = vpop.f32.mrf.mxu3  ;;  %v8740_v62 = vpop.f32.mrf.mxu0 }
 0x7b7   : > { %v8473_v3 = vadd.f32 %v8417_v24, %v8180_v59  ;;  %v18735_v47 = vadd.f32 %v8740_v62, %v8472_v22  ;;  %v10340_v22 = vrot.slane %v14043_v23, 2  ;;  %v8958_v57 = vor.u32 %v8957_v34, %v8954_v16 }
 0x7b8   : > { %v9428_v8 = vsel %vm1997_vm4, %v9423_v10, %v9427_v30  ;;  %v20196_v16 = vshrl.u32 %v20195_v12, 16  ;;  %v8966_v23 = vrot.slane %v8964_v54, 4  ;;  %v14044_v10 = vld [vmem:[#allocation2 + $0x2c] sm:$0xff]  ;;  %v13958_v54 = vld [vmem:[#allocation2 + $0x74] sm:$0xff]  }
 0x7b9   : > { %v9125_v5 = vpop.f32.mrf.mxu1  ;;  %v10341_v40 = vsel %vm845_vm2, %v10338_v2, %v10340_v22  ;;  %v8959_v32 = vsel %vm1454_vm3, %v8949_v56, %v8958_v57  ;;  %v8961_v2 = vshrl.u32 %v13956_v63, 16 }
 0x7ba   : > { %v18738_v43 = vadd.f32 %v9125_v5, %v18497_v38  ;;  %v9966_v34 = vrot.slane %v20196_v16, 1 }
 0x7bc   : > { %v8181_v41 = vpop.f32.mrf.mxu2 }
 0x7bd   : > { %v8182_v1 = vadd.f32 %v8181_v41, %v18538_v52  ;;  %v9962_v52 = vsel %vm297_vm0, %v9952_v19, %v9961_v45  ;;  %v20197_v41 = vshll.u32 %v20195_v12, 16 }
 0x7be   : > { %v8419_v38 = vpop.f32.mrf.mxu3  ;;  %v8743_v7 = vpop.f32.mrf.mxu0 }
 0x7bf   : > { %v8474_v17 = vadd.f32 %v8419_v38, %v8182_v1  ;;  %v18747_v61 = vadd.f32 %v8743_v7, %v8473_v3  ;;  %v9969_v39 = vrot.slane %v20197_v41, 2  ;;  %v9429_v38 = vshrl.u32 %v18732_v37, 16  ;;  %v13284_v41 = vld [vmem:[%s16784_s19 + $0x100] sm:$0xff] }
 0x7c0   : > { %10788 = vmatpush.bf16.msra.mxu1 %v13284_v41 }
 0x7c1   : > { %v9128_v59 = vpop.f32.mrf.mxu1  ;;  %12811 = vmatmul.msk.bf16.gmra.mxu2 %vm82_vm6, %v9428_v8  ;;  %12970 = vmatmul.msk.bf16.gmra.mxu0 %vm82_vm6, %v10341_v40  ;;  %v9970_v8 = vor.u32 %v9969_v39, %v9966_v34 }
 0x7c2   : > { %v18750_v24 = vadd.f32 %v9128_v59, %v18503_v31  ;;  %v18760_v31 = vld [vmem:[#allocation2 + $0x30] sm:$0xff] }
 0x7c3   : > { %12927 = vmatmul.msk.bf16.gmra.mxu3 %vm82_vm6, %v9962_v52  ;;  %v9433_v28 = vshll.u32 %v18760_v31, 16 }
 0x7c4   : > { %12699 = vmatmul.msk.bf16.gmra.mxu1 %vm82_vm6, %v8959_v32  ;;  %v8184_v62 = vpop.f32.mrf.mxu2  ;;  %v9431_v32 = vor.u32 %v9429_v38, %v9427_v30 }
 0x7c5   : > { %v8185_v3 = vadd.f32 %v8184_v62, %v18545_v4  ;;  %v8963_v4 = vrot.slane %v8961_v2, 3  ;;  %v9435_v7 = vrot.slane %v9433_v28, 1  ;;  %v8973_v28 = vshll.u32 %v13958_v54, 16 }
 0x7c6   : > { %v8422_v5 = vpop.f32.mrf.mxu3  ;;  %v8745_v11 = vpop.f32.mrf.mxu0 }
 0x7c7   : > { %v8475_v14 = vadd.f32 %v8422_v5, %v8185_v3  ;;  %v18763_v19 = vadd.f32 %v8745_v11, %v8474_v17  ;;  %v10342_v17 = vrot.slane %v14044_v10, 2  ;;  %v8967_v40 = vor.u32 %v8966_v23, %v8963_v4  ;;  %v18788_v11 = vld [vmem:[#allocation2 + $0x38] sm:$0xff]  ;;  %v20198_v4 = vld [vmem:[#allocation38_spill] sm:$0xff] }
 0x7c8   : > { %v9436_v2 = vsel %vm1997_vm4, %v9431_v32, %v9435_v7  ;;  %v9441_v39 = vshll.u32 %v18788_v11, 16  ;;  %v20199_v23 = vshrl.u32 %v20198_v4, 16  ;;  %v20200_v38 = vshll.u32 %v20198_v4, 16 }
 0x7c9   : > { %v9130_v53 = vpop.f32.mrf.mxu1  ;;  %v10343_v37 = vsel %vm845_vm2, %v10340_v22, %v10342_v17  ;;  %v8968_v30 = vsel %vm1454_vm3, %v8958_v57, %v8967_v40 }
 0x7ca   : > { %v18766_v56 = vadd.f32 %v9130_v53, %v18516_v20  ;;  %v8970_v53 = vshrl.u32 %v13958_v54, 16  ;;  %v9443_v32 = vrot.slane %v9441_v39, 1 }
 0x7cc   : > { %v8186_v1 = vpop.f32.mrf.mxu2  ;;  %v8972_v10 = vrot.slane %v8970_v53, 3 }
 0x7cd   : > { %v8187_v59 = vadd.f32 %v8186_v1, %v18560_v36  ;;  %v9971_v36 = vsel %vm297_vm0, %v9961_v45, %v9970_v8  ;;  %v9975_v1 = vrot.slane %v20199_v23, 1 }
 0x7ce   : > { %v8424_v20 = vpop.f32.mrf.mxu3  ;;  %v8748_v52 = vpop.f32.mrf.mxu0 }
 0x7cf   : > { %v8476_v63 = vadd.f32 %v8424_v20, %v8187_v59  ;;  %v18775_v62 = vadd.f32 %v8748_v52, %v8475_v14  ;;  %v8975_v59 = vrot.slane %v8973_v28, 4  ;;  %v9437_v52 = vshrl.u32 %v18760_v31, 16 }
 0x7d1   : > { %v9133_v3 = vpop.f32.mrf.mxu1  ;;  %12812 = vmatmul.msk.bf16.gmra.mxu2 %vm82_vm6, %v9436_v2  ;;  %12971 = vmatmul.msk.bf16.gmra.mxu0 %vm82_vm6, %v10343_v37  ;;  %v9439_v54 = vor.u32 %v9437_v52, %v9435_v7  ;;  %v13960_v7 = vld [vmem:[#allocation2 + $0x7c] sm:$0xff]  }
 0x7d2   : > { %v18778_v5 = vadd.f32 %v9133_v3, %v18522_v48  ;;  %v8982_v39 = vshll.u32 %v13960_v7, 16 }
 0x7d3   : > { %12928 = vmatmul.msk.bf16.gmra.mxu3 %vm82_vm6, %v9971_v36  ;;  %v8976_v36 = vor.u32 %v8975_v59, %v8972_v10  ;;  %v9444_v28 = vsel %vm1997_vm4, %v9439_v54, %v9443_v32  ;;  %v14046_v54 = vld [vmem:[#allocation2 + $0x3c] sm:$0xff] }
 0x7d4   : > { %12700 = vmatmul.msk.bf16.gmra.mxu1 %vm82_vm6, %v8968_v30  ;;  %v8189_v48 = vpop.f32.mrf.mxu2 }
 0x7d5   : > { %v8190_v14 = vadd.f32 %v8189_v48, %v18566_v9  ;;  %v9978_v9 = vrot.slane %v20200_v38, 2 }
 0x7d6   : > { %v8427_v22 = vpop.f32.mrf.mxu3  ;;  %v8750_v12 = vpop.f32.mrf.mxu0 }
 0x7d7   : > { %v8477_v45 = vadd.f32 %v8427_v22, %v8190_v14  ;;  %v18791_v16 = vadd.f32 %v8750_v12, %v8476_v63  ;;  %v14045_v63 = vld [vmem:[#allocation2 + $0x34] sm:$0xff]  ;;  %v9979_v37 = vor.u32 %v9978_v9, %v9975_v1  ;;  %v8977_v12 = vsel %vm1454_vm3, %v8967_v40, %v8976_v36  ;;  %v20201_v9 = vld [vmem:[#allocation42_spill] sm:$0xff] }
 0x7d8   : > { %v10344_v3 = vrot.slane %v14045_v63, 2  ;;  %v20202_v10 = vshrl.u32 %v20201_v9, 16  ;;  %v8984_v63 = vrot.slane %v8982_v39, 4 }
 0x7d9   : > { %v9135_v34 = vpop.f32.mrf.mxu1 }
 0x7da   : > { %v18795_v57 = vadd.f32 %v9135_v34, %v18536_v29  ;;  %v10345_v31 = vsel %vm845_vm2, %v10342_v17, %v10344_v3  ;;  %v8979_v17 = vshrl.u32 %v13960_v7, 16  ;;  %v9984_v59 = vrot.slane %v20202_v10, 1 }
 0x7dc   : > { %v8191_v20 = vpop.f32.mrf.mxu2 }
 0x7dd   : > { %v8192_v29 = vadd.f32 %v8191_v20, %v18579_v50  ;;  %v9980_v50 = vsel %vm297_vm0, %v9970_v8, %v9979_v37  ;;  %v20203_v20 = vshll.u32 %v20201_v9, 16 }
 0x7de   : > { %v8429_v2 = vpop.f32.mrf.mxu3  ;;  %v8753_v30 = vpop.f32.mrf.mxu0 }
 0x7df   : > { %v8478_v48 = vadd.f32 %v8429_v2, %v8192_v29  ;;  %v18804_v14 = vadd.f32 %v8753_v30, %v8477_v45  ;;  %v9987_v52 = vrot.slane %v20203_v20, 2  ;;  %v9445_v2 = vshrl.u32 %v18788_v11, 16 }
 0x7e1   : > { %v9138_v22 = vpop.f32.mrf.mxu1  ;;  %12813 = vmatmul.msk.bf16.gmra.mxu2 %vm82_vm6, %v9444_v28  ;;  %12972 = vmatmul.msk.bf16.gmra.mxu0 %vm82_vm6, %v10345_v31  ;;  %v9988_v28 = vor.u32 %v9987_v52, %v9984_v59  ;;  %v20204_v52 = vld [vmem:[#allocation44_spill] sm:$0xff] }
 0x7e2   : > { %v18807_v53 = vadd.f32 %v9138_v22, %v18543_v44  ;;  %v18817_v44 = vld [vmem:[#allocation2 + $0x40] sm:$0xff] }
 0x7e3   : > { %12929 = vmatmul.msk.bf16.gmra.mxu3 %vm82_vm6, %v9980_v50  ;;  %v9449_v38 = vshll.u32 %v18817_v44, 16 }
 0x7e4   : > { %12701 = vmatmul.msk.bf16.gmra.mxu1 %vm82_vm6, %v8977_v12  ;;  %v8194_v45 = vpop.f32.mrf.mxu2  ;;  %v9447_v12 = vor.u32 %v9445_v2, %v9443_v32  ;;  %v13962_v32 = vld [vmem:[#allocation2 + $0x84] sm:$0xff]  }
 0x7e5   : > { %v8195_v34 = vadd.f32 %v8194_v45, %v18585_v0  ;;  %v8981_v0 = vrot.slane %v8979_v17, 3  ;;  %v9451_v30 = vrot.slane %v9449_v38, 1  ;;  %v8991_v38 = vshll.u32 %v13962_v32, 16 }
 0x7e6   : > { %v8432_v41 = vpop.f32.mrf.mxu3  ;;  %v8755_v4 = vpop.f32.mrf.mxu0 }
 0x7e7   : > { %v8479_v23 = vadd.f32 %v8432_v41, %v8195_v34  ;;  %v18820_v8 = vadd.f32 %v8755_v4, %v8478_v48  ;;  %v10346_v48 = vrot.slane %v14046_v54, 2  ;;  %v8985_v31 = vor.u32 %v8984_v63, %v8981_v0 }
 0x7e8   : > { %v9452_v17 = vsel %vm1997_vm4, %v9447_v12, %v9451_v30  ;;  %v20205_v0 = vshrl.u32 %v20204_v52, 16  ;;  %v8993_v54 = vrot.slane %v8991_v38, 4  ;;  %v14047_v12 = vld [vmem:[#allocation2 + $0x44] sm:$0xff] }
 0x7e9   : > { %v9140_v1 = vpop.f32.mrf.mxu1  ;;  %v10347_v11 = vsel %vm845_vm2, %v10344_v3, %v10346_v48  ;;  %v8986_v39 = vsel %vm1454_vm3, %v8976_v36, %v8985_v31  ;;  %v8988_v3 = vshrl.u32 %v13962_v32, 16 }
 0x7ea   : > { %v18823_v40 = vadd.f32 %v9140_v1, %v18558_v51  ;;  %v9993_v63 = vrot.slane %v20205_v0, 1 }
 0x7ec   : > { %v8196_v29 = vpop.f32.mrf.mxu2 }
 0x7ed   : > { %v8197_v22 = vadd.f32 %v8196_v29, %v18598_v25  ;;  %v9989_v25 = vsel %vm297_vm0, %v9979_v37, %v9988_v28  ;;  %v20206_v29 = vshll.u32 %v20204_v52, 16 }
 0x7ee   : > { %v8434_v51 = vpop.f32.mrf.mxu3  ;;  %v8758_v50 = vpop.f32.mrf.mxu0 }
 0x7ef   : > { %v8480_v7 = vadd.f32 %v8434_v51, %v8197_v22  ;;  %v18832_v45 = vadd.f32 %v8758_v50, %v8479_v23  ;;  %v9996_v2 = vrot.slane %v20206_v29, 2  ;;  %v9453_v51 = vshrl.u32 %v18817_v44, 16 }
 0x7f1   : > { %v9143_v34 = vpop.f32.mrf.mxu1  ;;  %12814 = vmatmul.msk.bf16.gmra.mxu2 %vm82_vm6, %v9452_v17  ;;  %12973 = vmatmul.msk.bf16.gmra.mxu0 %vm82_vm6, %v10347_v11  ;;  %v9997_v17 = vor.u32 %v9996_v2, %v9993_v63  ;;  %v20208_v2 = vld [vmem:[#allocation17_spill] sm:$0xff] }
 0x7f2   : > { %v18835_v41 = vadd.f32 %v9143_v34, %v18564_v55  ;;  %v18845_v55 = vld [vmem:[#allocation2 + $0x48] sm:$0xff] }
 0x7f3   : > { %12930 = vmatmul.msk.bf16.gmra.mxu3 %vm82_vm6, %v9989_v25  ;;  %v9457_v20 = vshll.u32 %v18845_v55, 16 }
 0x7f4   : > { %12702 = vmatmul.msk.bf16.gmra.mxu1 %vm82_vm6, %v8986_v39  ;;  %v8199_v4 = vpop.f32.mrf.mxu2  ;;  %v9455_v39 = vor.u32 %v9453_v51, %v9451_v30  ;;  %v13964_v30 = vld [vmem:[#allocation2 + $0x8c] sm:$0xff]  }
 0x7f5   : > { %v8200_v23 = vadd.f32 %v8199_v4, %v18606_v42  ;;  %v8990_v42 = vrot.slane %v8988_v3, 3  ;;  %v9459_v50 = vrot.slane %v9457_v20, 1  ;;  %v9000_v52 = vshll.u32 %v13964_v30, 16 }
 0x7f6   : > { %v8437_v1 = vpop.f32.mrf.mxu3  ;;  %v8760_v9 = vpop.f32.mrf.mxu0 }
 0x7f7   : > { %v8481_v10 = vadd.f32 %v8437_v1, %v8200_v23  ;;  %v18848_v37 = vadd.f32 %v8760_v9, %v8480_v7  ;;  %v10348_v7 = vrot.slane %v14047_v12, 2  ;;  %v8994_v11 = vor.u32 %v8993_v54, %v8990_v42  ;;  %v20209_v54 = vld [vmem:[#allocation46_spill] sm:$0xff] }
 0x7f8   : > { %v9460_v3 = vsel %vm1997_vm4, %v9455_v39, %v9459_v50  ;;  %v20211_v12 = vshll.u32 %v20209_v54, 16 }
 0x7f9   : > { %v9145_v59 = vpop.f32.mrf.mxu1  ;;  %v10349_v44 = vsel %vm845_vm2, %v10346_v48, %v10348_v7  ;;  %v8995_v38 = vsel %vm1454_vm3, %v8985_v31, %v8994_v11  ;;  %v8997_v48 = vshrl.u32 %v13964_v30, 16 }
 0x7fa   : > { %v18851_v36 = vadd.f32 %v9145_v59, %v18577_v18 }
 0x7fc   : > { %v8201_v22 = vpop.f32.mrf.mxu2 }
 0x7fd   : > { %v8202_v34 = vadd.f32 %v8201_v22, %v18621_v49  ;;  %v9998_v49 = vsel %vm297_vm0, %v9988_v28, %v9997_v17  ;;  %v20210_v22 = vshrl.u32 %v20209_v54, 16  ;;  %v20213_v54 = vld [vmem:[#allocation52_spill] sm:$0xff] }
 0x7fe   : > { %v8439_v18 = vpop.f32.mrf.mxu3  ;;  %v8763_v25 = vpop.f32.mrf.mxu0 }
 0x7ff   : > { %v8482_v32 = vadd.f32 %v8439_v18, %v8202_v34  ;;  %v18860_v4 = vadd.f32 %v8763_v25, %v8481_v10  ;;  %v20207_v10 = vld [vmem:[#allocation55_spill] sm:$0xff]  ;;  %v10002_v51 = vrot.slane %v20210_v22, 1  ;;  %v10005_v34 = vrot.slane %v20211_v12, 2 }
 0x800   : > { %v8999_v18 = vrot.slane %v8997_v48, 3  ;;  %v9002_v25 = vrot.slane %v9000_v52, 4 }
 0x801   : > { %v9148_v23 = vpop.f32.mrf.mxu1  ;;  %12815 = vmatmul.msk.bf16.gmra.mxu2 %vm82_vm6, %v9460_v3  ;;  %12974 = vmatmul.msk.bf16.gmra.mxu0 %vm82_vm6, %v10349_v44 }
 0x802   : > { %v18863_v1 = vadd.f32 %v9148_v23, %v18583_v26  ;;  %v18873_v26 = vld [vmem:[#allocation2 + $0x50] sm:$0xff]  ;;  %v9461_v23 = vshrl.u32 %v18845_v55, 16 }
 0x803   : > { %12931 = vmatmul.msk.bf16.gmra.mxu3 %vm82_vm6, %v9998_v49  ;;  %v9465_v42 = vshll.u32 %v18873_v26, 16  ;;  %v20212_v49 = vld [vmem:[#allocation57_spill] sm:$0xff] }
 0x804   : > { %12703 = vmatmul.msk.bf16.gmra.mxu1 %vm82_vm6, %v8995_v38  ;;  %v8204_v9 = vpop.f32.mrf.mxu2 }
 0x805   : > { %v8205_v59 = vadd.f32 %v8204_v9, %v20207_v10  ;;  %v9467_v3 = vrot.slane %v9465_v42, 1  ;;  %v10006_v9 = vor.u32 %v10005_v34, %v10002_v51  ;;  %v9003_v10 = vor.u32 %v9002_v25, %v8999_v18  ;;  %v18901_v51 = vld [vmem:[#allocation2 + $0x58] sm:$0xff] }
 0x806   : > { %v8442_v20 = vpop.f32.mrf.mxu3  ;;  %v8765_v0 = vpop.f32.mrf.mxu0 }
 0x807   : > { %v8483_v63 = vadd.f32 %v8442_v20, %v8205_v59  ;;  %v18876_v28 = vadd.f32 %v8765_v0, %v8482_v32  ;;  %v14048_v32 = vld [vmem:[#allocation2 + $0x4c] sm:$0xff]  ;;  %v9463_v20 = vor.u32 %v9461_v23, %v9459_v50  ;;  %v10007_v42 = vsel %vm297_vm0, %v9997_v17, %v10006_v9  ;;  %v13965_v50 = vld [vmem:[#allocation2 + $0x94] sm:$0xff]  }
 0x808   : > { %v10350_v44 = vrot.slane %v14048_v32, 2  ;;  %v9004_v22 = vsel %vm1454_vm3, %v8994_v11, %v9003_v10  ;;  %v9009_v18 = vshll.u32 %v13965_v50, 16  ;;  %v20214_v32 = vld [vmem:[#allocation53_spill] sm:$0xff] }
 0x809   : > { %v9150_v29 = vpop.f32.mrf.mxu1  ;;  %v9468_v52 = vsel %vm1997_vm4, %v9463_v20, %v9467_v3 }
 0x80a   : > { %v18879_v31 = vadd.f32 %v9150_v29, %v20208_v2  ;;  %v10351_v55 = vsel %vm845_vm2, %v10348_v7, %v10350_v44  ;;  %v9006_v7 = vshrl.u32 %v13965_v50, 16  ;;  %v20219_v50 = vld [vmem:[#allocation56_spill] sm:$0xff] }
 0x80c   : > { %v8206_v39 = vpop.f32.mrf.mxu2 }
 0x80d   : > { %v8207_v38 = vadd.f32 %v8206_v39, %v20212_v49  ;;  %v9473_v49 = vshll.u32 %v18901_v51, 16 }
 0x80e   : > { %v8444_v30 = vpop.f32.mrf.mxu3  ;;  %v8768_v59 = vpop.f32.mrf.mxu0 }
 0x80f   : > { %v8484_v0 = vadd.f32 %v8444_v30, %v8207_v38  ;;  %v18888_v29 = vadd.f32 %v8768_v59, %v8483_v63  ;;  %v20216_v38 = vld [vmem:[#allocation48_spill] sm:$0xff] }
 0x810   : > { %v20217_v30 = vshrl.u32 %v20216_v38, 16  ;;  %v20218_v20 = vshll.u32 %v20216_v38, 16 }
 0x811   : > { %v9153_v2 = vpop.f32.mrf.mxu1  ;;  %12816 = vmatmul.msk.bf16.gmra.mxu2 %vm82_vm6, %v9468_v52  ;;  %12975 = vmatmul.msk.bf16.gmra.mxu0 %vm82_vm6, %v10351_v55  ;;  %v9469_v55 = vshrl.u32 %v18873_v26, 16 }
 0x812   : > { %v18891_v48 = vadd.f32 %v9153_v2, %v20213_v54  ;;  %v10011_v59 = vrot.slane %v20217_v30, 1  ;;  %v10014_v2 = vrot.slane %v20218_v20, 2  ;;  %v9011_v54 = vrot.slane %v9009_v18, 4  ;;  %v20220_v18 = vld [vmem:[#allocation54_spill] sm:$0xff] }
 0x813   : > { %12932 = vmatmul.msk.bf16.gmra.mxu3 %vm82_vm6, %v10007_v42  ;;  %v9475_v42 = vrot.slane %v9473_v49, 1  ;;  %v9471_v30 = vor.u32 %v9469_v55, %v9467_v3 }
 0x814   : > { %12704 = vmatmul.msk.bf16.gmra.mxu1 %vm82_vm6, %v9004_v22  ;;  %v9639_v63 = vpop.f32.mrf.mxu2 }
 0x815   : > { %v9734_v12 = vadd.f32 %v9639_v63, %v18663_v6  ;;  %v9008_v6 = vrot.slane %v9006_v7, 3  ;;  %v13515_v63 = vunpack.c.h.b16 %v20219_v50  ;;  %v9476_v26 = vsel %vm1997_vm4, %v9471_v30, %v9475_v42 }
 0x816   : > { %v10188_v34 = vpop.f32.mrf.mxu3  ;;  %v8770_v25 = vpop.f32.mrf.mxu0 }
 0x817   : > { %v10283_v39 = vadd.f32 %v10188_v34, %v9734_v12  ;;  %v18904_v17 = vadd.f32 %v8770_v25, %v8484_v0  ;;  %v14049_v0 = vld [vmem:[#allocation2 + $0x54] sm:$0xff]  ;;  %v10015_v25 = vor.u32 %v10014_v2, %v10011_v59  ;;  %v13246_v59 = vld [vmem:[#allocation2 + $0x60] sm:$0xff] }
 0x818   : > { %v10352_v22 = vrot.slane %v14049_v0, 2  ;;  %v8843_v0 = vpack.c.b16 %v13515_v63, %v13515_v63  ;;  %v20221_v63 = vld [vmem:[#allocation22_spill] sm:$0xff] }
 0x819   : > { %v9155_v23 = vpop.f32.mrf.mxu1 }
 0x81a   : > { %v18907_v11 = vadd.f32 %v9155_v23, %v20214_v32  ;;  %v9012_v23 = vor.u32 %v9011_v54, %v9008_v6  ;;  %v10353_v49 = vsel %vm845_vm2, %v10350_v44, %v10352_v22  ;;  %v9015_v54 = vshrl.u32 %v8843_v0, 16 }
 0x81b   : > { %v9018_v44 = vshll.u32 %v8843_v0, 16  ;;  %v9477_v0 = vshrl.u32 %v18901_v51, 16 }
 0x81c   : > { %20215 = vst [vmem:[#allocation29_spill] sm:$0xff] %v18907_v11  ;;  %v9641_v52 = vpop.f32.mrf.mxu2  ;;  %v9013_v3 = vsel %vm1454_vm3, %v9003_v10, %v9012_v23  ;;  %v9481_v10 = vshll.u32 %v13246_v59, 16 }
 0x81d   : > { %v9735_v12 = vadd.f32 %v9641_v52, %v18681_v35  ;;  %v10016_v35 = vsel %vm297_vm0, %v10006_v9, %v10015_v25 }
 0x81e   : > { %v10190_v34 = vpop.f32.mrf.mxu3  ;;  %v10464_v32 = vpop.f32.mrf.mxu0 }
 0x81f   : > { %v10284_v11 = vadd.f32 %v10190_v34, %v9735_v12  ;;  %v18917_v38 = vadd.f32 %v10464_v32, %v10283_v39  ;;  %v20223_v34 = vld [vmem:[#allocation12_spill] sm:$0xff] }
 0x820   : > { %v20224_v32 = vshrl.u32 %v20223_v34, 16 }
 0x821   : > { %v9158_v7 = vpop.f32.mrf.mxu1  ;;  %12817 = vmatmul.msk.bf16.gmra.mxu2 %vm82_vm6, %v9476_v26  ;;  %12976 = vmatmul.msk.bf16.gmra.mxu0 %vm82_vm6, %v10353_v49  ;;  %v9017_v26 = vrot.slane %v9015_v54, 3 }
 0x822   : > { %v18920_v20 = vadd.f32 %v9158_v7, %v20220_v18  ;;  %v10020_v30 = vrot.slane %v20224_v32, 1  ;;  %v20225_v7 = vshll.u32 %v20223_v34, 16 }
 0x823   : > { %12933 = vmatmul.msk.bf16.gmra.mxu3 %vm82_vm6, %v10016_v35  ;;  %v9483_v35 = vrot.slane %v9481_v10, 1 }
 0x824   : > { %12705 = vmatmul.msk.bf16.gmra.mxu1 %vm82_vm6, %v9013_v3  ;;  %v9644_v39 = vpop.f32.mrf.mxu2  ;;  %v10023_v18 = vrot.slane %v20225_v7, 2  ;;  %v14050_v3 = vld [vmem:[#allocation2 + $0x5c] sm:$0xff] }
 0x825   : > { %v9736_v2 = vadd.f32 %v9644_v39, %v18694_v58  ;;  %v9020_v58 = vrot.slane %v9018_v44, 4 }
 0x826   : > { %v10193_v6 = vpop.f32.mrf.mxu3  ;;  %v10466_v52 = vpop.f32.mrf.mxu0 }
 0x827   : > { %v10285_v55 = vadd.f32 %v10193_v6, %v9736_v2  ;;  %v18931_v50 = vadd.f32 %v10466_v52, %v10284_v11  ;;  %v10354_v11 = vrot.slane %v14050_v3, 2  ;;  %v10024_v6 = vor.u32 %v10023_v18, %v10020_v30 }
 0x828   : > { %v9021_v52 = vor.u32 %v9020_v58, %v9017_v26 }
 0x829   : > { %v9160_v9 = vpop.f32.mrf.mxu1  ;;  %v10355_v51 = vsel %vm845_vm2, %v10352_v22, %v10354_v11 }
 0x82a   : > { %v18934_v12 = vadd.f32 %v9160_v9, %v20221_v63  ;;  %v9479_v63 = vor.u32 %v9477_v0, %v9475_v42  ;;  %v9022_v10 = vsel %vm1454_vm3, %v9012_v23, %v9021_v52  ;;  %v9485_v52 = vshrl.u32 %v13246_v59, 16 }
 0x82c   : > { %20222 = vst [vmem:[#allocation31_spill] sm:$0xff] %v18934_v12  ;;  %v9646_v49 = vpop.f32.mrf.mxu2  ;;  %v9484_v44 = vsel %vm1997_vm4, %v9479_v63, %v9483_v35 }
 0x82d   : > { %v9737_v39 = vadd.f32 %v9646_v49, %v18710_v15  ;;  %v10025_v15 = vsel %vm297_vm0, %v10015_v25, %v10024_v6  ;;  %v20226_v49 = vld [vmem:[#allocation13_spill] sm:$0xff] }
 0x82e   : > { %v10195_v2 = vpop.f32.mrf.mxu3  ;;  %v10469_v9 = vpop.f32.mrf.mxu0  ;;  %v20227_v23 = vshrl.u32 %v20226_v49, 16  ;;  %v20228_v3 = vshll.u32 %v20226_v49, 16 }
 0x82f   : > { %v10286_v12 = vadd.f32 %v10195_v2, %v9737_v39  ;;  %v18942_v32 = vadd.f32 %v10469_v9, %v10285_v55  ;;  %v13247_v55 = vld [vmem:[#allocation2 + $0x68] sm:$0xff] }
 0x830   : > { %v9489_v58 = vshll.u32 %v13247_v55, 16  ;;  %v10029_v0 = vrot.slane %v20227_v23, 1  ;;  %v10032_v39 = vrot.slane %v20228_v3, 2  ;;  %v14051_v9 = vld [vmem:[#allocation2 + $0x64] sm:$0xff]  ;;  %v20230_v3 = vld [vmem:[#allocation24_spill] sm:$0xff] }
 0x831   : > { %v9163_v34 = vpop.f32.mrf.mxu1  ;;  %12818 = vmatmul.msk.bf16.gmra.mxu2 %vm82_vm6, %v9484_v44  ;;  %12977 = vmatmul.msk.bf16.gmra.mxu0 %vm82_vm6, %v10355_v51  ;;  %v10356_v63 = vrot.slane %v14051_v9, 2  ;;  %v9487_v51 = vor.u32 %v9485_v52, %v9483_v35  ;;  %v20229_v35 = vld [vmem:[#allocation32_spill] sm:$0xff]  ;;  %v20232_v52 = vshll.u32 %v20230_v3, 16 }
 0x832   : > { %v18945_v54 = vadd.f32 %v9163_v34, %v18660_v33  ;;  %v10033_v44 = vor.u32 %v10032_v39, %v10029_v0  ;;  %v20231_v39 = vshrl.u32 %v20230_v3, 16 }
 0x833   : > { %12934 = vmatmul.msk.bf16.gmra.mxu3 %vm82_vm6, %v10025_v15  ;;  %v10357_v59 = vsel %vm845_vm2, %v10354_v11, %v10356_v63  ;;  %v13248_v11 = vld [vmem:[#allocation2 + $0x70] sm:$0xff]  ;;  %v10041_v9 = vrot.slane %v20232_v52, 2 }
 0x834   : > { %12706 = vmatmul.msk.bf16.gmra.mxu1 %vm82_vm6, %v9022_v10  ;;  %v9649_v42 = vpop.f32.mrf.mxu2  ;;  %v9497_v0 = vshll.u32 %v13248_v11, 16  ;;  %v20234_v52 = vld [vmem:[#allocation16_spill] sm:$0xff] }
 0x835   : > { %v9738_v33 = vadd.f32 %v9649_v42, %v18722_v13  ;;  %v9491_v13 = vrot.slane %v9489_v58, 1 }
 0x836   : > { %v10198_v30 = vpop.f32.mrf.mxu3  ;;  %v10471_v7 = vpop.f32.mrf.mxu0 }
 0x837   : > { %v10287_v18 = vadd.f32 %v10198_v30, %v9738_v33  ;;  %v18956_v22 = vadd.f32 %v10471_v7, %v10286_v12  ;;  %v9492_v30 = vsel %vm1997_vm4, %v9487_v51, %v9491_v13 }
 0x839   : > { %v9165_v26 = vpop.f32.mrf.mxu1 }
 0x83a   : > { %v18959_v25 = vadd.f32 %v9165_v26, %v18678_v46 }
 0x83c   : > { %v9651_v2 = vpop.f32.mrf.mxu2 }
 0x83d   : > { %v9739_v12 = vadd.f32 %v9651_v2, %v18738_v43  ;;  %v10034_v43 = vsel %vm297_vm0, %v10024_v6, %v10033_v44  ;;  %v10038_v2 = vrot.slane %v20231_v39, 1 }
 0x83e   : > { %v10200_v34 = vpop.f32.mrf.mxu3  ;;  %v10474_v46 = vpop.f32.mrf.mxu0 }
 0x83f   : > { %v10288_v15 = vadd.f32 %v10200_v34, %v9739_v12  ;;  %v18966_v10 = vadd.f32 %v10474_v46, %v10287_v18  ;;  %v9493_v34 = vshrl.u32 %v13247_v55, 16  ;;  %v9499_v46 = vrot.slane %v9497_v0, 1 }
 0x841   : > { %v9168_v42 = vpop.f32.mrf.mxu1  ;;  %12819 = vmatmul.msk.bf16.gmra.mxu2 %vm82_vm6, %v9492_v30  ;;  %12978 = vmatmul.msk.bf16.gmra.mxu0 %vm82_vm6, %v10357_v59  ;;  %v10042_v30 = vor.u32 %v10041_v9, %v10038_v2  ;;  %v20235_v9 = vshrl.u32 %v20234_v52, 16 }
 0x842   : > { %v18969_v33 = vadd.f32 %v9168_v42, %v18691_v21 }
 0x843   : > { %12935 = vmatmul.msk.bf16.gmra.mxu3 %vm82_vm6, %v10034_v43  ;;  %v9495_v43 = vor.u32 %v9493_v34, %v9491_v13  ;;  %v20236_v34 = vshll.u32 %v20234_v52, 16 }
 0x844   : > { %13012 = vmatmul.msk.bf16.vlgmr.msra.gmra.mxu1 %vm82_vm6, %v20229_v35  ;;  %v9654_v21 = vpop.f32.mrf.mxu2 }
 0x845   : > { %v9740_v7 = vadd.f32 %v9654_v21, %v18750_v24  ;;  %v14052_v24 = vld [vmem:[#allocation2 + $0x6c] sm:$0xff] }
 0x846   : > { %v10203_v18 = vpop.f32.mrf.mxu3  ;;  %v10476_v26 = vpop.f32.mrf.mxu0  ;;  %v10358_v51 = vrot.slane %v14052_v24, 2  ;;  %v10050_v24 = vrot.slane %v20236_v34, 2  ;;  %v20238_v34 = vld [vmem:[#allocation18_spill] sm:$0xff] }
 0x847   : > { %v10289_v58 = vadd.f32 %v10203_v18, %v9740_v7  ;;  %v18992_v6 = vadd.f32 %v10476_v26, %v10288_v15  ;;  %v9500_v18 = vsel %vm1997_vm4, %v9495_v43, %v9499_v46  ;;  %v10043_v26 = vsel %vm297_vm0, %v10033_v44, %v10042_v30 }
 0x848   : > { %v10359_v55 = vsel %vm845_vm2, %v10356_v63, %v10358_v51 }
 0x849   : > { %v9170_v49 = vpop.f32.mrf.mxu1 }
 0x84a   : > { %v18995_v23 = vadd.f32 %v9170_v49, %v18707_v27 }
 0x84c   : > { %v9656_v12 = vpop.f32.mrf.mxu2 }
 0x84d   : > { %v9741_v42 = vadd.f32 %v9656_v12, %v18766_v56  ;;  %v20233_v56 = vld [vmem:[#allocation34_spill] sm:$0xff]  ;;  %v10047_v12 = vrot.slane %v20235_v9, 1 }
 0x84e   : > { %v10205_v15 = vpop.f32.mrf.mxu3  ;;  %v10479_v59 = vpop.f32.mrf.mxu0 }
 0x84f   : > { %v10290_v27 = vadd.f32 %v10205_v15, %v9741_v42  ;;  %v19002_v35 = vadd.f32 %v10479_v59, %v10289_v58  ;;  %v13249_v58 = vld [vmem:[#allocation2 + $0x78] sm:$0xff]  ;;  %v9501_v15 = vshrl.u32 %v13248_v11, 16 }
 0x850   : > { %v9505_v44 = vshll.u32 %v13249_v58, 16 }
 0x851   : > { %v9173_v21 = vpop.f32.mrf.mxu1  ;;  %12820 = vmatmul.msk.bf16.gmra.mxu2 %vm82_vm6, %v9500_v18  ;;  %12979 = vmatmul.msk.bf16.gmra.mxu0 %vm82_vm6, %v10359_v55  ;;  %v10051_v18 = vor.u32 %v10050_v24, %v10047_v12  ;;  %v20239_v24 = vshrl.u32 %v20238_v34, 16 }
 0x852   : > { %v19005_v7 = vadd.f32 %v9173_v21, %v18719_v60  ;;  %v9507_v59 = vrot.slane %v9505_v44, 1 }
 0x853   : > { %12936 = vmatmul.msk.bf16.gmra.mxu3 %vm82_vm6, %v10043_v26  ;;  %v9503_v26 = vor.u32 %v9501_v15, %v9499_v46  ;;  %v20240_v15 = vshll.u32 %v20238_v34, 16 }
 0x854   : > { %13013 = vmatmul.msk.bf16.gmra.mxu1 %vm82_vm6, %v20233_v56  ;;  %v9659_v13 = vpop.f32.mrf.mxu2 }
 0x855   : > { %v9742_v60 = vadd.f32 %v9659_v13, %v18778_v5  ;;  %v14053_v5 = vld [vmem:[#allocation2 + $0x74] sm:$0xff] }
 0x856   : > { %v10208_v49 = vpop.f32.mrf.mxu3  ;;  %v10481_v0 = vpop.f32.mrf.mxu0  ;;  %v10360_v43 = vrot.slane %v14053_v5, 2  ;;  %v10059_v5 = vrot.slane %v20240_v15, 2  ;;  %v20242_v15 = vld [vmem:[#allocation19_spill] sm:$0xff] }
 0x857   : > { %v10291_v3 = vadd.f32 %v10208_v49, %v9742_v60  ;;  %v19016_v39 = vadd.f32 %v10481_v0, %v10290_v27  ;;  %v9508_v49 = vsel %vm1997_vm4, %v9503_v26, %v9507_v59  ;;  %v10052_v0 = vsel %vm297_vm0, %v10042_v30, %v10051_v18 }
 0x858   : > { %v10361_v11 = vsel %vm845_vm2, %v10358_v51, %v10360_v43 }
 0x859   : > { %v9175_v63 = vpop.f32.mrf.mxu1 }
 0x85a   : > { %v19019_v2 = vadd.f32 %v9175_v63, %v18735_v47 }
 0x85c   : > { %v9661_v42 = vpop.f32.mrf.mxu2 }
 0x85d   : > { %v9743_v21 = vadd.f32 %v9661_v42, %v18795_v57  ;;  %v20237_v57 = vld [vmem:[#allocation35_spill] sm:$0xff]  ;;  %v10056_v42 = vrot.slane %v20239_v24, 1 }
 0x85e   : > { %v10210_v27 = vpop.f32.mrf.mxu3  ;;  %v10484_v55 = vpop.f32.mrf.mxu0 }
 0x85f   : > { %v10292_v47 = vadd.f32 %v10210_v27, %v9743_v21  ;;  %v19026_v56 = vadd.f32 %v10484_v55, %v10291_v3  ;;  %v13250_v3 = vld [vmem:[#allocation2 + $0x80] sm:$0xff]  ;;  %v9509_v27 = vshrl.u32 %v13249_v58, 16 }
 0x860   : > { %v9513_v30 = vshll.u32 %v13250_v3, 16 }
 0x861   : > { %v9178_v13 = vpop.f32.mrf.mxu1  ;;  %12821 = vmatmul.msk.bf16.gmra.mxu2 %vm82_vm6, %v9508_v49  ;;  %12980 = vmatmul.msk.bf16.gmra.mxu0 %vm82_vm6, %v10361_v11  ;;  %v10060_v49 = vor.u32 %v10059_v5, %v10056_v42  ;;  %v20243_v5 = vshrl.u32 %v20242_v15, 16 }
 0x862   : > { %v19029_v60 = vadd.f32 %v9178_v13, %v18747_v61  ;;  %v9515_v55 = vrot.slane %v9513_v30, 1 }
 0x863   : > { %12937 = vmatmul.msk.bf16.gmra.mxu3 %vm82_vm6, %v10052_v0  ;;  %v9511_v0 = vor.u32 %v9509_v27, %v9507_v59  ;;  %v20244_v27 = vshll.u32 %v20242_v15, 16  ;;  %v20246_v15 = vld [vmem:[#allocation27_spill] sm:$0xff] }
 0x864   : > { %13014 = vmatmul.msk.bf16.gmra.mxu1 %vm82_vm6, %v20237_v57  ;;  %v9664_v46 = vpop.f32.mrf.mxu2 }
 0x865   : > { %v9744_v61 = vadd.f32 %v9664_v46, %v18807_v53  ;;  %v14054_v53 = vld [vmem:[#allocation2 + $0x7c] sm:$0xff] }
 0x866   : > { %v10213_v63 = vpop.f32.mrf.mxu3  ;;  %v10486_v44 = vpop.f32.mrf.mxu0  ;;  %v10362_v26 = vrot.slane %v14054_v53, 2  ;;  %v10068_v53 = vrot.slane %v20244_v27, 2 }
 0x867   : > { %v10293_v52 = vadd.f32 %v10213_v63, %v9744_v61  ;;  %v19040_v9 = vadd.f32 %v10486_v44, %v10292_v47  ;;  %v9516_v63 = vsel %vm1997_vm4, %v9511_v0, %v9515_v55  ;;  %v10061_v44 = vsel %vm297_vm0, %v10051_v18, %v10060_v49 }
 0x868   : > { %v10363_v58 = vsel %vm845_vm2, %v10360_v43, %v10362_v26 }
 0x869   : > { %v9180_v51 = vpop.f32.mrf.mxu1 }
 0x86a   : > { %v19043_v12 = vadd.f32 %v9180_v51, %v18763_v19 }
 0x86c   : > { %v9666_v21 = vpop.f32.mrf.mxu2 }
 0x86d   : > { %v9745_v13 = vadd.f32 %v9666_v21, %v18823_v40  ;;  %v20241_v40 = vld [vmem:[#allocation39_spill] sm:$0xff]  ;;  %v10065_v21 = vrot.slane %v20243_v5, 1  ;;  %v20247_v5 = vshrl.u32 %v20246_v15, 16 }
 0x86e   : > { %v10215_v47 = vpop.f32.mrf.mxu3  ;;  %v10489_v11 = vpop.f32.mrf.mxu0 }
 0x86f   : > { %v10294_v19 = vadd.f32 %v10215_v47, %v9745_v13  ;;  %v19050_v57 = vadd.f32 %v10489_v11, %v10293_v52  ;;  %v13251_v52 = vld [vmem:[#allocation2 + $0x88] sm:$0xff]  ;;  %v9517_v47 = vshrl.u32 %v13250_v3, 16 }
 0x870   : > { %v9521_v18 = vshll.u32 %v13251_v52, 16 }
 0x871   : > { %v9183_v46 = vpop.f32.mrf.mxu1  ;;  %12822 = vmatmul.msk.bf16.gmra.mxu2 %vm82_vm6, %v9516_v63  ;;  %12981 = vmatmul.msk.bf16.gmra.mxu0 %vm82_vm6, %v10363_v58 }
 0x872   : > { %v19053_v61 = vadd.f32 %v9183_v46, %v18775_v62  ;;  %v9523_v11 = vrot.slane %v9521_v18, 1 }
 0x873   : > { %12938 = vmatmul.msk.bf16.gmra.mxu3 %vm82_vm6, %v10061_v44  ;;  %v9519_v44 = vor.u32 %v9517_v47, %v9515_v55  ;;  %v13252_v55 = vld [vmem:[#allocation2 + $0x90] sm:$0xff] }
 0x874   : > { %13015 = vmatmul.msk.bf16.gmra.mxu1 %vm82_vm6, %v20241_v40  ;;  %v9669_v59 = vpop.f32.mrf.mxu2  ;;  %v14056_v47 = vld [vmem:[#allocation2 + $0x8c] sm:$0xff] }
 0x875   : > { %v9746_v62 = vadd.f32 %v9669_v59, %v18835_v41  ;;  %v14055_v41 = vld [vmem:[#allocation2 + $0x84] sm:$0xff] }
 0x876   : > { %v10218_v51 = vpop.f32.mrf.mxu3  ;;  %v10491_v30 = vpop.f32.mrf.mxu0  ;;  %v10364_v0 = vrot.slane %v14055_v41, 2  ;;  %v10366_v41 = vrot.slane %v14056_v47, 2 }
 0x877   : > { %v10295_v34 = vadd.f32 %v10218_v51, %v9746_v62  ;;  %v19064_v24 = vadd.f32 %v10491_v30, %v10294_v19  ;;  %v10069_v19 = vor.u32 %v10068_v53, %v10065_v21  ;;  %v9524_v51 = vsel %vm1997_vm4, %v9519_v44, %v9523_v11 }
 0x878   : > { %v10365_v3 = vsel %vm845_vm2, %v10362_v26, %v10364_v0  ;;  %v9529_v26 = vshll.u32 %v13252_v55, 16  ;;  %v10074_v21 = vrot.slane %v20247_v5, 1  ;;  %v9525_v53 = vshrl.u32 %v13251_v52, 16  ;;  %v20249_v52 = vld [vmem:[#allocation41_spill] sm:$0xff] }
 0x879   : > { %v9185_v43 = vpop.f32.mrf.mxu1  ;;  %v10070_v30 = vsel %vm297_vm0, %v10060_v49, %v10069_v19  ;;  %v20248_v49 = vshll.u32 %v20246_v15, 16  ;;  %v14057_v5 = vld [vmem:[#allocation2 + $0x94] sm:$0xff] }
 0x87a   : > { %v19067_v42 = vadd.f32 %v9185_v43, %v18791_v16 }
 0x87b   : > { %v10077_v27 = vrot.slane %v20248_v49, 2 }
 0x87c   : > { %v9671_v13 = vpop.f32.mrf.mxu2 }
 0x87d   : > { %v9747_v46 = vadd.f32 %v9671_v13, %v18851_v36  ;;  %v20245_v36 = vld [vmem:[#allocation40_spill] sm:$0xff]  ;;  %v9531_v13 = vrot.slane %v9529_v26, 1  ;;  %v9533_v26 = vshrl.u32 %v13252_v55, 16 }
 0x87e   : > { %v10220_v63 = vpop.f32.mrf.mxu3  ;;  %v10494_v58 = vpop.f32.mrf.mxu0 }
 0x87f   : > { %v10296_v16 = vadd.f32 %v10220_v63, %v9747_v46  ;;  %v19074_v40 = vadd.f32 %v10494_v58, %v10295_v34  ;;  %v10078_v46 = vor.u32 %v10077_v27, %v10074_v21  ;;  %v9527_v63 = vor.u32 %v9525_v53, %v9523_v11  ;;  %v13253_v11 = vld [vmem:[#allocation2 + $0x98] sm:$0xff]  ;;  %v9284_v27 = vld [vmem:[#allocation2 + $0xa0] sm:$0x1] }
 0x880   : > { %v10368_v21 = vrot.slane %v14057_v5, 2  ;;  %v9535_v47 = vor.u32 %v9533_v26, %v9531_v13 }
 0x881   : > { %v9188_v59 = vpop.f32.mrf.mxu1  ;;  %12823 = vmatmul.msk.bf16.gmra.mxu2 %vm82_vm6, %v9524_v51  ;;  %12982 = vmatmul.msk.bf16.gmra.mxu0 %vm82_vm6, %v10365_v3  ;;  %v9537_v3 = vshll.u32 %v13253_v11, 16 }
 0x882   : > { %v19077_v62 = vadd.f32 %v9188_v59, %v18804_v14  ;;  %v10079_v59 = vsel %vm297_vm0, %v10069_v19, %v10078_v46  ;;  %v9810_v19 = vld [vmem:[#allocation2 + $0xa4] sm:$0x3] }
 0x883   : > { %12939 = vmatmul.msk.bf16.gmra.mxu3 %vm82_vm6, %v10070_v30  ;;  %v20250_v30 = vld [vmem:[#allocation21_spill] sm:$0xff]  ;;  %v9539_v15 = vrot.slane %v9537_v3, 1  ;;  %v9898_v53 = vunpack.c.l.b16 %v9810_v19 }
 0x884   : > { %13016 = vmatmul.msk.bf16.gmra.mxu1 %vm82_vm6, %v20245_v36  ;;  %v20251_v36 = vshrl.u32 %v20250_v30, 16  ;;  %v14058_v19 = vld [vmem:[#allocation2 + $0x9c] sm:$0xff] }
 0x885   : > { %v10370_v26 = vrot.slane %v14058_v19, 2 }
 0x886   : > { %v10496_v34 = vpop.f32.mrf.mxu0 }
 0x887   : > { %v19087_v43 = vadd.f32 %v10496_v34, %v10296_v16  ;;  %v10367_v16 = vsel %vm845_vm2, %v10364_v0, %v10366_v41  ;;  %v10083_v0 = vrot.slane %v20251_v36, 1  ;;  %v20252_v34 = vshll.u32 %v20250_v30, 16 }
 0x889   : > { %v9190_v14 = vpop.f32.mrf.mxu1 }
 0x88a   : > { %v19090_v18 = vadd.f32 %v9190_v14, %v18820_v8  ;;  %v9532_v8 = vsel %vm1997_vm4, %v9527_v63, %v9531_v13  ;;  %v10086_v14 = vrot.slane %v20252_v34, 2  ;;  %v9541_v34 = vshrl.u32 %v13253_v11, 16  ;;  %v20254_v11 = vld [vmem:[#allocation45_spill] sm:$0xff] }
 0x88c   : > { %v10087_v49 = vor.u32 %v10086_v14, %v10083_v0 }
 0x88e   : > { %v10088_v55 = vsel %vm297_vm0, %v10078_v46, %v10087_v49  ;;  %v9543_v46 = vor.u32 %v9541_v34, %v9539_v15  ;;  %v11010_v34 = vld [vmem:[%s19817_s11 + $0x18] sm:$0xff] }
 0x891   : > { %v9193_v58 = vpop.f32.mrf.mxu1  ;;  %12824 = vmatmul.msk.bf16.gmra.mxu2 %vm82_vm6, %v9532_v8  ;;  %12983 = vmatmul.msk.bf16.gmra.mxu0 %vm82_vm6, %v10367_v16  ;;  %v10369_v8 = vsel %vm845_vm2, %v10366_v41, %v10368_v21  ;;  %v9372_v16 = vunpack.c.l.b16 %v9284_v27 }
 0x892   : > { %v19097_v44 = vadd.f32 %v9193_v58, %v18832_v45  ;;  %v9540_v58 = vsel %vm1997_vm4, %v9535_v47, %v9539_v15 }
 0x893   : > { %12940 = vmatmul.msk.bf16.gmra.mxu3 %vm82_vm6, %v10079_v59  ;;  %v9918_v59 = vpack.c.b16 %v9898_v53, %v9898_v53  ;;  %v9392_v13 = vpack.c.b16 %v9372_v16, %v9372_v16 }
 0x894   : > { %13017 = vmatmul.msk.bf16.gmra.mxu1 %vm82_vm6, %v20249_v52  ;;  %v20253_v52 = vld [vmem:[#allocation43_spill] sm:$0xff] }
 0x895   : > { %v9545_v41 = vshll.u32 %v9392_v13, 16  ;;  %v20255_v13 = vld [vmem:[#allocation47_spill] sm:$0xff] }
 0x897   : > { %v9547_v14 = vrot.slane %v9545_v41, 1 }
 0x899   : > { %v9195_v51 = vpop.f32.mrf.mxu1  ;;  %v9548_v47 = vsel %vm1997_vm4, %v9543_v46, %v9547_v14 }
 0x89a   : > { %v19108_v45 = vadd.f32 %v9195_v51, %v18848_v37  ;;  %v10093_v51 = vshll.u32 %v9918_v59, 16 }
 0x89c   : > { %v10095_v0 = vrot.slane %v10093_v51, 2 }
 0x8a1   : > { %v9198_v63 = vpop.f32.mrf.mxu1  ;;  %12825 = vmatmul.msk.bf16.gmra.mxu2 %vm82_vm6, %v9540_v58  ;;  %12984 = vmatmul.msk.bf16.gmra.mxu0 %vm82_vm6, %v10369_v8  ;;  %v19143_v8 = vld [vmem:[%s18977_s22] ss:$0 sm:$0xff] }
 0x8a2   : > { %v19115_v37 = vadd.f32 %v9198_v63, %v18860_v4  ;;  %v10090_v4 = vshrl.u32 %v9918_v59, 16 }
 0x8a3   : > { %12941 = vmatmul.msk.bf16.gmra.mxu3 %vm82_vm6, %v10088_v55  ;;  %v19147_v55 = vld [vmem:[%s18989_s26] ss:$0 sm:$0xff] }
 0x8a4   : > { %13018 = vmatmul.msk.bf16.gmra.mxu1 %vm82_vm6, %v20253_v52  ;;  %v10092_v36 = vrot.slane %v10090_v4, 1 }
 0x8a6   : > { %v10096_v5 = vor.u32 %v10095_v0, %v10092_v36 }
 0x8a8   : > { %v10097_v63 = vsel %vm297_vm0, %v10087_v49, %v10096_v5 }
 0x8a9   : > { %v9200_v3 = vpop.f32.mrf.mxu1 }
 0x8aa   : > { %v19126_v30 = vadd.f32 %v9200_v3, %v18876_v28  ;;  %v10371_v28 = vsel %vm845_vm2, %v10368_v21, %v10370_v26 }
 0x8b1   : > { %v9203_v27 = vpop.f32.mrf.mxu1  ;;  %12826 = vmatmul.msk.bf16.gmra.mxu2 %vm82_vm6, %v9548_v47  ;;  %12985 = vmatmul.msk.bf16.gmra.mxu0 %vm82_vm6, %v10371_v28 }
 0x8b2   : > { %v19129_v53 = vadd.f32 %v9203_v27, %v18888_v29  ;;  %v10372_v29 = vrot.slane %v9918_v59, 2 }
 0x8b3   : > { %12942 = vmatmul.msk.bf16.gmra.mxu3 %vm82_vm6, %v10097_v63  ;;  %v20256_v63 = vld [vmem:[#allocation49_spill] sm:$0xff] }
 0x8b4   : > { %13019 = vmatmul.msk.bf16.gmra.mxu1 %vm82_vm6, %v20254_v11  ;;  %v10373_v49 = vsel %vm845_vm2, %v10370_v26, %v10372_v29  ;;  %v11011_v11 = vld [vmem:[%s19817_s11 + $0x20] sm:$0xff] }
 0x8b9   : > { %v9205_v15 = vpop.f32.mrf.mxu1 }
 0x8ba   : > { %v19140_v58 = vadd.f32 %v9205_v15, %v18904_v17  ;;  %v11009_v17 = vld [vmem:[%s19817_s11 + $0x10] sm:$0xff] }
 0x8c1   : > { %v10790_v16 = vpop.f32.mrf.mxu1  ;;  %12986 = vmatmul.msk.bf16.gmra.mxu0 %vm82_vm6, %v10373_v49 }
 0x8c2   : > { %v10885_v21 = vadd.f32 %v10790_v16, %v18917_v38  ;;  %v11123_v38 = vld [vmem:[%s19818_s10] sm:$0xff]  ;;  %v11125_v16 = vld [vmem:[%s19818_s10 + $0x10] sm:$0xff] }
 0x8c4   : > { %v10928_v52 = vmul.f32 %v19143_v8, %v10885_v21  ;;  %13020 = vmatmul.msk.bf16.gmra.mxu1 %vm82_vm6, %v20255_v13 }
 0x8c6   : > { %v10971_v59 = vadd.f32 %v19147_v55, %v10928_v52 }
 0x8c8   : > { %v11047_v4 = vadd.f32 %v11009_v17, %v10971_v59  ;;  %v11012_v59 = vld [vmem:[%s19817_s11 + $0x28] sm:$0xff] }
 0x8c9   : > { %v10792_v51 = vpop.f32.mrf.mxu1 }
 0x8ca   : > { %v11085_v3 = vmax.f32 %v11047_v4, 0.0  ;;  %v10886_v41 = vadd.f32 %v10792_v51, %v18931_v50  ;;  %v11124_v50 = vld [vmem:[%s19818_s10 + $0x8] sm:$0xff] }
 0x8cc   : > { %v11161_v36 = vmul.f32 %v11123_v38, %v11085_v3  ;;  %v10929_v0 = vmul.f32 %v19143_v8, %v10886_v41 }
 0x8ce   : > { %11199 = vst.msk [vmem:[%s19817_s11 + $0x10] sm:$0xff] %vm82_vm6, %v11161_v36  ;;  %v11237_v46 = vpack.c.bf16 %v11161_v36, %v11161_v36  ;;  %v10972_v14 = vadd.f32 %v19147_v55, %v10929_v0 }
 0x8d0   : > { %11275 = vst.msk [vmem:[#allocation2 + $0x8] sm:$0xf] %vm39_vm5, %v11237_v46  ;;  %v11048_v19 = vadd.f32 %v11010_v34, %v10972_v14  ;;  %v20257_v46 = vld [vmem:[#allocation23_spill] sm:$0xff]  ;;  %v11013_v14 = vld [vmem:[%s19817_s11 + $0x30] sm:$0xff] }
 0x8d1   : > { %v10795_v26 = vpop.f32.mrf.mxu1 }
 0x8d2   : > { %v11086_v5 = vmax.f32 %v11048_v19, 0.0  ;;  %v10887_v27 = vadd.f32 %v10795_v26, %v18942_v32  ;;  %v11127_v26 = vld [vmem:[%s19818_s10 + $0x20] sm:$0xff] }
 0x8d4   : > { %v11162_v47 = vmul.f32 %v11124_v50, %v11086_v5  ;;  %v10930_v28 = vmul.f32 %v19143_v8, %v10887_v27  ;;  %13021 = vmatmul.msk.bf16.gmra.mxu1 %vm82_vm6, %v20256_v63 }
 0x8d6   : > { %11200 = vst.msk [vmem:[%s19817_s11 + $0x18] sm:$0xff] %vm82_vm6, %v11162_v47  ;;  %v11238_v15 = vpack.c.bf16 %v11162_v47, %v11162_v47  ;;  %v10973_v29 = vadd.f32 %v19147_v55, %v10930_v28 }
 0x8d8   : > { %11276 = vst.msk [vmem:[#allocation2 + $0xc] sm:$0xf] %vm39_vm5, %v11238_v15  ;;  %v11049_v32 = vadd.f32 %v11011_v11, %v10973_v29  ;;  %v11014_v11 = vld [vmem:[%s19817_s11 + $0x38] sm:$0xff] }
 0x8d9   : > { %v10797_v21 = vpop.f32.mrf.mxu1 }
 0x8da   : > { %v11087_v49 = vmax.f32 %v11049_v32, 0.0  ;;  %v10888_v52 = vadd.f32 %v10797_v21, %v18956_v22  ;;  %v11126_v22 = vld [vmem:[%s19818_s10 + $0x18] sm:$0xff] }
 0x8dc   : > { %v11163_v13 = vmul.f32 %v11125_v16, %v11087_v49  ;;  %v10931_v17 = vmul.f32 %v19143_v8, %v10888_v52 }
 0x8de   : > { %11201 = vst.msk [vmem:[%s19817_s11 + $0x20] sm:$0xff] %vm82_vm6, %v11163_v13  ;;  %v11239_v4 = vpack.c.bf16 %v11163_v13, %v11163_v13  ;;  %v10974_v38 = vadd.f32 %v19147_v55, %v10931_v17  ;;  %v20258_v17 = vld [vmem:[#allocation14_spill] sm:$0xff] }
 0x8e0   : > { %11277 = vst.msk [vmem:[#allocation2 + $0x10] sm:$0xf] %vm39_vm5, %v11239_v4  ;;  %v11050_v51 = vadd.f32 %v11012_v59, %v10974_v38  ;;  %v11015_v59 = vld [vmem:[%s19817_s11 + $0x40] sm:$0xff] }
 0x8e1   : > { %v10800_v3 = vpop.f32.mrf.mxu1 }
 0x8e2   : > { %v11088_v41 = vmax.f32 %v11050_v51, 0.0  ;;  %v10889_v36 = vadd.f32 %v10800_v3, %v18966_v10  ;;  %v19248_v51 = vpop.f32.mrf.mxu2 }
 0x8e4   : > { %v11164_v0 = vmul.f32 %v11126_v22, %v11088_v41  ;;  %v10932_v34 = vmul.f32 %v19143_v8, %v10889_v36  ;;  %13022 = vmatmul.msk.bf16.gmra.mxu1 %vm82_vm6, %v20257_v46  ;;  %v11129_v22 = vld [vmem:[%s19818_s10 + $0x30] sm:$0xff]  ;;  %v11016_v46 = vld [vmem:[%s19817_s11 + $0x48] sm:$0xff] }
 0x8e6   : > { %11202 = vst.msk [vmem:[%s19817_s11 + $0x28] sm:$0xff] %vm82_vm6, %v11164_v0  ;;  %v11240_v19 = vpack.c.bf16 %v11164_v0, %v11164_v0  ;;  %v10975_v50 = vadd.f32 %v19147_v55, %v10932_v34 }
 0x8e8   : > { %11278 = vst.msk [vmem:[#allocation2 + $0x14] sm:$0xf] %vm39_vm5, %v11240_v19  ;;  %v11051_v10 = vadd.f32 %v11013_v14, %v10975_v50  ;;  %v19258_v14 = vpop.f32.mrf.mxu3 }
 0x8e9   : > { %v10802_v5 = vpop.f32.mrf.mxu1 }
 0x8ea   : > { %v11089_v27 = vmax.f32 %v11051_v10, 0.0  ;;  %v10890_v47 = vadd.f32 %v10802_v5, %v18992_v6  ;;  %v11128_v6 = vld [vmem:[%s19818_s10 + $0x28] sm:$0xff]  ;;  %v19265_v10 = vpop.f32.mrf.mxu0 }
 0x8ec   : > { %v11165_v28 = vmul.f32 %v11127_v26, %v11089_v27  ;;  %v10933_v63 = vmul.f32 %v19143_v8, %v10890_v47  ;;  %v11130_v26 = vld [vmem:[%s19818_s10 + $0x38] sm:$0xff] }
 0x8ee   : > { %11203 = vst.msk [vmem:[%s19817_s11 + $0x30] sm:$0xff] %vm82_vm6, %v11165_v28  ;;  %v11241_v15 = vpack.c.bf16 %v11165_v28, %v11165_v28  ;;  %v10976_v29 = vadd.f32 %v19147_v55, %v10933_v63  ;;  %v19272_v28 = vpop.f32.mrf.mxu2 }
 0x8f0   : > { %11279 = vst.msk [vmem:[#allocation2 + $0x18] sm:$0xf] %vm39_vm5, %v11241_v15  ;;  %v11052_v32 = vadd.f32 %v11014_v11, %v10976_v29  ;;  %v20259_v15 = vld [vmem:[#allocation15_spill] sm:$0xff]  ;;  %v11017_v29 = vld [vmem:[%s19817_s11 + $0x50] sm:$0xff] }
 0x8f1   : > { %v10805_v16 = vpop.f32.mrf.mxu1 }
 0x8f2   : > { %v11090_v21 = vmax.f32 %v11052_v32, 0.0  ;;  %v10891_v49 = vadd.f32 %v10805_v16, %v19002_v35 }
 0x8f4   : > { %v11166_v52 = vmul.f32 %v11128_v6, %v11090_v21  ;;  %v10934_v13 = vmul.f32 %v19143_v8, %v10891_v49  ;;  %13023 = vmatmul.msk.bf16.gmra.mxu1 %vm82_vm6, %v20258_v17  ;;  %v19285_v6 = vpop.f32.mrf.mxu3  ;;  %v19288_v21 = vpop.f32.mrf.mxu0  ;;  %v11131_v49 = vld [vmem:[%s19818_s10 + $0x40] sm:$0xff] }
 0x8f6   : > { %11204 = vst.msk [vmem:[%s19817_s11 + $0x38] sm:$0xff] %vm82_vm6, %v11166_v52  ;;  %v11242_v4 = vpack.c.bf16 %v11166_v52, %v11166_v52  ;;  %v10977_v38 = vadd.f32 %v19147_v55, %v10934_v13 }
 0x8f8   : > { %11280 = vst.msk [vmem:[#allocation2 + $0x1c] sm:$0xf] %vm39_vm5, %v11242_v4  ;;  %v11053_v35 = vadd.f32 %v11015_v59, %v10977_v38  ;;  %v19295_v38 = vpop.f32.mrf.mxu2 }
 0x8f9   : > { %v10807_v3 = vpop.f32.mrf.mxu1 }
 0x8fa   : > { %v11091_v41 = vmax.f32 %v11053_v35, 0.0  ;;  %v10892_v36 = vadd.f32 %v10807_v3, %v19016_v39  ;;  %v11018_v35 = vld [vmem:[%s19817_s11 + $0x58] sm:$0xff] }
 0x8fc   : > { %v11167_v0 = vmul.f32 %v11129_v22, %v11091_v41  ;;  %v10935_v34 = vmul.f32 %v19143_v8, %v10892_v36  ;;  %v11132_v41 = vld [vmem:[%s19818_s10 + $0x48] sm:$0xff] }
 0x8fe   : > { %11205 = vst.msk [vmem:[%s19817_s11 + $0x40] sm:$0xff] %vm82_vm6, %v11167_v0  ;;  %v11243_v19 = vpack.c.bf16 %v11167_v0, %v11167_v0  ;;  %v10978_v50 = vadd.f32 %v19147_v55, %v10935_v34  ;;  %v19309_v0 = vpop.f32.mrf.mxu3 }
 0x900   : > { %11281 = vst.msk [vmem:[#allocation2 + $0x20] sm:$0xf] %vm39_vm5, %v11243_v19  ;;  %v11054_v39 = vadd.f32 %v11016_v46, %v10978_v50  ;;  %v19312_v19 = vpop.f32.mrf.mxu0 }
 0x901   : > { %v10810_v5 = vpop.f32.mrf.mxu1 }
 0x902   : > { %v11092_v27 = vmax.f32 %v11054_v39, 0.0  ;;  %v10893_v47 = vadd.f32 %v10810_v5, %v19026_v56  ;;  %v11019_v5 = vld [vmem:[%s19817_s11 + $0x60] sm:$0xff] }
 0x904   : > { %v11168_v63 = vmul.f32 %v11130_v26, %v11092_v27  ;;  %v10936_v11 = vmul.f32 %v19143_v8, %v10893_v47  ;;  %13024 = vmatmul.msk.bf16.gmra.mxu1 %vm82_vm6, %v20259_v15  ;;  %v20260_v26 = vld [vmem:[#allocation25_spill] sm:$0xff]  ;;  %v19325_v47 = vpop.f32.mrf.mxu2 }
 0x906   : > { %11206 = vst.msk [vmem:[%s19817_s11 + $0x48] sm:$0xff] %vm82_vm6, %v11168_v63  ;;  %v11244_v32 = vpack.c.bf16 %v11168_v63, %v11168_v63  ;;  %v10979_v56 = vadd.f32 %v19147_v55, %v10936_v11  ;;  %v11133_v11 = vld [vmem:[%s19818_s10 + $0x50] sm:$0xff] }
 0x908   : > { %11282 = vst.msk [vmem:[#allocation2 + $0x24] sm:$0xf] %vm39_vm5, %v11244_v32  ;;  %v11055_v16 = vadd.f32 %v11017_v29, %v10979_v56  ;;  %v19332_v56 = vpop.f32.mrf.mxu3 }
 0x909   : > { %v10812_v52 = vpop.f32.mrf.mxu1 }
 0x90a   : > { %v11093_v13 = vmax.f32 %v11055_v16, 0.0  ;;  %v10894_v17 = vadd.f32 %v10812_v52, %v19040_v9  ;;  %v19335_v52 = vpop.f32.mrf.mxu0 }
 0x90c   : > { %v11169_v59 = vmul.f32 %v11131_v49, %v11093_v13  ;;  %v10937_v4 = vmul.f32 %v19143_v8, %v10894_v17  ;;  %v11020_v13 = vld [vmem:[%s19817_s11 + $0x68] sm:$0xff] }
 0x90e   : > { %11207 = vst.msk [vmem:[%s19817_s11 + $0x50] sm:$0xff] %vm82_vm6, %v11169_v59  ;;  %v11245_v22 = vpack.c.bf16 %v11169_v59, %v11169_v59  ;;  %v10980_v3 = vadd.f32 %v19147_v55, %v10937_v4  ;;  %v19346_v4 = vpop.f32.mrf.mxu2 }
 0x910   : > { %11283 = vst.msk [vmem:[#allocation2 + $0x28] sm:$0xf] %vm39_vm5, %v11245_v22  ;;  %v11056_v9 = vadd.f32 %v11018_v35, %v10980_v3  ;;  %v11134_v35 = vld [vmem:[%s19818_s10 + $0x58] sm:$0xff] }
 0x911   : > { %v10815_v36 = vpop.f32.mrf.mxu1 }
 0x912   : > { %v11094_v34 = vmax.f32 %v11056_v9, 0.0  ;;  %v10895_v46 = vadd.f32 %v10815_v36, %v19050_v57 }
 0x914   : > { %v11170_v50 = vmul.f32 %v11132_v41, %v11094_v34  ;;  %v10938_v39 = vmul.f32 %v19143_v8, %v10895_v46  ;;  %13025 = vmatmul.msk.bf16.gmra.mxu1 %vm82_vm6, %v20260_v26  ;;  %v20261_v34 = vld [vmem:[#allocation26_spill] sm:$0xff]  ;;  %v11021_v46 = vld [vmem:[%s19817_s11 + $0x70] sm:$0xff]  ;;  %v19365_v26 = vpop.f32.mrf.mxu0 }
 0x916   : > { %11208 = vst.msk [vmem:[%s19817_s11 + $0x58] sm:$0xff] %vm82_vm6, %v11170_v50  ;;  %v11246_v27 = vpack.c.bf16 %v11170_v50, %v11170_v50  ;;  %v10981_v57 = vadd.f32 %v19147_v55, %v10938_v39  ;;  %v19358_v50 = vpop.f32.mrf.mxu3 }
 0x918   : > { %11284 = vst.msk [vmem:[#allocation2 + $0x2c] sm:$0xf] %vm39_vm5, %v11246_v27  ;;  %v11057_v63 = vadd.f32 %v11019_v5, %v10981_v57  ;;  %v11135_v27 = vld [vmem:[%s19818_s10 + $0x60] sm:$0xff] }
 0x919   : > { %v10817_v15 = vpop.f32.mrf.mxu1 }
 0x91a   : > { %v11095_v29 = vmax.f32 %v11057_v63, 0.0  ;;  %v10896_v32 = vadd.f32 %v10817_v15, %v19064_v24  ;;  %v9748_v63 = vadd.f32 %v19248_v51, %v18863_v1 }
 0x91c   : > { %v11171_v16 = vmul.f32 %v11133_v11, %v11095_v29  ;;  %v10939_v49 = vmul.f32 %v19143_v8, %v10896_v32  ;;  %v19374_v29 = vpop.f32.mrf.mxu2 }
 0x91e   : > { %11209 = vst.msk [vmem:[%s19817_s11 + $0x60] sm:$0xff] %vm82_vm6, %v11171_v16  ;;  %v11247_v17 = vpack.c.bf16 %v11171_v16, %v11171_v16  ;;  %v10982_v59 = vadd.f32 %v19147_v55, %v10939_v49  ;;  %v11022_v49 = vld [vmem:[%s19817_s11 + $0x78] sm:$0xff] }
 0x920   : > { %11285 = vst.msk [vmem:[#allocation2 + $0x30] sm:$0xf] %vm39_vm5, %v11247_v17  ;;  %v11058_v24 = vadd.f32 %v11020_v13, %v10982_v59  ;;  %v10297_v13 = vadd.f32 %v19258_v14, %v9748_v63  ;;  %v19387_v17 = vpop.f32.mrf.mxu3  ;;  %v11136_v14 = vld [vmem:[%s19818_s10 + $0x68] sm:$0xff] }
 0x921   : > { %v10820_v22 = vpop.f32.mrf.mxu1 }
 0x922   : > { %v11096_v3 = vmax.f32 %v11058_v24, 0.0  ;;  %v10897_v9 = vadd.f32 %v10820_v22, %v19074_v40  ;;  %v19390_v24 = vpop.f32.mrf.mxu0  ;;  %v9749_v22 = vadd.f32 %v19272_v28, %v18879_v31 }
 0x924   : > { %v11172_v41 = vmul.f32 %v11134_v35, %v11096_v3  ;;  %v10940_v36 = vmul.f32 %v19143_v8, %v10897_v9  ;;  %13026 = vmatmul.msk.bf16.gmra.mxu1 %vm82_vm6, %v20261_v34  ;;  %v19400_v34 = vpop.f32.mrf.mxu2 }
 0x926   : > { %11210 = vst.msk [vmem:[%s19817_s11 + $0x68] sm:$0xff] %vm82_vm6, %v11172_v41  ;;  %v11248_v39 = vpack.c.bf16 %v11172_v41, %v11172_v41  ;;  %v10983_v40 = vadd.f32 %v19147_v55, %v10940_v36  ;;  %v20262_v36 = vld [vmem:[#allocation20_spill] sm:$0xff] }
 0x928   : > { %11286 = vst.msk [vmem:[#allocation2 + $0x34] sm:$0xf] %vm39_vm5, %v11248_v39  ;;  %v11059_v5 = vadd.f32 %v11021_v46, %v10983_v40  ;;  %v11023_v46 = vld [vmem:[%s19817_s11 + $0x80] sm:$0xff]  ;;  %v10298_v39 = vadd.f32 %v19285_v6, %v9749_v22  ;;  %v9750_v6 = vadd.f32 %v19295_v38, %v18891_v48  ;;  %v19418_v63 = vpop.f32.mrf.mxu3 }
 0x929   : > { %v10822_v57 = vpop.f32.mrf.mxu1 }
 0x92a   : > { %v11097_v11 = vmax.f32 %v11059_v5, 0.0  ;;  %v10898_v15 = vadd.f32 %v10822_v57, %v19087_v43  ;;  %v10573_v43 = vadd.f32 %v19265_v10, %v10297_v13  ;;  %v10574_v40 = vadd.f32 %v19288_v21, %v10298_v39 }
 0x92b   : > { %v10299_v13 = vadd.f32 %v19309_v0, %v9750_v6 }
 0x92c   : > { %v11173_v32 = vmul.f32 %v11135_v27, %v11097_v11  ;;  %v10941_v16 = vmul.f32 %v19143_v8, %v10898_v15  ;;  %v11137_v27 = vld [vmem:[%s19818_s10 + $0x70] sm:$0xff] }
 0x92e   : > { %11211 = vst.msk [vmem:[%s19817_s11 + $0x70] sm:$0xff] %vm82_vm6, %v11173_v32  ;;  %v11249_v1 = vpack.c.bf16 %v11173_v32, %v11173_v32  ;;  %v10984_v51 = vadd.f32 %v19147_v55, %v10941_v16  ;;  %v19420_v32 = vpop.f32.mrf.mxu0 }
 0x930   : > { %11287 = vst.msk [vmem:[#allocation2 + $0x38] sm:$0xf] %vm39_vm5, %v11249_v1  ;;  %v11060_v59 = vadd.f32 %v11022_v49, %v10984_v51  ;;  %v11024_v49 = vld [vmem:[%s19817_s11 + $0x88] sm:$0xff]  ;;  %v19432_v1 = vpop.f32.mrf.mxu2  ;;  %v10575_v51 = vadd.f32 %v19312_v19, %v10299_v13 }
 0x931   : > { %v10825_v35 = vpop.f32.mrf.mxu1 }
 0x932   : > { %v11098_v3 = vmax.f32 %v11060_v59, 0.0  ;;  %v10899_v9 = vadd.f32 %v10825_v35, %v10573_v43  ;;  %v11138_v59 = vld [vmem:[%s19818_s10 + $0x78] sm:$0xff] }
 0x934   : > { %v11174_v41 = vmul.f32 %v11136_v14, %v11098_v3  ;;  %v10942_v10 = vmul.f32 %v19143_v8, %v10899_v9  ;;  %13027 = vmatmul.msk.bf16.gmra.mxu1 %vm82_vm6, %v20262_v36  ;;  %v20263_v14 = vld [vmem:[#allocation29_spill] sm:$0xff]  ;;  %v19441_v9 = vpop.f32.mrf.mxu3  ;;  %v20264_v36 = vld [vmem:[#allocation50_spill] sm:$0xff] }
 0x935   : > { %v9751_v35 = vadd.f32 %v19325_v47, %v20263_v14 }
 0x936   : > { %11212 = vst.msk [vmem:[%s19817_s11 + $0x78] sm:$0xff] %vm82_vm6, %v11174_v41  ;;  %v11250_v31 = vpack.c.bf16 %v11174_v41, %v11174_v41  ;;  %v10985_v28 = vadd.f32 %v19147_v55, %v10942_v10  ;;  %v19446_v19 = vpop.f32.mrf.mxu0 }
 0x937   : > { %v10300_v39 = vadd.f32 %v19332_v56, %v9751_v35 }
 0x938   : > { %11288 = vst.msk [vmem:[#allocation2 + $0x3c] sm:$0xf] %vm39_vm5, %v11250_v31  ;;  %v11061_v5 = vadd.f32 %v11023_v46, %v10985_v28  ;;  %v11025_v46 = vld [vmem:[%s19817_s11 + $0x90] sm:$0xff] }
 0x939   : > { %v10827_v57 = vpop.f32.mrf.mxu1  ;;  %v10576_v28 = vadd.f32 %v19335_v52, %v10300_v39  ;;  %v11026_v52 = vld [vmem:[%s19817_s11 + $0x98] sm:$0xff] }
 0x93a   : > { %v11099_v11 = vmax.f32 %v11061_v5, 0.0  ;;  %v10900_v15 = vadd.f32 %v10827_v57, %v10574_v40  ;;  %v19459_v5 = vpop.f32.mrf.mxu2  ;;  %v9752_v57 = vadd.f32 %v19346_v4, %v18920_v20 }
 0x93c   : > { %v11175_v16 = vmul.f32 %v11137_v27, %v11099_v11  ;;  %v10943_v21 = vmul.f32 %v19143_v8, %v10900_v15  ;;  %v11139_v27 = vld [vmem:[%s19818_s10 + $0x80] sm:$0xff]  ;;  %v19471_v13 = vpop.f32.mrf.mxu3 }
 0x93e   : > { %11213 = vst.msk [vmem:[%s19817_s11 + $0x80] sm:$0xff] %vm82_vm6, %v11175_v16  ;;  %v11251_v48 = vpack.c.bf16 %v11175_v16, %v11175_v16  ;;  %v10986_v38 = vadd.f32 %v19147_v55, %v10943_v21  ;;  %v10597_v21 = vld [vmem:[#allocation2 + $0xa4] sm:$0x7] }
 0x940   : > { %11289 = vst.msk [vmem:[#allocation2 + $0x40] sm:$0xf] %vm39_vm5, %v11251_v48  ;;  %v11062_v43 = vadd.f32 %v11024_v49, %v10986_v38  ;;  %v10301_v49 = vadd.f32 %v19358_v50, %v9752_v57  ;;  %v19478_v48 = vpop.f32.mrf.mxu0  ;;  %v10609_v38 = vunpack.c.l.b16 %v10597_v21  ;;  %v11140_v50 = vld [vmem:[%s19818_s10 + $0x88] sm:$0xff] }
 0x941   : > { %v10830_v0 = vpop.f32.mrf.mxu1 }
 0x942   : > { %v11100_v22 = vmax.f32 %v11062_v43, 0.0  ;;  %v10901_v3 = vadd.f32 %v10830_v0, %v10575_v51  ;;  %v10577_v51 = vadd.f32 %v19365_v26, %v10301_v49  ;;  %v20265_v0 = vld [vmem:[#allocation31_spill] sm:$0xff] }
 0x943   : > { %v9753_v14 = vadd.f32 %v19374_v29, %v20265_v0  ;;  %v20266_v26 = vld [vmem:[#allocation51_spill] sm:$0xff] }
 0x944   : > { %v11176_v41 = vmul.f32 %v11138_v59, %v11100_v22  ;;  %v10944_v10 = vmul.f32 %v19143_v8, %v10901_v3  ;;  %13028 = vmatmul.msk.bf16.gmra.mxu1 %vm82_vm6, %v20264_v36  ;;  %v19487_v3 = vpop.f32.mrf.mxu2 }
 0x945   : > { %v10302_v39 = vadd.f32 %v19387_v17, %v9753_v14  ;;  %v11141_v17 = vld [vmem:[%s19818_s10 + $0x90] sm:$0xff] }
 0x946   : > { %11214 = vst.msk [vmem:[%s19817_s11 + $0x88] sm:$0xff] %vm82_vm6, %v11176_v41  ;;  %v11252_v47 = vpack.c.bf16 %v11176_v41, %v11176_v41  ;;  %v10987_v31 = vadd.f32 %v19147_v55, %v10944_v10  ;;  %v10610_v41 = vpack.c.b16 %v10609_v38, %v10609_v38 }
 0x948   : > { %11290 = vst.msk [vmem:[#allocation2 + $0x44] sm:$0xf] %vm39_vm5, %v11252_v47  ;;  %v11063_v40 = vadd.f32 %v11025_v46, %v10987_v31  ;;  %v11027_v46 = vld [vmem:[%s19817_s11 + $0xa0] sm:$0xff]  ;;  %v10692_v31 = vshrl.u32 %v10610_v41, 16  ;;  %v19505_v57 = vpop.f32.mrf.mxu0 }
 0x949   : > { %v10832_v56 = vpop.f32.mrf.mxu1 }
 0x94a   : > { %v11101_v6 = vmax.f32 %v11063_v40, 0.0  ;;  %v10902_v11 = vadd.f32 %v10832_v56, %v10576_v28  ;;  %v10695_v28 = vshll.u32 %v10610_v41, 16  ;;  %v10578_v40 = vadd.f32 %v19390_v24, %v10302_v39 }
 0x94b   : > { %v10694_v21 = vrot.slane %v10692_v31, 2 }
 0x94c   : > { %v11177_v15 = vmul.f32 %v11139_v27, %v11101_v6  ;;  %v10945_v16 = vmul.f32 %v19143_v8, %v10902_v11  ;;  %v19502_v27 = vpop.f32.mrf.mxu3  ;;  %v9754_v11 = vadd.f32 %v19400_v34, %v18945_v54 }
 0x94e   : > { %11215 = vst.msk [vmem:[%s19817_s11 + $0x90] sm:$0xff] %vm82_vm6, %v11177_v15  ;;  %v11253_v20 = vpack.c.bf16 %v11177_v15, %v11177_v15  ;;  %v10988_v4 = vadd.f32 %v19147_v55, %v10945_v16  ;;  %v10303_v38 = vadd.f32 %v19418_v63, %v9754_v11  ;;  %v9755_v63 = vadd.f32 %v19432_v1, %v18959_v25 }
 0x950   : > { %11291 = vst.msk [vmem:[#allocation2 + $0x48] sm:$0xf] %vm39_vm5, %v11253_v20  ;;  %v11064_v43 = vadd.f32 %v11026_v52, %v10988_v4  ;;  %v10697_v52 = vrot.slane %v10695_v28, 3  ;;  %v19513_v20 = vpop.f32.mrf.mxu2  ;;  %v11028_v4 = vld [vmem:[%s19817_s11 + $0xa8] sm:$0xff]  ;;  %v10524_v41 = vpop.f32.mrf.mxu0  ;;  %v10304_v39 = vadd.f32 %v19441_v9, %v9755_v63  ;;  %v11143_v28 = vld [vmem:[%s19818_s10 + $0xa0] sm:$0xff]  ;;  %v9756_v9 = vadd.f32 %v19459_v5, %v18969_v33 }
 0x951   : > { %v10835_v59 = vpop.f32.mrf.mxu1 }
 0x952   : > { %v11102_v35 = vmax.f32 %v11064_v43, 0.0  ;;  %v10903_v22 = vadd.f32 %v10835_v59, %v10577_v51  ;;  %v10698_v51 = vor.u32 %v10697_v52, %v10694_v21  ;;  %v10579_v43 = vadd.f32 %v19420_v32, %v10303_v38  ;;  %v11142_v59 = vld [vmem:[%s19818_s10 + $0x98] sm:$0xff] }
 0x953   : > { %v10305_v21 = vadd.f32 %v19471_v13, %v9756_v9  ;;  %v9757_v13 = vadd.f32 %v19487_v3, %v18995_v23 }
 0x954   : > { %v11178_v10 = vmul.f32 %v11140_v50, %v11102_v35  ;;  %v10946_v36 = vmul.f32 %v19143_v8, %v10903_v22  ;;  %13029 = vmatmul.msk.bf16.gmra.mxu1 %vm82_vm6, %v20266_v26  ;;  %v10248_v14 = vpop.f32.mrf.mxu3 }
 0x955   : > { %v10581_v5 = vadd.f32 %v19478_v48, %v10305_v21  ;;  %v11031_v48 = vld [vmem:[%s19817_s11 + $0xc0] sm:$0xff] }
 0x956   : > { %11216 = vst.msk [vmem:[%s19817_s11 + $0x98] sm:$0xff] %vm82_vm6, %v11178_v10  ;;  %v11254_v29 = vpack.c.bf16 %v11178_v10, %v11178_v10  ;;  %v10989_v47 = vadd.f32 %v19147_v55, %v10946_v36  ;;  %v20267_v10 = vld [vmem:[#allocation28_spill] sm:$0xff] }
 0x957   : > { %v10699_v36 = vsel %vm1115_vm1, %v20267_v10, %v10698_v51  ;;  %v9758_v10 = vadd.f32 %v19513_v20, %v19005_v7 }
 0x958   : > { %11292 = vst.msk [vmem:[#allocation2 + $0x4c] sm:$0xf] %vm39_vm5, %v11254_v29  ;;  %v11065_v56 = vadd.f32 %v11027_v46, %v10989_v47  ;;  %v11029_v46 = vld [vmem:[%s19817_s11 + $0xb0] sm:$0xff]  ;;  %v9701_v29 = vpop.f32.mrf.mxu2  ;;  %v10580_v47 = vadd.f32 %v19446_v19, %v10304_v39  ;;  %v11030_v19 = vld [vmem:[%s19817_s11 + $0xb8] sm:$0xff] }
 0x959   : > { %v10837_v6 = vpop.f32.mrf.mxu1 }
 0x95a   : > { %v11103_v15 = vmax.f32 %v11065_v56, 0.0  ;;  %v10904_v16 = vadd.f32 %v10837_v6, %v10578_v40 }
 0x95c   : > { %v11179_v24 = vmul.f32 %v11141_v17, %v11103_v15  ;;  %v10947_v49 = vmul.f32 %v19143_v8, %v10904_v16  ;;  %v10250_v6 = vpop.f32.mrf.mxu3  ;;  %v10526_v16 = vpop.f32.mrf.mxu0 }
 0x95e   : > { %11217 = vst.msk [vmem:[%s19817_s11 + $0xa0] sm:$0xff] %vm82_vm6, %v11179_v24  ;;  %v11255_v54 = vpack.c.bf16 %v11179_v24, %v11179_v24  ;;  %v10990_v34 = vadd.f32 %v19147_v55, %v10947_v49 }
 0x960   : > { %11293 = vst.msk [vmem:[#allocation2 + $0x50] sm:$0xf] %vm39_vm5, %v11255_v54  ;;  %v11066_v50 = vadd.f32 %v11028_v4, %v10990_v34  ;;  %v9704_v49 = vpop.f32.mrf.mxu2  ;;  %v11144_v4 = vld [vmem:[%s19818_s10 + $0xa8] sm:$0xff] }
 0x961   : > { %v10840_v0 = vpop.f32.mrf.mxu1 }
 0x962   : > { %v11104_v35 = vmax.f32 %v11066_v50, 0.0  ;;  %v10905_v22 = vadd.f32 %v10840_v0, %v10579_v43  ;;  %v10306_v50 = vadd.f32 %v19502_v27, %v9757_v13 }
 0x964   : > { %v11180_v26 = vmul.f32 %v11142_v59, %v11104_v35  ;;  %v10948_v32 = vmul.f32 %v19143_v8, %v10905_v22  ;;  %13030 = vmatmul.msk.bf16.gmra.mxu1 %vm82_vm6, %v10699_v36  ;;  %v10253_v59 = vpop.f32.mrf.mxu3  ;;  %v10529_v3 = vpop.f32.mrf.mxu0  ;;  %v10582_v63 = vadd.f32 %v19505_v57, %v10306_v50  ;;  %v11145_v22 = vld [vmem:[%s19818_s10 + $0xb0] sm:$0xff]  ;;  %v11032_v57 = vld [vmem:[%s19817_s11 + $0xc8] sm:$0xff] }
 0x966   : > { %11218 = vst.msk [vmem:[%s19817_s11 + $0xa8] sm:$0xff] %vm82_vm6, %v11180_v26  ;;  %v11256_v25 = vpack.c.bf16 %v11180_v26, %v11180_v26  ;;  %v10991_v1 = vadd.f32 %v19147_v55, %v10948_v32 }
 0x968   : > { %11294 = vst.msk [vmem:[#allocation2 + $0x54] sm:$0xf] %vm39_vm5, %v11256_v25  ;;  %v11067_v31 = vadd.f32 %v11029_v46, %v10991_v1  ;;  %v9706_v32 = vpop.f32.mrf.mxu2  ;;  %v10307_v25 = vadd.f32 %v10248_v14, %v9758_v10  ;;  %v9759_v14 = vadd.f32 %v9701_v29, %v19019_v2 }
 0x969   : > { %v10842_v40 = vpop.f32.mrf.mxu1 }
 0x96a   : > { %v11105_v56 = vmax.f32 %v11067_v31, 0.0  ;;  %v10906_v17 = vadd.f32 %v10842_v40, %v10580_v47  ;;  %v10583_v7 = vadd.f32 %v10524_v41, %v10307_v25  ;;  %v11146_v40 = vld [vmem:[%s19818_s10 + $0xb8] sm:$0xff]  ;;  %v11033_v41 = vld [vmem:[%s19817_s11 + $0xd0] sm:$0xff]  ;;  %v10308_v21 = vadd.f32 %v10250_v6, %v9759_v14 }
 0x96c   : > { %v11181_v11 = vmul.f32 %v11143_v28, %v11105_v56  ;;  %v10949_v15 = vmul.f32 %v19143_v8, %v10906_v17  ;;  %v10255_v20 = vpop.f32.mrf.mxu3  ;;  %v10531_v28 = vpop.f32.mrf.mxu0  ;;  %v10584_v2 = vadd.f32 %v10526_v16, %v10308_v21  ;;  %v11034_v16 = vld [vmem:[%s19817_s11 + $0xd8] sm:$0xff] }
 0x96e   : > { %11219 = vst.msk [vmem:[%s19817_s11 + $0xb0] sm:$0xff] %vm82_vm6, %v11181_v11  ;;  %v11257_v52 = vpack.c.bf16 %v11181_v11, %v11181_v11  ;;  %v10992_v33 = vadd.f32 %v19147_v55, %v10949_v15 }
 0x970   : > { %11295 = vst.msk [vmem:[#allocation2 + $0x58] sm:$0xf] %vm39_vm5, %v11257_v52  ;;  %v11068_v24 = vadd.f32 %v11030_v19, %v10992_v33  ;;  %v9709_v19 = vpop.f32.mrf.mxu2 }
 0x971   : > { %v10845_v38 = vpop.f32.mrf.mxu1 }
 0x972   : > { %v11106_v54 = vmax.f32 %v11068_v24, 0.0  ;;  %v10907_v34 = vadd.f32 %v10845_v38, %v10581_v5  ;;  %v11147_v5 = vld [vmem:[%s19818_s10 + $0xc0] sm:$0xff] }
 0x974   : > { %v11182_v51 = vmul.f32 %v11144_v4, %v11106_v54  ;;  %v10950_v43 = vmul.f32 %v19143_v8, %v10907_v34  ;;  %v9760_v4 = vadd.f32 %v9704_v49, %v19029_v60  ;;  %v10258_v6 = vpop.f32.mrf.mxu3  ;;  %v10534_v54 = vpop.f32.mrf.mxu0 }
 0x976   : > { %11220 = vst.msk [vmem:[%s19817_s11 + $0xb8] sm:$0xff] %vm82_vm6, %v11182_v51  ;;  %v11258_v0 = vpack.c.bf16 %v11182_v51, %v11182_v51  ;;  %v10993_v23 = vadd.f32 %v19147_v55, %v10950_v43  ;;  %v10309_v43 = vadd.f32 %v10253_v59, %v9760_v4  ;;  %v9761_v59 = vadd.f32 %v9706_v32, %v19043_v12  ;;  %v11037_v4 = vld [vmem:[%s19817_s11 + $0xf0] sm:$0xff] }
 0x978   : > { %11296 = vst.msk [vmem:[#allocation2 + $0x5c] sm:$0xf] %vm39_vm5, %v11258_v0  ;;  %v11069_v35 = vadd.f32 %v11031_v48, %v10993_v23  ;;  %v9711_v49 = vpop.f32.mrf.mxu2  ;;  %v10585_v50 = vadd.f32 %v10529_v3, %v10309_v43  ;;  %v11148_v23 = vld [vmem:[%s19818_s10 + $0xc8] sm:$0xff]  ;;  %v11035_v3 = vld [vmem:[%s19817_s11 + $0xe0] sm:$0xff] }
 0x979   : > { %v10847_v27 = vpop.f32.mrf.mxu1 }
 0x97a   : > { %v11107_v36 = vmax.f32 %v11069_v35, 0.0  ;;  %v10908_v26 = vadd.f32 %v10847_v27, %v10582_v63 }
 0x97c   : > { %v11183_v46 = vmul.f32 %v11145_v22, %v11107_v36  ;;  %v10951_v39 = vmul.f32 %v19143_v8, %v10908_v26  ;;  %v10260_v27 = vpop.f32.mrf.mxu3  ;;  %v10536_v26 = vpop.f32.mrf.mxu0 }
 0x97e   : > { %11221 = vst.msk [vmem:[%s19817_s11 + $0xc0] sm:$0xff] %vm82_vm6, %v11183_v46  ;;  %v11259_v1 = vpack.c.bf16 %v11183_v46, %v11183_v46  ;;  %v10994_v47 = vadd.f32 %v19147_v55, %v10951_v39  ;;  %v10310_v46 = vadd.f32 %v10255_v20, %v9761_v59 }
 0x980   : > { %11297 = vst.msk [vmem:[#allocation2 + $0x60] sm:$0xf] %vm39_vm5, %v11259_v1  ;;  %v11070_v31 = vadd.f32 %v11032_v57, %v10994_v47  ;;  %v10586_v32 = vadd.f32 %v10531_v28, %v10310_v46  ;;  %v9714_v25 = vpop.f32.mrf.mxu2  ;;  %v11149_v1 = vld [vmem:[%s19818_s10 + $0xd0] sm:$0xff]  ;;  %v11036_v28 = vld [vmem:[%s19817_s11 + $0xe8] sm:$0xff] }
 0x981   : > { %v10850_v9 = vpop.f32.mrf.mxu1 }
 0x982   : > { %v11108_v56 = vmax.f32 %v11070_v31, 0.0  ;;  %v10909_v17 = vadd.f32 %v10850_v9, %v10583_v7  ;;  %v9762_v7 = vadd.f32 %v9709_v19, %v19053_v61 }
 0x984   : > { %v11184_v11 = vmul.f32 %v11146_v40, %v11108_v56  ;;  %v10952_v15 = vmul.f32 %v19143_v8, %v10909_v17  ;;  %v10311_v14 = vadd.f32 %v10258_v6, %v9762_v7  ;;  %v10263_v56 = vpop.f32.mrf.mxu3  ;;  %v10539_v61 = vpop.f32.mrf.mxu0 }
 0x986   : > { %11222 = vst.msk [vmem:[%s19817_s11 + $0xc8] sm:$0xff] %vm82_vm6, %v11184_v11  ;;  %v11260_v52 = vpack.c.bf16 %v11184_v11, %v11184_v11  ;;  %v10995_v33 = vadd.f32 %v19147_v55, %v10952_v15  ;;  %v10587_v15 = vadd.f32 %v10534_v54, %v10311_v14 }
 0x988   : > { %11298 = vst.msk [vmem:[#allocation2 + $0x64] sm:$0xf] %vm39_vm5, %v11260_v52  ;;  %v11071_v29 = vadd.f32 %v11033_v41, %v10995_v33  ;;  %v11150_v41 = vld [vmem:[%s19818_s10 + $0xd8] sm:$0xff]  ;;  %v9763_v52 = vadd.f32 %v9711_v49, %v19067_v42 }
 0x989   : > { %v10852_v24 = vpop.f32.mrf.mxu1 }
 0x98a   : > { %v11109_v38 = vmax.f32 %v11071_v29, 0.0  ;;  %v10910_v13 = vadd.f32 %v10852_v24, %v10584_v2  ;;  %v9716_v29 = vpop.f32.mrf.mxu2  ;;  %v10312_v6 = vadd.f32 %v10260_v27, %v9763_v52 }
 0x98c   : > { %v11185_v34 = vmul.f32 %v11147_v5, %v11109_v38  ;;  %v10953_v51 = vmul.f32 %v19143_v8, %v10910_v13  ;;  %v10588_v42 = vadd.f32 %v10536_v26, %v10312_v6  ;;  %v10265_v54 = vpop.f32.mrf.mxu3  ;;  %v9765_v26 = vadd.f32 %v9716_v29, %v19090_v18 }
 0x98e   : > { %11223 = vst.msk [vmem:[%s19817_s11 + $0xd0] sm:$0xff] %vm82_vm6, %v11185_v34  ;;  %v11261_v48 = vpack.c.bf16 %v11185_v34, %v11185_v34  ;;  %v10996_v60 = vadd.f32 %v19147_v55, %v10953_v51  ;;  %v10541_v51 = vpop.f32.mrf.mxu0 }
 0x990   : > { %11299 = vst.msk [vmem:[#allocation2 + $0x68] sm:$0xf] %vm39_vm5, %v11261_v48  ;;  %v11072_v0 = vadd.f32 %v11034_v16, %v10996_v60  ;;  %v11151_v16 = vld [vmem:[%s19818_s10 + $0xe0] sm:$0xff]  ;;  %v9764_v48 = vadd.f32 %v9714_v25, %v19077_v62 }
 0x991   : > { %v10855_v63 = vpop.f32.mrf.mxu1  ;;  %v11039_v25 = vld [vmem:[%s19817_s11 + $0x100] sm:$0xff] }
 0x992   : > { %v11110_v35 = vmax.f32 %v11072_v0, 0.0  ;;  %v10911_v22 = vadd.f32 %v10855_v63, %v10585_v50  ;;  %v11038_v63 = vld [vmem:[%s19817_s11 + $0xf8] sm:$0xff]  ;;  %v10313_v59 = vadd.f32 %v10263_v56, %v9764_v48 }
 0x994   : > { %v11186_v10 = vmul.f32 %v11148_v23, %v11110_v35  ;;  %v10954_v36 = vmul.f32 %v19143_v8, %v10911_v22  ;;  %v9719_v23 = vpop.f32.mrf.mxu2  ;;  %v10589_v62 = vadd.f32 %v10539_v61, %v10313_v59 }
 0x996   : > { %11224 = vst.msk [vmem:[%s19817_s11 + $0xd8] sm:$0xff] %vm82_vm6, %v11186_v10  ;;  %v11262_v39 = vpack.c.bf16 %v11186_v10, %v11186_v10  ;;  %v10997_v12 = vadd.f32 %v19147_v55, %v10954_v36  ;;  %v11152_v10 = vld [vmem:[%s19818_s10 + $0xe8] sm:$0xff] }
 0x998   : > { %11300 = vst.msk [vmem:[#allocation2 + $0x6c] sm:$0xf] %vm39_vm5, %v11262_v39  ;;  %v11073_v57 = vadd.f32 %v11035_v3, %v10997_v12  ;;  %v10268_v3 = vpop.f32.mrf.mxu3  ;;  %v10544_v12 = vpop.f32.mrf.mxu0 }
 0x999   : > { %v10857_v47 = vpop.f32.mrf.mxu1 }
 0x99a   : > { %v11111_v20 = vmax.f32 %v11073_v57, 0.0  ;;  %v10912_v31 = vadd.f32 %v10857_v47, %v10586_v32 }
 0x99c   : > { %v11187_v40 = vmul.f32 %v11149_v1, %v11111_v20  ;;  %v10955_v9 = vmul.f32 %v19143_v8, %v10912_v31  ;;  %v10314_v1 = vadd.f32 %v10265_v54, %v9765_v26  ;;  %v9721_v7 = vpop.f32.mrf.mxu2 }
 0x99e   : > { %11225 = vst.msk [vmem:[%s19817_s11 + $0xe0] sm:$0xff] %vm82_vm6, %v11187_v40  ;;  %v11263_v17 = vpack.c.bf16 %v11187_v40, %v11187_v40  ;;  %v10998_v11 = vadd.f32 %v19147_v55, %v10955_v9  ;;  %v10590_v20 = vadd.f32 %v10541_v51, %v10314_v1  ;;  %v11153_v40 = vld [vmem:[%s19818_s10 + $0xf0] sm:$0xff] }
 0x9a0   : > { %11301 = vst.msk [vmem:[#allocation2 + $0x70] sm:$0xf] %vm39_vm5, %v11263_v17  ;;  %v11074_v19 = vadd.f32 %v11036_v28, %v10998_v11  ;;  %v9766_v28 = vadd.f32 %v9719_v23, %v19097_v44  ;;  %v10270_v17 = vpop.f32.mrf.mxu3  ;;  %v19706_v44 = vld [vmem:[%s18989_s26] ss:$0 sm:$0xff] }
 0x9a1   : > { %v10860_v21 = vpop.f32.mrf.mxu1 }
 0x9a2   : > { %v11112_v33 = vmax.f32 %v11074_v19, 0.0  ;;  %v10913_v2 = vadd.f32 %v10860_v21, %v10587_v15  ;;  %v11040_v15 = vld [vmem:[%s19817_s11 + $0x108] sm:$0xff]  ;;  %v10315_v19 = vadd.f32 %v10268_v3, %v9766_v28 }
 0x9a4   : > { %v11188_v5 = vmul.f32 %v11150_v41, %v11112_v33  ;;  %v10956_v24 = vmul.f32 %v19143_v8, %v10913_v2  ;;  %v10591_v52 = vadd.f32 %v10544_v12, %v10315_v19  ;;  %v9724_v33 = vpop.f32.mrf.mxu2  ;;  %v11154_v2 = vld [vmem:[%s19818_s10 + $0xf8] sm:$0xff]  ;;  %v11044_v19 = vld [vmem:[%s19817_s11 + $0x128] sm:$0xff] }
 0x9a6   : > { %11226 = vst.msk [vmem:[%s19817_s11 + $0xe8] sm:$0xff] %vm82_vm6, %v11188_v5  ;;  %v11264_v38 = vpack.c.bf16 %v11188_v5, %v11188_v5  ;;  %v10999_v13 = vadd.f32 %v19147_v55, %v10956_v24  ;;  %v9767_v5 = vadd.f32 %v9721_v7, %v19108_v45 }
 0x9a8   : > { %11302 = vst.msk [vmem:[#allocation2 + $0x74] sm:$0xf] %vm39_vm5, %v11264_v38  ;;  %v11075_v34 = vadd.f32 %v11037_v4, %v10999_v13  ;;  %v19715_v38 = vld [vmem:[%s18977_s22] ss:$0 sm:$0xff]  ;;  %v10316_v54 = vadd.f32 %v10270_v17, %v9767_v5 }
 0x9a9   : > { %v10862_v43 = vpop.f32.mrf.mxu1 }
 0x9aa   : > { %v11113_v60 = vmax.f32 %v11075_v34, 0.0  ;;  %v10914_v49 = vadd.f32 %v10862_v43, %v10588_v42  ;;  %v11041_v42 = vld [vmem:[%s19817_s11 + $0x110] sm:$0xff]  ;;  %v10273_v34 = vpop.f32.mrf.mxu3 }
 0x9ac   : > { %v11189_v50 = vmul.f32 %v11151_v16, %v11113_v60  ;;  %v10957_v0 = vmul.f32 %v19143_v8, %v10914_v49  ;;  %v11155_v60 = vld [vmem:[%s19818_s10 + $0x100] sm:$0xff] }
 0x9ae   : > { %11227 = vst.msk [vmem:[%s19817_s11 + $0xf0] sm:$0xff] %vm82_vm6, %v11189_v50  ;;  %v11265_v35 = vpack.c.bf16 %v11189_v50, %v11189_v50  ;;  %v11000_v22 = vadd.f32 %v19147_v55, %v10957_v0  ;;  %v9768_v50 = vadd.f32 %v9724_v33, %v19115_v37 }
 0x9b0   : > { %11303 = vst.msk [vmem:[#allocation2 + $0x78] sm:$0xf] %vm39_vm5, %v11265_v35  ;;  %v11076_v27 = vadd.f32 %v11038_v63, %v11000_v22  ;;  %v9726_v63 = vpop.f32.mrf.mxu2  ;;  %v11042_v22 = vld [vmem:[%s19817_s11 + $0x118] sm:$0xff] }
 0x9b1   : > { %v10865_v36 = vpop.f32.mrf.mxu1  ;;  %v9769_v12 = vadd.f32 %v9726_v63, %v19126_v30  ;;  %v11046_v63 = vld [vmem:[%s19817_s11 + $0x138] sm:$0xff] }
 0x9b2   : > { %v11114_v46 = vmax.f32 %v11076_v27, 0.0  ;;  %v10915_v39 = vadd.f32 %v10865_v36, %v10589_v62  ;;  %v10317_v62 = vadd.f32 %v10273_v34, %v9768_v50  ;;  %v10275_v37 = vpop.f32.mrf.mxu3  ;;  %v11045_v34 = vld [vmem:[%s19817_s11 + $0x130] sm:$0xff] }
 0x9b3   : > { %v10318_v7 = vadd.f32 %v10275_v37, %v9769_v12 }
 0x9b4   : > { %v11190_v32 = vmul.f32 %v11152_v10, %v11114_v46  ;;  %v10958_v57 = vmul.f32 %v19143_v8, %v10915_v39  ;;  %v11156_v46 = vld [vmem:[%s19818_s10 + $0x108] sm:$0xff] }
 0x9b6   : > { %11228 = vst.msk [vmem:[%s19817_s11 + $0xf8] sm:$0xff] %vm82_vm6, %v11190_v32  ;;  %v11266_v47 = vpack.c.bf16 %v11190_v32, %v11190_v32  ;;  %v11001_v18 = vadd.f32 %v19147_v55, %v10958_v57  ;;  %v10546_v55 = vpop.f32.mrf.mxu0 }
 0x9b7   : > { %v10592_v43 = vadd.f32 %v10546_v55, %v10316_v54 }
 0x9b8   : > { %11304 = vst.msk [vmem:[#allocation2 + $0x7c] sm:$0xf] %vm39_vm5, %v11266_v47  ;;  %v11077_v31 = vadd.f32 %v11039_v25, %v11001_v18  ;;  %v9729_v47 = vpop.f32.mrf.mxu2  ;;  %v11043_v18 = vld [vmem:[%s19817_s11 + $0x120] sm:$0xff] }
 0x9b9   : > { %v10867_v9 = vpop.f32.mrf.mxu1 }
 0x9ba   : > { %v11115_v14 = vmax.f32 %v11077_v31, 0.0  ;;  %v10916_v56 = vadd.f32 %v10867_v9, %v10590_v20  ;;  %v11157_v9 = vld [vmem:[%s19818_s10 + $0x110] sm:$0xff] }
 0x9bc   : > { %v11191_v11 = vmul.f32 %v11153_v40, %v11115_v14  ;;  %v10959_v61 = vmul.f32 %v19143_v8, %v10916_v56  ;;  %v9770_v14 = vadd.f32 %v9729_v47, %v19129_v53 }
 0x9be   : > { %11229 = vst.msk [vmem:[%s19817_s11 + $0x100] sm:$0xff] %vm82_vm6, %v11191_v11  ;;  %v11267_v41 = vpack.c.bf16 %v11191_v11, %v11191_v11  ;;  %v11002_v21 = vadd.f32 %v19706_v44, %v10959_v61  ;;  %v10549_v16 = vpop.f32.mrf.mxu0  ;;  %v10278_v11 = vpop.f32.mrf.mxu3 }
 0x9bf   : > { %v10593_v36 = vadd.f32 %v10549_v16, %v10317_v62  ;;  %v11160_v62 = vld [vmem:[%s19818_s10 + $0x128] sm:$0xff] }
 0x9c0   : > { %11305 = vst.msk [vmem:[#allocation2 + $0x80] sm:$0xf] %vm39_vm5, %v11267_v41  ;;  %v11078_v8 = vadd.f32 %v11040_v15, %v11002_v21  ;;  %v10319_v41 = vadd.f32 %v10278_v11, %v9770_v14 }
 0x9c1   : > { %v10870_v29 = vpop.f32.mrf.mxu1 }
 0x9c2   : > { %v11116_v24 = vmax.f32 %v11078_v8, 0.0  ;;  %v10917_v4 = vadd.f32 %v10870_v29, %v10591_v52  ;;  %v9731_v52 = vpop.f32.mrf.mxu2 }
 0x9c3   : > { %v9771_v5 = vadd.f32 %v9731_v52, %v19140_v58 }
 0x9c4   : > { %v11192_v6 = vmul.f32 %v11154_v2, %v11116_v24  ;;  %v10960_v13 = vmul.f32 %v19715_v38, %v10917_v4  ;;  %v11158_v2 = vld [vmem:[%s19818_s10 + $0x118] sm:$0xff] }
 0x9c6   : > { %11230 = vst.msk [vmem:[%s19817_s11 + $0x108] sm:$0xff] %vm82_vm6, %v11192_v6  ;;  %v11268_v51 = vpack.c.bf16 %v11192_v6, %v11192_v6  ;;  %v11003_v45 = vadd.f32 %v19706_v44, %v10960_v13  ;;  %v10551_v3 = vpop.f32.mrf.mxu0 }
 0x9c7   : > { %v10594_v30 = vadd.f32 %v10551_v3, %v10318_v7 }
 0x9c8   : > { %11306 = vst.msk [vmem:[#allocation2 + $0x84] sm:$0xf] %vm39_vm5, %v11268_v51  ;;  %v11079_v48 = vadd.f32 %v11041_v42, %v11003_v45  ;;  %v10280_v42 = vpop.f32.mrf.mxu3 }
 0x9c9   : > { %v10872_v49 = vpop.f32.mrf.mxu1  ;;  %v10320_v51 = vadd.f32 %v10280_v42, %v9771_v5 }
 0x9ca   : > { %v11117_v0 = vmax.f32 %v11079_v48, 0.0  ;;  %v10918_v23 = vadd.f32 %v10872_v49, %v10592_v43  ;;  %v11159_v48 = vld [vmem:[%s19818_s10 + $0x120] sm:$0xff] }
 0x9cc   : > { %v11193_v59 = vmul.f32 %v11155_v60, %v11117_v0  ;;  %v10961_v35 = vmul.f32 %v19715_v38, %v10918_v23 }
 0x9ce   : > { %11231 = vst.msk [vmem:[%s19817_s11 + $0x110] sm:$0xff] %vm82_vm6, %v11193_v59  ;;  %v11269_v27 = vpack.c.bf16 %v11193_v59, %v11193_v59  ;;  %v11004_v10 = vadd.f32 %v19706_v44, %v10961_v35  ;;  %v10554_v61 = vpop.f32.mrf.mxu0 }
 0x9cf   : > { %v10595_v8 = vadd.f32 %v10554_v61, %v10319_v41 }
 0x9d0   : > { %11307 = vst.msk [vmem:[#allocation2 + $0x88] sm:$0xf] %vm39_vm5, %v11269_v27  ;;  %v11080_v26 = vadd.f32 %v11042_v22, %v11004_v10 }
 0x9d1   : > { %v10875_v39 = vpop.f32.mrf.mxu1 }
 0x9d2   : > { %v11118_v32 = vmax.f32 %v11080_v26, 0.0  ;;  %v10919_v57 = vadd.f32 %v10875_v39, %v10593_v36 }
 0x9d4   : > { %v11194_v25 = vmul.f32 %v11156_v46, %v11118_v32  ;;  %v10962_v1 = vmul.f32 %v19715_v38, %v10919_v57 }
 0x9d6   : > { %11232 = vst.msk [vmem:[%s19817_s11 + $0x118] sm:$0xff] %vm82_vm6, %v11194_v25  ;;  %v11270_v20 = vpack.c.bf16 %v11194_v25, %v11194_v25  ;;  %v11005_v31 = vadd.f32 %v19706_v44, %v10962_v1  ;;  %v10556_v54 = vpop.f32.mrf.mxu0 }
 0x9d7   : > { %v10596_v16 = vadd.f32 %v10556_v54, %v10320_v51 }
 0x9d8   : > { %11308 = vst.msk [vmem:[#allocation2 + $0x8c] sm:$0xf] %vm39_vm5, %v11270_v20  ;;  %v11081_v40 = vadd.f32 %v11043_v18, %v11005_v31 }
 0x9d9   : > { %v10877_v28 = vpop.f32.mrf.mxu1 }
 0x9da   : > { %v11119_v56 = vmax.f32 %v11081_v40, 0.0  ;;  %v10920_v17 = vadd.f32 %v10877_v28, %v10594_v30 }
 0x9dc   : > { %v11195_v55 = vmul.f32 %v11157_v9, %v11119_v56  ;;  %v10963_v15 = vmul.f32 %v19715_v38, %v10920_v17 }
 0x9de   : > { %11233 = vst.msk [vmem:[%s19817_s11 + $0x120] sm:$0xff] %vm82_vm6, %v11195_v55  ;;  %v11271_v21 = vpack.c.bf16 %v11195_v55, %v11195_v55  ;;  %v11006_v53 = vadd.f32 %v19706_v44, %v10963_v15 }
 0x9e0   : > { %11309 = vst.msk [vmem:[#allocation2 + $0x90] sm:$0xf] %vm39_vm5, %v11271_v21  ;;  %v11082_v33 = vadd.f32 %v11044_v19, %v11006_v53 }
 0x9e1   : > { %v10880_v29 = vpop.f32.mrf.mxu1 }
 0x9e2   : > { %v11120_v24 = vmax.f32 %v11082_v33, 0.0  ;;  %v10921_v4 = vadd.f32 %v10880_v29, %v10595_v8 }
 0x9e4   : > { %v11196_v6 = vmul.f32 %v11158_v2, %v11120_v24  ;;  %v10964_v13 = vmul.f32 %v19715_v38, %v10921_v4 }
 0x9e6   : > { %11234 = vst.msk [vmem:[%s19817_s11 + $0x128] sm:$0xff] %vm82_vm6, %v11196_v6  ;;  %v11272_v45 = vpack.c.bf16 %v11196_v6, %v11196_v6  ;;  %v11007_v58 = vadd.f32 %v19706_v44, %v10964_v13 }
 0x9e8   : > { %11310 = vst.msk [vmem:[#allocation2 + $0x94] sm:$0xf] %vm39_vm5, %v11272_v45  ;;  %v11083_v43 = vadd.f32 %v11045_v34, %v11007_v58 }
 0x9e9   : > { %v10882_v60 = vpop.f32.mrf.mxu1 }
 0x9ea   : > { %v11121_v49 = vmax.f32 %v11083_v43, 0.0  ;;  %v10922_v50 = vadd.f32 %v10882_v60, %v10596_v16 }
 0x9ec   : > { %v11197_v0 = vmul.f32 %v11159_v48, %v11121_v49  ;;  %v10965_v23 = vmul.f32 %v19715_v38, %v10922_v50 }
 0x9ee   : > { %11235 = vst.msk [vmem:[%s19817_s11 + $0x130] sm:$0xff] %vm82_vm6, %v11197_v0  ;;  %v11273_v59 = vpack.c.bf16 %v11197_v0, %v11197_v0  ;;  %v11008_v35 = vadd.f32 %v19706_v44, %v10965_v23 }
 0x9f0   : > { %11311 = vst.msk [vmem:[#allocation2 + $0x98] sm:$0xf] %vm39_vm5, %v11273_v59  ;;  %v11084_v22 = vadd.f32 %v11046_v63, %v11008_v35 }
 0x9f2   : > { %v11122_v38 = vmax.f32 %v11084_v22, 0.0 }
 0x9f4   : > { %v11198_v27 = vmul.f32 %v11160_v62, %v11122_v38  ;;  %3809 = sbr.rel (!%p3807_p0) target bundleno = 862 (0x35e), region = 101 }
 0x9f6   : > { %11236 = vst.msk [vmem:[%s19817_s11 + $0x138] sm:$0xff] %vm82_vm6, %v11198_v27  ;;  %v11274_v10 = vpack.c.bf16 %v11198_v27, %v11198_v27 }
 0x9f8   : > { %11312 = vst.msk [vmem:[#allocation2 + $0x9c] sm:$0xf] %vm39_vm5, %v11274_v10 }

</bundles_post_ra>
